<compile_context>
chip_gen: v6e
topology: v6e:2x2x1
jax: 0.10.0
libtpu: 0.0.40
codegen_flags: <defaults>
</compile_context>

<pallas_src>
import functools

import jax
import jax.numpy as jnp
from jax import lax
from jax.experimental import pallas as pl
from jax.experimental.pallas import tpu as pltpu

K = 7          # kernel size (7x7)
PAD = 3        # padding = 3 for kernel_size 7


def _spatial_attention_kernel(w_ref, x_ref, o_ref, sum_ref, max_ref, pad_ref,
                              *, C, H, W):
    # w_ref   : SMEM (2*K*K,) f32          flat conv weights (in-ch, i, j)
    # x_ref   : VMEM (NB, CT, H*W)         lane-dense slab of x (native dtype)
    # o_ref   : VMEM (NB, 1, H*W)          lane-dense output attention map
    # sum_ref : VMEM (NB, H*W) f32         running channel sum
    # max_ref : VMEM (NB, H*W) f32         running channel max
    # pad_ref : VMEM (NB, 2, H+2P, W+2P)   zero-padded [avg; max] planes
    c_idx = pl.program_id(1)
    n_c = pl.num_programs(1)
    NB = sum_ref.shape[0]
    Wp = W + 2 * PAD

    @pl.when(c_idx == 0)
    def _init():
        sum_ref[...] = jnp.zeros_like(sum_ref)
        max_ref[...] = jnp.full_like(max_ref, -jnp.inf)

    # --- channel reduction on the lane-dense slab (accumulate in f32) ------
    xb = x_ref[...].astype(jnp.float32)                    # (NB, CT, HW)
    sum_ref[...] = sum_ref[...] + jnp.sum(xb, axis=1)
    max_ref[...] = jnp.maximum(max_ref[...], jnp.max(xb, axis=1))

    # --- finalize: mean, pad, 7x7 conv, sigmoid (once per batch block) -----
    @pl.when(c_idx == n_c - 1)
    def _finalize():
        avg = sum_ref[...] * (1.0 / C)                     # (NB, HW) f32
        mx = max_ref[...]                                  # (NB, HW) f32

        # Interior of the padded planes, written row-by-row from the
        # lane-dense reduction results (static slices only -> no reshape).
        for h in range(H):
            pad_ref[:, 0, PAD + h, PAD:PAD + W] = avg[:, h * W:(h + 1) * W]
            pad_ref[:, 1, PAD + h, PAD:PAD + W] = mx[:, h * W:(h + 1) * W]

        # Zero only the halo border (interior is fully overwritten above).
        pad_ref[:, :, :PAD, :] = jnp.zeros((NB, 2, PAD, Wp), jnp.float32)
        pad_ref[:, :, PAD + H:, :] = jnp.zeros((NB, 2, PAD, Wp), jnp.float32)
        pad_ref[:, :, PAD:PAD + H, :PAD] = jnp.zeros((NB, 2, H, PAD), jnp.float32)
        pad_ref[:, :, PAD:PAD + H, PAD + W:] = jnp.zeros((NB, 2, H, PAD), jnp.float32)

        # 7x7 conv, 2 input channels -> 1 output, stride 1, fully unrolled
        # shift-and-MAC on the VPU.  The lane shift (j) is hoisted out of the
        # i-loop: 7 lane-sliced loads total; row windows are sublane offsets.
        acc = jnp.zeros((NB, H, W), jnp.float32)
        for j in range(K):
            shifted = pad_ref[:, :, :, j:j + W]            # (NB, 2, Hp, W)
            for i in range(K):
                win = shifted[:, :, i:i + H, :]            # (NB, 2, H, W)
                w0 = w_ref[0 * K * K + i * K + j]
                w1 = w_ref[1 * K * K + i * K + j]
                acc = acc + w0 * win[:, 0] + w1 * win[:, 1]

        out = jax.nn.sigmoid(acc).astype(o_ref.dtype)      # (NB, H, W)
        # Store lane-dense: row h goes to lanes [h*W, (h+1)*W).
        for h in range(H):
            o_ref[:, 0, h * W:(h + 1) * W] = out[:, h, :]


def _largest_divisor_at_most(n, cap):
    cap = max(1, min(n, cap))
    for d in range(cap, 0, -1):
        if n % d == 0:
            return d
    return 1


def _pick_channel_tile(C, per_channel_bytes, budget_bytes):
    """Divisor of C whose x block fits budget_bytes; prefers multiples of 8
    (BlockSpec sublane rule), falls back to full C."""
    if C * per_channel_bytes <= budget_bytes:
        return C
    cap = max(8, int(budget_bytes // max(per_channel_bytes, 1)) // 8 * 8)
    d = min(cap, (C // 8) * 8)
    while d >= 8:
        if C % d == 0:
            return d
        d -= 8
    return C


def spatial_attention(x, weight):
    """x: (N, C, H, W), weight: (1, 2, K, K) -> (N, 1, H, W) in x.dtype."""
    N, C, H, W = x.shape
    HW = H * W
    Hp, Wp = H + 2 * PAD, W + 2 * PAD

    # Lane-dense layout; keep x in its native dtype (upcast inside kernel).
    x_flat = x.reshape(N, C, HW)
    w_flat = weight.reshape(-1).astype(jnp.float32)        # (2*K*K,) -> SMEM

    # Block sizing: several batch elements per step for small spatial maps
    # (amortizes ~0.35us per-step overhead), and a channel tile that keeps the
    # double-buffered x slab well under the v7x VMEM budget.
    itemsize = jnp.dtype(x.dtype).itemsize
    NB = _largest_divisor_at_most(N, max(1, 16384 // max(HW, 1)))
    per_channel_bytes = NB * HW * itemsize
    CT = _pick_channel_tile(C, per_channel_bytes, 8 * 1024 * 1024)

    grid = (N // NB, C // CT)
    kernel = functools.partial(_spatial_attention_kernel, C=C, H=H, W=W)

    out_flat = pl.pallas_call(
        kernel,
        out_shape=jax.ShapeDtypeStruct((N, 1, HW), x.dtype),
        grid=grid,
        in_specs=[
            pl.BlockSpec(memory_space=pltpu.MemorySpace.SMEM),      # weights
            pl.BlockSpec((NB, CT, HW), lambda n, c: (n, c, 0)),     # x slab
        ],
        out_specs=pl.BlockSpec((NB, 1, HW), lambda n, c: (n, 0, 0)),
        scratch_shapes=[
            pltpu.VMEM((NB, HW), jnp.float32),          # running channel sum
            pltpu.VMEM((NB, HW), jnp.float32),          # running channel max
            pltpu.VMEM((NB, 2, Hp, Wp), jnp.float32),   # padded [avg; max]
        ],
        compiler_params=pltpu.CompilerParams(
            dimension_semantics=("parallel", "arbitrary"),
            vmem_limit_bytes=32 * 1024 * 1024,
        ),
    )(w_flat, x_flat)

    return out_flat.reshape(N, 1, H, W)


def spatial_attention_reference(x, weight):
    avg = jnp.mean(x, axis=1, keepdims=True)
    mx = jnp.max(x, axis=1, keepdims=True)
    cat = jnp.concatenate([avg, mx], axis=1)
    y = lax.conv_general_dilated(
        cat, weight, window_strides=(1, 1), padding="SAME",
        dimension_numbers=("NCHW", "OIHW", "NCHW"))
    return jax.nn.sigmoid(y)


if __name__ == "__main__":
    key = jax.random.PRNGKey(0)
    kx, kw = jax.random.split(key)

    N, C, H, W = 2, 4, 16, 16
    x = jax.random.normal(kx, (N, C, H, W), dtype=jnp.float32)

    # Deterministic conv weight init, shape (out=1, in=2, K, K),
    # scaled like PyTorch's default kaiming-uniform fan-in bound.
    fan_in = 2 * K * K
    bound = 1.0 / (fan_in ** 0.5)
    weight = jax.random.uniform(kw, (1, 2, K, K), dtype=jnp.float32,
                                minval=-bound, maxval=bound)

    out = spatial_attention(x, weight)
    out = jax.block_until_ready(out)

    ref = spatial_attention_reference(x, weight)
    assert out.shape == (N, 1, H, W)
    assert jnp.allclose(out, ref, atol=1e-5, rtol=1e-5), "mismatch vs reference"

    print("KERNEL_OK")
</pallas_src>

<mosaic_0001>
module attributes {stable_mosaic.version = 11 : i64} {
  func.func @_spatial_attention_kernel(%arg0: i32, %arg1: i32, %arg2: memref<98xf32, #tpu.memory_space<smem>>, %arg3: memref<2x4x256xf32, #tpu.memory_space<vmem>>, %arg4: memref<2x1x256xf32, #tpu.memory_space<vmem>>, %arg5: memref<2x256xf32, #tpu.memory_space<vmem>>, %arg6: memref<2x256xf32, #tpu.memory_space<vmem>>, %arg7: memref<2x2x22x22xf32, #tpu.memory_space<vmem>>) attributes {dimension_semantics = [#tpu.dimension_semantics<parallel>, #tpu.dimension_semantics<arbitrary>], iteration_bounds = array<i64: 1, 1>, scalar_prefetch = 0 : i64, scratch_operands = 3 : i64, tpu.core_type = #tpu.core_type<tc>, window_params = [{transform_indices = @transform_0, window_bounds = array<i64: 98>}, {transform_indices = @transform_1, window_bounds = array<i64: 2, 4, 256>}, {transform_indices = @transform_2, window_bounds = array<i64: 2, 1, 256>}]} {
    %c0_i32 = arith.constant 0 : i32
    %0 = arith.cmpi eq, %arg1, %c0_i32 : i32
    %1 = arith.extui %0 : i1 to i32
    %c0_i32_0 = arith.constant 0 : i32
    %2 = arith.cmpi ne, %1, %c0_i32_0 : i32
    scf.if %2 {
      %cst_14 = arith.constant 0.000000e+00 : f32
      %15 = vector.broadcast %cst_14 : f32 to vector<2x256xf32>
      %c0_15 = arith.constant 0 : index
      %c0_16 = arith.constant 0 : index
      %16 = vector.load %arg5[%c0_15, %c0_16] : memref<2x256xf32, #tpu.memory_space<vmem>>, vector<2x256xf32>
      tpu.vector_store %arg5[%c0_15, %c0_16], %15 {strides = array<i32>} : memref<2x256xf32, #tpu.memory_space<vmem>>, vector<2x256xf32>,
      %cst_17 = arith.constant 0xFF800000 : f32
      %17 = vector.broadcast %cst_17 : f32 to vector<2x256xf32>
      %c0_18 = arith.constant 0 : index
      %c0_19 = arith.constant 0 : index
      %18 = vector.load %arg6[%c0_18, %c0_19] : memref<2x256xf32, #tpu.memory_space<vmem>>, vector<2x256xf32>
      tpu.vector_store %arg6[%c0_18, %c0_19], %17 {strides = array<i32>} : memref<2x256xf32, #tpu.memory_space<vmem>>, vector<2x256xf32>,
    } else {
    }
    %c0 = arith.constant 0 : index
    %c0_1 = arith.constant 0 : index
    %c0_2 = arith.constant 0 : index
    %3 = vector.load %arg3[%c0, %c0_1, %c0_2] : memref<2x4x256xf32, #tpu.memory_space<vmem>>, vector<2x4x256xf32>
    %c0_3 = arith.constant 0 : index
    %c0_4 = arith.constant 0 : index
    %4 = vector.load %arg5[%c0_3, %c0_4] : memref<2x256xf32, #tpu.memory_space<vmem>>, vector<2x256xf32>
    %cst = arith.constant dense<0.000000e+00> : vector<2x256xf32>
    %5 = vector.multi_reduction <add>, %3, %cst [1] : vector<2x4x256xf32> to vector<2x256xf32>
    %6 = arith.addf %4, %5 : vector<2x256xf32>
    %c0_5 = arith.constant 0 : index
    %c0_6 = arith.constant 0 : index
    %7 = vector.load %arg5[%c0_5, %c0_6] : memref<2x256xf32, #tpu.memory_space<vmem>>, vector<2x256xf32>
    tpu.vector_store %arg5[%c0_5, %c0_6], %6 {strides = array<i32>} : memref<2x256xf32, #tpu.memory_space<vmem>>, vector<2x256xf32>,
    %c0_7 = arith.constant 0 : index
    %c0_8 = arith.constant 0 : index
    %8 = vector.load %arg6[%c0_7, %c0_8] : memref<2x256xf32, #tpu.memory_space<vmem>>, vector<2x256xf32>
    %cst_9 = arith.constant dense<0xFF800000> : vector<2x256xf32>
    %9 = vector.multi_reduction <maximumf>, %3, %cst_9 [1] : vector<2x4x256xf32> to vector<2x256xf32>
    %10 = arith.maximumf %8, %9 : vector<2x256xf32>
    %c0_10 = arith.constant 0 : index
    %c0_11 = arith.constant 0 : index
    %11 = vector.load %arg6[%c0_10, %c0_11] : memref<2x256xf32, #tpu.memory_space<vmem>>, vector<2x256xf32>
    tpu.vector_store %arg6[%c0_10, %c0_11], %10 {strides = array<i32>} : memref<2x256xf32, #tpu.memory_space<vmem>>, vector<2x256xf32>,
    %c0_i32_12 = arith.constant 0 : i32
    %12 = arith.cmpi eq, %arg1, %c0_i32_12 : i32
    %13 = arith.extui %12 : i1 to i32
    %c0_i32_13 = arith.constant 0 : i32
    %14 = arith.cmpi ne, %13, %c0_i32_13 : i32
    scf.if %14 {
      %c0_14 = arith.constant 0 : index
      %c0_15 = arith.constant 0 : index
      %15 = vector.load %arg5[%c0_14, %c0_15] : memref<2x256xf32, #tpu.memory_space<vmem>>, vector<2x256xf32>
      %cst_16 = arith.constant 2.500000e-01 : f32
      %16 = vector.broadcast %cst_16 : f32 to vector<2x256xf32>
      %17 = arith.mulf %15, %16 : vector<2x256xf32>
      %c0_17 = arith.constant 0 : index
      %c0_18 = arith.constant 0 : index
      %18 = vector.load %arg6[%c0_17, %c0_18] : memref<2x256xf32, #tpu.memory_space<vmem>>, vector<2x256xf32>
      %19 = vector.extract_strided_slice %17 {offsets = [0, 0], sizes = [2, 16], strides = [1, 1]} : vector<2x256xf32> to vector<2x16xf32>
      %c0_19 = arith.constant 0 : index
      %c0_20 = arith.constant 0 : index
      %c3 = arith.constant 3 : index
      %c3_21 = arith.constant 3 : index
      %20 = vector.load %arg7[%c0_19, %c0_20, %c3, %c3_21] : memref<2x2x22x22xf32, #tpu.memory_space<vmem>>, vector<2x1x1x16xf32>
      %21 = vector.shape_cast %20 : vector<2x1x1x16xf32> to vector<2x16xf32>
      %22 = vector.shape_cast %19 : vector<2x16xf32> to vector<2x1x1x16xf32>
      tpu.vector_store %arg7[%c0_19, %c0_20, %c3, %c3_21], %22 {strides = array<i32>} : memref<2x2x22x22xf32, #tpu.memory_space<vmem>>, vector<2x1x1x16xf32>,
      %23 = vector.extract_strided_slice %18 {offsets = [0, 0], sizes = [2, 16], strides = [1, 1]} : vector<2x256xf32> to vector<2x16xf32>
      %c0_22 = arith.constant 0 : index
      %c1 = arith.constant 1 : index
      %c3_23 = arith.constant 3 : index
      %c3_24 = arith.constant 3 : index
      %24 = vector.load %arg7[%c0_22, %c1, %c3_23, %c3_24] : memref<2x2x22x22xf32, #tpu.memory_space<vmem>>, vector<2x1x1x16xf32>
      %25 = vector.shape_cast %24 : vector<2x1x1x16xf32> to vector<2x16xf32>
      %26 = vector.shape_cast %23 : vector<2x16xf32> to vector<2x1x1x16xf32>
      tpu.vector_store %arg7[%c0_22, %c1, %c3_23, %c3_24], %26 {strides = array<i32>} : memref<2x2x22x22xf32, #tpu.memory_space<vmem>>, vector<2x1x1x16xf32>,
      %27 = vector.extract_strided_slice %17 {offsets = [0, 16], sizes = [2, 16], strides = [1, 1]} : vector<2x256xf32> to vector<2x16xf32>
      %c0_25 = arith.constant 0 : index
      %c0_26 = arith.constant 0 : index
      %c4 = arith.constant 4 : index
      %c3_27 = arith.constant 3 : index
      %28 = vector.load %arg7[%c0_25, %c0_26, %c4, %c3_27] : memref<2x2x22x22xf32, #tpu.memory_space<vmem>>, vector<2x1x1x16xf32>
      %29 = vector.shape_cast %28 : vector<2x1x1x16xf32> to vector<2x16xf32>
      %30 = vector.shape_cast %27 : vector<2x16xf32> to vector<2x1x1x16xf32>
      tpu.vector_store %arg7[%c0_25, %c0_26, %c4, %c3_27], %30 {strides = array<i32>} : memref<2x2x22x22xf32, #tpu.memory_space<vmem>>, vector<2x1x1x16xf32>,
      %31 = vector.extract_strided_slice %18 {offsets = [0, 16], sizes = [2, 16], strides = [1, 1]} : vector<2x256xf32> to vector<2x16xf32>
      %c0_28 = arith.constant 0 : index
      %c1_29 = arith.constant 1 : index
      %c4_30 = arith.constant 4 : index
      %c3_31 = arith.constant 3 : index
      %32 = vector.load %arg7[%c0_28, %c1_29, %c4_30, %c3_31] : memref<2x2x22x22xf32, #tpu.memory_space<vmem>>, vector<2x1x1x16xf32>
      %33 = vector.shape_cast %32 : vector<2x1x1x16xf32> to vector<2x16xf32>
      %34 = vector.shape_cast %31 : vector<2x16xf32> to vector<2x1x1x16xf32>
      tpu.vector_store %arg7[%c0_28, %c1_29, %c4_30, %c3_31], %34 {strides = array<i32>} : memref<2x2x22x22xf32, #tpu.memory_space<vmem>>, vector<2x1x1x16xf32>,
      %35 = vector.extract_strided_slice %17 {offsets = [0, 32], sizes = [2, 16], strides = [1, 1]} : vector<2x256xf32> to vector<2x16xf32>
      %c0_32 = arith.constant 0 : index
      %c0_33 = arith.constant 0 : index
      %c5 = arith.constant 5 : index
      %c3_34 = arith.constant 3 : index
      %36 = vector.load %arg7[%c0_32, %c0_33, %c5, %c3_34] : memref<2x2x22x22xf32, #tpu.memory_space<vmem>>, vector<2x1x1x16xf32>
      %37 = vector.shape_cast %36 : vector<2x1x1x16xf32> to vector<2x16xf32>
      %38 = vector.shape_cast %35 : vector<2x16xf32> to vector<2x1x1x16xf32>
      tpu.vector_store %arg7[%c0_32, %c0_33, %c5, %c3_34], %38 {strides = array<i32>} : memref<2x2x22x22xf32, #tpu.memory_space<vmem>>, vector<2x1x1x16xf32>,
      %39 = vector.extract_strided_slice %18 {offsets = [0, 32], sizes = [2, 16], strides = [1, 1]} : vector<2x256xf32> to vector<2x16xf32>
      %c0_35 = arith.constant 0 : index
      %c1_36 = arith.constant 1 : index
      %c5_37 = arith.constant 5 : index
      %c3_38 = arith.constant 3 : index
      %40 = vector.load %arg7[%c0_35, %c1_36, %c5_37, %c3_38] : memref<2x2x22x22xf32, #tpu.memory_space<vmem>>, vector<2x1x1x16xf32>
      %41 = vector.shape_cast %40 : vector<2x1x1x16xf32> to vector<2x16xf32>
      %42 = vector.shape_cast %39 : vector<2x16xf32> to vector<2x1x1x16xf32>
      tpu.vector_store %arg7[%c0_35, %c1_36, %c5_37, %c3_38], %42 {strides = array<i32>} : memref<2x2x22x22xf32, #tpu.memory_space<vmem>>, vector<2x1x1x16xf32>,
      %43 = vector.extract_strided_slice %17 {offsets = [0, 48], sizes = [2, 16], strides = [1, 1]} : vector<2x256xf32> to vector<2x16xf32>
      %c0_39 = arith.constant 0 : index
      %c0_40 = arith.constant 0 : index
      %c6 = arith.constant 6 : index
      %c3_41 = arith.constant 3 : index
      %44 = vector.load %arg7[%c0_39, %c0_40, %c6, %c3_41] : memref<2x2x22x22xf32, #tpu.memory_space<vmem>>, vector<2x1x1x16xf32>
      %45 = vector.shape_cast %44 : vector<2x1x1x16xf32> to vector<2x16xf32>
      %46 = vector.shape_cast %43 : vector<2x16xf32> to vector<2x1x1x16xf32>
      tpu.vector_store %arg7[%c0_39, %c0_40, %c6, %c3_41], %46 {strides = array<i32>} : memref<2x2x22x22xf32, #tpu.memory_space<vmem>>, vector<2x1x1x16xf32>,
      %47 = vector.extract_strided_slice %18 {offsets = [0, 48], sizes = [2, 16], strides = [1, 1]} : vector<2x256xf32> to vector<2x16xf32>
      %c0_42 = arith.constant 0 : index
      %c1_43 = arith.constant 1 : index
      %c6_44 = arith.constant 6 : index
      %c3_45 = arith.constant 3 : index
      %48 = vector.load %arg7[%c0_42, %c1_43, %c6_44, %c3_45] : memref<2x2x22x22xf32, #tpu.memory_space<vmem>>, vector<2x1x1x16xf32>
      %49 = vector.shape_cast %48 : vector<2x1x1x16xf32> to vector<2x16xf32>
      %50 = vector.shape_cast %47 : vector<2x16xf32> to vector<2x1x1x16xf32>
      tpu.vector_store %arg7[%c0_42, %c1_43, %c6_44, %c3_45], %50 {strides = array<i32>} : memref<2x2x22x22xf32, #tpu.memory_space<vmem>>, vector<2x1x1x16xf32>,
      %51 = vector.extract_strided_slice %17 {offsets = [0, 64], sizes = [2, 16], strides = [1, 1]} : vector<2x256xf32> to vector<2x16xf32>
      %c0_46 = arith.constant 0 : index
      %c0_47 = arith.constant 0 : index
      %c7 = arith.constant 7 : index
      %c3_48 = arith.constant 3 : index
      %52 = vector.load %arg7[%c0_46, %c0_47, %c7, %c3_48] : memref<2x2x22x22xf32, #tpu.memory_space<vmem>>, vector<2x1x1x16xf32>
      %53 = vector.shape_cast %52 : vector<2x1x1x16xf32> to vector<2x16xf32>
      %54 = vector.shape_cast %51 : vector<2x16xf32> to vector<2x1x1x16xf32>
      tpu.vector_store %arg7[%c0_46, %c0_47, %c7, %c3_48], %54 {strides = array<i32>} : memref<2x2x22x22xf32, #tpu.memory_space<vmem>>, vector<2x1x1x16xf32>,
      %55 = vector.extract_strided_slice %18 {offsets = [0, 64], sizes = [2, 16], strides = [1, 1]} : vector<2x256xf32> to vector<2x16xf32>
      %c0_49 = arith.constant 0 : index
      %c1_50 = arith.constant 1 : index
      %c7_51 = arith.constant 7 : index
      %c3_52 = arith.constant 3 : index
      %56 = vector.load %arg7[%c0_49, %c1_50, %c7_51, %c3_52] : memref<2x2x22x22xf32, #tpu.memory_space<vmem>>, vector<2x1x1x16xf32>
      %57 = vector.shape_cast %56 : vector<2x1x1x16xf32> to vector<2x16xf32>
      %58 = vector.shape_cast %55 : vector<2x16xf32> to vector<2x1x1x16xf32>
      tpu.vector_store %arg7[%c0_49, %c1_50, %c7_51, %c3_52], %58 {strides = array<i32>} : memref<2x2x22x22xf32, #tpu.memory_space<vmem>>, vector<2x1x1x16xf32>,
      %59 = vector.extract_strided_slice %17 {offsets = [0, 80], sizes = [2, 16], strides = [1, 1]} : vector<2x256xf32> to vector<2x16xf32>
      %c0_53 = arith.constant 0 : index
      %c0_54 = arith.constant 0 : index
      %c8 = arith.constant 8 : index
      %c3_55 = arith.constant 3 : index
      %60 = vector.load %arg7[%c0_53, %c0_54, %c8, %c3_55] : memref<2x2x22x22xf32, #tpu.memory_space<vmem>>, vector<2x1x1x16xf32>
      %61 = vector.shape_cast %60 : vector<2x1x1x16xf32> to vector<2x16xf32>
      %62 = vector.shape_cast %59 : vector<2x16xf32> to vector<2x1x1x16xf32>
      tpu.vector_store %arg7[%c0_53, %c0_54, %c8, %c3_55], %62 {strides = array<i32>} : memref<2x2x22x22xf32, #tpu.memory_space<vmem>>, vector<2x1x1x16xf32>,
      %63 = vector.extract_strided_slice %18 {offsets = [0, 80], sizes = [2, 16], strides = [1, 1]} : vector<2x256xf32> to vector<2x16xf32>
      %c0_56 = arith.constant 0 : index
      %c1_57 = arith.constant 1 : index
      %c8_58 = arith.constant 8 : index
      %c3_59 = arith.constant 3 : index
      %64 = vector.load %arg7[%c0_56, %c1_57, %c8_58, %c3_59] : memref<2x2x22x22xf32, #tpu.memory_space<vmem>>, vector<2x1x1x16xf32>
      %65 = vector.shape_cast %64 : vector<2x1x1x16xf32> to vector<2x16xf32>
      %66 = vector.shape_cast %63 : vector<2x16xf32> to vector<2x1x1x16xf32>
      tpu.vector_store %arg7[%c0_56, %c1_57, %c8_58, %c3_59], %66 {strides = array<i32>} : memref<2x2x22x22xf32, #tpu.memory_space<vmem>>, vector<2x1x1x16xf32>,
      %67 = vector.extract_strided_slice %17 {offsets = [0, 96], sizes = [2, 16], strides = [1, 1]} : vector<2x256xf32> to vector<2x16xf32>
      %c0_60 = arith.constant 0 : index
      %c0_61 = arith.constant 0 : index
      %c9 = arith.constant 9 : index
      %c3_62 = arith.constant 3 : index
      %68 = vector.load %arg7[%c0_60, %c0_61, %c9, %c3_62] : memref<2x2x22x22xf32, #tpu.memory_space<vmem>>, vector<2x1x1x16xf32>
      %69 = vector.shape_cast %68 : vector<2x1x1x16xf32> to vector<2x16xf32>
      %70 = vector.shape_cast %67 : vector<2x16xf32> to vector<2x1x1x16xf32>
      tpu.vector_store %arg7[%c0_60, %c0_61, %c9, %c3_62], %70 {strides = array<i32>} : memref<2x2x22x22xf32, #tpu.memory_space<vmem>>, vector<2x1x1x16xf32>,
      %71 = vector.extract_strided_slice %18 {offsets = [0, 96], sizes = [2, 16], strides = [1, 1]} : vector<2x256xf32> to vector<2x16xf32>
      %c0_63 = arith.constant 0 : index
      %c1_64 = arith.constant 1 : index
      %c9_65 = arith.constant 9 : index
      %c3_66 = arith.constant 3 : index
      %72 = vector.load %arg7[%c0_63, %c1_64, %c9_65, %c3_66] : memref<2x2x22x22xf32, #tpu.memory_space<vmem>>, vector<2x1x1x16xf32>
      %73 = vector.shape_cast %72 : vector<2x1x1x16xf32> to vector<2x16xf32>
      %74 = vector.shape_cast %71 : vector<2x16xf32> to vector<2x1x1x16xf32>
      tpu.vector_store %arg7[%c0_63, %c1_64, %c9_65, %c3_66], %74 {strides = array<i32>} : memref<2x2x22x22xf32, #tpu.memory_space<vmem>>, vector<2x1x1x16xf32>,
      %75 = vector.extract_strided_slice %17 {offsets = [0, 112], sizes = [2, 16], strides = [1, 1]} : vector<2x256xf32> to vector<2x16xf32>
      %c0_67 = arith.constant 0 : index
      %c0_68 = arith.constant 0 : index
      %c10 = arith.constant 10 : index
      %c3_69 = arith.constant 3 : index
      %76 = vector.load %arg7[%c0_67, %c0_68, %c10, %c3_69] : memref<2x2x22x22xf32, #tpu.memory_space<vmem>>, vector<2x1x1x16xf32>
      %77 = vector.shape_cast %76 : vector<2x1x1x16xf32> to vector<2x16xf32>
      %78 = vector.shape_cast %75 : vector<2x16xf32> to vector<2x1x1x16xf32>
      tpu.vector_store %arg7[%c0_67, %c0_68, %c10, %c3_69], %78 {strides = array<i32>} : memref<2x2x22x22xf32, #tpu.memory_space<vmem>>, vector<2x1x1x16xf32>,
      %79 = vector.extract_strided_slice %18 {offsets = [0, 112], sizes = [2, 16], strides = [1, 1]} : vector<2x256xf32> to vector<2x16xf32>
      %c0_70 = arith.constant 0 : index
      %c1_71 = arith.constant 1 : index
      %c10_72 = arith.constant 10 : index
      %c3_73 = arith.constant 3 : index
      %80 = vector.load %arg7[%c0_70, %c1_71, %c10_72, %c3_73] : memref<2x2x22x22xf32, #tpu.memory_space<vmem>>, vector<2x1x1x16xf32>
      %81 = vector.shape_cast %80 : vector<2x1x1x16xf32> to vector<2x16xf32>
      %82 = vector.shape_cast %79 : vector<2x16xf32> to vector<2x1x1x16xf32>
      tpu.vector_store %arg7[%c0_70, %c1_71, %c10_72, %c3_73], %82 {strides = array<i32>} : memref<2x2x22x22xf32, #tpu.memory_space<vmem>>, vector<2x1x1x16xf32>,
      %83 = vector.extract_strided_slice %17 {offsets = [0, 128], sizes = [2, 16], strides = [1, 1]} : vector<2x256xf32> to vector<2x16xf32>
      %c0_74 = arith.constant 0 : index
      %c0_75 = arith.constant 0 : index
      %c11 = arith.constant 11 : index
      %c3_76 = arith.constant 3 : index
      %84 = vector.load %arg7[%c0_74, %c0_75, %c11, %c3_76] : memref<2x2x22x22xf32, #tpu.memory_space<vmem>>, vector<2x1x1x16xf32>
      %85 = vector.shape_cast %84 : vector<2x1x1x16xf32> to vector<2x16xf32>
      %86 = vector.shape_cast %83 : vector<2x16xf32> to vector<2x1x1x16xf32>
      tpu.vector_store %arg7[%c0_74, %c0_75, %c11, %c3_76], %86 {strides = array<i32>} : memref<2x2x22x22xf32, #tpu.memory_space<vmem>>, vector<2x1x1x16xf32>,
      %87 = vector.extract_strided_slice %18 {offsets = [0, 128], sizes = [2, 16], strides = [1, 1]} : vector<2x256xf32> to vector<2x16xf32>
      %c0_77 = arith.constant 0 : index
      %c1_78 = arith.constant 1 : index
      %c11_79 = arith.constant 11 : index
      %c3_80 = arith.constant 3 : index
      %88 = vector.load %arg7[%c0_77, %c1_78, %c11_79, %c3_80] : memref<2x2x22x22xf32, #tpu.memory_space<vmem>>, vector<2x1x1x16xf32>
      %89 = vector.shape_cast %88 : vector<2x1x1x16xf32> to vector<2x16xf32>
      %90 = vector.shape_cast %87 : vector<2x16xf32> to vector<2x1x1x16xf32>
      tpu.vector_store %arg7[%c0_77, %c1_78, %c11_79, %c3_80], %90 {strides = array<i32>} : memref<2x2x22x22xf32, #tpu.memory_space<vmem>>, vector<2x1x1x16xf32>,
      %91 = vector.extract_strided_slice %17 {offsets = [0, 144], sizes = [2, 16], strides = [1, 1]} : vector<2x256xf32> to vector<2x16xf32>
      %c0_81 = arith.constant 0 : index
      %c0_82 = arith.constant 0 : index
      %c12 = arith.constant 12 : index
      %c3_83 = arith.constant 3 : index
      %92 = vector.load %arg7[%c0_81, %c0_82, %c12, %c3_83] : memref<2x2x22x22xf32, #tpu.memory_space<vmem>>, vector<2x1x1x16xf32>
      %93 = vector.shape_cast %92 : vector<2x1x1x16xf32> to vector<2x16xf32>
      %94 = vector.shape_cast %91 : vector<2x16xf32> to vector<2x1x1x16xf32>
      tpu.vector_store %arg7[%c0_81, %c0_82, %c12, %c3_83], %94 {strides = array<i32>} : memref<2x2x22x22xf32, #tpu.memory_space<vmem>>, vector<2x1x1x16xf32>,
      %95 = vector.extract_strided_slice %18 {offsets = [0, 144], sizes = [2, 16], strides = [1, 1]} : vector<2x256xf32> to vector<2x16xf32>
      %c0_84 = arith.constant 0 : index
      %c1_85 = arith.constant 1 : index
      %c12_86 = arith.constant 12 : index
      %c3_87 = arith.constant 3 : index
      %96 = vector.load %arg7[%c0_84, %c1_85, %c12_86, %c3_87] : memref<2x2x22x22xf32, #tpu.memory_space<vmem>>, vector<2x1x1x16xf32>
      %97 = vector.shape_cast %96 : vector<2x1x1x16xf32> to vector<2x16xf32>
      %98 = vector.shape_cast %95 : vector<2x16xf32> to vector<2x1x1x16xf32>
      tpu.vector_store %arg7[%c0_84, %c1_85, %c12_86, %c3_87], %98 {strides = array<i32>} : memref<2x2x22x22xf32, #tpu.memory_space<vmem>>, vector<2x1x1x16xf32>,
      %99 = vector.extract_strided_slice %17 {offsets = [0, 160], sizes = [2, 16], strides = [1, 1]} : vector<2x256xf32> to vector<2x16xf32>
      %c0_88 = arith.constant 0 : index
      %c0_89 = arith.constant 0 : index
      %c13 = arith.constant 13 : index
      %c3_90 = arith.constant 3 : index
      %100 = vector.load %arg7[%c0_88, %c0_89, %c13, %c3_90] : memref<2x2x22x22xf32, #tpu.memory_space<vmem>>, vector<2x1x1x16xf32>
      %101 = vector.shape_cast %100 : vector<2x1x1x16xf32> to vector<2x16xf32>
      %102 = vector.shape_cast %99 : vector<2x16xf32> to vector<2x1x1x16xf32>
      tpu.vector_store %arg7[%c0_88, %c0_89, %c13, %c3_90], %102 {strides = array<i32>} : memref<2x2x22x22xf32, #tpu.memory_space<vmem>>, vector<2x1x1x16xf32>,
      %103 = vector.extract_strided_slice %18 {offsets = [0, 160], sizes = [2, 16], strides = [1, 1]} : vector<2x256xf32> to vector<2x16xf32>
      %c0_91 = arith.constant 0 : index
      %c1_92 = arith.constant 1 : index
      %c13_93 = arith.constant 13 : index
      %c3_94 = arith.constant 3 : index
      %104 = vector.load %arg7[%c0_91, %c1_92, %c13_93, %c3_94] : memref<2x2x22x22xf32, #tpu.memory_space<vmem>>, vector<2x1x1x16xf32>
      %105 = vector.shape_cast %104 : vector<2x1x1x16xf32> to vector<2x16xf32>
      %106 = vector.shape_cast %103 : vector<2x16xf32> to vector<2x1x1x16xf32>
      tpu.vector_store %arg7[%c0_91, %c1_92, %c13_93, %c3_94], %106 {strides = array<i32>} : memref<2x2x22x22xf32, #tpu.memory_space<vmem>>, vector<2x1x1x16xf32>,
      %107 = vector.extract_strided_slice %17 {offsets = [0, 176], sizes = [2, 16], strides = [1, 1]} : vector<2x256xf32> to vector<2x16xf32>
      %c0_95 = arith.constant 0 : index
      %c0_96 = arith.constant 0 : index
      %c14 = arith.constant 14 : index
      %c3_97 = arith.constant 3 : index
      %108 = vector.load %arg7[%c0_95, %c0_96, %c14, %c3_97] : memref<2x2x22x22xf32, #tpu.memory_space<vmem>>, vector<2x1x1x16xf32>
      %109 = vector.shape_cast %108 : vector<2x1x1x16xf32> to vector<2x16xf32>
      %110 = vector.shape_cast %107 : vector<2x16xf32> to vector<2x1x1x16xf32>
      tpu.vector_store %arg7[%c0_95, %c0_96, %c14, %c3_97], %110 {strides = array<i32>} : memref<2x2x22x22xf32, #tpu.memory_space<vmem>>, vector<2x1x1x16xf32>,
      %111 = vector.extract_strided_slice %18 {offsets = [0, 176], sizes = [2, 16], strides = [1, 1]} : vector<2x256xf32> to vector<2x16xf32>
      %c0_98 = arith.constant 0 : index
      %c1_99 = arith.constant 1 : index
      %c14_100 = arith.constant 14 : index
      %c3_101 = arith.constant 3 : index
      %112 = vector.load %arg7[%c0_98, %c1_99, %c14_100, %c3_101] : memref<2x2x22x22xf32, #tpu.memory_space<vmem>>, vector<2x1x1x16xf32>
      %113 = vector.shape_cast %112 : vector<2x1x1x16xf32> to vector<2x16xf32>
      %114 = vector.shape_cast %111 : vector<2x16xf32> to vector<2x1x1x16xf32>
      tpu.vector_store %arg7[%c0_98, %c1_99, %c14_100, %c3_101], %114 {strides = array<i32>} : memref<2x2x22x22xf32, #tpu.memory_space<vmem>>, vector<2x1x1x16xf32>,
      %115 = vector.extract_strided_slice %17 {offsets = [0, 192], sizes = [2, 16], strides = [1, 1]} : vector<2x256xf32> to vector<2x16xf32>
      %c0_102 = arith.constant 0 : index
      %c0_103 = arith.constant 0 : index
      %c15 = arith.constant 15 : index
      %c3_104 = arith.constant 3 : index
      %116 = vector.load %arg7[%c0_102, %c0_103, %c15, %c3_104] : memref<2x2x22x22xf32, #tpu.memory_space<vmem>>, vector<2x1x1x16xf32>
      %117 = vector.shape_cast %116 : vector<2x1x1x16xf32> to vector<2x16xf32>
      %118 = vector.shape_cast %115 : vector<2x16xf32> to vector<2x1x1x16xf32>
      tpu.vector_store %arg7[%c0_102, %c0_103, %c15, %c3_104], %118 {strides = array<i32>} : memref<2x2x22x22xf32, #tpu.memory_space<vmem>>, vector<2x1x1x16xf32>,
      %119 = vector.extract_strided_slice %18 {offsets = [0, 192], sizes = [2, 16], strides = [1, 1]} : vector<2x256xf32> to vector<2x16xf32>
      %c0_105 = arith.constant 0 : index
      %c1_106 = arith.constant 1 : index
      %c15_107 = arith.constant 15 : index
      %c3_108 = arith.constant 3 : index
      %120 = vector.load %arg7[%c0_105, %c1_106, %c15_107, %c3_108] : memref<2x2x22x22xf32, #tpu.memory_space<vmem>>, vector<2x1x1x16xf32>
      %121 = vector.shape_cast %120 : vector<2x1x1x16xf32> to vector<2x16xf32>
      %122 = vector.shape_cast %119 : vector<2x16xf32> to vector<2x1x1x16xf32>
      tpu.vector_store %arg7[%c0_105, %c1_106, %c15_107, %c3_108], %122 {strides = array<i32>} : memref<2x2x22x22xf32, #tpu.memory_space<vmem>>, vector<2x1x1x16xf32>,
      %123 = vector.extract_strided_slice %17 {offsets = [0, 208], sizes = [2, 16], strides = [1, 1]} : vector<2x256xf32> to vector<2x16xf32>
      %c0_109 = arith.constant 0 : index
      %c0_110 = arith.constant 0 : index
      %c16 = arith.constant 16 : index
      %c3_111 = arith.constant 3 : index
      %124 = vector.load %arg7[%c0_109, %c0_110, %c16, %c3_111] : memref<2x2x22x22xf32, #tpu.memory_space<vmem>>, vector<2x1x1x16xf32>
      %125 = vector.shape_cast %124 : vector<2x1x1x16xf32> to vector<2x16xf32>
      %126 = vector.shape_cast %123 : vector<2x16xf32> to vector<2x1x1x16xf32>
      tpu.vector_store %arg7[%c0_109, %c0_110, %c16, %c3_111], %126 {strides = array<i32>} : memref<2x2x22x22xf32, #tpu.memory_space<vmem>>, vector<2x1x1x16xf32>,
      %127 = vector.extract_strided_slice %18 {offsets = [0, 208], sizes = [2, 16], strides = [1, 1]} : vector<2x256xf32> to vector<2x16xf32>
      %c0_112 = arith.constant 0 : index
      %c1_113 = arith.constant 1 : index
      %c16_114 = arith.constant 16 : index
      %c3_115 = arith.constant 3 : index
      %128 = vector.load %arg7[%c0_112, %c1_113, %c16_114, %c3_115] : memref<2x2x22x22xf32, #tpu.memory_space<vmem>>, vector<2x1x1x16xf32>
      %129 = vector.shape_cast %128 : vector<2x1x1x16xf32> to vector<2x16xf32>
      %130 = vector.shape_cast %127 : vector<2x16xf32> to vector<2x1x1x16xf32>
      tpu.vector_store %arg7[%c0_112, %c1_113, %c16_114, %c3_115], %130 {strides = array<i32>} : memref<2x2x22x22xf32, #tpu.memory_space<vmem>>, vector<2x1x1x16xf32>,
      %131 = vector.extract_strided_slice %17 {offsets = [0, 224], sizes = [2, 16], strides = [1, 1]} : vector<2x256xf32> to vector<2x16xf32>
      %c0_116 = arith.constant 0 : index
      %c0_117 = arith.constant 0 : index
      %c17 = arith.constant 17 : index
      %c3_118 = arith.constant 3 : index
      %132 = vector.load %arg7[%c0_116, %c0_117, %c17, %c3_118] : memref<2x2x22x22xf32, #tpu.memory_space<vmem>>, vector<2x1x1x16xf32>
      %133 = vector.shape_cast %132 : vector<2x1x1x16xf32> to vector<2x16xf32>
      %134 = vector.shape_cast %131 : vector<2x16xf32> to vector<2x1x1x16xf32>
      tpu.vector_store %arg7[%c0_116, %c0_117, %c17, %c3_118], %134 {strides = array<i32>} : memref<2x2x22x22xf32, #tpu.memory_space<vmem>>, vector<2x1x1x16xf32>,
      %135 = vector.extract_strided_slice %18 {offsets = [0, 224], sizes = [2, 16], strides = [1, 1]} : vector<2x256xf32> to vector<2x16xf32>
      %c0_119 = arith.constant 0 : index
      %c1_120 = arith.constant 1 : index
      %c17_121 = arith.constant 17 : index
      %c3_122 = arith.constant 3 : index
      %136 = vector.load %arg7[%c0_119, %c1_120, %c17_121, %c3_122] : memref<2x2x22x22xf32, #tpu.memory_space<vmem>>, vector<2x1x1x16xf32>
      %137 = vector.shape_cast %136 : vector<2x1x1x16xf32> to vector<2x16xf32>
      %138 = vector.shape_cast %135 : vector<2x16xf32> to vector<2x1x1x16xf32>
      tpu.vector_store %arg7[%c0_119, %c1_120, %c17_121, %c3_122], %138 {strides = array<i32>} : memref<2x2x22x22xf32, #tpu.memory_space<vmem>>, vector<2x1x1x16xf32>,
      %139 = vector.extract_strided_slice %17 {offsets = [0, 240], sizes = [2, 16], strides = [1, 1]} : vector<2x256xf32> to vector<2x16xf32>
      %c0_123 = arith.constant 0 : index
      %c0_124 = arith.constant 0 : index
      %c18 = arith.constant 18 : index
      %c3_125 = arith.constant 3 : index
      %140 = vector.load %arg7[%c0_123, %c0_124, %c18, %c3_125] : memref<2x2x22x22xf32, #tpu.memory_space<vmem>>, vector<2x1x1x16xf32>
      %141 = vector.shape_cast %140 : vector<2x1x1x16xf32> to vector<2x16xf32>
      %142 = vector.shape_cast %139 : vector<2x16xf32> to vector<2x1x1x16xf32>
      tpu.vector_store %arg7[%c0_123, %c0_124, %c18, %c3_125], %142 {strides = array<i32>} : memref<2x2x22x22xf32, #tpu.memory_space<vmem>>, vector<2x1x1x16xf32>,
      %143 = vector.extract_strided_slice %18 {offsets = [0, 240], sizes = [2, 16], strides = [1, 1]} : vector<2x256xf32> to vector<2x16xf32>
      %c0_126 = arith.constant 0 : index
      %c1_127 = arith.constant 1 : index
      %c18_128 = arith.constant 18 : index
      %c3_129 = arith.constant 3 : index
      %144 = vector.load %arg7[%c0_126, %c1_127, %c18_128, %c3_129] : memref<2x2x22x22xf32, #tpu.memory_space<vmem>>, vector<2x1x1x16xf32>
      %145 = vector.shape_cast %144 : vector<2x1x1x16xf32> to vector<2x16xf32>
      %146 = vector.shape_cast %143 : vector<2x16xf32> to vector<2x1x1x16xf32>
      tpu.vector_store %arg7[%c0_126, %c1_127, %c18_128, %c3_129], %146 {strides = array<i32>} : memref<2x2x22x22xf32, #tpu.memory_space<vmem>>, vector<2x1x1x16xf32>,
      %cst_130 = arith.constant 0.000000e+00 : f32
      %147 = vector.broadcast %cst_130 : f32 to vector<2x2x3x22xf32>
      %c0_131 = arith.constant 0 : index
      %c0_132 = arith.constant 0 : index
      %c0_133 = arith.constant 0 : index
      %c0_134 = arith.constant 0 : index
      %148 = vector.load %arg7[%c0_131, %c0_132, %c0_133, %c0_134] : memref<2x2x22x22xf32, #tpu.memory_space<vmem>>, vector<2x2x3x22xf32>
      tpu.vector_store %arg7[%c0_131, %c0_132, %c0_133, %c0_134], %147 {strides = array<i32>} : memref<2x2x22x22xf32, #tpu.memory_space<vmem>>, vector<2x2x3x22xf32>,
      %cst_135 = arith.constant 0.000000e+00 : f32
      %149 = vector.broadcast %cst_135 : f32 to vector<2x2x3x22xf32>
      %c0_136 = arith.constant 0 : index
      %c0_137 = arith.constant 0 : index
      %c19 = arith.constant 19 : index
      %c0_138 = arith.constant 0 : index
      %150 = vector.load %arg7[%c0_136, %c0_137, %c19, %c0_138] : memref<2x2x22x22xf32, #tpu.memory_space<vmem>>, vector<2x2x3x22xf32>
      tpu.vector_store %arg7[%c0_136, %c0_137, %c19, %c0_138], %149 {strides = array<i32>} : memref<2x2x22x22xf32, #tpu.memory_space<vmem>>, vector<2x2x3x22xf32>,
      %cst_139 = arith.constant 0.000000e+00 : f32
      %151 = vector.broadcast %cst_139 : f32 to vector<2x2x16x3xf32>
      %c0_140 = arith.constant 0 : index
      %c0_141 = arith.constant 0 : index
      %c3_142 = arith.constant 3 : index
      %c0_143 = arith.constant 0 : index
      %152 = vector.load %arg7[%c0_140, %c0_141, %c3_142, %c0_143] : memref<2x2x22x22xf32, #tpu.memory_space<vmem>>, vector<2x2x16x3xf32>
      tpu.vector_store %arg7[%c0_140, %c0_141, %c3_142, %c0_143], %151 {strides = array<i32>} : memref<2x2x22x22xf32, #tpu.memory_space<vmem>>, vector<2x2x16x3xf32>,
      %cst_144 = arith.constant 0.000000e+00 : f32
      %153 = vector.broadcast %cst_144 : f32 to vector<2x2x16x3xf32>
      %c0_145 = arith.constant 0 : index
      %c0_146 = arith.constant 0 : index
      %c3_147 = arith.constant 3 : index
      %c19_148 = arith.constant 19 : index
      %154 = vector.load %arg7[%c0_145, %c0_146, %c3_147, %c19_148] : memref<2x2x22x22xf32, #tpu.memory_space<vmem>>, vector<2x2x16x3xf32>
      tpu.vector_store %arg7[%c0_145, %c0_146, %c3_147, %c19_148], %153 {strides = array<i32>} : memref<2x2x22x22xf32, #tpu.memory_space<vmem>>, vector<2x2x16x3xf32>,
      %cst_149 = arith.constant 0.000000e+00 : f32
      %155 = vector.broadcast %cst_149 : f32 to vector<2x16x16xf32>
      %c0_150 = arith.constant 0 : index
      %c0_151 = arith.constant 0 : index
      %c0_152 = arith.constant 0 : index
      %c0_153 = arith.constant 0 : index
      %156 = vector.load %arg7[%c0_150, %c0_151, %c0_152, %c0_153] : memref<2x2x22x22xf32, #tpu.memory_space<vmem>>, vector<2x2x22x16xf32>
      %157 = vector.extract_strided_slice %156 {offsets = [0, 0, 0, 0], sizes = [2, 2, 16, 16], strides = [1, 1, 1, 1]} : vector<2x2x22x16xf32> to vector<2x2x16x16xf32>
      %c0_154 = arith.constant 0 : index
      %158 = memref.load %arg2[%c0_154] : memref<98xf32, #tpu.memory_space<smem>>
      %c49 = arith.constant 49 : index
      %159 = memref.load %arg2[%c49] : memref<98xf32, #tpu.memory_space<smem>>
      %160 = vector.extract_strided_slice %157 {offsets = [0, 0, 0, 0], sizes = [2, 1, 16, 16], strides = [1, 1, 1, 1]} : vector<2x2x16x16xf32> to vector<2x1x16x16xf32>
      %161 = vector.shape_cast %160 : vector<2x1x16x16xf32> to vector<2x16x16xf32>
      %162 = vector.broadcast %158 : f32 to vector<2x16x16xf32>
      %163 = arith.mulf %162, %161 : vector<2x16x16xf32>
      %164 = arith.addf %155, %163 : vector<2x16x16xf32>
      %165 = vector.extract_strided_slice %157 {offsets = [0, 1, 0, 0], sizes = [2, 1, 16, 16], strides = [1, 1, 1, 1]} : vector<2x2x16x16xf32> to vector<2x1x16x16xf32>
      %166 = vector.shape_cast %165 : vector<2x1x16x16xf32> to vector<2x16x16xf32>
      %167 = vector.broadcast %159 : f32 to vector<2x16x16xf32>
      %168 = arith.mulf %167, %166 : vector<2x16x16xf32>
      %169 = arith.addf %164, %168 : vector<2x16x16xf32>
      %170 = vector.extract_strided_slice %156 {offsets = [0, 0, 1, 0], sizes = [2, 2, 16, 16], strides = [1, 1, 1, 1]} : vector<2x2x22x16xf32> to vector<2x2x16x16xf32>
      %c7_155 = arith.constant 7 : index
      %171 = memref.load %arg2[%c7_155] : memref<98xf32, #tpu.memory_space<smem>>
      %c56 = arith.constant 56 : index
      %172 = memref.load %arg2[%c56] : memref<98xf32, #tpu.memory_space<smem>>
      %173 = vector.extract_strided_slice %170 {offsets = [0, 0, 0, 0], sizes = [2, 1, 16, 16], strides = [1, 1, 1, 1]} : vector<2x2x16x16xf32> to vector<2x1x16x16xf32>
      %174 = vector.shape_cast %173 : vector<2x1x16x16xf32> to vector<2x16x16xf32>
      %175 = vector.broadcast %171 : f32 to vector<2x16x16xf32>
      %176 = arith.mulf %175, %174 : vector<2x16x16xf32>
      %177 = arith.addf %169, %176 : vector<2x16x16xf32>
      %178 = vector.extract_strided_slice %170 {offsets = [0, 1, 0, 0], sizes = [2, 1, 16, 16], strides = [1, 1, 1, 1]} : vector<2x2x16x16xf32> to vector<2x1x16x16xf32>
      %179 = vector.shape_cast %178 : vector<2x1x16x16xf32> to vector<2x16x16xf32>
      %180 = vector.broadcast %172 : f32 to vector<2x16x16xf32>
      %181 = arith.mulf %180, %179 : vector<2x16x16xf32>
      %182 = arith.addf %177, %181 : vector<2x16x16xf32>
      %183 = vector.extract_strided_slice %156 {offsets = [0, 0, 2, 0], sizes = [2, 2, 16, 16], strides = [1, 1, 1, 1]} : vector<2x2x22x16xf32> to vector<2x2x16x16xf32>
      %c14_156 = arith.constant 14 : index
      %184 = memref.load %arg2[%c14_156] : memref<98xf32, #tpu.memory_space<smem>>
      %c63 = arith.constant 63 : index
      %185 = memref.load %arg2[%c63] : memref<98xf32, #tpu.memory_space<smem>>
      %186 = vector.extract_strided_slice %183 {offsets = [0, 0, 0, 0], sizes = [2, 1, 16, 16], strides = [1, 1, 1, 1]} : vector<2x2x16x16xf32> to vector<2x1x16x16xf32>
      %187 = vector.shape_cast %186 : vector<2x1x16x16xf32> to vector<2x16x16xf32>
      %188 = vector.broadcast %184 : f32 to vector<2x16x16xf32>
      %189 = arith.mulf %188, %187 : vector<2x16x16xf32>
      %190 = arith.addf %182, %189 : vector<2x16x16xf32>
      %191 = vector.extract_strided_slice %183 {offsets = [0, 1, 0, 0], sizes = [2, 1, 16, 16], strides = [1, 1, 1, 1]} : vector<2x2x16x16xf32> to vector<2x1x16x16xf32>
      %192 = vector.shape_cast %191 : vector<2x1x16x16xf32> to vector<2x16x16xf32>
      %193 = vector.broadcast %185 : f32 to vector<2x16x16xf32>
      %194 = arith.mulf %193, %192 : vector<2x16x16xf32>
      %195 = arith.addf %190, %194 : vector<2x16x16xf32>
      %196 = vector.extract_strided_slice %156 {offsets = [0, 0, 3, 0], sizes = [2, 2, 16, 16], strides = [1, 1, 1, 1]} : vector<2x2x22x16xf32> to vector<2x2x16x16xf32>
      %c21 = arith.constant 21 : index
      %197 = memref.load %arg2[%c21] : memref<98xf32, #tpu.memory_space<smem>>
      %c70 = arith.constant 70 : index
      %198 = memref.load %arg2[%c70] : memref<98xf32, #tpu.memory_space<smem>>
      %199 = vector.extract_strided_slice %196 {offsets = [0, 0, 0, 0], sizes = [2, 1, 16, 16], strides = [1, 1, 1, 1]} : vector<2x2x16x16xf32> to vector<2x1x16x16xf32>
      %200 = vector.shape_cast %199 : vector<2x1x16x16xf32> to vector<2x16x16xf32>
      %201 = vector.broadcast %197 : f32 to vector<2x16x16xf32>
      %202 = arith.mulf %201, %200 : vector<2x16x16xf32>
      %203 = arith.addf %195, %202 : vector<2x16x16xf32>
      %204 = vector.extract_strided_slice %196 {offsets = [0, 1, 0, 0], sizes = [2, 1, 16, 16], strides = [1, 1, 1, 1]} : vector<2x2x16x16xf32> to vector<2x1x16x16xf32>
      %205 = vector.shape_cast %204 : vector<2x1x16x16xf32> to vector<2x16x16xf32>
      %206 = vector.broadcast %198 : f32 to vector<2x16x16xf32>
      %207 = arith.mulf %206, %205 : vector<2x16x16xf32>
      %208 = arith.addf %203, %207 : vector<2x16x16xf32>
      %209 = vector.extract_strided_slice %156 {offsets = [0, 0, 4, 0], sizes = [2, 2, 16, 16], strides = [1, 1, 1, 1]} : vector<2x2x22x16xf32> to vector<2x2x16x16xf32>
      %c28 = arith.constant 28 : index
      %210 = memref.load %arg2[%c28] : memref<98xf32, #tpu.memory_space<smem>>
      %c77 = arith.constant 77 : index
      %211 = memref.load %arg2[%c77] : memref<98xf32, #tpu.memory_space<smem>>
      %212 = vector.extract_strided_slice %209 {offsets = [0, 0, 0, 0], sizes = [2, 1, 16, 16], strides = [1, 1, 1, 1]} : vector<2x2x16x16xf32> to vector<2x1x16x16xf32>
      %213 = vector.shape_cast %212 : vector<2x1x16x16xf32> to vector<2x16x16xf32>
      %214 = vector.broadcast %210 : f32 to vector<2x16x16xf32>
      %215 = arith.mulf %214, %213 : vector<2x16x16xf32>
      %216 = arith.addf %208, %215 : vector<2x16x16xf32>
      %217 = vector.extract_strided_slice %209 {offsets = [0, 1, 0, 0], sizes = [2, 1, 16, 16], strides = [1, 1, 1, 1]} : vector<2x2x16x16xf32> to vector<2x1x16x16xf32>
      %218 = vector.shape_cast %217 : vector<2x1x16x16xf32> to vector<2x16x16xf32>
      %219 = vector.broadcast %211 : f32 to vector<2x16x16xf32>
      %220 = arith.mulf %219, %218 : vector<2x16x16xf32>
      %221 = arith.addf %216, %220 : vector<2x16x16xf32>
      %222 = vector.extract_strided_slice %156 {offsets = [0, 0, 5, 0], sizes = [2, 2, 16, 16], strides = [1, 1, 1, 1]} : vector<2x2x22x16xf32> to vector<2x2x16x16xf32>
      %c35 = arith.constant 35 : index
      %223 = memref.load %arg2[%c35] : memref<98xf32, #tpu.memory_space<smem>>
      %c84 = arith.constant 84 : index
      %224 = memref.load %arg2[%c84] : memref<98xf32, #tpu.memory_space<smem>>
      %225 = vector.extract_strided_slice %222 {offsets = [0, 0, 0, 0], sizes = [2, 1, 16, 16], strides = [1, 1, 1, 1]} : vector<2x2x16x16xf32> to vector<2x1x16x16xf32>
      %226 = vector.shape_cast %225 : vector<2x1x16x16xf32> to vector<2x16x16xf32>
      %227 = vector.broadcast %223 : f32 to vector<2x16x16xf32>
      %228 = arith.mulf %227, %226 : vector<2x16x16xf32>
      %229 = arith.addf %221, %228 : vector<2x16x16xf32>
      %230 = vector.extract_strided_slice %222 {offsets = [0, 1, 0, 0], sizes = [2, 1, 16, 16], strides = [1, 1, 1, 1]} : vector<2x2x16x16xf32> to vector<2x1x16x16xf32>
      %231 = vector.shape_cast %230 : vector<2x1x16x16xf32> to vector<2x16x16xf32>
      %232 = vector.broadcast %224 : f32 to vector<2x16x16xf32>
      %233 = arith.mulf %232, %231 : vector<2x16x16xf32>
      %234 = arith.addf %229, %233 : vector<2x16x16xf32>
      %235 = vector.extract_strided_slice %156 {offsets = [0, 0, 6, 0], sizes = [2, 2, 16, 16], strides = [1, 1, 1, 1]} : vector<2x2x22x16xf32> to vector<2x2x16x16xf32>
      %c42 = arith.constant 42 : index
      %236 = memref.load %arg2[%c42] : memref<98xf32, #tpu.memory_space<smem>>
      %c91 = arith.constant 91 : index
      %237 = memref.load %arg2[%c91] : memref<98xf32, #tpu.memory_space<smem>>
      %238 = vector.extract_strided_slice %235 {offsets = [0, 0, 0, 0], sizes = [2, 1, 16, 16], strides = [1, 1, 1, 1]} : vector<2x2x16x16xf32> to vector<2x1x16x16xf32>
      %239 = vector.shape_cast %238 : vector<2x1x16x16xf32> to vector<2x16x16xf32>
      %240 = vector.broadcast %236 : f32 to vector<2x16x16xf32>
      %241 = arith.mulf %240, %239 : vector<2x16x16xf32>
      %242 = arith.addf %234, %241 : vector<2x16x16xf32>
      %243 = vector.extract_strided_slice %235 {offsets = [0, 1, 0, 0], sizes = [2, 1, 16, 16], strides = [1, 1, 1, 1]} : vector<2x2x16x16xf32> to vector<2x1x16x16xf32>
      %244 = vector.shape_cast %243 : vector<2x1x16x16xf32> to vector<2x16x16xf32>
      %245 = vector.broadcast %237 : f32 to vector<2x16x16xf32>
      %246 = arith.mulf %245, %244 : vector<2x16x16xf32>
      %247 = arith.addf %242, %246 : vector<2x16x16xf32>
      %c0_157 = arith.constant 0 : index
      %c0_158 = arith.constant 0 : index
      %c0_159 = arith.constant 0 : index
      %c1_160 = arith.constant 1 : index
      %248 = vector.load %arg7[%c0_157, %c0_158, %c0_159, %c1_160] : memref<2x2x22x22xf32, #tpu.memory_space<vmem>>, vector<2x2x22x16xf32>
      %249 = vector.extract_strided_slice %248 {offsets = [0, 0, 0, 0], sizes = [2, 2, 16, 16], strides = [1, 1, 1, 1]} : vector<2x2x22x16xf32> to vector<2x2x16x16xf32>
      %c1_161 = arith.constant 1 : index
      %250 = memref.load %arg2[%c1_161] : memref<98xf32, #tpu.memory_space<smem>>
      %c50 = arith.constant 50 : index
      %251 = memref.load %arg2[%c50] : memref<98xf32, #tpu.memory_space<smem>>
      %252 = vector.extract_strided_slice %249 {offsets = [0, 0, 0, 0], sizes = [2, 1, 16, 16], strides = [1, 1, 1, 1]} : vector<2x2x16x16xf32> to vector<2x1x16x16xf32>
      %253 = vector.shape_cast %252 : vector<2x1x16x16xf32> to vector<2x16x16xf32>
      %254 = vector.broadcast %250 : f32 to vector<2x16x16xf32>
      %255 = arith.mulf %254, %253 : vector<2x16x16xf32>
      %256 = arith.addf %247, %255 : vector<2x16x16xf32>
      %257 = vector.extract_strided_slice %249 {offsets = [0, 1, 0, 0], sizes = [2, 1, 16, 16], strides = [1, 1, 1, 1]} : vector<2x2x16x16xf32> to vector<2x1x16x16xf32>
      %258 = vector.shape_cast %257 : vector<2x1x16x16xf32> to vector<2x16x16xf32>
      %259 = vector.broadcast %251 : f32 to vector<2x16x16xf32>
      %260 = arith.mulf %259, %258 : vector<2x16x16xf32>
      %261 = arith.addf %256, %260 : vector<2x16x16xf32>
      %262 = vector.extract_strided_slice %248 {offsets = [0, 0, 1, 0], sizes = [2, 2, 16, 16], strides = [1, 1, 1, 1]} : vector<2x2x22x16xf32> to vector<2x2x16x16xf32>
      %c8_162 = arith.constant 8 : index
      %263 = memref.load %arg2[%c8_162] : memref<98xf32, #tpu.memory_space<smem>>
      %c57 = arith.constant 57 : index
      %264 = memref.load %arg2[%c57] : memref<98xf32, #tpu.memory_space<smem>>
      %265 = vector.extract_strided_slice %262 {offsets = [0, 0, 0, 0], sizes = [2, 1, 16, 16], strides = [1, 1, 1, 1]} : vector<2x2x16x16xf32> to vector<2x1x16x16xf32>
      %266 = vector.shape_cast %265 : vector<2x1x16x16xf32> to vector<2x16x16xf32>
      %267 = vector.broadcast %263 : f32 to vector<2x16x16xf32>
      %268 = arith.mulf %267, %266 : vector<2x16x16xf32>
      %269 = arith.addf %261, %268 : vector<2x16x16xf32>
      %270 = vector.extract_strided_slice %262 {offsets = [0, 1, 0, 0], sizes = [2, 1, 16, 16], strides = [1, 1, 1, 1]} : vector<2x2x16x16xf32> to vector<2x1x16x16xf32>
      %271 = vector.shape_cast %270 : vector<2x1x16x16xf32> to vector<2x16x16xf32>
      %272 = vector.broadcast %264 : f32 to vector<2x16x16xf32>
      %273 = arith.mulf %272, %271 : vector<2x16x16xf32>
      %274 = arith.addf %269, %273 : vector<2x16x16xf32>
      %275 = vector.extract_strided_slice %248 {offsets = [0, 0, 2, 0], sizes = [2, 2, 16, 16], strides = [1, 1, 1, 1]} : vector<2x2x22x16xf32> to vector<2x2x16x16xf32>
      %c15_163 = arith.constant 15 : index
      %276 = memref.load %arg2[%c15_163] : memref<98xf32, #tpu.memory_space<smem>>
      %c64 = arith.constant 64 : index
      %277 = memref.load %arg2[%c64] : memref<98xf32, #tpu.memory_space<smem>>
      %278 = vector.extract_strided_slice %275 {offsets = [0, 0, 0, 0], sizes = [2, 1, 16, 16], strides = [1, 1, 1, 1]} : vector<2x2x16x16xf32> to vector<2x1x16x16xf32>
      %279 = vector.shape_cast %278 : vector<2x1x16x16xf32> to vector<2x16x16xf32>
      %280 = vector.broadcast %276 : f32 to vector<2x16x16xf32>
      %281 = arith.mulf %280, %279 : vector<2x16x16xf32>
      %282 = arith.addf %274, %281 : vector<2x16x16xf32>
      %283 = vector.extract_strided_slice %275 {offsets = [0, 1, 0, 0], sizes = [2, 1, 16, 16], strides = [1, 1, 1, 1]} : vector<2x2x16x16xf32> to vector<2x1x16x16xf32>
      %284 = vector.shape_cast %283 : vector<2x1x16x16xf32> to vector<2x16x16xf32>
      %285 = vector.broadcast %277 : f32 to vector<2x16x16xf32>
      %286 = arith.mulf %285, %284 : vector<2x16x16xf32>
      %287 = arith.addf %282, %286 : vector<2x16x16xf32>
      %288 = vector.extract_strided_slice %248 {offsets = [0, 0, 3, 0], sizes = [2, 2, 16, 16], strides = [1, 1, 1, 1]} : vector<2x2x22x16xf32> to vector<2x2x16x16xf32>
      %c22 = arith.constant 22 : index
      %289 = memref.load %arg2[%c22] : memref<98xf32, #tpu.memory_space<smem>>
      %c71 = arith.constant 71 : index
      %290 = memref.load %arg2[%c71] : memref<98xf32, #tpu.memory_space<smem>>
      %291 = vector.extract_strided_slice %288 {offsets = [0, 0, 0, 0], sizes = [2, 1, 16, 16], strides = [1, 1, 1, 1]} : vector<2x2x16x16xf32> to vector<2x1x16x16xf32>
      %292 = vector.shape_cast %291 : vector<2x1x16x16xf32> to vector<2x16x16xf32>
      %293 = vector.broadcast %289 : f32 to vector<2x16x16xf32>
      %294 = arith.mulf %293, %292 : vector<2x16x16xf32>
      %295 = arith.addf %287, %294 : vector<2x16x16xf32>
      %296 = vector.extract_strided_slice %288 {offsets = [0, 1, 0, 0], sizes = [2, 1, 16, 16], strides = [1, 1, 1, 1]} : vector<2x2x16x16xf32> to vector<2x1x16x16xf32>
      %297 = vector.shape_cast %296 : vector<2x1x16x16xf32> to vector<2x16x16xf32>
      %298 = vector.broadcast %290 : f32 to vector<2x16x16xf32>
      %299 = arith.mulf %298, %297 : vector<2x16x16xf32>
      %300 = arith.addf %295, %299 : vector<2x16x16xf32>
      %301 = vector.extract_strided_slice %248 {offsets = [0, 0, 4, 0], sizes = [2, 2, 16, 16], strides = [1, 1, 1, 1]} : vector<2x2x22x16xf32> to vector<2x2x16x16xf32>
      %c29 = arith.constant 29 : index
      %302 = memref.load %arg2[%c29] : memref<98xf32, #tpu.memory_space<smem>>
      %c78 = arith.constant 78 : index
      %303 = memref.load %arg2[%c78] : memref<98xf32, #tpu.memory_space<smem>>
      %304 = vector.extract_strided_slice %301 {offsets = [0, 0, 0, 0], sizes = [2, 1, 16, 16], strides = [1, 1, 1, 1]} : vector<2x2x16x16xf32> to vector<2x1x16x16xf32>
      %305 = vector.shape_cast %304 : vector<2x1x16x16xf32> to vector<2x16x16xf32>
      %306 = vector.broadcast %302 : f32 to vector<2x16x16xf32>
      %307 = arith.mulf %306, %305 : vector<2x16x16xf32>
      %308 = arith.addf %300, %307 : vector<2x16x16xf32>
      %309 = vector.extract_strided_slice %301 {offsets = [0, 1, 0, 0], sizes = [2, 1, 16, 16], strides = [1, 1, 1, 1]} : vector<2x2x16x16xf32> to vector<2x1x16x16xf32>
      %310 = vector.shape_cast %309 : vector<2x1x16x16xf32> to vector<2x16x16xf32>
      %311 = vector.broadcast %303 : f32 to vector<2x16x16xf32>
      %312 = arith.mulf %311, %310 : vector<2x16x16xf32>
      %313 = arith.addf %308, %312 : vector<2x16x16xf32>
      %314 = vector.extract_strided_slice %248 {offsets = [0, 0, 5, 0], sizes = [2, 2, 16, 16], strides = [1, 1, 1, 1]} : vector<2x2x22x16xf32> to vector<2x2x16x16xf32>
      %c36 = arith.constant 36 : index
      %315 = memref.load %arg2[%c36] : memref<98xf32, #tpu.memory_space<smem>>
      %c85 = arith.constant 85 : index
      %316 = memref.load %arg2[%c85] : memref<98xf32, #tpu.memory_space<smem>>
      %317 = vector.extract_strided_slice %314 {offsets = [0, 0, 0, 0], sizes = [2, 1, 16, 16], strides = [1, 1, 1, 1]} : vector<2x2x16x16xf32> to vector<2x1x16x16xf32>
      %318 = vector.shape_cast %317 : vector<2x1x16x16xf32> to vector<2x16x16xf32>
      %319 = vector.broadcast %315 : f32 to vector<2x16x16xf32>
      %320 = arith.mulf %319, %318 : vector<2x16x16xf32>
      %321 = arith.addf %313, %320 : vector<2x16x16xf32>
      %322 = vector.extract_strided_slice %314 {offsets = [0, 1, 0, 0], sizes = [2, 1, 16, 16], strides = [1, 1, 1, 1]} : vector<2x2x16x16xf32> to vector<2x1x16x16xf32>
      %323 = vector.shape_cast %322 : vector<2x1x16x16xf32> to vector<2x16x16xf32>
      %324 = vector.broadcast %316 : f32 to vector<2x16x16xf32>
      %325 = arith.mulf %324, %323 : vector<2x16x16xf32>
      %326 = arith.addf %321, %325 : vector<2x16x16xf32>
      %327 = vector.extract_strided_slice %248 {offsets = [0, 0, 6, 0], sizes = [2, 2, 16, 16], strides = [1, 1, 1, 1]} : vector<2x2x22x16xf32> to vector<2x2x16x16xf32>
      %c43 = arith.constant 43 : index
      %328 = memref.load %arg2[%c43] : memref<98xf32, #tpu.memory_space<smem>>
      %c92 = arith.constant 92 : index
      %329 = memref.load %arg2[%c92] : memref<98xf32, #tpu.memory_space<smem>>
      %330 = vector.extract_strided_slice %327 {offsets = [0, 0, 0, 0], sizes = [2, 1, 16, 16], strides = [1, 1, 1, 1]} : vector<2x2x16x16xf32> to vector<2x1x16x16xf32>
      %331 = vector.shape_cast %330 : vector<2x1x16x16xf32> to vector<2x16x16xf32>
      %332 = vector.broadcast %328 : f32 to vector<2x16x16xf32>
      %333 = arith.mulf %332, %331 : vector<2x16x16xf32>
      %334 = arith.addf %326, %333 : vector<2x16x16xf32>
      %335 = vector.extract_strided_slice %327 {offsets = [0, 1, 0, 0], sizes = [2, 1, 16, 16], strides = [1, 1, 1, 1]} : vector<2x2x16x16xf32> to vector<2x1x16x16xf32>
      %336 = vector.shape_cast %335 : vector<2x1x16x16xf32> to vector<2x16x16xf32>
      %337 = vector.broadcast %329 : f32 to vector<2x16x16xf32>
      %338 = arith.mulf %337, %336 : vector<2x16x16xf32>
      %339 = arith.addf %334, %338 : vector<2x16x16xf32>
      %c0_164 = arith.constant 0 : index
      %c0_165 = arith.constant 0 : index
      %c0_166 = arith.constant 0 : index
      %c2 = arith.constant 2 : index
      %340 = vector.load %arg7[%c0_164, %c0_165, %c0_166, %c2] : memref<2x2x22x22xf32, #tpu.memory_space<vmem>>, vector<2x2x22x16xf32>
      %341 = vector.extract_strided_slice %340 {offsets = [0, 0, 0, 0], sizes = [2, 2, 16, 16], strides = [1, 1, 1, 1]} : vector<2x2x22x16xf32> to vector<2x2x16x16xf32>
      %c2_167 = arith.constant 2 : index
      %342 = memref.load %arg2[%c2_167] : memref<98xf32, #tpu.memory_space<smem>>
      %c51 = arith.constant 51 : index
      %343 = memref.load %arg2[%c51] : memref<98xf32, #tpu.memory_space<smem>>
      %344 = vector.extract_strided_slice %341 {offsets = [0, 0, 0, 0], sizes = [2, 1, 16, 16], strides = [1, 1, 1, 1]} : vector<2x2x16x16xf32> to vector<2x1x16x16xf32>
      %345 = vector.shape_cast %344 : vector<2x1x16x16xf32> to vector<2x16x16xf32>
      %346 = vector.broadcast %342 : f32 to vector<2x16x16xf32>
      %347 = arith.mulf %346, %345 : vector<2x16x16xf32>
      %348 = arith.addf %339, %347 : vector<2x16x16xf32>
      %349 = vector.extract_strided_slice %341 {offsets = [0, 1, 0, 0], sizes = [2, 1, 16, 16], strides = [1, 1, 1, 1]} : vector<2x2x16x16xf32> to vector<2x1x16x16xf32>
      %350 = vector.shape_cast %349 : vector<2x1x16x16xf32> to vector<2x16x16xf32>
      %351 = vector.broadcast %343 : f32 to vector<2x16x16xf32>
      %352 = arith.mulf %351, %350 : vector<2x16x16xf32>
      %353 = arith.addf %348, %352 : vector<2x16x16xf32>
      %354 = vector.extract_strided_slice %340 {offsets = [0, 0, 1, 0], sizes = [2, 2, 16, 16], strides = [1, 1, 1, 1]} : vector<2x2x22x16xf32> to vector<2x2x16x16xf32>
      %c9_168 = arith.constant 9 : index
      %355 = memref.load %arg2[%c9_168] : memref<98xf32, #tpu.memory_space<smem>>
      %c58 = arith.constant 58 : index
      %356 = memref.load %arg2[%c58] : memref<98xf32, #tpu.memory_space<smem>>
      %357 = vector.extract_strided_slice %354 {offsets = [0, 0, 0, 0], sizes = [2, 1, 16, 16], strides = [1, 1, 1, 1]} : vector<2x2x16x16xf32> to vector<2x1x16x16xf32>
      %358 = vector.shape_cast %357 : vector<2x1x16x16xf32> to vector<2x16x16xf32>
      %359 = vector.broadcast %355 : f32 to vector<2x16x16xf32>
      %360 = arith.mulf %359, %358 : vector<2x16x16xf32>
      %361 = arith.addf %353, %360 : vector<2x16x16xf32>
      %362 = vector.extract_strided_slice %354 {offsets = [0, 1, 0, 0], sizes = [2, 1, 16, 16], strides = [1, 1, 1, 1]} : vector<2x2x16x16xf32> to vector<2x1x16x16xf32>
      %363 = vector.shape_cast %362 : vector<2x1x16x16xf32> to vector<2x16x16xf32>
      %364 = vector.broadcast %356 : f32 to vector<2x16x16xf32>
      %365 = arith.mulf %364, %363 : vector<2x16x16xf32>
      %366 = arith.addf %361, %365 : vector<2x16x16xf32>
      %367 = vector.extract_strided_slice %340 {offsets = [0, 0, 2, 0], sizes = [2, 2, 16, 16], strides = [1, 1, 1, 1]} : vector<2x2x22x16xf32> to vector<2x2x16x16xf32>
      %c16_169 = arith.constant 16 : index
      %368 = memref.load %arg2[%c16_169] : memref<98xf32, #tpu.memory_space<smem>>
      %c65 = arith.constant 65 : index
      %369 = memref.load %arg2[%c65] : memref<98xf32, #tpu.memory_space<smem>>
      %370 = vector.extract_strided_slice %367 {offsets = [0, 0, 0, 0], sizes = [2, 1, 16, 16], strides = [1, 1, 1, 1]} : vector<2x2x16x16xf32> to vector<2x1x16x16xf32>
      %371 = vector.shape_cast %370 : vector<2x1x16x16xf32> to vector<2x16x16xf32>
      %372 = vector.broadcast %368 : f32 to vector<2x16x16xf32>
      %373 = arith.mulf %372, %371 : vector<2x16x16xf32>
      %374 = arith.addf %366, %373 : vector<2x16x16xf32>
      %375 = vector.extract_strided_slice %367 {offsets = [0, 1, 0, 0], sizes = [2, 1, 16, 16], strides = [1, 1, 1, 1]} : vector<2x2x16x16xf32> to vector<2x1x16x16xf32>
      %376 = vector.shape_cast %375 : vector<2x1x16x16xf32> to vector<2x16x16xf32>
      %377 = vector.broadcast %369 : f32 to vector<2x16x16xf32>
      %378 = arith.mulf %377, %376 : vector<2x16x16xf32>
      %379 = arith.addf %374, %378 : vector<2x16x16xf32>
      %380 = vector.extract_strided_slice %340 {offsets = [0, 0, 3, 0], sizes = [2, 2, 16, 16], strides = [1, 1, 1, 1]} : vector<2x2x22x16xf32> to vector<2x2x16x16xf32>
      %c23 = arith.constant 23 : index
      %381 = memref.load %arg2[%c23] : memref<98xf32, #tpu.memory_space<smem>>
      %c72 = arith.constant 72 : index
      %382 = memref.load %arg2[%c72] : memref<98xf32, #tpu.memory_space<smem>>
      %383 = vector.extract_strided_slice %380 {offsets = [0, 0, 0, 0], sizes = [2, 1, 16, 16], strides = [1, 1, 1, 1]} : vector<2x2x16x16xf32> to vector<2x1x16x16xf32>
      %384 = vector.shape_cast %383 : vector<2x1x16x16xf32> to vector<2x16x16xf32>
      %385 = vector.broadcast %381 : f32 to vector<2x16x16xf32>
      %386 = arith.mulf %385, %384 : vector<2x16x16xf32>
      %387 = arith.addf %379, %386 : vector<2x16x16xf32>
      %388 = vector.extract_strided_slice %380 {offsets = [0, 1, 0, 0], sizes = [2, 1, 16, 16], strides = [1, 1, 1, 1]} : vector<2x2x16x16xf32> to vector<2x1x16x16xf32>
      %389 = vector.shape_cast %388 : vector<2x1x16x16xf32> to vector<2x16x16xf32>
      %390 = vector.broadcast %382 : f32 to vector<2x16x16xf32>
      %391 = arith.mulf %390, %389 : vector<2x16x16xf32>
      %392 = arith.addf %387, %391 : vector<2x16x16xf32>
      %393 = vector.extract_strided_slice %340 {offsets = [0, 0, 4, 0], sizes = [2, 2, 16, 16], strides = [1, 1, 1, 1]} : vector<2x2x22x16xf32> to vector<2x2x16x16xf32>
      %c30 = arith.constant 30 : index
      %394 = memref.load %arg2[%c30] : memref<98xf32, #tpu.memory_space<smem>>
      %c79 = arith.constant 79 : index
      %395 = memref.load %arg2[%c79] : memref<98xf32, #tpu.memory_space<smem>>
      %396 = vector.extract_strided_slice %393 {offsets = [0, 0, 0, 0], sizes = [2, 1, 16, 16], strides = [1, 1, 1, 1]} : vector<2x2x16x16xf32> to vector<2x1x16x16xf32>
      %397 = vector.shape_cast %396 : vector<2x1x16x16xf32> to vector<2x16x16xf32>
      %398 = vector.broadcast %394 : f32 to vector<2x16x16xf32>
      %399 = arith.mulf %398, %397 : vector<2x16x16xf32>
      %400 = arith.addf %392, %399 : vector<2x16x16xf32>
      %401 = vector.extract_strided_slice %393 {offsets = [0, 1, 0, 0], sizes = [2, 1, 16, 16], strides = [1, 1, 1, 1]} : vector<2x2x16x16xf32> to vector<2x1x16x16xf32>
      %402 = vector.shape_cast %401 : vector<2x1x16x16xf32> to vector<2x16x16xf32>
      %403 = vector.broadcast %395 : f32 to vector<2x16x16xf32>
      %404 = arith.mulf %403, %402 : vector<2x16x16xf32>
      %405 = arith.addf %400, %404 : vector<2x16x16xf32>
      %406 = vector.extract_strided_slice %340 {offsets = [0, 0, 5, 0], sizes = [2, 2, 16, 16], strides = [1, 1, 1, 1]} : vector<2x2x22x16xf32> to vector<2x2x16x16xf32>
      %c37 = arith.constant 37 : index
      %407 = memref.load %arg2[%c37] : memref<98xf32, #tpu.memory_space<smem>>
      %c86 = arith.constant 86 : index
      %408 = memref.load %arg2[%c86] : memref<98xf32, #tpu.memory_space<smem>>
      %409 = vector.extract_strided_slice %406 {offsets = [0, 0, 0, 0], sizes = [2, 1, 16, 16], strides = [1, 1, 1, 1]} : vector<2x2x16x16xf32> to vector<2x1x16x16xf32>
      %410 = vector.shape_cast %409 : vector<2x1x16x16xf32> to vector<2x16x16xf32>
      %411 = vector.broadcast %407 : f32 to vector<2x16x16xf32>
      %412 = arith.mulf %411, %410 : vector<2x16x16xf32>
      %413 = arith.addf %405, %412 : vector<2x16x16xf32>
      %414 = vector.extract_strided_slice %406 {offsets = [0, 1, 0, 0], sizes = [2, 1, 16, 16], strides = [1, 1, 1, 1]} : vector<2x2x16x16xf32> to vector<2x1x16x16xf32>
      %415 = vector.shape_cast %414 : vector<2x1x16x16xf32> to vector<2x16x16xf32>
      %416 = vector.broadcast %408 : f32 to vector<2x16x16xf32>
      %417 = arith.mulf %416, %415 : vector<2x16x16xf32>
      %418 = arith.addf %413, %417 : vector<2x16x16xf32>
      %419 = vector.extract_strided_slice %340 {offsets = [0, 0, 6, 0], sizes = [2, 2, 16, 16], strides = [1, 1, 1, 1]} : vector<2x2x22x16xf32> to vector<2x2x16x16xf32>
      %c44 = arith.constant 44 : index
      %420 = memref.load %arg2[%c44] : memref<98xf32, #tpu.memory_space<smem>>
      %c93 = arith.constant 93 : index
      %421 = memref.load %arg2[%c93] : memref<98xf32, #tpu.memory_space<smem>>
      %422 = vector.extract_strided_slice %419 {offsets = [0, 0, 0, 0], sizes = [2, 1, 16, 16], strides = [1, 1, 1, 1]} : vector<2x2x16x16xf32> to vector<2x1x16x16xf32>
      %423 = vector.shape_cast %422 : vector<2x1x16x16xf32> to vector<2x16x16xf32>
      %424 = vector.broadcast %420 : f32 to vector<2x16x16xf32>
      %425 = arith.mulf %424, %423 : vector<2x16x16xf32>
      %426 = arith.addf %418, %425 : vector<2x16x16xf32>
      %427 = vector.extract_strided_slice %419 {offsets = [0, 1, 0, 0], sizes = [2, 1, 16, 16], strides = [1, 1, 1, 1]} : vector<2x2x16x16xf32> to vector<2x1x16x16xf32>
      %428 = vector.shape_cast %427 : vector<2x1x16x16xf32> to vector<2x16x16xf32>
      %429 = vector.broadcast %421 : f32 to vector<2x16x16xf32>
      %430 = arith.mulf %429, %428 : vector<2x16x16xf32>
      %431 = arith.addf %426, %430 : vector<2x16x16xf32>
      %c0_170 = arith.constant 0 : index
      %c0_171 = arith.constant 0 : index
      %c0_172 = arith.constant 0 : index
      %c3_173 = arith.constant 3 : index
      %432 = vector.load %arg7[%c0_170, %c0_171, %c0_172, %c3_173] : memref<2x2x22x22xf32, #tpu.memory_space<vmem>>, vector<2x2x22x16xf32>
      %433 = vector.extract_strided_slice %432 {offsets = [0, 0, 0, 0], sizes = [2, 2, 16, 16], strides = [1, 1, 1, 1]} : vector<2x2x22x16xf32> to vector<2x2x16x16xf32>
      %c3_174 = arith.constant 3 : index
      %434 = memref.load %arg2[%c3_174] : memref<98xf32, #tpu.memory_space<smem>>
      %c52 = arith.constant 52 : index
      %435 = memref.load %arg2[%c52] : memref<98xf32, #tpu.memory_space<smem>>
      %436 = vector.extract_strided_slice %433 {offsets = [0, 0, 0, 0], sizes = [2, 1, 16, 16], strides = [1, 1, 1, 1]} : vector<2x2x16x16xf32> to vector<2x1x16x16xf32>
      %437 = vector.shape_cast %436 : vector<2x1x16x16xf32> to vector<2x16x16xf32>
      %438 = vector.broadcast %434 : f32 to vector<2x16x16xf32>
      %439 = arith.mulf %438, %437 : vector<2x16x16xf32>
      %440 = arith.addf %431, %439 : vector<2x16x16xf32>
      %441 = vector.extract_strided_slice %433 {offsets = [0, 1, 0, 0], sizes = [2, 1, 16, 16], strides = [1, 1, 1, 1]} : vector<2x2x16x16xf32> to vector<2x1x16x16xf32>
      %442 = vector.shape_cast %441 : vector<2x1x16x16xf32> to vector<2x16x16xf32>
      %443 = vector.broadcast %435 : f32 to vector<2x16x16xf32>
      %444 = arith.mulf %443, %442 : vector<2x16x16xf32>
      %445 = arith.addf %440, %444 : vector<2x16x16xf32>
      %446 = vector.extract_strided_slice %432 {offsets = [0, 0, 1, 0], sizes = [2, 2, 16, 16], strides = [1, 1, 1, 1]} : vector<2x2x22x16xf32> to vector<2x2x16x16xf32>
      %c10_175 = arith.constant 10 : index
      %447 = memref.load %arg2[%c10_175] : memref<98xf32, #tpu.memory_space<smem>>
      %c59 = arith.constant 59 : index
      %448 = memref.load %arg2[%c59] : memref<98xf32, #tpu.memory_space<smem>>
      %449 = vector.extract_strided_slice %446 {offsets = [0, 0, 0, 0], sizes = [2, 1, 16, 16], strides = [1, 1, 1, 1]} : vector<2x2x16x16xf32> to vector<2x1x16x16xf32>
      %450 = vector.shape_cast %449 : vector<2x1x16x16xf32> to vector<2x16x16xf32>
      %451 = vector.broadcast %447 : f32 to vector<2x16x16xf32>
      %452 = arith.mulf %451, %450 : vector<2x16x16xf32>
      %453 = arith.addf %445, %452 : vector<2x16x16xf32>
      %454 = vector.extract_strided_slice %446 {offsets = [0, 1, 0, 0], sizes = [2, 1, 16, 16], strides = [1, 1, 1, 1]} : vector<2x2x16x16xf32> to vector<2x1x16x16xf32>
      %455 = vector.shape_cast %454 : vector<2x1x16x16xf32> to vector<2x16x16xf32>
      %456 = vector.broadcast %448 : f32 to vector<2x16x16xf32>
      %457 = arith.mulf %456, %455 : vector<2x16x16xf32>
      %458 = arith.addf %453, %457 : vector<2x16x16xf32>
      %459 = vector.extract_strided_slice %432 {offsets = [0, 0, 2, 0], sizes = [2, 2, 16, 16], strides = [1, 1, 1, 1]} : vector<2x2x22x16xf32> to vector<2x2x16x16xf32>
      %c17_176 = arith.constant 17 : index
      %460 = memref.load %arg2[%c17_176] : memref<98xf32, #tpu.memory_space<smem>>
      %c66 = arith.constant 66 : index
      %461 = memref.load %arg2[%c66] : memref<98xf32, #tpu.memory_space<smem>>
      %462 = vector.extract_strided_slice %459 {offsets = [0, 0, 0, 0], sizes = [2, 1, 16, 16], strides = [1, 1, 1, 1]} : vector<2x2x16x16xf32> to vector<2x1x16x16xf32>
      %463 = vector.shape_cast %462 : vector<2x1x16x16xf32> to vector<2x16x16xf32>
      %464 = vector.broadcast %460 : f32 to vector<2x16x16xf32>
      %465 = arith.mulf %464, %463 : vector<2x16x16xf32>
      %466 = arith.addf %458, %465 : vector<2x16x16xf32>
      %467 = vector.extract_strided_slice %459 {offsets = [0, 1, 0, 0], sizes = [2, 1, 16, 16], strides = [1, 1, 1, 1]} : vector<2x2x16x16xf32> to vector<2x1x16x16xf32>
      %468 = vector.shape_cast %467 : vector<2x1x16x16xf32> to vector<2x16x16xf32>
      %469 = vector.broadcast %461 : f32 to vector<2x16x16xf32>
      %470 = arith.mulf %469, %468 : vector<2x16x16xf32>
      %471 = arith.addf %466, %470 : vector<2x16x16xf32>
      %472 = vector.extract_strided_slice %432 {offsets = [0, 0, 3, 0], sizes = [2, 2, 16, 16], strides = [1, 1, 1, 1]} : vector<2x2x22x16xf32> to vector<2x2x16x16xf32>
      %c24 = arith.constant 24 : index
      %473 = memref.load %arg2[%c24] : memref<98xf32, #tpu.memory_space<smem>>
      %c73 = arith.constant 73 : index
      %474 = memref.load %arg2[%c73] : memref<98xf32, #tpu.memory_space<smem>>
      %475 = vector.extract_strided_slice %472 {offsets = [0, 0, 0, 0], sizes = [2, 1, 16, 16], strides = [1, 1, 1, 1]} : vector<2x2x16x16xf32> to vector<2x1x16x16xf32>
      %476 = vector.shape_cast %475 : vector<2x1x16x16xf32> to vector<2x16x16xf32>
      %477 = vector.broadcast %473 : f32 to vector<2x16x16xf32>
      %478 = arith.mulf %477, %476 : vector<2x16x16xf32>
      %479 = arith.addf %471, %478 : vector<2x16x16xf32>
      %480 = vector.extract_strided_slice %472 {offsets = [0, 1, 0, 0], sizes = [2, 1, 16, 16], strides = [1, 1, 1, 1]} : vector<2x2x16x16xf32> to vector<2x1x16x16xf32>
      %481 = vector.shape_cast %480 : vector<2x1x16x16xf32> to vector<2x16x16xf32>
      %482 = vector.broadcast %474 : f32 to vector<2x16x16xf32>
      %483 = arith.mulf %482, %481 : vector<2x16x16xf32>
      %484 = arith.addf %479, %483 : vector<2x16x16xf32>
      %485 = vector.extract_strided_slice %432 {offsets = [0, 0, 4, 0], sizes = [2, 2, 16, 16], strides = [1, 1, 1, 1]} : vector<2x2x22x16xf32> to vector<2x2x16x16xf32>
      %c31 = arith.constant 31 : index
      %486 = memref.load %arg2[%c31] : memref<98xf32, #tpu.memory_space<smem>>
      %c80 = arith.constant 80 : index
      %487 = memref.load %arg2[%c80] : memref<98xf32, #tpu.memory_space<smem>>
      %488 = vector.extract_strided_slice %485 {offsets = [0, 0, 0, 0], sizes = [2, 1, 16, 16], strides = [1, 1, 1, 1]} : vector<2x2x16x16xf32> to vector<2x1x16x16xf32>
      %489 = vector.shape_cast %488 : vector<2x1x16x16xf32> to vector<2x16x16xf32>
      %490 = vector.broadcast %486 : f32 to vector<2x16x16xf32>
      %491 = arith.mulf %490, %489 : vector<2x16x16xf32>
      %492 = arith.addf %484, %491 : vector<2x16x16xf32>
      %493 = vector.extract_strided_slice %485 {offsets = [0, 1, 0, 0], sizes = [2, 1, 16, 16], strides = [1, 1, 1, 1]} : vector<2x2x16x16xf32> to vector<2x1x16x16xf32>
      %494 = vector.shape_cast %493 : vector<2x1x16x16xf32> to vector<2x16x16xf32>
      %495 = vector.broadcast %487 : f32 to vector<2x16x16xf32>
      %496 = arith.mulf %495, %494 : vector<2x16x16xf32>
      %497 = arith.addf %492, %496 : vector<2x16x16xf32>
      %498 = vector.extract_strided_slice %432 {offsets = [0, 0, 5, 0], sizes = [2, 2, 16, 16], strides = [1, 1, 1, 1]} : vector<2x2x22x16xf32> to vector<2x2x16x16xf32>
      %c38 = arith.constant 38 : index
      %499 = memref.load %arg2[%c38] : memref<98xf32, #tpu.memory_space<smem>>
      %c87 = arith.constant 87 : index
      %500 = memref.load %arg2[%c87] : memref<98xf32, #tpu.memory_space<smem>>
      %501 = vector.extract_strided_slice %498 {offsets = [0, 0, 0, 0], sizes = [2, 1, 16, 16], strides = [1, 1, 1, 1]} : vector<2x2x16x16xf32> to vector<2x1x16x16xf32>
      %502 = vector.shape_cast %501 : vector<2x1x16x16xf32> to vector<2x16x16xf32>
      %503 = vector.broadcast %499 : f32 to vector<2x16x16xf32>
      %504 = arith.mulf %503, %502 : vector<2x16x16xf32>
      %505 = arith.addf %497, %504 : vector<2x16x16xf32>
      %506 = vector.extract_strided_slice %498 {offsets = [0, 1, 0, 0], sizes = [2, 1, 16, 16], strides = [1, 1, 1, 1]} : vector<2x2x16x16xf32> to vector<2x1x16x16xf32>
      %507 = vector.shape_cast %506 : vector<2x1x16x16xf32> to vector<2x16x16xf32>
      %508 = vector.broadcast %500 : f32 to vector<2x16x16xf32>
      %509 = arith.mulf %508, %507 : vector<2x16x16xf32>
      %510 = arith.addf %505, %509 : vector<2x16x16xf32>
      %511 = vector.extract_strided_slice %432 {offsets = [0, 0, 6, 0], sizes = [2, 2, 16, 16], strides = [1, 1, 1, 1]} : vector<2x2x22x16xf32> to vector<2x2x16x16xf32>
      %c45 = arith.constant 45 : index
      %512 = memref.load %arg2[%c45] : memref<98xf32, #tpu.memory_space<smem>>
      %c94 = arith.constant 94 : index
      %513 = memref.load %arg2[%c94] : memref<98xf32, #tpu.memory_space<smem>>
      %514 = vector.extract_strided_slice %511 {offsets = [0, 0, 0, 0], sizes = [2, 1, 16, 16], strides = [1, 1, 1, 1]} : vector<2x2x16x16xf32> to vector<2x1x16x16xf32>
      %515 = vector.shape_cast %514 : vector<2x1x16x16xf32> to vector<2x16x16xf32>
      %516 = vector.broadcast %512 : f32 to vector<2x16x16xf32>
      %517 = arith.mulf %516, %515 : vector<2x16x16xf32>
      %518 = arith.addf %510, %517 : vector<2x16x16xf32>
      %519 = vector.extract_strided_slice %511 {offsets = [0, 1, 0, 0], sizes = [2, 1, 16, 16], strides = [1, 1, 1, 1]} : vector<2x2x16x16xf32> to vector<2x1x16x16xf32>
      %520 = vector.shape_cast %519 : vector<2x1x16x16xf32> to vector<2x16x16xf32>
      %521 = vector.broadcast %513 : f32 to vector<2x16x16xf32>
      %522 = arith.mulf %521, %520 : vector<2x16x16xf32>
      %523 = arith.addf %518, %522 : vector<2x16x16xf32>
      %c0_177 = arith.constant 0 : index
      %c0_178 = arith.constant 0 : index
      %c0_179 = arith.constant 0 : index
      %c4_180 = arith.constant 4 : index
      %524 = vector.load %arg7[%c0_177, %c0_178, %c0_179, %c4_180] : memref<2x2x22x22xf32, #tpu.memory_space<vmem>>, vector<2x2x22x16xf32>
      %525 = vector.extract_strided_slice %524 {offsets = [0, 0, 0, 0], sizes = [2, 2, 16, 16], strides = [1, 1, 1, 1]} : vector<2x2x22x16xf32> to vector<2x2x16x16xf32>
      %c4_181 = arith.constant 4 : index
      %526 = memref.load %arg2[%c4_181] : memref<98xf32, #tpu.memory_space<smem>>
      %c53 = arith.constant 53 : index
      %527 = memref.load %arg2[%c53] : memref<98xf32, #tpu.memory_space<smem>>
      %528 = vector.extract_strided_slice %525 {offsets = [0, 0, 0, 0], sizes = [2, 1, 16, 16], strides = [1, 1, 1, 1]} : vector<2x2x16x16xf32> to vector<2x1x16x16xf32>
      %529 = vector.shape_cast %528 : vector<2x1x16x16xf32> to vector<2x16x16xf32>
      %530 = vector.broadcast %526 : f32 to vector<2x16x16xf32>
      %531 = arith.mulf %530, %529 : vector<2x16x16xf32>
      %532 = arith.addf %523, %531 : vector<2x16x16xf32>
      %533 = vector.extract_strided_slice %525 {offsets = [0, 1, 0, 0], sizes = [2, 1, 16, 16], strides = [1, 1, 1, 1]} : vector<2x2x16x16xf32> to vector<2x1x16x16xf32>
      %534 = vector.shape_cast %533 : vector<2x1x16x16xf32> to vector<2x16x16xf32>
      %535 = vector.broadcast %527 : f32 to vector<2x16x16xf32>
      %536 = arith.mulf %535, %534 : vector<2x16x16xf32>
      %537 = arith.addf %532, %536 : vector<2x16x16xf32>
      %538 = vector.extract_strided_slice %524 {offsets = [0, 0, 1, 0], sizes = [2, 2, 16, 16], strides = [1, 1, 1, 1]} : vector<2x2x22x16xf32> to vector<2x2x16x16xf32>
      %c11_182 = arith.constant 11 : index
      %539 = memref.load %arg2[%c11_182] : memref<98xf32, #tpu.memory_space<smem>>
      %c60 = arith.constant 60 : index
      %540 = memref.load %arg2[%c60] : memref<98xf32, #tpu.memory_space<smem>>
      %541 = vector.extract_strided_slice %538 {offsets = [0, 0, 0, 0], sizes = [2, 1, 16, 16], strides = [1, 1, 1, 1]} : vector<2x2x16x16xf32> to vector<2x1x16x16xf32>
      %542 = vector.shape_cast %541 : vector<2x1x16x16xf32> to vector<2x16x16xf32>
      %543 = vector.broadcast %539 : f32 to vector<2x16x16xf32>
      %544 = arith.mulf %543, %542 : vector<2x16x16xf32>
      %545 = arith.addf %537, %544 : vector<2x16x16xf32>
      %546 = vector.extract_strided_slice %538 {offsets = [0, 1, 0, 0], sizes = [2, 1, 16, 16], strides = [1, 1, 1, 1]} : vector<2x2x16x16xf32> to vector<2x1x16x16xf32>
      %547 = vector.shape_cast %546 : vector<2x1x16x16xf32> to vector<2x16x16xf32>
      %548 = vector.broadcast %540 : f32 to vector<2x16x16xf32>
      %549 = arith.mulf %548, %547 : vector<2x16x16xf32>
      %550 = arith.addf %545, %549 : vector<2x16x16xf32>
      %551 = vector.extract_strided_slice %524 {offsets = [0, 0, 2, 0], sizes = [2, 2, 16, 16], strides = [1, 1, 1, 1]} : vector<2x2x22x16xf32> to vector<2x2x16x16xf32>
      %c18_183 = arith.constant 18 : index
      %552 = memref.load %arg2[%c18_183] : memref<98xf32, #tpu.memory_space<smem>>
      %c67 = arith.constant 67 : index
      %553 = memref.load %arg2[%c67] : memref<98xf32, #tpu.memory_space<smem>>
      %554 = vector.extract_strided_slice %551 {offsets = [0, 0, 0, 0], sizes = [2, 1, 16, 16], strides = [1, 1, 1, 1]} : vector<2x2x16x16xf32> to vector<2x1x16x16xf32>
      %555 = vector.shape_cast %554 : vector<2x1x16x16xf32> to vector<2x16x16xf32>
      %556 = vector.broadcast %552 : f32 to vector<2x16x16xf32>
      %557 = arith.mulf %556, %555 : vector<2x16x16xf32>
      %558 = arith.addf %550, %557 : vector<2x16x16xf32>
      %559 = vector.extract_strided_slice %551 {offsets = [0, 1, 0, 0], sizes = [2, 1, 16, 16], strides = [1, 1, 1, 1]} : vector<2x2x16x16xf32> to vector<2x1x16x16xf32>
      %560 = vector.shape_cast %559 : vector<2x1x16x16xf32> to vector<2x16x16xf32>
      %561 = vector.broadcast %553 : f32 to vector<2x16x16xf32>
      %562 = arith.mulf %561, %560 : vector<2x16x16xf32>
      %563 = arith.addf %558, %562 : vector<2x16x16xf32>
      %564 = vector.extract_strided_slice %524 {offsets = [0, 0, 3, 0], sizes = [2, 2, 16, 16], strides = [1, 1, 1, 1]} : vector<2x2x22x16xf32> to vector<2x2x16x16xf32>
      %c25 = arith.constant 25 : index
      %565 = memref.load %arg2[%c25] : memref<98xf32, #tpu.memory_space<smem>>
      %c74 = arith.constant 74 : index
      %566 = memref.load %arg2[%c74] : memref<98xf32, #tpu.memory_space<smem>>
      %567 = vector.extract_strided_slice %564 {offsets = [0, 0, 0, 0], sizes = [2, 1, 16, 16], strides = [1, 1, 1, 1]} : vector<2x2x16x16xf32> to vector<2x1x16x16xf32>
      %568 = vector.shape_cast %567 : vector<2x1x16x16xf32> to vector<2x16x16xf32>
      %569 = vector.broadcast %565 : f32 to vector<2x16x16xf32>
      %570 = arith.mulf %569, %568 : vector<2x16x16xf32>
      %571 = arith.addf %563, %570 : vector<2x16x16xf32>
      %572 = vector.extract_strided_slice %564 {offsets = [0, 1, 0, 0], sizes = [2, 1, 16, 16], strides = [1, 1, 1, 1]} : vector<2x2x16x16xf32> to vector<2x1x16x16xf32>
      %573 = vector.shape_cast %572 : vector<2x1x16x16xf32> to vector<2x16x16xf32>
      %574 = vector.broadcast %566 : f32 to vector<2x16x16xf32>
      %575 = arith.mulf %574, %573 : vector<2x16x16xf32>
      %576 = arith.addf %571, %575 : vector<2x16x16xf32>
      %577 = vector.extract_strided_slice %524 {offsets = [0, 0, 4, 0], sizes = [2, 2, 16, 16], strides = [1, 1, 1, 1]} : vector<2x2x22x16xf32> to vector<2x2x16x16xf32>
      %c32 = arith.constant 32 : index
      %578 = memref.load %arg2[%c32] : memref<98xf32, #tpu.memory_space<smem>>
      %c81 = arith.constant 81 : index
      %579 = memref.load %arg2[%c81] : memref<98xf32, #tpu.memory_space<smem>>
      %580 = vector.extract_strided_slice %577 {offsets = [0, 0, 0, 0], sizes = [2, 1, 16, 16], strides = [1, 1, 1, 1]} : vector<2x2x16x16xf32> to vector<2x1x16x16xf32>
      %581 = vector.shape_cast %580 : vector<2x1x16x16xf32> to vector<2x16x16xf32>
      %582 = vector.broadcast %578 : f32 to vector<2x16x16xf32>
      %583 = arith.mulf %582, %581 : vector<2x16x16xf32>
      %584 = arith.addf %576, %583 : vector<2x16x16xf32>
      %585 = vector.extract_strided_slice %577 {offsets = [0, 1, 0, 0], sizes = [2, 1, 16, 16], strides = [1, 1, 1, 1]} : vector<2x2x16x16xf32> to vector<2x1x16x16xf32>
      %586 = vector.shape_cast %585 : vector<2x1x16x16xf32> to vector<2x16x16xf32>
      %587 = vector.broadcast %579 : f32 to vector<2x16x16xf32>
      %588 = arith.mulf %587, %586 : vector<2x16x16xf32>
      %589 = arith.addf %584, %588 : vector<2x16x16xf32>
      %590 = vector.extract_strided_slice %524 {offsets = [0, 0, 5, 0], sizes = [2, 2, 16, 16], strides = [1, 1, 1, 1]} : vector<2x2x22x16xf32> to vector<2x2x16x16xf32>
      %c39 = arith.constant 39 : index
      %591 = memref.load %arg2[%c39] : memref<98xf32, #tpu.memory_space<smem>>
      %c88 = arith.constant 88 : index
      %592 = memref.load %arg2[%c88] : memref<98xf32, #tpu.memory_space<smem>>
      %593 = vector.extract_strided_slice %590 {offsets = [0, 0, 0, 0], sizes = [2, 1, 16, 16], strides = [1, 1, 1, 1]} : vector<2x2x16x16xf32> to vector<2x1x16x16xf32>
      %594 = vector.shape_cast %593 : vector<2x1x16x16xf32> to vector<2x16x16xf32>
      %595 = vector.broadcast %591 : f32 to vector<2x16x16xf32>
      %596 = arith.mulf %595, %594 : vector<2x16x16xf32>
      %597 = arith.addf %589, %596 : vector<2x16x16xf32>
      %598 = vector.extract_strided_slice %590 {offsets = [0, 1, 0, 0], sizes = [2, 1, 16, 16], strides = [1, 1, 1, 1]} : vector<2x2x16x16xf32> to vector<2x1x16x16xf32>
      %599 = vector.shape_cast %598 : vector<2x1x16x16xf32> to vector<2x16x16xf32>
      %600 = vector.broadcast %592 : f32 to vector<2x16x16xf32>
      %601 = arith.mulf %600, %599 : vector<2x16x16xf32>
      %602 = arith.addf %597, %601 : vector<2x16x16xf32>
      %603 = vector.extract_strided_slice %524 {offsets = [0, 0, 6, 0], sizes = [2, 2, 16, 16], strides = [1, 1, 1, 1]} : vector<2x2x22x16xf32> to vector<2x2x16x16xf32>
      %c46 = arith.constant 46 : index
      %604 = memref.load %arg2[%c46] : memref<98xf32, #tpu.memory_space<smem>>
      %c95 = arith.constant 95 : index
      %605 = memref.load %arg2[%c95] : memref<98xf32, #tpu.memory_space<smem>>
      %606 = vector.extract_strided_slice %603 {offsets = [0, 0, 0, 0], sizes = [2, 1, 16, 16], strides = [1, 1, 1, 1]} : vector<2x2x16x16xf32> to vector<2x1x16x16xf32>
      %607 = vector.shape_cast %606 : vector<2x1x16x16xf32> to vector<2x16x16xf32>
      %608 = vector.broadcast %604 : f32 to vector<2x16x16xf32>
      %609 = arith.mulf %608, %607 : vector<2x16x16xf32>
      %610 = arith.addf %602, %609 : vector<2x16x16xf32>
      %611 = vector.extract_strided_slice %603 {offsets = [0, 1, 0, 0], sizes = [2, 1, 16, 16], strides = [1, 1, 1, 1]} : vector<2x2x16x16xf32> to vector<2x1x16x16xf32>
      %612 = vector.shape_cast %611 : vector<2x1x16x16xf32> to vector<2x16x16xf32>
      %613 = vector.broadcast %605 : f32 to vector<2x16x16xf32>
      %614 = arith.mulf %613, %612 : vector<2x16x16xf32>
      %615 = arith.addf %610, %614 : vector<2x16x16xf32>
      %c0_184 = arith.constant 0 : index
      %c0_185 = arith.constant 0 : index
      %c0_186 = arith.constant 0 : index
      %c5_187 = arith.constant 5 : index
      %616 = vector.load %arg7[%c0_184, %c0_185, %c0_186, %c5_187] : memref<2x2x22x22xf32, #tpu.memory_space<vmem>>, vector<2x2x22x16xf32>
      %617 = vector.extract_strided_slice %616 {offsets = [0, 0, 0, 0], sizes = [2, 2, 16, 16], strides = [1, 1, 1, 1]} : vector<2x2x22x16xf32> to vector<2x2x16x16xf32>
      %c5_188 = arith.constant 5 : index
      %618 = memref.load %arg2[%c5_188] : memref<98xf32, #tpu.memory_space<smem>>
      %c54 = arith.constant 54 : index
      %619 = memref.load %arg2[%c54] : memref<98xf32, #tpu.memory_space<smem>>
      %620 = vector.extract_strided_slice %617 {offsets = [0, 0, 0, 0], sizes = [2, 1, 16, 16], strides = [1, 1, 1, 1]} : vector<2x2x16x16xf32> to vector<2x1x16x16xf32>
      %621 = vector.shape_cast %620 : vector<2x1x16x16xf32> to vector<2x16x16xf32>
      %622 = vector.broadcast %618 : f32 to vector<2x16x16xf32>
      %623 = arith.mulf %622, %621 : vector<2x16x16xf32>
      %624 = arith.addf %615, %623 : vector<2x16x16xf32>
      %625 = vector.extract_strided_slice %617 {offsets = [0, 1, 0, 0], sizes = [2, 1, 16, 16], strides = [1, 1, 1, 1]} : vector<2x2x16x16xf32> to vector<2x1x16x16xf32>
      %626 = vector.shape_cast %625 : vector<2x1x16x16xf32> to vector<2x16x16xf32>
      %627 = vector.broadcast %619 : f32 to vector<2x16x16xf32>
      %628 = arith.mulf %627, %626 : vector<2x16x16xf32>
      %629 = arith.addf %624, %628 : vector<2x16x16xf32>
      %630 = vector.extract_strided_slice %616 {offsets = [0, 0, 1, 0], sizes = [2, 2, 16, 16], strides = [1, 1, 1, 1]} : vector<2x2x22x16xf32> to vector<2x2x16x16xf32>
      %c12_189 = arith.constant 12 : index
      %631 = memref.load %arg2[%c12_189] : memref<98xf32, #tpu.memory_space<smem>>
      %c61 = arith.constant 61 : index
      %632 = memref.load %arg2[%c61] : memref<98xf32, #tpu.memory_space<smem>>
      %633 = vector.extract_strided_slice %630 {offsets = [0, 0, 0, 0], sizes = [2, 1, 16, 16], strides = [1, 1, 1, 1]} : vector<2x2x16x16xf32> to vector<2x1x16x16xf32>
      %634 = vector.shape_cast %633 : vector<2x1x16x16xf32> to vector<2x16x16xf32>
      %635 = vector.broadcast %631 : f32 to vector<2x16x16xf32>
      %636 = arith.mulf %635, %634 : vector<2x16x16xf32>
      %637 = arith.addf %629, %636 : vector<2x16x16xf32>
      %638 = vector.extract_strided_slice %630 {offsets = [0, 1, 0, 0], sizes = [2, 1, 16, 16], strides = [1, 1, 1, 1]} : vector<2x2x16x16xf32> to vector<2x1x16x16xf32>
      %639 = vector.shape_cast %638 : vector<2x1x16x16xf32> to vector<2x16x16xf32>
      %640 = vector.broadcast %632 : f32 to vector<2x16x16xf32>
      %641 = arith.mulf %640, %639 : vector<2x16x16xf32>
      %642 = arith.addf %637, %641 : vector<2x16x16xf32>
      %643 = vector.extract_strided_slice %616 {offsets = [0, 0, 2, 0], sizes = [2, 2, 16, 16], strides = [1, 1, 1, 1]} : vector<2x2x22x16xf32> to vector<2x2x16x16xf32>
      %c19_190 = arith.constant 19 : index
      %644 = memref.load %arg2[%c19_190] : memref<98xf32, #tpu.memory_space<smem>>
      %c68 = arith.constant 68 : index
      %645 = memref.load %arg2[%c68] : memref<98xf32, #tpu.memory_space<smem>>
      %646 = vector.extract_strided_slice %643 {offsets = [0, 0, 0, 0], sizes = [2, 1, 16, 16], strides = [1, 1, 1, 1]} : vector<2x2x16x16xf32> to vector<2x1x16x16xf32>
      %647 = vector.shape_cast %646 : vector<2x1x16x16xf32> to vector<2x16x16xf32>
      %648 = vector.broadcast %644 : f32 to vector<2x16x16xf32>
      %649 = arith.mulf %648, %647 : vector<2x16x16xf32>
      %650 = arith.addf %642, %649 : vector<2x16x16xf32>
      %651 = vector.extract_strided_slice %643 {offsets = [0, 1, 0, 0], sizes = [2, 1, 16, 16], strides = [1, 1, 1, 1]} : vector<2x2x16x16xf32> to vector<2x1x16x16xf32>
      %652 = vector.shape_cast %651 : vector<2x1x16x16xf32> to vector<2x16x16xf32>
      %653 = vector.broadcast %645 : f32 to vector<2x16x16xf32>
      %654 = arith.mulf %653, %652 : vector<2x16x16xf32>
      %655 = arith.addf %650, %654 : vector<2x16x16xf32>
      %656 = vector.extract_strided_slice %616 {offsets = [0, 0, 3, 0], sizes = [2, 2, 16, 16], strides = [1, 1, 1, 1]} : vector<2x2x22x16xf32> to vector<2x2x16x16xf32>
      %c26 = arith.constant 26 : index
      %657 = memref.load %arg2[%c26] : memref<98xf32, #tpu.memory_space<smem>>
      %c75 = arith.constant 75 : index
      %658 = memref.load %arg2[%c75] : memref<98xf32, #tpu.memory_space<smem>>
      %659 = vector.extract_strided_slice %656 {offsets = [0, 0, 0, 0], sizes = [2, 1, 16, 16], strides = [1, 1, 1, 1]} : vector<2x2x16x16xf32> to vector<2x1x16x16xf32>
      %660 = vector.shape_cast %659 : vector<2x1x16x16xf32> to vector<2x16x16xf32>
      %661 = vector.broadcast %657 : f32 to vector<2x16x16xf32>
      %662 = arith.mulf %661, %660 : vector<2x16x16xf32>
      %663 = arith.addf %655, %662 : vector<2x16x16xf32>
      %664 = vector.extract_strided_slice %656 {offsets = [0, 1, 0, 0], sizes = [2, 1, 16, 16], strides = [1, 1, 1, 1]} : vector<2x2x16x16xf32> to vector<2x1x16x16xf32>
      %665 = vector.shape_cast %664 : vector<2x1x16x16xf32> to vector<2x16x16xf32>
      %666 = vector.broadcast %658 : f32 to vector<2x16x16xf32>
      %667 = arith.mulf %666, %665 : vector<2x16x16xf32>
      %668 = arith.addf %663, %667 : vector<2x16x16xf32>
      %669 = vector.extract_strided_slice %616 {offsets = [0, 0, 4, 0], sizes = [2, 2, 16, 16], strides = [1, 1, 1, 1]} : vector<2x2x22x16xf32> to vector<2x2x16x16xf32>
      %c33 = arith.constant 33 : index
      %670 = memref.load %arg2[%c33] : memref<98xf32, #tpu.memory_space<smem>>
      %c82 = arith.constant 82 : index
      %671 = memref.load %arg2[%c82] : memref<98xf32, #tpu.memory_space<smem>>
      %672 = vector.extract_strided_slice %669 {offsets = [0, 0, 0, 0], sizes = [2, 1, 16, 16], strides = [1, 1, 1, 1]} : vector<2x2x16x16xf32> to vector<2x1x16x16xf32>
      %673 = vector.shape_cast %672 : vector<2x1x16x16xf32> to vector<2x16x16xf32>
      %674 = vector.broadcast %670 : f32 to vector<2x16x16xf32>
      %675 = arith.mulf %674, %673 : vector<2x16x16xf32>
      %676 = arith.addf %668, %675 : vector<2x16x16xf32>
      %677 = vector.extract_strided_slice %669 {offsets = [0, 1, 0, 0], sizes = [2, 1, 16, 16], strides = [1, 1, 1, 1]} : vector<2x2x16x16xf32> to vector<2x1x16x16xf32>
      %678 = vector.shape_cast %677 : vector<2x1x16x16xf32> to vector<2x16x16xf32>
      %679 = vector.broadcast %671 : f32 to vector<2x16x16xf32>
      %680 = arith.mulf %679, %678 : vector<2x16x16xf32>
      %681 = arith.addf %676, %680 : vector<2x16x16xf32>
      %682 = vector.extract_strided_slice %616 {offsets = [0, 0, 5, 0], sizes = [2, 2, 16, 16], strides = [1, 1, 1, 1]} : vector<2x2x22x16xf32> to vector<2x2x16x16xf32>
      %c40 = arith.constant 40 : index
      %683 = memref.load %arg2[%c40] : memref<98xf32, #tpu.memory_space<smem>>
      %c89 = arith.constant 89 : index
      %684 = memref.load %arg2[%c89] : memref<98xf32, #tpu.memory_space<smem>>
      %685 = vector.extract_strided_slice %682 {offsets = [0, 0, 0, 0], sizes = [2, 1, 16, 16], strides = [1, 1, 1, 1]} : vector<2x2x16x16xf32> to vector<2x1x16x16xf32>
      %686 = vector.shape_cast %685 : vector<2x1x16x16xf32> to vector<2x16x16xf32>
      %687 = vector.broadcast %683 : f32 to vector<2x16x16xf32>
      %688 = arith.mulf %687, %686 : vector<2x16x16xf32>
      %689 = arith.addf %681, %688 : vector<2x16x16xf32>
      %690 = vector.extract_strided_slice %682 {offsets = [0, 1, 0, 0], sizes = [2, 1, 16, 16], strides = [1, 1, 1, 1]} : vector<2x2x16x16xf32> to vector<2x1x16x16xf32>
      %691 = vector.shape_cast %690 : vector<2x1x16x16xf32> to vector<2x16x16xf32>
      %692 = vector.broadcast %684 : f32 to vector<2x16x16xf32>
      %693 = arith.mulf %692, %691 : vector<2x16x16xf32>
      %694 = arith.addf %689, %693 : vector<2x16x16xf32>
      %695 = vector.extract_strided_slice %616 {offsets = [0, 0, 6, 0], sizes = [2, 2, 16, 16], strides = [1, 1, 1, 1]} : vector<2x2x22x16xf32> to vector<2x2x16x16xf32>
      %c47 = arith.constant 47 : index
      %696 = memref.load %arg2[%c47] : memref<98xf32, #tpu.memory_space<smem>>
      %c96 = arith.constant 96 : index
      %697 = memref.load %arg2[%c96] : memref<98xf32, #tpu.memory_space<smem>>
      %698 = vector.extract_strided_slice %695 {offsets = [0, 0, 0, 0], sizes = [2, 1, 16, 16], strides = [1, 1, 1, 1]} : vector<2x2x16x16xf32> to vector<2x1x16x16xf32>
      %699 = vector.shape_cast %698 : vector<2x1x16x16xf32> to vector<2x16x16xf32>
      %700 = vector.broadcast %696 : f32 to vector<2x16x16xf32>
      %701 = arith.mulf %700, %699 : vector<2x16x16xf32>
      %702 = arith.addf %694, %701 : vector<2x16x16xf32>
      %703 = vector.extract_strided_slice %695 {offsets = [0, 1, 0, 0], sizes = [2, 1, 16, 16], strides = [1, 1, 1, 1]} : vector<2x2x16x16xf32> to vector<2x1x16x16xf32>
      %704 = vector.shape_cast %703 : vector<2x1x16x16xf32> to vector<2x16x16xf32>
      %705 = vector.broadcast %697 : f32 to vector<2x16x16xf32>
      %706 = arith.mulf %705, %704 : vector<2x16x16xf32>
      %707 = arith.addf %702, %706 : vector<2x16x16xf32>
      %c0_191 = arith.constant 0 : index
      %c0_192 = arith.constant 0 : index
      %c0_193 = arith.constant 0 : index
      %c6_194 = arith.constant 6 : index
      %708 = vector.load %arg7[%c0_191, %c0_192, %c0_193, %c6_194] : memref<2x2x22x22xf32, #tpu.memory_space<vmem>>, vector<2x2x22x16xf32>
      %709 = vector.extract_strided_slice %708 {offsets = [0, 0, 0, 0], sizes = [2, 2, 16, 16], strides = [1, 1, 1, 1]} : vector<2x2x22x16xf32> to vector<2x2x16x16xf32>
      %c6_195 = arith.constant 6 : index
      %710 = memref.load %arg2[%c6_195] : memref<98xf32, #tpu.memory_space<smem>>
      %c55 = arith.constant 55 : index
      %711 = memref.load %arg2[%c55] : memref<98xf32, #tpu.memory_space<smem>>
      %712 = vector.extract_strided_slice %709 {offsets = [0, 0, 0, 0], sizes = [2, 1, 16, 16], strides = [1, 1, 1, 1]} : vector<2x2x16x16xf32> to vector<2x1x16x16xf32>
      %713 = vector.shape_cast %712 : vector<2x1x16x16xf32> to vector<2x16x16xf32>
      %714 = vector.broadcast %710 : f32 to vector<2x16x16xf32>
      %715 = arith.mulf %714, %713 : vector<2x16x16xf32>
      %716 = arith.addf %707, %715 : vector<2x16x16xf32>
      %717 = vector.extract_strided_slice %709 {offsets = [0, 1, 0, 0], sizes = [2, 1, 16, 16], strides = [1, 1, 1, 1]} : vector<2x2x16x16xf32> to vector<2x1x16x16xf32>
      %718 = vector.shape_cast %717 : vector<2x1x16x16xf32> to vector<2x16x16xf32>
      %719 = vector.broadcast %711 : f32 to vector<2x16x16xf32>
      %720 = arith.mulf %719, %718 : vector<2x16x16xf32>
      %721 = arith.addf %716, %720 : vector<2x16x16xf32>
      %722 = vector.extract_strided_slice %708 {offsets = [0, 0, 1, 0], sizes = [2, 2, 16, 16], strides = [1, 1, 1, 1]} : vector<2x2x22x16xf32> to vector<2x2x16x16xf32>
      %c13_196 = arith.constant 13 : index
      %723 = memref.load %arg2[%c13_196] : memref<98xf32, #tpu.memory_space<smem>>
      %c62 = arith.constant 62 : index
      %724 = memref.load %arg2[%c62] : memref<98xf32, #tpu.memory_space<smem>>
      %725 = vector.extract_strided_slice %722 {offsets = [0, 0, 0, 0], sizes = [2, 1, 16, 16], strides = [1, 1, 1, 1]} : vector<2x2x16x16xf32> to vector<2x1x16x16xf32>
      %726 = vector.shape_cast %725 : vector<2x1x16x16xf32> to vector<2x16x16xf32>
      %727 = vector.broadcast %723 : f32 to vector<2x16x16xf32>
      %728 = arith.mulf %727, %726 : vector<2x16x16xf32>
      %729 = arith.addf %721, %728 : vector<2x16x16xf32>
      %730 = vector.extract_strided_slice %722 {offsets = [0, 1, 0, 0], sizes = [2, 1, 16, 16], strides = [1, 1, 1, 1]} : vector<2x2x16x16xf32> to vector<2x1x16x16xf32>
      %731 = vector.shape_cast %730 : vector<2x1x16x16xf32> to vector<2x16x16xf32>
      %732 = vector.broadcast %724 : f32 to vector<2x16x16xf32>
      %733 = arith.mulf %732, %731 : vector<2x16x16xf32>
      %734 = arith.addf %729, %733 : vector<2x16x16xf32>
      %735 = vector.extract_strided_slice %708 {offsets = [0, 0, 2, 0], sizes = [2, 2, 16, 16], strides = [1, 1, 1, 1]} : vector<2x2x22x16xf32> to vector<2x2x16x16xf32>
      %c20 = arith.constant 20 : index
      %736 = memref.load %arg2[%c20] : memref<98xf32, #tpu.memory_space<smem>>
      %c69 = arith.constant 69 : index
      %737 = memref.load %arg2[%c69] : memref<98xf32, #tpu.memory_space<smem>>
      %738 = vector.extract_strided_slice %735 {offsets = [0, 0, 0, 0], sizes = [2, 1, 16, 16], strides = [1, 1, 1, 1]} : vector<2x2x16x16xf32> to vector<2x1x16x16xf32>
      %739 = vector.shape_cast %738 : vector<2x1x16x16xf32> to vector<2x16x16xf32>
      %740 = vector.broadcast %736 : f32 to vector<2x16x16xf32>
      %741 = arith.mulf %740, %739 : vector<2x16x16xf32>
      %742 = arith.addf %734, %741 : vector<2x16x16xf32>
      %743 = vector.extract_strided_slice %735 {offsets = [0, 1, 0, 0], sizes = [2, 1, 16, 16], strides = [1, 1, 1, 1]} : vector<2x2x16x16xf32> to vector<2x1x16x16xf32>
      %744 = vector.shape_cast %743 : vector<2x1x16x16xf32> to vector<2x16x16xf32>
      %745 = vector.broadcast %737 : f32 to vector<2x16x16xf32>
      %746 = arith.mulf %745, %744 : vector<2x16x16xf32>
      %747 = arith.addf %742, %746 : vector<2x16x16xf32>
      %748 = vector.extract_strided_slice %708 {offsets = [0, 0, 3, 0], sizes = [2, 2, 16, 16], strides = [1, 1, 1, 1]} : vector<2x2x22x16xf32> to vector<2x2x16x16xf32>
      %c27 = arith.constant 27 : index
      %749 = memref.load %arg2[%c27] : memref<98xf32, #tpu.memory_space<smem>>
      %c76 = arith.constant 76 : index
      %750 = memref.load %arg2[%c76] : memref<98xf32, #tpu.memory_space<smem>>
      %751 = vector.extract_strided_slice %748 {offsets = [0, 0, 0, 0], sizes = [2, 1, 16, 16], strides = [1, 1, 1, 1]} : vector<2x2x16x16xf32> to vector<2x1x16x16xf32>
      %752 = vector.shape_cast %751 : vector<2x1x16x16xf32> to vector<2x16x16xf32>
      %753 = vector.broadcast %749 : f32 to vector<2x16x16xf32>
      %754 = arith.mulf %753, %752 : vector<2x16x16xf32>
      %755 = arith.addf %747, %754 : vector<2x16x16xf32>
      %756 = vector.extract_strided_slice %748 {offsets = [0, 1, 0, 0], sizes = [2, 1, 16, 16], strides = [1, 1, 1, 1]} : vector<2x2x16x16xf32> to vector<2x1x16x16xf32>
      %757 = vector.shape_cast %756 : vector<2x1x16x16xf32> to vector<2x16x16xf32>
      %758 = vector.broadcast %750 : f32 to vector<2x16x16xf32>
      %759 = arith.mulf %758, %757 : vector<2x16x16xf32>
      %760 = arith.addf %755, %759 : vector<2x16x16xf32>
      %761 = vector.extract_strided_slice %708 {offsets = [0, 0, 4, 0], sizes = [2, 2, 16, 16], strides = [1, 1, 1, 1]} : vector<2x2x22x16xf32> to vector<2x2x16x16xf32>
      %c34 = arith.constant 34 : index
      %762 = memref.load %arg2[%c34] : memref<98xf32, #tpu.memory_space<smem>>
      %c83 = arith.constant 83 : index
      %763 = memref.load %arg2[%c83] : memref<98xf32, #tpu.memory_space<smem>>
      %764 = vector.extract_strided_slice %761 {offsets = [0, 0, 0, 0], sizes = [2, 1, 16, 16], strides = [1, 1, 1, 1]} : vector<2x2x16x16xf32> to vector<2x1x16x16xf32>
      %765 = vector.shape_cast %764 : vector<2x1x16x16xf32> to vector<2x16x16xf32>
      %766 = vector.broadcast %762 : f32 to vector<2x16x16xf32>
      %767 = arith.mulf %766, %765 : vector<2x16x16xf32>
      %768 = arith.addf %760, %767 : vector<2x16x16xf32>
      %769 = vector.extract_strided_slice %761 {offsets = [0, 1, 0, 0], sizes = [2, 1, 16, 16], strides = [1, 1, 1, 1]} : vector<2x2x16x16xf32> to vector<2x1x16x16xf32>
      %770 = vector.shape_cast %769 : vector<2x1x16x16xf32> to vector<2x16x16xf32>
      %771 = vector.broadcast %763 : f32 to vector<2x16x16xf32>
      %772 = arith.mulf %771, %770 : vector<2x16x16xf32>
      %773 = arith.addf %768, %772 : vector<2x16x16xf32>
      %774 = vector.extract_strided_slice %708 {offsets = [0, 0, 5, 0], sizes = [2, 2, 16, 16], strides = [1, 1, 1, 1]} : vector<2x2x22x16xf32> to vector<2x2x16x16xf32>
      %c41 = arith.constant 41 : index
      %775 = memref.load %arg2[%c41] : memref<98xf32, #tpu.memory_space<smem>>
      %c90 = arith.constant 90 : index
      %776 = memref.load %arg2[%c90] : memref<98xf32, #tpu.memory_space<smem>>
      %777 = vector.extract_strided_slice %774 {offsets = [0, 0, 0, 0], sizes = [2, 1, 16, 16], strides = [1, 1, 1, 1]} : vector<2x2x16x16xf32> to vector<2x1x16x16xf32>
      %778 = vector.shape_cast %777 : vector<2x1x16x16xf32> to vector<2x16x16xf32>
      %779 = vector.broadcast %775 : f32 to vector<2x16x16xf32>
      %780 = arith.mulf %779, %778 : vector<2x16x16xf32>
      %781 = arith.addf %773, %780 : vector<2x16x16xf32>
      %782 = vector.extract_strided_slice %774 {offsets = [0, 1, 0, 0], sizes = [2, 1, 16, 16], strides = [1, 1, 1, 1]} : vector<2x2x16x16xf32> to vector<2x1x16x16xf32>
      %783 = vector.shape_cast %782 : vector<2x1x16x16xf32> to vector<2x16x16xf32>
      %784 = vector.broadcast %776 : f32 to vector<2x16x16xf32>
      %785 = arith.mulf %784, %783 : vector<2x16x16xf32>
      %786 = arith.addf %781, %785 : vector<2x16x16xf32>
      %787 = vector.extract_strided_slice %708 {offsets = [0, 0, 6, 0], sizes = [2, 2, 16, 16], strides = [1, 1, 1, 1]} : vector<2x2x22x16xf32> to vector<2x2x16x16xf32>
      %c48 = arith.constant 48 : index
      %788 = memref.load %arg2[%c48] : memref<98xf32, #tpu.memory_space<smem>>
      %c97 = arith.constant 97 : index
      %789 = memref.load %arg2[%c97] : memref<98xf32, #tpu.memory_space<smem>>
      %790 = vector.extract_strided_slice %787 {offsets = [0, 0, 0, 0], sizes = [2, 1, 16, 16], strides = [1, 1, 1, 1]} : vector<2x2x16x16xf32> to vector<2x1x16x16xf32>
      %791 = vector.shape_cast %790 : vector<2x1x16x16xf32> to vector<2x16x16xf32>
      %792 = vector.broadcast %788 : f32 to vector<2x16x16xf32>
      %793 = arith.mulf %792, %791 : vector<2x16x16xf32>
      %794 = arith.addf %786, %793 : vector<2x16x16xf32>
      %795 = vector.extract_strided_slice %787 {offsets = [0, 1, 0, 0], sizes = [2, 1, 16, 16], strides = [1, 1, 1, 1]} : vector<2x2x16x16xf32> to vector<2x1x16x16xf32>
      %796 = vector.shape_cast %795 : vector<2x1x16x16xf32> to vector<2x16x16xf32>
      %797 = vector.broadcast %789 : f32 to vector<2x16x16xf32>
      %798 = arith.mulf %797, %796 : vector<2x16x16xf32>
      %799 = arith.addf %794, %798 : vector<2x16x16xf32>
      %800 = arith.negf %799 : vector<2x16x16xf32>
      %801 = math.exp %800 : vector<2x16x16xf32>
      %cst_197 = arith.constant 1.000000e+00 : f32
      %802 = vector.broadcast %cst_197 : f32 to vector<2x16x16xf32>
      %803 = arith.addf %802, %801 : vector<2x16x16xf32>
      %804 = arith.divf %802, %803 : vector<2x16x16xf32>
      %805 = vector.extract_strided_slice %804 {offsets = [0, 0, 0], sizes = [2, 1, 16], strides = [1, 1, 1]} : vector<2x16x16xf32> to vector<2x1x16xf32>
      %806 = vector.shape_cast %805 : vector<2x1x16xf32> to vector<2x16xf32>
      %c0_198 = arith.constant 0 : index
      %c0_199 = arith.constant 0 : index
      %c0_200 = arith.constant 0 : index
      %807 = vector.load %arg4[%c0_198, %c0_199, %c0_200] : memref<2x1x256xf32, #tpu.memory_space<vmem>>, vector<2x1x16xf32>
      %808 = vector.shape_cast %807 : vector<2x1x16xf32> to vector<2x16xf32>
      %809 = vector.shape_cast %806 : vector<2x16xf32> to vector<2x1x16xf32>
      tpu.vector_store %arg4[%c0_198, %c0_199, %c0_200], %809 {strides = array<i32>} : memref<2x1x256xf32, #tpu.memory_space<vmem>>, vector<2x1x16xf32>,
      %810 = vector.extract_strided_slice %804 {offsets = [0, 1, 0], sizes = [2, 1, 16], strides = [1, 1, 1]} : vector<2x16x16xf32> to vector<2x1x16xf32>
      %811 = vector.shape_cast %810 : vector<2x1x16xf32> to vector<2x16xf32>
      %c0_201 = arith.constant 0 : index
      %c0_202 = arith.constant 0 : index
      %c16_203 = arith.constant 16 : index
      %812 = vector.load %arg4[%c0_201, %c0_202, %c16_203] : memref<2x1x256xf32, #tpu.memory_space<vmem>>, vector<2x1x16xf32>
      %813 = vector.shape_cast %812 : vector<2x1x16xf32> to vector<2x16xf32>
      %814 = vector.shape_cast %811 : vector<2x16xf32> to vector<2x1x16xf32>
      tpu.vector_store %arg4[%c0_201, %c0_202, %c16_203], %814 {strides = array<i32>} : memref<2x1x256xf32, #tpu.memory_space<vmem>>, vector<2x1x16xf32>,
      %815 = vector.extract_strided_slice %804 {offsets = [0, 2, 0], sizes = [2, 1, 16], strides = [1, 1, 1]} : vector<2x16x16xf32> to vector<2x1x16xf32>
      %816 = vector.shape_cast %815 : vector<2x1x16xf32> to vector<2x16xf32>
      %c0_204 = arith.constant 0 : index
      %c0_205 = arith.constant 0 : index
      %c32_206 = arith.constant 32 : index
      %817 = vector.load %arg4[%c0_204, %c0_205, %c32_206] : memref<2x1x256xf32, #tpu.memory_space<vmem>>, vector<2x1x16xf32>
      %818 = vector.shape_cast %817 : vector<2x1x16xf32> to vector<2x16xf32>
      %819 = vector.shape_cast %816 : vector<2x16xf32> to vector<2x1x16xf32>
      tpu.vector_store %arg4[%c0_204, %c0_205, %c32_206], %819 {strides = array<i32>} : memref<2x1x256xf32, #tpu.memory_space<vmem>>, vector<2x1x16xf32>,
      %820 = vector.extract_strided_slice %804 {offsets = [0, 3, 0], sizes = [2, 1, 16], strides = [1, 1, 1]} : vector<2x16x16xf32> to vector<2x1x16xf32>
      %821 = vector.shape_cast %820 : vector<2x1x16xf32> to vector<2x16xf32>
      %c0_207 = arith.constant 0 : index
      %c0_208 = arith.constant 0 : index
      %c48_209 = arith.constant 48 : index
      %822 = vector.load %arg4[%c0_207, %c0_208, %c48_209] : memref<2x1x256xf32, #tpu.memory_space<vmem>>, vector<2x1x16xf32>
      %823 = vector.shape_cast %822 : vector<2x1x16xf32> to vector<2x16xf32>
      %824 = vector.shape_cast %821 : vector<2x16xf32> to vector<2x1x16xf32>
      tpu.vector_store %arg4[%c0_207, %c0_208, %c48_209], %824 {strides = array<i32>} : memref<2x1x256xf32, #tpu.memory_space<vmem>>, vector<2x1x16xf32>,
      %825 = vector.extract_strided_slice %804 {offsets = [0, 4, 0], sizes = [2, 1, 16], strides = [1, 1, 1]} : vector<2x16x16xf32> to vector<2x1x16xf32>
      %826 = vector.shape_cast %825 : vector<2x1x16xf32> to vector<2x16xf32>
      %c0_210 = arith.constant 0 : index
      %c0_211 = arith.constant 0 : index
      %c64_212 = arith.constant 64 : index
      %827 = vector.load %arg4[%c0_210, %c0_211, %c64_212] : memref<2x1x256xf32, #tpu.memory_space<vmem>>, vector<2x1x16xf32>
      %828 = vector.shape_cast %827 : vector<2x1x16xf32> to vector<2x16xf32>
      %829 = vector.shape_cast %826 : vector<2x16xf32> to vector<2x1x16xf32>
      tpu.vector_store %arg4[%c0_210, %c0_211, %c64_212], %829 {strides = array<i32>} : memref<2x1x256xf32, #tpu.memory_space<vmem>>, vector<2x1x16xf32>,
      %830 = vector.extract_strided_slice %804 {offsets = [0, 5, 0], sizes = [2, 1, 16], strides = [1, 1, 1]} : vector<2x16x16xf32> to vector<2x1x16xf32>
      %831 = vector.shape_cast %830 : vector<2x1x16xf32> to vector<2x16xf32>
      %c0_213 = arith.constant 0 : index
      %c0_214 = arith.constant 0 : index
      %c80_215 = arith.constant 80 : index
      %832 = vector.load %arg4[%c0_213, %c0_214, %c80_215] : memref<2x1x256xf32, #tpu.memory_space<vmem>>, vector<2x1x16xf32>
      %833 = vector.shape_cast %832 : vector<2x1x16xf32> to vector<2x16xf32>
      %834 = vector.shape_cast %831 : vector<2x16xf32> to vector<2x1x16xf32>
      tpu.vector_store %arg4[%c0_213, %c0_214, %c80_215], %834 {strides = array<i32>} : memref<2x1x256xf32, #tpu.memory_space<vmem>>, vector<2x1x16xf32>,
      %835 = vector.extract_strided_slice %804 {offsets = [0, 6, 0], sizes = [2, 1, 16], strides = [1, 1, 1]} : vector<2x16x16xf32> to vector<2x1x16xf32>
      %836 = vector.shape_cast %835 : vector<2x1x16xf32> to vector<2x16xf32>
      %c0_216 = arith.constant 0 : index
      %c0_217 = arith.constant 0 : index
      %c96_218 = arith.constant 96 : index
      %837 = vector.load %arg4[%c0_216, %c0_217, %c96_218] : memref<2x1x256xf32, #tpu.memory_space<vmem>>, vector<2x1x16xf32>
      %838 = vector.shape_cast %837 : vector<2x1x16xf32> to vector<2x16xf32>
      %839 = vector.shape_cast %836 : vector<2x16xf32> to vector<2x1x16xf32>
      tpu.vector_store %arg4[%c0_216, %c0_217, %c96_218], %839 {strides = array<i32>} : memref<2x1x256xf32, #tpu.memory_space<vmem>>, vector<2x1x16xf32>,
      %840 = vector.extract_strided_slice %804 {offsets = [0, 7, 0], sizes = [2, 1, 16], strides = [1, 1, 1]} : vector<2x16x16xf32> to vector<2x1x16xf32>
      %841 = vector.shape_cast %840 : vector<2x1x16xf32> to vector<2x16xf32>
      %c0_219 = arith.constant 0 : index
      %c0_220 = arith.constant 0 : index
      %c112 = arith.constant 112 : index
      %842 = vector.load %arg4[%c0_219, %c0_220, %c112] : memref<2x1x256xf32, #tpu.memory_space<vmem>>, vector<2x1x16xf32>
      %843 = vector.shape_cast %842 : vector<2x1x16xf32> to vector<2x16xf32>
      %844 = vector.shape_cast %841 : vector<2x16xf32> to vector<2x1x16xf32>
      tpu.vector_store %arg4[%c0_219, %c0_220, %c112], %844 {strides = array<i32>} : memref<2x1x256xf32, #tpu.memory_space<vmem>>, vector<2x1x16xf32>,
      %845 = vector.extract_strided_slice %804 {offsets = [0, 8, 0], sizes = [2, 1, 16], strides = [1, 1, 1]} : vector<2x16x16xf32> to vector<2x1x16xf32>
      %846 = vector.shape_cast %845 : vector<2x1x16xf32> to vector<2x16xf32>
      %c0_221 = arith.constant 0 : index
      %c0_222 = arith.constant 0 : index
      %c128 = arith.constant 128 : index
      %847 = vector.load %arg4[%c0_221, %c0_222, %c128] : memref<2x1x256xf32, #tpu.memory_space<vmem>>, vector<2x1x16xf32>
      %848 = vector.shape_cast %847 : vector<2x1x16xf32> to vector<2x16xf32>
      %849 = vector.shape_cast %846 : vector<2x16xf32> to vector<2x1x16xf32>
      tpu.vector_store %arg4[%c0_221, %c0_222, %c128], %849 {strides = array<i32>} : memref<2x1x256xf32, #tpu.memory_space<vmem>>, vector<2x1x16xf32>,
      %850 = vector.extract_strided_slice %804 {offsets = [0, 9, 0], sizes = [2, 1, 16], strides = [1, 1, 1]} : vector<2x16x16xf32> to vector<2x1x16xf32>
      %851 = vector.shape_cast %850 : vector<2x1x16xf32> to vector<2x16xf32>
      %c0_223 = arith.constant 0 : index
      %c0_224 = arith.constant 0 : index
      %c144 = arith.constant 144 : index
      %852 = vector.load %arg4[%c0_223, %c0_224, %c144] : memref<2x1x256xf32, #tpu.memory_space<vmem>>, vector<2x1x16xf32>
      %853 = vector.shape_cast %852 : vector<2x1x16xf32> to vector<2x16xf32>
      %854 = vector.shape_cast %851 : vector<2x16xf32> to vector<2x1x16xf32>
      tpu.vector_store %arg4[%c0_223, %c0_224, %c144], %854 {strides = array<i32>} : memref<2x1x256xf32, #tpu.memory_space<vmem>>, vector<2x1x16xf32>,
      %855 = vector.extract_strided_slice %804 {offsets = [0, 10, 0], sizes = [2, 1, 16], strides = [1, 1, 1]} : vector<2x16x16xf32> to vector<2x1x16xf32>
      %856 = vector.shape_cast %855 : vector<2x1x16xf32> to vector<2x16xf32>
      %c0_225 = arith.constant 0 : index
      %c0_226 = arith.constant 0 : index
      %c160 = arith.constant 160 : index
      %857 = vector.load %arg4[%c0_225, %c0_226, %c160] : memref<2x1x256xf32, #tpu.memory_space<vmem>>, vector<2x1x16xf32>
      %858 = vector.shape_cast %857 : vector<2x1x16xf32> to vector<2x16xf32>
      %859 = vector.shape_cast %856 : vector<2x16xf32> to vector<2x1x16xf32>
      tpu.vector_store %arg4[%c0_225, %c0_226, %c160], %859 {strides = array<i32>} : memref<2x1x256xf32, #tpu.memory_space<vmem>>, vector<2x1x16xf32>,
      %860 = vector.extract_strided_slice %804 {offsets = [0, 11, 0], sizes = [2, 1, 16], strides = [1, 1, 1]} : vector<2x16x16xf32> to vector<2x1x16xf32>
      %861 = vector.shape_cast %860 : vector<2x1x16xf32> to vector<2x16xf32>
      %c0_227 = arith.constant 0 : index
      %c0_228 = arith.constant 0 : index
      %c176 = arith.constant 176 : index
      %862 = vector.load %arg4[%c0_227, %c0_228, %c176] : memref<2x1x256xf32, #tpu.memory_space<vmem>>, vector<2x1x16xf32>
      %863 = vector.shape_cast %862 : vector<2x1x16xf32> to vector<2x16xf32>
      %864 = vector.shape_cast %861 : vector<2x16xf32> to vector<2x1x16xf32>
      tpu.vector_store %arg4[%c0_227, %c0_228, %c176], %864 {strides = array<i32>} : memref<2x1x256xf32, #tpu.memory_space<vmem>>, vector<2x1x16xf32>,
      %865 = vector.extract_strided_slice %804 {offsets = [0, 12, 0], sizes = [2, 1, 16], strides = [1, 1, 1]} : vector<2x16x16xf32> to vector<2x1x16xf32>
      %866 = vector.shape_cast %865 : vector<2x1x16xf32> to vector<2x16xf32>
      %c0_229 = arith.constant 0 : index
      %c0_230 = arith.constant 0 : index
      %c192 = arith.constant 192 : index
      %867 = vector.load %arg4[%c0_229, %c0_230, %c192] : memref<2x1x256xf32, #tpu.memory_space<vmem>>, vector<2x1x16xf32>
      %868 = vector.shape_cast %867 : vector<2x1x16xf32> to vector<2x16xf32>
      %869 = vector.shape_cast %866 : vector<2x16xf32> to vector<2x1x16xf32>
      tpu.vector_store %arg4[%c0_229, %c0_230, %c192], %869 {strides = array<i32>} : memref<2x1x256xf32, #tpu.memory_space<vmem>>, vector<2x1x16xf32>,
      %870 = vector.extract_strided_slice %804 {offsets = [0, 13, 0], sizes = [2, 1, 16], strides = [1, 1, 1]} : vector<2x16x16xf32> to vector<2x1x16xf32>
      %871 = vector.shape_cast %870 : vector<2x1x16xf32> to vector<2x16xf32>
      %c0_231 = arith.constant 0 : index
      %c0_232 = arith.constant 0 : index
      %c208 = arith.constant 208 : index
      %872 = vector.load %arg4[%c0_231, %c0_232, %c208] : memref<2x1x256xf32, #tpu.memory_space<vmem>>, vector<2x1x16xf32>
      %873 = vector.shape_cast %872 : vector<2x1x16xf32> to vector<2x16xf32>
      %874 = vector.shape_cast %871 : vector<2x16xf32> to vector<2x1x16xf32>
      tpu.vector_store %arg4[%c0_231, %c0_232, %c208], %874 {strides = array<i32>} : memref<2x1x256xf32, #tpu.memory_space<vmem>>, vector<2x1x16xf32>,
      %875 = vector.extract_strided_slice %804 {offsets = [0, 14, 0], sizes = [2, 1, 16], strides = [1, 1, 1]} : vector<2x16x16xf32> to vector<2x1x16xf32>
      %876 = vector.shape_cast %875 : vector<2x1x16xf32> to vector<2x16xf32>
      %c0_233 = arith.constant 0 : index
      %c0_234 = arith.constant 0 : index
      %c224 = arith.constant 224 : index
      %877 = vector.load %arg4[%c0_233, %c0_234, %c224] : memref<2x1x256xf32, #tpu.memory_space<vmem>>, vector<2x1x16xf32>
      %878 = vector.shape_cast %877 : vector<2x1x16xf32> to vector<2x16xf32>
      %879 = vector.shape_cast %876 : vector<2x16xf32> to vector<2x1x16xf32>
      tpu.vector_store %arg4[%c0_233, %c0_234, %c224], %879 {strides = array<i32>} : memref<2x1x256xf32, #tpu.memory_space<vmem>>, vector<2x1x16xf32>,
      %880 = vector.extract_strided_slice %804 {offsets = [0, 15, 0], sizes = [2, 1, 16], strides = [1, 1, 1]} : vector<2x16x16xf32> to vector<2x1x16xf32>
      %881 = vector.shape_cast %880 : vector<2x1x16xf32> to vector<2x16xf32>
      %c0_235 = arith.constant 0 : index
      %c0_236 = arith.constant 0 : index
      %c240 = arith.constant 240 : index
      %882 = vector.load %arg4[%c0_235, %c0_236, %c240] : memref<2x1x256xf32, #tpu.memory_space<vmem>>, vector<2x1x16xf32>
      %883 = vector.shape_cast %882 : vector<2x1x16xf32> to vector<2x16xf32>
      %884 = vector.shape_cast %881 : vector<2x16xf32> to vector<2x1x16xf32>
      tpu.vector_store %arg4[%c0_235, %c0_236, %c240], %884 {strides = array<i32>} : memref<2x1x256xf32, #tpu.memory_space<vmem>>, vector<2x1x16xf32>,
    } else {
    }
    return
  }
  func.func @transform_0(%arg0: i32, %arg1: i32) -> i32 {
    %c0_i32 = arith.constant 0 : i32
    %c0_i32_0 = arith.constant 0 : i32
    return %c0_i32 : i32
  }
  func.func @transform_1(%arg0: i32, %arg1: i32) -> (i32, i32, i32) {
    %c0_i32 = arith.constant 0 : i32
    %c0_i32_0 = arith.constant 0 : i32
    return %arg0, %arg1, %c0_i32 : i32, i32, i32
  }
  func.func @transform_2(%arg0: i32, %arg1: i32) -> (i32, i32, i32) {
    %c0_i32 = arith.constant 0 : i32
    %c0_i32_0 = arith.constant 0 : i32
    %c0_i32_1 = arith.constant 0 : i32
    return %arg0, %c0_i32, %c0_i32_0 : i32, i32, i32
  }
}

</mosaic_0001>

<bundles_post_ra>
// kernel: tpu_custom_call.1
= control target key start
LH: loop header
LB: loop body
LE: loop exit
PB: predicated region body
PF: predicated region fallthrough
CT: control target
= control target key end

     0   :  { %7 = vsyncpa [#allocation8], 0  ;;  %s9253_s0 = inlined_call_operand.hbm [shape: f32[98], index: 0, kind: input, shape index: {}]   ;;  %s9254_s1 = inlined_call_operand.hbm [shape: f32[2,4,256], index: 1, kind: input, shape index: {}]   ;;  %s9255_s2 = inlined_call_operand.hbm [shape: f32[2,1,256], index: 2, kind: output, shape index: {}]  }
   0x1   :  { %8 = vsyncpa [#allocation6], 0 }
   0x2   :  { %9 = vsyncpa [#allocation7], 0  ;;  %s4966_s9 = smov [#allocation5]   ;;  %s4967_s12 = smov [#allocation9]  }
   0x3   :  { %17 = dma.hbm_to_smem %s9253_s0, 16, %s4966_s9, [#allocation8]  }
   0x4   :  { %s23_s13 = sshll.u32 %s4967_s12, 4  ;;  %s24_s13 = int_to_ptr.vmem [resolvable:$true] %s23_s13 }
   0x5   :  { %s4928_s14 = scalar_lea.vmem %s24_s13, 256  ;;  %p4933_p1 = scmp.lt.s32.totalorder %s24_s13, %s24_s13 }
   0x6   :  { %p4929_p0 = scmp.ne.s32.totalorder %s24_s13, %s4928_s14  ;;  %p4934_p2 = scmp.lt.s32.totalorder %s4928_s14, %s4928_s14 }
   0x8   :  { %p4935_p3 = por %p4934_p2, %p4933_p1 }
   0xa   :  { %p4936_p4 = pnand %p4935_p3, %p4929_p0 }
   0xc   :  { %4939 = shalt.err (!%p4936_p4)
}
   0xd   :  { %s4968_s15 = smov 128   ;;  %s4969_s16 = smov 8  }
   0xe   :  { %29 = dma.hbm_to_vmem [thread:$0]  %s9254_s1, 256, %s24_s13, [#allocation6], %s4968_s15, %s4968_s15, %s4969_s16  }
   0xf   :  { %4960 = dma.done.wait [#allocation8], 16  }
  0x10   :  { %4961 = vsyncadd [#allocation8], 4294967280 }
  0x11   :  { %4962 = dma.done.wait [#allocation6], 256  }
  0x12   :  { %4963 = vsyncadd [#allocation6], 4294967040 }
  0x13   :  { %36 = sfence }
  0x14   :  { %v43_v0 = vld [vmem:[#allocation9] sm:$0xff]  ;;  %v44_v1 = vld [vmem:[#allocation9 + $0x8] sm:$0xff]  ;;  %vm52_vm0 = vcmask 1043456   ;;  %v9256_v2 = vlaneseq  ;;  %v4970_v3 = vmov -inf   ;;  %v4971_v12 = vmov 1983009808  }
  0x15   :  { %42 = vst [vmem:[#allocation3] sm:$0xf] %v4970_v3  ;;  %v48_v4 = vcombine.high %v43_v0, %v43_v0  ;;  %v49_v5 = vcombine.high %v44_v1, %v44_v1  ;;  %v53_v6 = vsel %vm52_vm0, %v43_v0, 0.0  ;;  %v67_v7 = vsel %vm52_vm0, %v44_v1, 0.0  ;;  %s4974_s0 = smov 115   ;;  %s4975_s1 = smov 3  }
  0x16   :  { %v54_v8 = vrot.slane %v53_v6, 4  ;;  %v68_v9 = vrot.slane %v67_v7, 4  ;;  %v87_v13 = vunpack.c.l.s4 %v4971_v12  ;;  %v5023_v18 = vshrl.u32 %v9256_v2, 7  ;;  %s4976_s19 = smov 99   ;;  %s4977_s20 = smov 83  }
  0x17   :  { %v60_v10 = vsel %vm52_vm0, %v48_v4, 0.0  ;;  %v74_v11 = vsel %vm52_vm0, %v49_v5, 0.0  ;;  %v118_v19 = vsel %vm52_vm0, %v43_v0, -inf  ;;  %v125_v26 = vsel %vm52_vm0, %v48_v4, -inf  ;;  %s4978_s21 = smov 67   ;;  %s4979_s22 = smov 51  }
  0x18   :  { %v55_v14 = vadd.f32 %v54_v8, %v53_v6  ;;  %v61_v15 = vrot.slane %v60_v10, 4  ;;  %v69_v16 = vadd.f32 %v68_v9, %v67_v7  ;;  %v75_v17 = vrot.slane %v74_v11, 4  ;;  %s4980_s23 = smov 35   ;;  %s4981_s24 = smov 19  }
  0x19   :  { %v88_v24 = vunpack.c.0.s8 %v87_v13  ;;  %v119_v25 = vrot.slane %v118_v19, 4  ;;  %v132_v27 = vsel %vm52_vm0, %v44_v1, -inf  ;;  %v126_v33 = vrot.slane %v125_v26, 4  ;;  %s4982_s25 = smov 112   ;;  %s4983_s26 = smov 96  }
  0x1a   :  { %v56_v20 = vrot.slane %v55_v14, 2  ;;  %v62_v21 = vadd.f32 %v61_v15, %v60_v10  ;;  %v70_v22 = vrot.slane %v69_v16, 2  ;;  %v76_v23 = vadd.f32 %v75_v17, %v74_v11  ;;  %s4984_s27 = smov 80   ;;  %s4985_s28 = smov 64  }
  0x1b   :  { %v120_v32 = vmax.f32 %v118_v19, %v119_v25  ;;  %v133_v34 = vrot.slane %v132_v27, 4  ;;  %v139_v35 = vsel %vm52_vm0, %v49_v5, -inf  ;;  %v127_v41 = vmax.f32 %v125_v26, %v126_v33  ;;  %s4986_s29 = smov 48   ;;  %s4987_s30 = smov 32  }
  0x1c   :  { %v57_v28 = vadd.f32 %v56_v20, %v55_v14  ;;  %v63_v29 = vrot.slane %v62_v21, 2  ;;  %v71_v30 = vadd.f32 %v70_v22, %v69_v16  ;;  %v77_v31 = vrot.slane %v76_v23, 2  ;;  %s4988_s3 = smov 16   ;;  %s4727_s4 = sld [smem:[#allocation5 + $0x1]] }
  0x1d   :  { %v121_v40 = vrot.slane %v120_v32, 2  ;;  %v134_v42 = vmax.f32 %v132_v27, %v133_v34  ;;  %v140_v43 = vrot.slane %v139_v35, 4  ;;  %v128_v49 = vrot.slane %v127_v41, 2  ;;  %s4728_s5 = sld [smem:[#allocation5 + $0x32]]  ;;  %s4989_s6 = smov 127  }
  0x1e   :  { %v58_v36 = vrot.slane %v57_v28, 1  ;;  %v64_v37 = vadd.f32 %v63_v29, %v62_v21  ;;  %v72_v38 = vrot.slane %v71_v30, 1  ;;  %v78_v39 = vadd.f32 %v77_v31, %v76_v23  ;;  %v117_v23 = vld [vmem:[#allocation3] sm:$0xf]  ;;  %s4730_s7 = sld [smem:[#allocation5 + $0x39]] }
  0x1f   :  { %v122_v48 = vmax.f32 %v120_v32, %v121_v40  ;;  %v135_v50 = vrot.slane %v134_v42, 2  ;;  %v141_v51 = vmax.f32 %v139_v35, %v140_v43  ;;  %v129_v55 = vmax.f32 %v127_v41, %v128_v49  ;;  %s4732_s8 = sld [smem:[#allocation5 + $0x40]] }
  0x20   :  { %v59_v44 = vadd.f32 %v58_v36, %v57_v28  ;;  %v65_v45 = vrot.slane %v64_v37, 1  ;;  %v73_v46 = vadd.f32 %v72_v38, %v71_v30  ;;  %v79_v47 = vrot.slane %v78_v39, 1  ;;  %s4734_s9 = sld [smem:[#allocation5 + $0x47]] }
  0x21   :  { %v123_v54 = vrot.slane %v122_v48, 1  ;;  %v136_v56 = vmax.f32 %v134_v42, %v135_v50  ;;  %v142_v57 = vrot.slane %v141_v51, 2  ;;  %v91_v59 = vsub.s32 %v88_v24, %v5023_v18  ;;  %s4736_s10 = sld [smem:[#allocation5 + $0x4e]] }
  0x22   :  { %v66_v52 = vadd.f32 %v65_v45, %v64_v37  ;;  %v80_v53 = vadd.f32 %v79_v47, %v78_v39  ;;  %v130_v62 = vrot.slane %v129_v55, 1  ;;  %v4972_v1 = vmov 0.0   ;;  %s4738_s11 = sld [smem:[#allocation5 + $0x55]] }
  0x23   :  { %v124_v61 = vmax.f32 %v122_v48, %v123_v54  ;;  %v137_v63 = vrot.slane %v136_v56, 1  ;;  %v143_v0 = vmax.f32 %v141_v51, %v142_v57  ;;  %41 = vst [vmem:[#allocation2] sm:$0xf] %v4972_v1  ;;  %vm106_vm1 = vcmask 1041409   ;;  %s4740_s12 = sld [smem:[#allocation5 + $0x5c]] }
  0x24   :  { %v85_v58 = vcombine.low %v59_v44, %v66_v52  ;;  %v93_v60 = vcombine.low %v73_v46, %v80_v53  ;;  %v131_v5 = vmax.f32 %v129_v55, %v130_v62  ;;  %vm108_vm2 = vcmask 1043459   ;;  %s4729_s13 = sld [smem:[#allocation5 + $0x8]] }
  0x25   :  { %v138_v6 = vmax.f32 %v136_v56, %v137_v63  ;;  %v144_v7 = vrot.slane %v143_v0, 1  ;;  %vm110_vm3 = vcmask 1045509   ;;  %vm112_vm4 = vcmask 1047559   ;;  %s4731_s14 = sld [smem:[#allocation5 + $0xf]] }
  0x26   :  { %v92_v3 = vrot.slane %v85_v58, %v91_v59  ;;  %v100_v4 = vrot.slane %v93_v60, %v91_v59  ;;  %v150_v10 = vcombine.low %v124_v61, %v131_v5  ;;  %v5034_v28 = vsub.s32 0, %v5023_v18  ;;  %s4733_s15 = sld [smem:[#allocation5 + $0x16]] }
  0x27   :  { %v145_v9 = vmax.f32 %v143_v0, %v144_v7  ;;  %v4973_v32 = vmov 1966171168   ;;  %vm690_vm5 = vcmask 174080   ;;  %vm205_vm6 = vcmask 147480   ;;  %s4735_s16 = sld [smem:[#allocation5 + $0x1d]] }
  0x28   :  { %v105_v8 = vrot.slane %v100_v4, 7  ;;  %v157_v17 = vrot.slane %v150_v10, %v91_v59  ;;  %v184_v33 = vunpack.c.l.s4 %v4973_v32  ;;  %693 = vst.msk [vmem:[#allocation4 + $0x30] sm:$0x7] %vm690_vm5, %v4972_v1  ;;  %691 = vst.msk [vmem:[#allocation4] sm:$0x7] %vm690_vm5, %v4972_v1  ;;  %vm699_vm7 = vcmask 23552  }
  0x29   :  { %v158_v13 = vcombine.low %v138_v6, %v145_v9  ;;  %692 = vst.msk [vmem:[#allocation4 + $0x18] sm:$0x7] %vm690_vm5, %v4972_v1  ;;  %694 = vst.msk [vmem:[#allocation4 + $0x48] sm:$0x7] %vm690_vm5, %v4972_v1  ;;  %vm708_vm8 = vcmask 179352   ;;  %vm764_vm9 = vcmask 1046528  }
  0x2a   :  { %v107_v11 = vsel %vm106_vm1, %v105_v8, %v92_v3  ;;  %v45_v15 = vld [vmem:[#allocation2] sm:$0xf]  ;;  %v185_v35 = vunpack.c.0.s8 %v184_v33  ;;  %695 = vst.msk [vmem:[#allocation4 + $0x13] sm:$0x7] %vm690_vm5, %v4972_v1  ;;  %696 = vst.msk [vmem:[#allocation4 + $0x2b] sm:$0x7] %vm690_vm5, %v4972_v1 }
  0x2b   :  { %v109_v12 = vsel %vm108_vm2, %v105_v8, %v107_v11  ;;  %v165_v19 = vrot.slane %v158_v13, %v91_v59  ;;  %697 = vst.msk [vmem:[#allocation4 + $0x43] sm:$0x7] %vm690_vm5, %v4972_v1  ;;  %698 = vst.msk [vmem:[#allocation4 + $0x5b] sm:$0x7] %vm690_vm5, %v4972_v1  ;;  %vm829_vm10 = vcmask 1045504   ;;  %vm894_vm11 = vcmask 1044480  }
  0x2c   :  { %v111_v14 = vsel %vm110_vm3, %v105_v8, %v109_v12  ;;  %v5050_v37 = vsub.s32 %v185_v35, %v5023_v18  ;;  %vm1023_vm12 = vcmask 1042432   ;;  %vm1088_vm13 = vcmask 1041408   ;;  %s4737_s17 = sld [smem:[#allocation5 + $0x24]] }
  0x2d   :  { %v113_v16 = vsel %vm112_vm4, %v105_v8, %v111_v14  ;;  %v168_v21 = vrot.slane %v165_v19, 7  ;;  %s4739_s18 = sld [smem:[#allocation5 + $0x2b]] }
  0x2e   :  { %v115_v20 = vadd.f32 %v113_v16, %v45_v15  ;;  %9313 = vst [vmem:[#allocation14_spill] sm:$0xff] %v5050_v37 }
  0x2f   :  { %v169_v22 = vsel %vm106_vm1, %v168_v21, %v157_v17 }
  0x30   :  { %116 = vst [vmem:[#allocation2] sm:$0xf] %v115_v20  ;;  %v170_v24 = vsel %vm108_vm2, %v168_v21, %v169_v22 }
  0x31   :  { %v171_v25 = vsel %vm110_vm3, %v168_v21, %v170_v24 }
  0x32   :  { %v172_v26 = vsel %vm112_vm4, %v168_v21, %v171_v25 }
  0x33   :  { %v174_v27 = vmax.f32 %v117_v23, %v172_v26 }
  0x35   :  { %175 = vst [vmem:[#allocation3] sm:$0xf] %v174_v27 }
  0x37   :  { %v179_v36 = vld [vmem:[#allocation2] sm:$0xf] }
  0x38   :  { %v180_v38 = vmul.f32 0.25, %v179_v36 }
  0x3a   :  { %v5054_v39 = vrot.slane %v180_v38, %v5050_v37 }
  0x3c   :  { %v5036_v29 = vld.sshfl [vmem:[#allocation3] sm:$0x33 pattern:$0x75316420]  ;;  %v194_v40 = vrot.slane %v5054_v39, %v5034_v28  ;;  %v5061_v18 = vcombine.high %v5054_v39, %v5054_v39  ;;  %v346_v43 = vrot.slane %v5054_v39, 1 }
  0x3d   :  { %v220_v30 = vrot.slane %v5036_v29, %v5034_v28  ;;  %v5042_v31 = vcombine.high %v5036_v29, %v5036_v29  ;;  %v364_v47 = vrot.slane %v5036_v29, 1 }
  0x3e   :  { %v198_v41 = vrot.slane %v5061_v18, %v5034_v28  ;;  %v347_v42 = vrot.slane %v5061_v18, 1  ;;  %v351_v45 = vrot.slane %v346_v43, %v5034_v28 }
  0x3f   :  { %242 = vrot.lane.b32.xlu0 %v220_v30, %s4974_s0  ;;  %225 = vrot.lane.b32.xlu1 %v220_v30, %s4975_s1  ;;  %v224_v34 = vrot.slane %v5042_v31, %v5034_v28  ;;  %v365_v46 = vrot.slane %v5042_v31, 1  ;;  %v369_v49 = vrot.slane %v364_v47, %v5034_v28 }
  0x40   :  { %v355_v44 = vrot.slane %v347_v42, %v5034_v28 }
  0x41   :  { %v373_v48 = vrot.slane %v365_v46, %v5034_v28 }
  0x43   :  { %258 = vrot.lane.b32.xlu0 %v220_v30, %s4976_s19  ;;  %227 = vrot.lane.b32.xlu1 %v224_v34, %s4975_s1 }
  0x47   :  { %274 = vrot.lane.b32.xlu0 %v220_v30, %s4977_s20  ;;  %244 = vrot.lane.b32.xlu1 %v224_v34, %s4974_s0 }
  0x4b   :  { %290 = vrot.lane.b32.xlu0 %v220_v30, %s4978_s21  ;;  %260 = vrot.lane.b32.xlu1 %v224_v34, %s4976_s19 }
  0x4f   :  { %306 = vrot.lane.b32.xlu0 %v220_v30, %s4979_s22  ;;  %276 = vrot.lane.b32.xlu1 %v224_v34, %s4977_s20 }
  0x53   :  { %292 = vrot.lane.b32.xlu1 %v224_v34, %s4978_s21  ;;  %199 = vrot.lane.b32.xlu0 %v194_v40, %s4975_s1 }
  0x57   :  { %308 = vrot.lane.b32.xlu1 %v224_v34, %s4979_s22  ;;  %234 = vrot.lane.b32.xlu0 %v194_v40, %s4974_s0 }
  0x5b   :  { %250 = vrot.lane.b32.xlu0 %v194_v40, %s4976_s19  ;;  %236 = vrot.lane.b32.xlu1 %v198_v41, %s4974_s0  ;;  %s4741_s0 = sld [smem:[#allocation5 + $0x2]] }
  0x5f   :  { %266 = vrot.lane.b32.xlu0 %v194_v40, %s4977_s20  ;;  %252 = vrot.lane.b32.xlu1 %v198_v41, %s4976_s19  ;;  %s4743_s19 = sld [smem:[#allocation5 + $0x9]] }
  0x63   :  { %282 = vrot.lane.b32.xlu0 %v194_v40, %s4978_s21  ;;  %268 = vrot.lane.b32.xlu1 %v198_v41, %s4977_s20  ;;  %s4990_s20 = smov 126  }
  0x67   :  { %298 = vrot.lane.b32.xlu0 %v194_v40, %s4979_s22  ;;  %284 = vrot.lane.b32.xlu1 %v198_v41, %s4978_s21  ;;  %s4744_s21 = sld [smem:[#allocation5 + $0x3a]] }
  0x6b   :  { %300 = vrot.lane.b32.xlu1 %v198_v41, %s4979_s22  ;;  %201 = vrot.lane.b32.xlu0 %v198_v41, %s4975_s1  ;;  %s4745_s22 = sld [smem:[#allocation5 + $0x10]] }
  0x6f   :  { %316 = vrot.lane.b32.xlu1 %v198_v41, %s4980_s23  ;;  %314 = vrot.lane.b32.xlu0 %v194_v40, %s4980_s23 }
  0x73   :  { %324 = vrot.lane.b32.xlu1 %v224_v34, %s4980_s23  ;;  %322 = vrot.lane.b32.xlu0 %v220_v30, %s4980_s23  ;;  %s4746_s23 = sld [smem:[#allocation5 + $0x41]] }
  0x77   :  { %332 = vrot.lane.b32.xlu1 %v198_v41, %s4981_s24  ;;  %330 = vrot.lane.b32.xlu0 %v194_v40, %s4981_s24 }
  0x7b   :  { %340 = vrot.lane.b32.xlu1 %v224_v34, %s4981_s24  ;;  %338 = vrot.lane.b32.xlu0 %v220_v30, %s4981_s24  ;;  %s4747_s24 = sld [smem:[#allocation5 + $0x17]] }
  0x7f   :  { %358 = vrot.lane.b32.xlu1 %v355_v44, %s4975_s1  ;;  %356 = vrot.lane.b32.xlu0 %v351_v45, %s4975_s1 }
  0x83   :  { %376 = vrot.lane.b32.xlu1 %v373_v48, %s4975_s1  ;;  %374 = vrot.lane.b32.xlu0 %v369_v49, %s4975_s1 }
  0x87   :  { %384 = vrot.lane.b32.xlu1 %v5061_v18, %s4982_s25  ;;  %382 = vrot.lane.b32.xlu0 %v5054_v39, %s4982_s25 }
  0x8b   :  { %406 = vrot.lane.b32.xlu1 %v5042_v31, %s4982_s25  ;;  %404 = vrot.lane.b32.xlu0 %v5036_v29, %s4982_s25 }
  0x8f   :  { %428 = vrot.lane.b32.xlu1 %v5061_v18, %s4983_s26  ;;  %426 = vrot.lane.b32.xlu0 %v5054_v39, %s4983_s26 }
  0x93   :  { %450 = vrot.lane.b32.xlu1 %v5042_v31, %s4983_s26  ;;  %448 = vrot.lane.b32.xlu0 %v5036_v29, %s4983_s26 }
  0x97   :  { %472 = vrot.lane.b32.xlu1 %v5061_v18, %s4984_s27  ;;  %470 = vrot.lane.b32.xlu0 %v5054_v39, %s4984_s27 }
  0x9b   :  { %494 = vrot.lane.b32.xlu1 %v5042_v31, %s4984_s27  ;;  %492 = vrot.lane.b32.xlu0 %v5036_v29, %s4984_s27 }
  0x9f   :  { %516 = vrot.lane.b32.xlu1 %v5061_v18, %s4985_s28  ;;  %514 = vrot.lane.b32.xlu0 %v5054_v39, %s4985_s28 }
  0xa3   :  { %538 = vrot.lane.b32.xlu1 %v5042_v31, %s4985_s28  ;;  %536 = vrot.lane.b32.xlu0 %v5036_v29, %s4985_s28 }
  0xa7   :  { %560 = vrot.lane.b32.xlu1 %v5061_v18, %s4986_s29  ;;  %558 = vrot.lane.b32.xlu0 %v5054_v39, %s4986_s29 }
  0xab   :  { %582 = vrot.lane.b32.xlu1 %v5042_v31, %s4986_s29  ;;  %580 = vrot.lane.b32.xlu0 %v5036_v29, %s4986_s29 }
  0xaf   :  { %602 = vrot.lane.b32.xlu0 %v5054_v39, %s4987_s30  ;;  %604 = vrot.lane.b32.xlu1 %v5061_v18, %s4987_s30 }
  0xb1   :  { %v243_v50 = vpop.permute.xlu0 %242  ;;  %v226_v51 = vpop.permute.xlu1 %225 }
  0xb2   :  { %248 = vst.msk [vmem:[#allocation4 + $0x1c] sm:$0x1] %vm205_vm6, %v243_v50  ;;  %232 = vst.msk [vmem:[#allocation4 + $0x1b] sm:$0x1] %vm205_vm6, %v226_v51 }
  0xb5   :  { %v259_v52 = vpop.permute.xlu0 %258  ;;  %v228_v53 = vpop.permute.xlu1 %227 }
  0xb6   :  { %264 = vst.msk [vmem:[#allocation4 + $0x1d] sm:$0x1] %vm205_vm6, %v259_v52  ;;  %233 = vst.msk [vmem:[#allocation4 + $0x4b] sm:$0x1] %vm205_vm6, %v228_v53 }
  0xb9   :  { %v275_v54 = vpop.permute.xlu0 %274  ;;  %v245_v55 = vpop.permute.xlu1 %244 }
  0xba   :  { %280 = vst.msk [vmem:[#allocation4 + $0x1e] sm:$0x1] %vm205_vm6, %v275_v54  ;;  %249 = vst.msk [vmem:[#allocation4 + $0x4c] sm:$0x1] %vm205_vm6, %v245_v55 }
  0xbd   :  { %v291_v56 = vpop.permute.xlu0 %290  ;;  %v261_v57 = vpop.permute.xlu1 %260 }
  0xbe   :  { %296 = vst.msk [vmem:[#allocation4 + $0x1f] sm:$0x1] %vm205_vm6, %v291_v56  ;;  %265 = vst.msk [vmem:[#allocation4 + $0x4d] sm:$0x1] %vm205_vm6, %v261_v57 }
  0xc1   :  { %v307_v58 = vpop.permute.xlu0 %306  ;;  %v277_v59 = vpop.permute.xlu1 %276 }
  0xc2   :  { %312 = vst.msk [vmem:[#allocation4 + $0x20] sm:$0x1] %vm205_vm6, %v307_v58  ;;  %281 = vst.msk [vmem:[#allocation4 + $0x4e] sm:$0x1] %vm205_vm6, %v277_v59 }
  0xc5   :  { %v293_v60 = vpop.permute.xlu1 %292  ;;  %v200_v61 = vpop.permute.xlu0 %199 }
  0xc6   :  { %297 = vst.msk [vmem:[#allocation4 + $0x4f] sm:$0x1] %vm205_vm6, %v293_v60  ;;  %206 = vst.msk [vmem:[#allocation4 + $0x3] sm:$0x1] %vm205_vm6, %v200_v61 }
  0xc9   :  { %v309_v62 = vpop.permute.xlu1 %308  ;;  %v235_v63 = vpop.permute.xlu0 %234 }
  0xca   :  { %313 = vst.msk [vmem:[#allocation4 + $0x50] sm:$0x1] %vm205_vm6, %v309_v62  ;;  %240 = vst.msk [vmem:[#allocation4 + $0x4] sm:$0x1] %vm205_vm6, %v235_v63 }
  0xcd   :  { %v251_v0 = vpop.permute.xlu0 %250  ;;  %v237_v3 = vpop.permute.xlu1 %236 }
  0xce   :  { %256 = vst.msk [vmem:[#allocation4 + $0x5] sm:$0x1] %vm205_vm6, %v251_v0  ;;  %241 = vst.msk [vmem:[#allocation4 + $0x34] sm:$0x1] %vm205_vm6, %v237_v3 }
  0xd1   :  { %v267_v4 = vpop.permute.xlu0 %266  ;;  %v253_v5 = vpop.permute.xlu1 %252 }
  0xd2   :  { %272 = vst.msk [vmem:[#allocation4 + $0x6] sm:$0x1] %vm205_vm6, %v267_v4  ;;  %257 = vst.msk [vmem:[#allocation4 + $0x35] sm:$0x1] %vm205_vm6, %v253_v5 }
  0xd5   :  { %v283_v6 = vpop.permute.xlu0 %282  ;;  %v269_v7 = vpop.permute.xlu1 %268 }
  0xd6   :  { %288 = vst.msk [vmem:[#allocation4 + $0x7] sm:$0x1] %vm205_vm6, %v283_v6  ;;  %273 = vst.msk [vmem:[#allocation4 + $0x36] sm:$0x1] %vm205_vm6, %v269_v7 }
  0xd9   :  { %v299_v8 = vpop.permute.xlu0 %298  ;;  %v285_v9 = vpop.permute.xlu1 %284 }
  0xda   :  { %304 = vst.msk [vmem:[#allocation4 + $0x8] sm:$0x1] %vm205_vm6, %v299_v8  ;;  %289 = vst.msk [vmem:[#allocation4 + $0x37] sm:$0x1] %vm205_vm6, %v285_v9 }
  0xdd   :  { %v301_v10 = vpop.permute.xlu1 %300  ;;  %v202_v11 = vpop.permute.xlu0 %201 }
  0xde   :  { %305 = vst.msk [vmem:[#allocation4 + $0x38] sm:$0x1] %vm205_vm6, %v301_v10  ;;  %207 = vst.msk [vmem:[#allocation4 + $0x33] sm:$0x1] %vm205_vm6, %v202_v11 }
  0xe1   :  { %v317_v12 = vpop.permute.xlu1 %316  ;;  %v315_v13 = vpop.permute.xlu0 %314 }
  0xe2   :  { %321 = vst.msk [vmem:[#allocation4 + $0x39] sm:$0x1] %vm205_vm6, %v317_v12  ;;  %320 = vst.msk [vmem:[#allocation4 + $0x9] sm:$0x1] %vm205_vm6, %v315_v13 }
  0xe5   :  { %v325_v14 = vpop.permute.xlu1 %324  ;;  %v323_v15 = vpop.permute.xlu0 %322 }
  0xe6   :  { %329 = vst.msk [vmem:[#allocation4 + $0x51] sm:$0x1] %vm205_vm6, %v325_v14  ;;  %328 = vst.msk [vmem:[#allocation4 + $0x21] sm:$0x1] %vm205_vm6, %v323_v15 }
  0xe9   :  { %v333_v16 = vpop.permute.xlu1 %332  ;;  %v331_v17 = vpop.permute.xlu0 %330 }
  0xea   :  { %337 = vst.msk [vmem:[#allocation4 + $0x3a] sm:$0x1] %vm205_vm6, %v333_v16  ;;  %336 = vst.msk [vmem:[#allocation4 + $0xa] sm:$0x1] %vm205_vm6, %v331_v17 }
  0xeb   :  { %704 = vst.msk [vmem:[#allocation4 + $0x33] sm:$0xff] %vm699_vm7, %v4972_v1  ;;  %700 = vst.msk [vmem:[#allocation4 + $0x3] sm:$0xff] %vm699_vm7, %v4972_v1 }
  0xec   :  { %713 = vst.msk [vmem:[#allocation4 + $0x33] sm:$0xff] %vm708_vm8, %v4972_v1  ;;  %709 = vst.msk [vmem:[#allocation4 + $0x3] sm:$0xff] %vm708_vm8, %v4972_v1 }
  0xed   :  { %v341_v19 = vpop.permute.xlu1 %340  ;;  %v339_v20 = vpop.permute.xlu0 %338 }
  0xee   :  { %345 = vst.msk [vmem:[#allocation4 + $0x52] sm:$0x1] %vm205_vm6, %v341_v19  ;;  %344 = vst.msk [vmem:[#allocation4 + $0x22] sm:$0x1] %vm205_vm6, %v339_v20 }
  0xef   :  { %706 = vst.msk [vmem:[#allocation4 + $0x4b] sm:$0xff] %vm699_vm7, %v4972_v1  ;;  %702 = vst.msk [vmem:[#allocation4 + $0x1b] sm:$0xff] %vm699_vm7, %v4972_v1 }
  0xf0   :  { %715 = vst.msk [vmem:[#allocation4 + $0x4b] sm:$0xff] %vm708_vm8, %v4972_v1  ;;  %711 = vst.msk [vmem:[#allocation4 + $0x1b] sm:$0xff] %vm708_vm8, %v4972_v1 }
  0xf1   :  { %v359_v21 = vpop.permute.xlu1 %358  ;;  %v357_v22 = vpop.permute.xlu0 %356 }
  0xf2   :  { %363 = vst.msk [vmem:[#allocation4 + $0x3b] sm:$0x1] %vm205_vm6, %v359_v21  ;;  %362 = vst.msk [vmem:[#allocation4 + $0xb] sm:$0x1] %vm205_vm6, %v357_v22 }
  0xf5   :  { %v377_v23 = vpop.permute.xlu1 %376  ;;  %v375_v24 = vpop.permute.xlu0 %374 }
  0xf6   :  { %381 = vst.msk [vmem:[#allocation4 + $0x53] sm:$0x1] %vm205_vm6, %v377_v23  ;;  %380 = vst.msk [vmem:[#allocation4 + $0x23] sm:$0x1] %vm205_vm6, %v375_v24 }
  0xf9   :  { %v385_v25 = vpop.permute.xlu1 %384  ;;  %v383_v26 = vpop.permute.xlu0 %382 }
  0xfa   :  { %v386_v6 = vrot.slane %v383_v26, 1  ;;  %v387_v9 = vrot.slane %v385_v25, 1 }
  0xfc   :  { %v391_v10 = vrot.slane %v386_v6, %v5034_v28  ;;  %v395_v12 = vrot.slane %v387_v9, %v5034_v28 }
  0xfd   :  { %v407_v27 = vpop.permute.xlu1 %406  ;;  %v405_v30 = vpop.permute.xlu0 %404 }
  0xfe   :  { %v409_v32 = vrot.slane %v407_v27, 1  ;;  %v408_v33 = vrot.slane %v405_v30, 1 }
 0x100   :  { %v417_v34 = vrot.slane %v409_v32, %v5034_v28  ;;  %v413_v35 = vrot.slane %v408_v33, %v5034_v28 }
 0x101   :  { %v429_v36 = vpop.permute.xlu1 %428  ;;  %v427_v38 = vpop.permute.xlu0 %426 }
 0x102   :  { %418 = vrot.lane.b32.xlu0 %v413_v35, %s4975_s1  ;;  %420 = vrot.lane.b32.xlu1 %v417_v34, %s4975_s1  ;;  %v430_v11 = vrot.slane %v427_v38, 1  ;;  %v431_v13 = vrot.slane %v429_v36, 1 }
 0x104   :  { %v435_v14 = vrot.slane %v430_v11, %v5034_v28  ;;  %v439_v16 = vrot.slane %v431_v13, %v5034_v28 }
 0x105   :  { %v451_v40 = vpop.permute.xlu1 %450  ;;  %v449_v41 = vpop.permute.xlu0 %448 }
 0x106   :  { %v453_v42 = vrot.slane %v451_v40, 1  ;;  %v452_v43 = vrot.slane %v449_v41, 1 }
 0x108   :  { %v461_v44 = vrot.slane %v453_v42, %v5034_v28  ;;  %v457_v45 = vrot.slane %v452_v43, %v5034_v28 }
 0x109   :  { %v473_v46 = vpop.permute.xlu1 %472  ;;  %v471_v47 = vpop.permute.xlu0 %470 }
 0x10a   :  { %462 = vrot.lane.b32.xlu0 %v457_v45, %s4975_s1  ;;  %464 = vrot.lane.b32.xlu1 %v461_v44, %s4975_s1  ;;  %v474_v15 = vrot.slane %v471_v47, 1  ;;  %v475_v17 = vrot.slane %v473_v46, 1 }
 0x10c   :  { %v479_v19 = vrot.slane %v474_v15, %v5034_v28  ;;  %v483_v22 = vrot.slane %v475_v17, %v5034_v28  ;;  %v5284_v17 = vld [vmem:[#allocation4] sm:$0xff] }
 0x10d   :  { %v495_v48 = vpop.permute.xlu1 %494  ;;  %v493_v49 = vpop.permute.xlu0 %492 }
 0x10e   :  { %v497_v50 = vrot.slane %v495_v48, 1  ;;  %v496_v51 = vrot.slane %v493_v49, 1 }
 0x110   :  { %v505_v52 = vrot.slane %v497_v50, %v5034_v28  ;;  %v501_v53 = vrot.slane %v496_v51, %v5034_v28 }
 0x111   :  { %v517_v54 = vpop.permute.xlu1 %516  ;;  %v515_v55 = vpop.permute.xlu0 %514 }
 0x112   :  { %506 = vrot.lane.b32.xlu0 %v501_v53, %s4975_s1  ;;  %508 = vrot.lane.b32.xlu1 %v505_v52, %s4975_s1  ;;  %v518_v20 = vrot.slane %v515_v55, 1  ;;  %v519_v23 = vrot.slane %v517_v54, 1 }
 0x114   :  { %v523_v24 = vrot.slane %v518_v20, %v5034_v28  ;;  %v527_v30 = vrot.slane %v519_v23, %v5034_v28 }
 0x115   :  { %v539_v56 = vpop.permute.xlu1 %538  ;;  %v537_v57 = vpop.permute.xlu0 %536 }
 0x116   :  { %v541_v58 = vrot.slane %v539_v56, 1  ;;  %v540_v59 = vrot.slane %v537_v57, 1 }
 0x118   :  { %v549_v60 = vrot.slane %v541_v58, %v5034_v28  ;;  %v545_v61 = vrot.slane %v540_v59, %v5034_v28 }
 0x119   :  { %v561_v62 = vpop.permute.xlu1 %560  ;;  %v559_v63 = vpop.permute.xlu0 %558 }
 0x11a   :  { %550 = vrot.lane.b32.xlu0 %v545_v61, %s4975_s1  ;;  %552 = vrot.lane.b32.xlu1 %v549_v60, %s4975_s1  ;;  %v562_v25 = vrot.slane %v559_v63, 1  ;;  %v563_v26 = vrot.slane %v561_v62, 1 }
 0x11c   :  { %v567_v32 = vrot.slane %v562_v25, %v5034_v28  ;;  %v571_v34 = vrot.slane %v563_v26, %v5034_v28  ;;  %v1165_v25 = vstv %s4728_s5  ;;  %v5301_v26 = vld [vmem:[#allocation4 + $0x48] sm:$0xff]  ;;  %s4749_s5 = sld [smem:[#allocation5 + $0x1e]] }
 0x11d   :  { %v583_v0 = vpop.permute.xlu1 %582  ;;  %v581_v3 = vpop.permute.xlu0 %580 }
 0x11e   :  { %v585_v4 = vrot.slane %v583_v0, 1  ;;  %v584_v5 = vrot.slane %v581_v3, 1 }
 0x120   :  { %v593_v7 = vrot.slane %v585_v4, %v5034_v28  ;;  %v589_v8 = vrot.slane %v584_v5, %v5034_v28 }
 0x121   :  { %v603_v21 = vpop.permute.xlu0 %602  ;;  %v605_v33 = vpop.permute.xlu1 %604 }
 0x122   :  { %596 = vrot.lane.b32.xlu1 %v593_v7, %s4975_s1  ;;  %594 = vrot.lane.b32.xlu0 %v589_v8, %s4975_s1  ;;  %v606_v27 = vrot.slane %v603_v21, 1  ;;  %v607_v36 = vrot.slane %v605_v33, 1  ;;  %v5316_v33 = vstv %s4730_s7  ;;  %s4751_s7 = sld [smem:[#allocation5 + $0x25]] }
 0x124   :  { %v611_v35 = vrot.slane %v606_v27, %v5034_v28  ;;  %v615_v38 = vrot.slane %v607_v36, %v5034_v28  ;;  %v1168_v27 = vmul.f32 %v1165_v25, %v5301_v26 }
 0x126   :  { %626 = vrot.lane.b32.xlu1 %v5042_v31, %s4987_s30  ;;  %396 = vrot.lane.b32.xlu0 %v391_v10, %s4975_s1 }
 0x12a   :  { %398 = vrot.lane.b32.xlu1 %v395_v12, %s4975_s1  ;;  %440 = vrot.lane.b32.xlu0 %v435_v14, %s4975_s1 }
 0x12e   :  { %442 = vrot.lane.b32.xlu1 %v439_v16, %s4975_s1  ;;  %484 = vrot.lane.b32.xlu0 %v479_v19, %s4975_s1  ;;  %v5286_v19 = vstv %s4727_s4  ;;  %s4748_s4 = sld [smem:[#allocation5 + $0x48]] }
 0x12f   :  { %v1141_v21 = vmul.f32 %v5286_v19, %v5284_v17 }
 0x132   :  { %486 = vrot.lane.b32.xlu1 %v483_v22, %s4975_s1  ;;  %528 = vrot.lane.b32.xlu0 %v523_v24, %s4975_s1  ;;  %v5292_v22 = vld [vmem:[#allocation4 + $0x30] sm:$0xff]  ;;  %v5297_v24 = vld [vmem:[#allocation4 + $0x18] sm:$0xff] }
 0x133   :  { %v1143_v23 = vmul.f32 %v5286_v19, %v5292_v22 }
 0x136   :  { %530 = vrot.lane.b32.xlu1 %v527_v30, %s4975_s1  ;;  %572 = vrot.lane.b32.xlu0 %v567_v32, %s4975_s1 }
 0x13a   :  { %574 = vrot.lane.b32.xlu1 %v571_v34, %s4975_s1  ;;  %616 = vrot.lane.b32.xlu0 %v611_v35, %s4975_s1  ;;  %v5318_v34 = vstv %s4732_s8  ;;  %v1232_v35 = vmul.f32 %v5316_v33, %v5297_v24  ;;  %s4752_s8 = sld [smem:[#allocation5 + $0x56]] }
 0x13b   :  { %v1312_v36 = vmul.f32 %v5318_v34, %v5297_v24 }
 0x13e   :  { %624 = vrot.lane.b32.xlu0 %v5036_v29, %s4987_s30  ;;  %618 = vrot.lane.b32.xlu1 %v615_v38, %s4975_s1  ;;  %v5324_v38 = vstv %s4734_s9  ;;  %s4753_s9 = sld [smem:[#allocation5 + $0x2c]] }
 0x174   :  { %v419_v40 = vpop.permute.xlu0 %418  ;;  %v421_v41 = vpop.permute.xlu1 %420 }
 0x175   :  { %424 = vst.msk [vmem:[#allocation4 + $0x24] sm:$0x1] %vm205_vm6, %v419_v40  ;;  %425 = vst.msk [vmem:[#allocation4 + $0x54] sm:$0x1] %vm205_vm6, %v421_v41 }
 0x17c   :  { %v463_v42 = vpop.permute.xlu0 %462  ;;  %v465_v43 = vpop.permute.xlu1 %464 }
 0x17d   :  { %468 = vst.msk [vmem:[#allocation4 + $0x25] sm:$0x1] %vm205_vm6, %v463_v42  ;;  %469 = vst.msk [vmem:[#allocation4 + $0x55] sm:$0x1] %vm205_vm6, %v465_v43 }
 0x184   :  { %v507_v44 = vpop.permute.xlu0 %506  ;;  %v509_v45 = vpop.permute.xlu1 %508 }
 0x185   :  { %512 = vst.msk [vmem:[#allocation4 + $0x26] sm:$0x1] %vm205_vm6, %v507_v44  ;;  %513 = vst.msk [vmem:[#allocation4 + $0x56] sm:$0x1] %vm205_vm6, %v509_v45 }
 0x18c   :  { %v551_v46 = vpop.permute.xlu0 %550  ;;  %v553_v47 = vpop.permute.xlu1 %552 }
 0x18d   :  { %556 = vst.msk [vmem:[#allocation4 + $0x27] sm:$0x1] %vm205_vm6, %v551_v46  ;;  %557 = vst.msk [vmem:[#allocation4 + $0x57] sm:$0x1] %vm205_vm6, %v553_v47  ;;  %v1324_v47 = vrot.slane %v1312_v36, 2 }
 0x194   :  { %v597_v48 = vpop.permute.xlu1 %596  ;;  %v595_v49 = vpop.permute.xlu0 %594 }
 0x195   :  { %601 = vst.msk [vmem:[#allocation4 + $0x58] sm:$0x1] %vm205_vm6, %v597_v48  ;;  %600 = vst.msk [vmem:[#allocation4 + $0x28] sm:$0x1] %vm205_vm6, %v595_v49  ;;  %v1392_v48 = vmul.f32 %v5324_v38, %v5297_v24  ;;  %v5341_v49 = vstv %s4736_s10  ;;  %s4754_s10 = sld [smem:[#allocation5 + $0x5d]] }
 0x198   :  { %v627_v50 = vpop.permute.xlu1 %626  ;;  %v397_v51 = vpop.permute.xlu0 %396 }
 0x199   :  { %v629_v52 = vrot.slane %v627_v50, 1  ;;  %402 = vst.msk [vmem:[#allocation4 + $0xc] sm:$0x1] %vm205_vm6, %v397_v51 }
 0x19b   :  { %v637_v53 = vrot.slane %v629_v52, %v5034_v28 }
 0x19c   :  { %v399_v54 = vpop.permute.xlu1 %398  ;;  %v441_v55 = vpop.permute.xlu0 %440 }
 0x19d   :  { %403 = vst.msk [vmem:[#allocation4 + $0x3c] sm:$0x1] %vm205_vm6, %v399_v54  ;;  %446 = vst.msk [vmem:[#allocation4 + $0xd] sm:$0x1] %vm205_vm6, %v441_v55  ;;  %640 = vrot.lane.b32.xlu1 %v637_v53, %s4975_s1 }
 0x1a0   :  { %v443_v56 = vpop.permute.xlu1 %442  ;;  %v485_v57 = vpop.permute.xlu0 %484 }
 0x1a1   :  { %447 = vst.msk [vmem:[#allocation4 + $0x3d] sm:$0x1] %vm205_vm6, %v443_v56  ;;  %490 = vst.msk [vmem:[#allocation4 + $0xe] sm:$0x1] %vm205_vm6, %v485_v57  ;;  %648 = vrot.lane.b32.xlu1 %v5061_v18, %s4988_s3  ;;  %v1404_v57 = vrot.slane %v1392_v48, 3 }
 0x1a4   :  { %v487_v58 = vpop.permute.xlu1 %486  ;;  %v529_v59 = vpop.permute.xlu0 %528 }
 0x1a5   :  { %491 = vst.msk [vmem:[#allocation4 + $0x3e] sm:$0x1] %vm205_vm6, %v487_v58  ;;  %534 = vst.msk [vmem:[#allocation4 + $0xf] sm:$0x1] %vm205_vm6, %v529_v59  ;;  %v1472_v58 = vmul.f32 %v5341_v49, %v5297_v24 }
 0x1a8   :  { %v531_v60 = vpop.permute.xlu1 %530  ;;  %v573_v61 = vpop.permute.xlu0 %572 }
 0x1a9   :  { %535 = vst.msk [vmem:[#allocation4 + $0x3f] sm:$0x1] %vm205_vm6, %v531_v60  ;;  %578 = vst.msk [vmem:[#allocation4 + $0x10] sm:$0x1] %vm205_vm6, %v573_v61 }
 0x1ac   :  { %v575_v62 = vpop.permute.xlu1 %574  ;;  %v617_v63 = vpop.permute.xlu0 %616 }
 0x1ad   :  { %579 = vst.msk [vmem:[#allocation4 + $0x40] sm:$0x1] %vm205_vm6, %v575_v62  ;;  %622 = vst.msk [vmem:[#allocation4 + $0x11] sm:$0x1] %vm205_vm6, %v617_v63  ;;  %v5357_v62 = vstv %s4738_s11  ;;  %s4755_s11 = sld [smem:[#allocation5 + $0x3]] }
 0x1b0   :  { %v625_v0 = vpop.permute.xlu0 %624  ;;  %v619_v18 = vpop.permute.xlu1 %618 }
 0x1b1   :  { %v628_v3 = vrot.slane %v625_v0, 1  ;;  %623 = vst.msk [vmem:[#allocation4 + $0x41] sm:$0x1] %vm205_vm6, %v619_v18 }
 0x1b3   :  { %v633_v4 = vrot.slane %v628_v3, %v5034_v28  ;;  %v1484_v3 = vrot.slane %v1472_v58, 4  ;;  %v1475_v58 = vmul.f32 %v5341_v49, %v5301_v26 }
 0x1b5   :  { %638 = vrot.lane.b32.xlu0 %v633_v4, %s4975_s1  ;;  %v1552_v4 = vmul.f32 %v5357_v62, %v5297_v24 }
 0x1b9   :  { %646 = vrot.lane.b32.xlu0 %v5054_v39, %s4988_s3 }
 0x20f   :  { %v641_v5 = vpop.permute.xlu1 %640 }
 0x210   :  { %645 = vst.msk [vmem:[#allocation4 + $0x59] sm:$0x1] %vm205_vm6, %v641_v5 }
 0x213   :  { %v649_v6 = vpop.permute.xlu1 %648 }
 0x214   :  { %v651_v7 = vrot.slane %v649_v6, 1 }
 0x216   :  { %v659_v8 = vrot.slane %v651_v7, %v5034_v28 }
 0x218   :  { %662 = vrot.lane.b32.xlu1 %v659_v8, %s4975_s1  ;;  %v5369_v8 = vstv %s4740_s12  ;;  %s4756_s12 = sld [smem:[#allocation5 + $0x34]] }
 0x21c   :  { %670 = vrot.lane.b32.xlu1 %v5042_v31, %s4988_s3 }
 0x227   :  { %v639_v9 = vpop.permute.xlu0 %638 }
 0x228   :  { %644 = vst.msk [vmem:[#allocation4 + $0x29] sm:$0x1] %vm205_vm6, %v639_v9 }
 0x22b   :  { %v647_v10 = vpop.permute.xlu0 %646 }
 0x22c   :  { %v650_v11 = vrot.slane %v647_v10, 1 }
 0x22e   :  { %v655_v12 = vrot.slane %v650_v11, %v5034_v28 }
 0x230   :  { %660 = vrot.lane.b32.xlu0 %v655_v12, %s4975_s1  ;;  %v1632_v12 = vmul.f32 %v5369_v8, %v5297_v24 }
 0x234   :  { %668 = vrot.lane.b32.xlu0 %v5036_v29, %s4988_s3 }
 0x28a   :  { %v663_v39 = vpop.permute.xlu1 %662 }
 0x28b   :  { %667 = vst.msk [vmem:[#allocation4 + $0x42] sm:$0x1] %vm205_vm6, %v663_v39 }
 0x28c   :  { %705 = vst.msk [vmem:[#allocation4 + $0x3b] sm:$0xff] %vm699_vm7, %v4972_v1 }
 0x28d   :  { %714 = vst.msk [vmem:[#allocation4 + $0x3b] sm:$0xff] %vm708_vm8, %v4972_v1 }
 0x28e   :  { %v671_v31 = vpop.permute.xlu1 %670 }
 0x28f   :  { %v673_v13 = vrot.slane %v671_v31, 1  ;;  %v1564_v31 = vrot.slane %v1552_v4, 5 }
 0x291   :  { %v681_v14 = vrot.slane %v673_v13, %v5034_v28 }
 0x293   :  { %684 = vrot.lane.b32.xlu1 %v681_v14, %s4975_s1 }
 0x2a2   :  { %v661_v15 = vpop.permute.xlu0 %660 }
 0x2a3   :  { %666 = vst.msk [vmem:[#allocation4 + $0x12] sm:$0x1] %vm205_vm6, %v661_v15 }
 0x2a4   :  { %701 = vst.msk [vmem:[#allocation4 + $0xb] sm:$0xff] %vm699_vm7, %v4972_v1 }
 0x2a5   :  { %710 = vst.msk [vmem:[#allocation4 + $0xb] sm:$0xff] %vm708_vm8, %v4972_v1 }
 0x2a6   :  { %v669_v29 = vpop.permute.xlu0 %668 }
 0x2a7   :  { %v672_v16 = vrot.slane %v669_v29, 1 }
 0x2a9   :  { %v677_v20 = vrot.slane %v672_v16, %v5034_v28  ;;  %v1166_v28 = vmul.f32 %v1165_v25, %v5297_v24 }
 0x2ab   :  { %682 = vrot.lane.b32.xlu0 %v677_v20, %s4975_s1  ;;  %v1644_v20 = vrot.slane %v1632_v12, 6  ;;  %s4742_s1 = sld [smem:[#allocation5 + $0x33]] }
 0x2af   :  { %1149 = vrot.lane.b32.xlu0 %v1141_v21, %s4989_s6 }
 0x2b3   :  { %1153 = vrot.lane.b32.xlu0 %v1143_v23, %s4989_s6 }
 0x2b7   :  { %1174 = vrot.lane.b32.xlu0 %v1166_v28, %s4989_s6 }
 0x2bb   :  { %1178 = vrot.lane.b32.xlu0 %v1168_v27, %s4989_s6 }
 0x305   :  { %v685_v30 = vpop.permute.xlu1 %684 }
 0x306   :  { %689 = vst.msk [vmem:[#allocation4 + $0x5a] sm:$0x1] %vm205_vm6, %v685_v30 }
 0x307   :  { %707 = vst.msk [vmem:[#allocation4 + $0x53] sm:$0xff] %vm699_vm7, %v4972_v1 }
 0x308   :  { %716 = vst.msk [vmem:[#allocation4 + $0x53] sm:$0xff] %vm708_vm8, %v4972_v1 }
 0x30f   :  { %v5330_v42 = vld [vmem:[#allocation4 + $0x50] sm:$0xff] }
 0x310   :  { %v1169_v51 = vmul.f32 %v1165_v25, %v5330_v42  ;;  %v1236_v28 = vmul.f32 %v5316_v33, %v5330_v42 }
 0x31d   :  { %v683_v32 = vpop.permute.xlu0 %682 }
 0x31e   :  { %688 = vst.msk [vmem:[#allocation4 + $0x2a] sm:$0x1] %vm205_vm6, %v683_v32 }
 0x31f   :  { %703 = vst.msk [vmem:[#allocation4 + $0x23] sm:$0xff] %vm699_vm7, %v4972_v1 }
 0x320   :  { %712 = vst.msk [vmem:[#allocation4 + $0x23] sm:$0xff] %vm708_vm8, %v4972_v1  ;;  %v1244_v1 = vrot.slane %v1232_v35, 1  ;;  %v1315_v35 = vmul.f32 %v5318_v34, %v5301_v26 }
 0x322   :  { %v1329_v48 = vrot.slane %v1315_v35, 2 }
 0x327   :  { %v5326_v40 = vld [vmem:[#allocation4 + $0x20] sm:$0xff]  ;;  %v5328_v41 = vld [vmem:[#allocation4 + $0x28] sm:$0x3f] }
 0x328   :  { %v1167_v43 = vmul.f32 %v1165_v25, %v5326_v40  ;;  %v1233_v44 = vmul.f32 %v5316_v33, %v5326_v40  ;;  %v1313_v45 = vmul.f32 %v5318_v34, %v5326_v40  ;;  %v1234_v46 = vmul.f32 %v5316_v33, %v5328_v41 }
 0x329   :  { %v1393_v53 = vmul.f32 %v5324_v38, %v5326_v40  ;;  %v1314_v55 = vmul.f32 %v5318_v34, %v5328_v41  ;;  %v1473_v61 = vmul.f32 %v5341_v49, %v5326_v40  ;;  %v1394_v18 = vmul.f32 %v5324_v38, %v5328_v41 }
 0x32a   :  { %1176 = vrot.lane.b32.xlu1 %v1167_v43, %s4989_s6  ;;  %v1245_v50 = vrot.slane %v1233_v44, 1  ;;  %v1325_v52 = vrot.slane %v1313_v45, 2  ;;  %v1247_v54 = vrot.slane %v1234_v46, 1  ;;  %v1553_v7 = vmul.f32 %v5357_v62, %v5326_v40 }
 0x32b   :  { %v1405_v60 = vrot.slane %v1393_v53, 3  ;;  %v1327_v0 = vrot.slane %v1314_v55, 2  ;;  %v1485_v6 = vrot.slane %v1473_v61, 4  ;;  %v1407_v10 = vrot.slane %v1394_v18, 3 }
 0x32c   :  { %v1246_v56 = vsel %vm764_vm9, %v1244_v1, %v1245_v50  ;;  %v1326_v59 = vsel %vm829_vm10, %v1324_v47, %v1325_v52  ;;  %v1248_v63 = vsel %vm764_vm9, %v1245_v50, %v1247_v54  ;;  %v1474_v11 = vmul.f32 %v5341_v49, %v5328_v41  ;;  %v5402_v47 = vld [vmem:[#allocation4 + $0x58] sm:$0x3f]  ;;  %v5405_v50 = vld [vmem:[#allocation4 + $0x8] sm:$0xff] }
 0x32d   :  { %1254 = vrot.lane.b32.xlu0 %v1246_v56, %s4989_s6  ;;  %v1406_v5 = vsel %vm894_vm11, %v1404_v57, %v1405_v60  ;;  %v1328_v9 = vsel %vm829_vm10, %v1325_v52, %v1327_v0  ;;  %v1486_v39 = vsel %vm52_vm0, %v1484_v3, %v1485_v6  ;;  %v1565_v13 = vrot.slane %v1553_v7, 5 }
 0x32e   :  { %1180 = vrot.lane.b32.xlu1 %v1169_v51, %s4989_s6  ;;  %v1633_v14 = vmul.f32 %v5369_v8, %v5326_v40  ;;  %v1408_v15 = vsel %vm894_vm11, %v1405_v60, %v1407_v10  ;;  %v1487_v29 = vrot.slane %v1474_v11, 4  ;;  %v1554_v16 = vmul.f32 %v5357_v62, %v5328_v41 }
 0x32f   :  { %v1566_v21 = vsel %vm1023_vm12, %v1564_v31, %v1565_v13  ;;  %v1235_v25 = vmul.f32 %v5316_v33, %v5301_v26  ;;  %v1634_v32 = vmul.f32 %v5369_v8, %v5328_v41  ;;  %v1250_v43 = vrot.slane %v1236_v28, 1 }
 0x330   :  { %v1645_v23 = vrot.slane %v1633_v14, 6  ;;  %v1488_v27 = vsel %vm52_vm0, %v1485_v6, %v1487_v29  ;;  %v1567_v30 = vrot.slane %v1554_v16, 5  ;;  %v1316_v44 = vmul.f32 %v5318_v34, %v5330_v42 }
 0x331   :  { %1334 = vrot.lane.b32.xlu0 %v1326_v59, %s4989_s6  ;;  %v1249_v1 = vrot.slane %v1235_v25, 1  ;;  %v1647_v46 = vrot.slane %v1634_v32, 6  ;;  %v1395_v53 = vmul.f32 %v5324_v38, %v5301_v26  ;;  %v1396_v54 = vmul.f32 %v5324_v38, %v5330_v42 }
 0x332   :  { %1256 = vrot.lane.b32.xlu1 %v1248_v63, %s4989_s6  ;;  %v1646_v36 = vsel %vm1088_vm13, %v1644_v20, %v1645_v23  ;;  %v1568_v45 = vsel %vm1023_vm12, %v1565_v13, %v1567_v30  ;;  %v1330_v52 = vrot.slane %v1316_v44, 2  ;;  %v1237_v56 = vmul.f32 %v5316_v33, %v5402_v47 }
 0x333   :  { %v1251_v51 = vsel %vm764_vm9, %v1249_v1, %v1250_v43  ;;  %v1648_v55 = vsel %vm1088_vm13, %v1645_v23, %v1647_v46  ;;  %v1142_v57 = vmul.f32 %v5286_v19, %v5405_v50  ;;  %v1409_v60 = vrot.slane %v1395_v53, 3 }
 0x334   :  { %v1331_v59 = vsel %vm829_vm10, %v1329_v48, %v1330_v52  ;;  %v1410_v61 = vrot.slane %v1396_v54, 3  ;;  %v1476_v63 = vmul.f32 %v5341_v49, %v5330_v42  ;;  %v1252_v0 = vrot.slane %v1237_v56, 1  ;;  %v5487_v56 = vld [vmem:[#allocation4 + $0x38] sm:$0xff] }
 0x335   :  { %1414 = vrot.lane.b32.xlu0 %v1406_v5, %s4989_s6  ;;  %v1317_v33 = vmul.f32 %v5318_v34, %v5402_v47  ;;  %v1489_v18 = vrot.slane %v1475_v58, 4  ;;  %v1555_v3 = vmul.f32 %v5357_v62, %v5301_v26  ;;  %v1556_v6 = vmul.f32 %v5357_v62, %v5330_v42 }
 0x336   :  { %1336 = vrot.lane.b32.xlu1 %v1328_v9, %s4989_s6  ;;  %v1411_v4 = vsel %vm894_vm11, %v1409_v60, %v1410_v61  ;;  %v1490_v5 = vrot.slane %v1476_v63, 4  ;;  %v5434_v7 = vstv %s4729_s13  ;;  %v1253_v9 = vsel %vm764_vm9, %v1250_v43, %v1252_v0  ;;  %s4757_s13 = sld [smem:[#allocation5 + $0xa]] }
 0x337   :  { %v1332_v34 = vrot.slane %v1317_v33, 2  ;;  %v1397_v10 = vmul.f32 %v5324_v38, %v5402_v47  ;;  %v1569_v11 = vrot.slane %v1555_v3, 5  ;;  %v1193_v12 = vmul.f32 %v5434_v7, %v5284_v17 }
 0x338   :  { %v1570_v31 = vrot.slane %v1556_v6, 5  ;;  %v1194_v13 = vmul.f32 %v5434_v7, %v5405_v50  ;;  %v5446_v14 = vstv %s4731_s14  ;;  %v1477_v38 = vmul.f32 %v5341_v49, %v5402_v47  ;;  %s4991_s14 = smov 125  }
 0x339   :  { %1494 = vrot.lane.b32.xlu0 %v1486_v39, %s4989_s6  ;;  %v1491_v39 = vsel %vm52_vm0, %v1489_v18, %v1490_v5  ;;  %v1412_v29 = vrot.slane %v1397_v10, 3  ;;  %v1273_v16 = vmul.f32 %v5446_v14, %v5284_v17  ;;  %v5456_v20 = vmul.f32 %v5446_v14, %v5405_v50 }
 0x33a   :  { %1416 = vrot.lane.b32.xlu1 %v1408_v15, %s4989_s6  ;;  %v1333_v15 = vsel %vm829_vm10, %v1330_v52, %v1332_v34  ;;  %v1205_v23 = vrot.slane %v1193_v12, 1  ;;  %v1206_v25 = vrot.slane %v1194_v13, 1  ;;  %v5460_v28 = vstv %s4733_s15  ;;  %s4758_s15 = sld [smem:[#allocation5 + $0x3b]] }
 0x33b   :  { %v1413_v49 = vsel %vm894_vm11, %v1410_v61, %v1412_v29  ;;  %v1557_v30 = vmul.f32 %v5357_v62, %v5402_v47  ;;  %v1285_v32 = vrot.slane %v1273_v16, 2  ;;  %v1286_v35 = vrot.slane %v5456_v20, 2  ;;  %v5476_v62 = vld [vmem:[#allocation4 + $0x10] sm:$0x3f] }
 0x33c   :  { %v1207_v1 = vsel %vm764_vm9, %v1205_v23, %v1206_v25  ;;  %v1354_v43 = vmul.f32 %v5460_v28, %v5405_v50  ;;  %v5474_v46 = vstv %s4735_s16  ;;  %v1195_v58 = vmul.f32 %v5434_v7, %v5476_v62  ;;  %s4759_s16 = sld [smem:[#allocation5 + $0x11]] }
 0x33d   :  { %1574 = vrot.lane.b32.xlu0 %v1566_v21, %s4989_s6  ;;  %v1571_v21 = vsel %vm1023_vm12, %v1569_v11, %v1570_v31  ;;  %v1287_v48 = vsel %vm829_vm10, %v1285_v32, %v1286_v35  ;;  %v1433_v53 = vmul.f32 %v5474_v46, %v5284_v17  ;;  %v1434_v54 = vmul.f32 %v5474_v46, %v5405_v50 }
 0x33e   :  { %1496 = vrot.lane.b32.xlu1 %v1488_v27, %s4989_s6  ;;  %v1492_v27 = vrot.slane %v1477_v38, 4  ;;  %v1366_v52 = vrot.slane %v1354_v43, 3  ;;  %v1144_v63 = vmul.f32 %v5286_v19, %v5487_v56  ;;  %v1208_v18 = vrot.slane %v1195_v58, 1 }
 0x33f   :  { %v1445_v0 = vrot.slane %v1433_v53, 4  ;;  %v1446_v33 = vrot.slane %v1434_v54, 4  ;;  %v1275_v3 = vmul.f32 %v5446_v14, %v5476_v62  ;;  %v1355_v12 = vmul.f32 %v5460_v28, %v5476_v62  ;;  %v5545_v53 = vld [vmem:[#allocation4 + $0x40] sm:$0x3f] }
 0x340   :  { %v1493_v44 = vsel %vm52_vm0, %v1490_v5, %v1492_v27  ;;  %v1209_v10 = vsel %vm764_vm9, %v1206_v25, %v1208_v18  ;;  %v1197_v29 = vmul.f32 %v5434_v7, %v5487_v56  ;;  %v1435_v20 = vmul.f32 %v5474_v46, %v5476_v62 }
 0x341   :  { %1654 = vrot.lane.b32.xlu0 %v1646_v36, %s4989_s6  ;;  %v1353_v36 = vmul.f32 %v5460_v28, %v5284_v17  ;;  %v1288_v11 = vrot.slane %v1275_v3, 2  ;;  %v1368_v16 = vrot.slane %v1355_v12, 3  ;;  %v1277_v23 = vmul.f32 %v5446_v14, %v5487_v56 }
 0x342   :  { %1576 = vrot.lane.b32.xlu1 %v1568_v45, %s4989_s6  ;;  %v1572_v45 = vrot.slane %v1557_v30, 5  ;;  %v1211_v27 = vrot.slane %v1197_v29, 1  ;;  %v1448_v32 = vrot.slane %v1435_v20, 4  ;;  %v1636_v20 = vmul.f32 %v5369_v8, %v5330_v42 }
 0x343   :  { %v1289_v38 = vsel %vm829_vm10, %v1286_v35, %v1288_v11  ;;  %v1369_v30 = vsel %vm894_vm11, %v1366_v52, %v1368_v16  ;;  %v1635_v16 = vmul.f32 %v5369_v8, %v5301_v26 }
 0x345   :  { %1258 = vrot.lane.b32.xlu0 %v1251_v51, %s4989_s6  ;;  %v1365_v51 = vrot.slane %v1353_v36, 3 }
 0x346   :  { %1656 = vrot.lane.b32.xlu1 %v1648_v55, %s4989_s6  ;;  %v5485_v55 = vstv %s4737_s17  ;;  %s4760_s17 = sld [smem:[#allocation5 + $0x42]] }
 0x347   :  { %v1514_v60 = vmul.f32 %v5485_v55, %v5405_v50  ;;  %v1367_v61 = vsel %vm894_vm11, %v1365_v51, %v1366_v52  ;;  %v1515_v35 = vmul.f32 %v5485_v55, %v5476_v62  ;;  %v1517_v18 = vmul.f32 %v5485_v55, %v5487_v56 }
 0x349   :  { %1338 = vrot.lane.b32.xlu0 %v1331_v59, %s4989_s6  ;;  %v1513_v59 = vmul.f32 %v5485_v55, %v5284_v17  ;;  %v1526_v6 = vrot.slane %v1514_v60, 5  ;;  %v1528_v51 = vrot.slane %v1515_v35, 5  ;;  %v1437_v60 = vmul.f32 %v5474_v46, %v5487_v56 }
 0x34a   :  { %1151 = vrot.lane.b32.xlu1 %v1142_v57, %s4989_s6  ;;  %v1573_v57 = vsel %vm1023_vm12, %v1570_v31, %v1572_v45  ;;  %v1357_v45 = vmul.f32 %v5460_v28, %v5487_v56  ;;  %v1518_v35 = vmul.f32 %v5485_v55, %v5545_v53 }
 0x34b   :  { %v1525_v5 = vrot.slane %v1513_v59, 5  ;;  %v1436_v59 = vmul.f32 %v5474_v46, %v5292_v22 }
 0x34c   :  { %v1371_v58 = vrot.slane %v1357_v45, 3 }
 0x34d   :  { %1418 = vrot.lane.b32.xlu0 %v1411_v4, %s4989_s6  ;;  %v5503_v4 = vstv %s4739_s18  ;;  %s4761_s18 = sld [smem:[#allocation5 + $0x18]] }
 0x34e   :  { %1260 = vrot.lane.b32.xlu1 %v1253_v9, %s4989_s6  ;;  %v1447_v9 = vsel %vm52_vm0, %v1445_v0, %v1446_v33  ;;  %v1593_v34 = vmul.f32 %v5503_v4, %v5284_v17  ;;  %v1594_v19 = vmul.f32 %v5503_v4, %v5405_v50  ;;  %v1595_v52 = vmul.f32 %v5503_v4, %v5476_v62 }
 0x34f   :  { %v1198_v0 = vmul.f32 %v5434_v7, %v5545_v53  ;;  %v1596_v12 = vmul.f32 %v5503_v4, %v5292_v22  ;;  %v1598_v45 = vmul.f32 %v5503_v4, %v5545_v53 }
 0x350   :  { %v1605_v31 = vrot.slane %v1593_v34, 6  ;;  %v1606_v13 = vrot.slane %v1594_v19, 6 }
 0x351   :  { %1498 = vrot.lane.b32.xlu0 %v1491_v39, %s4989_s6  ;;  %v1527_v39 = vsel %vm1023_vm12, %v1525_v5, %v1526_v6  ;;  %v1450_v5 = vrot.slane %v1436_v59, 4  ;;  %v1213_v34 = vrot.slane %v1198_v0, 1  ;;  %v1610_v29 = vrot.slane %v1596_v12, 6 }
 0x352   :  { %1340 = vrot.lane.b32.xlu1 %v1333_v15, %s4989_s6  ;;  %v1196_v15 = vmul.f32 %v5434_v7, %v5292_v22  ;;  %v1607_v25 = vsel %vm1088_vm13, %v1605_v31, %v1606_v13  ;;  %v1278_v7 = vmul.f32 %v5446_v14, %v5545_v53 }
 0x353   :  { %v1214_v31 = vsel %vm764_vm9, %v1211_v27, %v1213_v34 }
 0x355   :  { %1578 = vrot.lane.b32.xlu0 %v1571_v21, %s4989_s6  ;;  %v1276_v21 = vmul.f32 %v5446_v14, %v5292_v22  ;;  %v1358_v14 = vmul.f32 %v5460_v28, %v5545_v53 }
 0x356   :  { %1420 = vrot.lane.b32.xlu1 %v1413_v49, %s4989_s6  ;;  %v1210_v49 = vrot.slane %v1196_v15, 1 }
 0x357   :  { %v1290_v36 = vrot.slane %v1276_v21, 2 }
 0x358   :  { %v1212_v43 = vsel %vm764_vm9, %v1210_v49, %v1211_v27  ;;  %v1649_v49 = vrot.slane %v1635_v16, 6  ;;  %v1650_v27 = vrot.slane %v1636_v20, 6 }
 0x359   :  { %1215 = vrot.lane.b32.xlu0 %v1207_v1, %s4989_s6  ;;  %v1291_v1 = vrot.slane %v1277_v23, 2  ;;  %v1373_v23 = vrot.slane %v1358_v14, 3 }
 0x35a   :  { %1500 = vrot.lane.b32.xlu1 %v1493_v44, %s4989_s6  ;;  %v1356_v44 = vmul.f32 %v5460_v28, %v5292_v22  ;;  %v1438_v28 = vmul.f32 %v5474_v46, %v5545_v53  ;;  %v1651_v46 = vsel %vm1088_vm13, %v1649_v49, %v1650_v27 }
 0x35b   :  { %v1292_v54 = vsel %vm829_vm10, %v1290_v36, %v1291_v1  ;;  %v1672_v36 = vstv %s4741_s0  ;;  %s4762_s0 = sld [smem:[#allocation5 + $0x49]] }
 0x35d   :  { %1295 = vrot.lane.b32.xlu0 %v1287_v48, %s4989_s6  ;;  %v1449_v48 = vsel %vm52_vm0, %v1446_v33, %v1448_v32  ;;  %v1516_v33 = vmul.f32 %v5485_v55, %v5292_v22  ;;  %v1453_v32 = vrot.slane %v1438_v28, 4  ;;  %v1673_v55 = vmul.f32 %v1672_v36, %v5284_v17 }
 0x35e   :  { %1580 = vrot.lane.b32.xlu1 %v1573_v57, %s4989_s6  ;;  %v1370_v57 = vrot.slane %v1356_v44, 3  ;;  %v5597_v44 = vpop.permute.xlu0 %1149 }
 0x35f   :  { %v1530_v19 = vrot.slane %v1516_v33, 5  ;;  %9314 = vst [vmem:[#allocation15_spill] sm:$0xff] %v5597_v44 }
 0x360   :  { %v1372_v3 = vsel %vm894_vm11, %v1370_v57, %v1371_v58 }
 0x361   :  { %1375 = vrot.lane.b32.xlu0 %v1367_v61, %s4989_s6  ;;  %v1529_v61 = vsel %vm1023_vm12, %v1526_v6, %v1528_v51  ;;  %v1613_v51 = vrot.slane %v1598_v45, 6 }
 0x362   :  { %1155 = vrot.lane.b32.xlu1 %v1144_v63, %s4989_s6  ;;  %v1608_v63 = vrot.slane %v1595_v52, 6  ;;  %v1637_v52 = vmul.f32 %v5369_v8, %v5402_v47  ;;  %v5609_v57 = vpop.permute.xlu0 %1153 }
 0x363   :  { %9315 = vst [vmem:[#allocation16_spill] sm:$0xff] %v5609_v57 }
 0x364   :  { %v1609_v6 = vsel %vm1088_vm13, %v1606_v13, %v1608_v63  ;;  %v1293_v13 = vrot.slane %v1278_v7, 2  ;;  %v1652_v59 = vrot.slane %v1637_v52, 6  ;;  %v1763_v7 = vstv %s4744_s21  ;;  %s4766_s21 = sld [smem:[#allocation5 + $0x57]] }
 0x365   :  { %1455 = vrot.lane.b32.xlu0 %v1447_v9, %s4989_s6  ;;  %v1451_v9 = vrot.slane %v1437_v60, 4  ;;  %v1724_v60 = vstv %s4743_s19  ;;  %s4764_s19 = sld [smem:[#allocation5 + $0x50]] }
 0x366   :  { %1217 = vrot.lane.b32.xlu1 %v1209_v10, %s4989_s6  ;;  %v1531_v10 = vrot.slane %v1517_v18, 5  ;;  %v1294_v21 = vsel %vm829_vm10, %v1291_v1, %v1293_v13  ;;  %v1725_v8 = vmul.f32 %v1724_v60, %v5284_v17  ;;  %v1726_v63 = vmul.f32 %v1724_v60, %v5405_v50  ;;  %v5619_v33 = vpop.permute.xlu0 %1174 }
 0x367   :  { %v1452_v11 = vsel %vm52_vm0, %v1450_v5, %v1451_v9  ;;  %v1454_v1 = vsel %vm52_vm0, %v1451_v9, %v1453_v32  ;;  %v1653_v0 = vsel %vm1088_vm13, %v1650_v27, %v1652_v59  ;;  %9316 = vst [vmem:[#allocation17_spill] sm:$0xff] %v5619_v33  ;;  %v1674_v5 = vmul.f32 %v1672_v36, %v5405_v50 }
 0x368   :  { %v1532_v15 = vsel %vm1023_vm12, %v1530_v19, %v1531_v10  ;;  %v1737_v9 = vrot.slane %v1725_v8, 1  ;;  %v1729_v34 = vmul.f32 %v1724_v60, %v5487_v56  ;;  %v5635_v13 = vmul.f32 %v1763_v7, %v5326_v40 }
 0x369   :  { %1535 = vrot.lane.b32.xlu0 %v1527_v39, %s4989_s6  ;;  %v1597_v39 = vmul.f32 %v5503_v4, %v5487_v56  ;;  %v1697_v4 = vstv %s4742_s1  ;;  %v1727_v28 = vmul.f32 %v1724_v60, %v5476_v62  ;;  %v1730_v45 = vmul.f32 %v1724_v60, %v5545_v53  ;;  %s4763_s1 = sld [smem:[#allocation5 + $0x1f]] }
 0x36a   :  { %1297 = vrot.lane.b32.xlu1 %v1289_v38, %s4989_s6  ;;  %v1700_v18 = vmul.f32 %v1697_v4, %v5301_v26  ;;  %v5628_v19 = vpop.permute.xlu0 %1178  ;;  %v1777_v20 = vrot.slane %v5635_v13, 1  ;;  %v1701_v27 = vmul.f32 %v1697_v4, %v5330_v42  ;;  %v5685_v8 = vstv %s4746_s23  ;;  %s4768_s23 = sld [smem:[#allocation5 + $0x5e]] }
 0x36b   :  { %v1611_v38 = vrot.slane %v1597_v39, 6  ;;  %9317 = vst [vmem:[#allocation18_spill] sm:$0xff] %v5628_v19  ;;  %v1743_v39 = vrot.slane %v1729_v34, 1 }
 0x36d   :  { %1615 = vrot.lane.b32.xlu0 %v1607_v25, %s4989_s6  ;;  %v1612_v25 = vsel %vm1088_vm13, %v1610_v29, %v1611_v38  ;;  %v1767_v29 = vmul.f32 %v1763_v7, %v5301_v26 }
 0x36e   :  { %1377 = vrot.lane.b32.xlu1 %v1369_v30, %s4989_s6  ;;  %v1374_v30 = vsel %vm894_vm11, %v1371_v58, %v1373_v23  ;;  %v1614_v58 = vsel %vm1088_vm13, %v1611_v38, %v1613_v51 }
 0x371   :  { %1219 = vrot.lane.b32.xlu0 %v1212_v43, %s4989_s6  ;;  %v1533_v43 = vrot.slane %v1518_v35, 5 }
 0x372   :  { %1457 = vrot.lane.b32.xlu1 %v1449_v48, %s4989_s6 }
 0x373   :  { %v1534_v48 = vsel %vm1023_vm12, %v1531_v10, %v1533_v43  ;;  %v1676_v10 = vmul.f32 %v1672_v36, %v5487_v56  ;;  %v1740_v43 = vrot.slane %v1727_v28, 1  ;;  %v5720_v28 = vstv %s4747_s24  ;;  %s4769_s24 = sld [smem:[#allocation5 + $0x4]] }
 0x375   :  { %1299 = vrot.lane.b32.xlu0 %v1292_v54, %s4989_s6  ;;  %v1675_v54 = vmul.f32 %v1672_v36, %v5292_v22 }
 0x376   :  { %1537 = vrot.lane.b32.xlu1 %v1529_v61, %s4989_s6  ;;  %v1698_v61 = vmul.f32 %v1697_v4, %v5297_v24 }
 0x379   :  { %1379 = vrot.lane.b32.xlu0 %v1372_v3, %s4989_s6  ;;  %v1728_v3 = vmul.f32 %v1724_v60, %v5292_v22  ;;  %v1745_v60 = vrot.slane %v1730_v45, 1 }
 0x37a   :  { %1617 = vrot.lane.b32.xlu1 %v1609_v6, %s4989_s6  ;;  %v1738_v6 = vrot.slane %v1726_v63, 1 }
 0x37b   :  { %v1746_v34 = vsel %vm764_vm9, %v1743_v39, %v1745_v60 }
 0x37c   :  { %v1739_v12 = vsel %vm764_vm9, %v1737_v9, %v1738_v6  ;;  %v1741_v59 = vsel %vm764_vm9, %v1738_v6, %v1740_v43  ;;  %v5697_v9 = vmul.f32 %v5685_v8, %v5326_v40 }
 0x37d   :  { %1459 = vrot.lane.b32.xlu0 %v1452_v11, %s4989_s6  ;;  %v1742_v11 = vrot.slane %v1728_v3, 1 }
 0x37e   :  { %1221 = vrot.lane.b32.xlu1 %v1214_v31, %s4989_s6  ;;  %v1764_v31 = vmul.f32 %v1763_v7, %v5297_v24 }
 0x37f   :  { %v1744_v38 = vsel %vm764_vm9, %v1742_v11, %v1743_v39  ;;  %v1769_v11 = vmul.f32 %v1763_v7, %v5402_v47  ;;  %v5713_v39 = vmul.f32 %v5685_v8, %v5330_v42 }
 0x380   :  { %v1776_v16 = vrot.slane %v1764_v31, 1  ;;  %v1847_v31 = vmul.f32 %v5685_v8, %v5301_v26 }
 0x381   :  { %1539 = vrot.lane.b32.xlu0 %v1532_v15, %s4989_s6  ;;  %v1699_v15 = vmul.f32 %v1697_v4, %v5326_v40 }
 0x382   :  { %1301 = vrot.lane.b32.xlu1 %v1294_v21, %s4989_s6  ;;  %v5646_v21 = vmul.f32 %v1763_v7, %v5330_v42  ;;  %v1778_v32 = vsel %vm764_vm9, %v1776_v16, %v1777_v20  ;;  %v1784_v16 = vrot.slane %v1769_v11, 1 }
 0x384   :  { %v1782_v35 = vrot.slane %v5646_v21, 1 }
 0x385   :  { %1619 = vrot.lane.b32.xlu0 %v1612_v25, %s4989_s6  ;;  %v5651_v25 = vstv %s4745_s22  ;;  %s4767_s22 = sld [smem:[#allocation5 + $0x2d]] }
 0x386   :  { %1381 = vrot.lane.b32.xlu1 %v1374_v30, %s4989_s6  ;;  %v1781_v30 = vrot.slane %v1767_v29, 1  ;;  %v5664_v36 = vmul.f32 %v5651_v25, %v5405_v50  ;;  %v5679_v4 = vmul.f32 %v5651_v25, %v5487_v56  ;;  %v1857_v29 = vrot.slane %v5697_v9, 2 }
 0x387   :  { %v1807_v21 = vmul.f32 %v5651_v25, %v5476_v62  ;;  %v1785_v45 = vsel %vm764_vm9, %v1782_v35, %v1784_v16  ;;  %v5756_v9 = vstv %s4748_s4  ;;  %v1849_v16 = vmul.f32 %v5685_v8, %v5402_v47  ;;  %s4770_s4 = sld [smem:[#allocation5 + $0x35]] }
 0x388   :  { %v1783_v51 = vsel %vm764_vm9, %v1781_v30, %v1782_v35  ;;  %v1823_v3 = vrot.slane %v5679_v4, 2  ;;  %v1861_v30 = vrot.slane %v1847_v31, 2  ;;  %v1888_v4 = vmul.f32 %v5720_v28, %v5292_v22 }
 0x389   :  { %1658 = vrot.lane.b32.xlu0 %v1651_v46, %s4989_s6  ;;  %v1805_v46 = vmul.f32 %v5651_v25, %v5284_v17  ;;  %v5749_v35 = vmul.f32 %v5720_v28, %v5487_v56 }
 0x38a   :  { %1461 = vrot.lane.b32.xlu1 %v1454_v1, %s4989_s6 }
 0x38b   :  { %v1817_v52 = vrot.slane %v1805_v46, 2  ;;  %v1862_v46 = vrot.slane %v5713_v39, 2  ;;  %v1903_v31 = vrot.slane %v5749_v35, 3 }
 0x38d   :  { %1681 = vrot.lane.b32.xlu0 %v1673_v55, %s4990_s20 }
 0x38e   :  { %1541 = vrot.lane.b32.xlu1 %v1534_v48, %s4989_s6  ;;  %v1808_v48 = vmul.f32 %v5651_v25, %v5292_v22 }
 0x391   :  { %1685 = vrot.lane.b32.xlu0 %v1675_v54, %s4990_s20  ;;  %v1818_v54 = vrot.slane %v5664_v36, 2  ;;  %v5732_v36 = vmul.f32 %v5720_v28, %v5405_v50 }
 0x392   :  { %1621 = vrot.lane.b32.xlu1 %v1614_v58, %s4989_s6 }
 0x395   :  { %1706 = vrot.lane.b32.xlu0 %v1698_v61, %s4990_s20  ;;  %v1766_v61 = vmul.f32 %v1763_v7, %v5328_v41 }
 0x396   :  { %1660 = vrot.lane.b32.xlu1 %v1653_v0, %s4989_s6  ;;  %v1822_v0 = vrot.slane %v1808_v48, 2  ;;  %v1820_v48 = vrot.slane %v1807_v21, 2  ;;  %s4750_s6 = sld [smem:[#allocation5 + $0x4f]] }
 0x398   :  { %v1824_v13 = vsel %vm829_vm10, %v1822_v0, %v1823_v3 }
 0x399   :  { %1710 = vrot.lane.b32.xlu0 %v1700_v18, %s4990_s20  ;;  %v1819_v18 = vsel %vm829_vm10, %v1817_v52, %v1818_v54 }
 0x39a   :  { %1683 = vrot.lane.b32.xlu1 %v1674_v5, %s4990_s20  ;;  %v1844_v5 = vmul.f32 %v5685_v8, %v5297_v24 }
 0x39c   :  { %v5637_v14 = vpop.permute.xlu1 %1176 }
 0x39d   :  { %9318 = vst [vmem:[#allocation19_spill] sm:$0xff] %v5637_v14  ;;  %1747 = vrot.lane.b32.xlu0 %v1739_v12, %s4990_s20 }
 0x39e   :  { %1687 = vrot.lane.b32.xlu1 %v1676_v10, %s4990_s20  ;;  %v1779_v10 = vrot.slane %v1766_v61, 1  ;;  %v1898_v61 = vrot.slane %v5732_v36, 3 }
 0x39f   :  { %v5648_v23 = vpop.permute.xlu0 %1254 }
 0x3a0   :  { %9319 = vst [vmem:[#allocation20_spill] sm:$0xff] %v5648_v23  ;;  %v5653_v49 = vpop.permute.xlu1 %1180  ;;  %v1780_v7 = vsel %vm764_vm9, %v1777_v20, %v1779_v10  ;;  %v1885_v20 = vmul.f32 %v5720_v28, %v5284_v17  ;;  %v1902_v10 = vrot.slane %v1888_v4, 3  ;;  %v5792_v4 = vstv %s4749_s5  ;;  %s4771_s5 = sld [smem:[#allocation5 + $0xb]] }
 0x3a1   :  { %9320 = vst [vmem:[#allocation21_spill] sm:$0xff] %v5653_v49  ;;  %1751 = vrot.lane.b32.xlu0 %v1744_v38, %s4990_s20 }
 0x3a2   :  { %1708 = vrot.lane.b32.xlu1 %v1699_v15, %s4990_s20  ;;  %v1856_v15 = vrot.slane %v1844_v5, 2  ;;  %v1897_v60 = vrot.slane %v1885_v20, 3  ;;  %v1846_v5 = vmul.f32 %v5685_v8, %v5328_v41 }
 0x3a3   :  { %v5666_v1 = vpop.permute.xlu0 %1334 }
 0x3a4   :  { %9321 = vst [vmem:[#allocation22_spill] sm:$0xff] %v5666_v1  ;;  %v5669_v55 = vpop.permute.xlu1 %1256  ;;  %v1899_v11 = vsel %vm894_vm11, %v1897_v60, %v1898_v61 }
 0x3a5   :  { %9322 = vst [vmem:[#allocation23_spill] sm:$0xff] %v5669_v55  ;;  %1786 = vrot.lane.b32.xlu0 %v1778_v32, %s4990_s20  ;;  %v1858_v32 = vsel %vm829_vm10, %v1856_v15, %v1857_v29 }
 0x3a6   :  { %1712 = vrot.lane.b32.xlu1 %v1701_v27, %s4990_s20 }
 0x3a7   :  { %v5681_v58 = vpop.permute.xlu0 %1414 }
 0x3a8   :  { %9323 = vst [vmem:[#allocation24_spill] sm:$0xff] %v5681_v58  ;;  %v5687_v63 = vpop.permute.xlu1 %1336  ;;  %v6654_v58 = vld [vmem:[#allocation4 + $0x50] sm:$0xff] }
 0x3a9   :  { %9324 = vst [vmem:[#allocation25_spill] sm:$0xff] %v5687_v63  ;;  %1790 = vrot.lane.b32.xlu0 %v1783_v51, %s4990_s20  ;;  %v1810_v51 = vmul.f32 %v5651_v25, %v5545_v53  ;;  %v1821_v25 = vsel %vm829_vm10, %v1818_v54, %v1820_v48  ;;  %v1924_v54 = vmul.f32 %v5756_v9, %v5297_v24  ;;  %v1864_v48 = vrot.slane %v1849_v16, 2  ;;  %v6629_v63 = vld [vmem:[#allocation4 + $0x18] sm:$0xff] }
 0x3aa   :  { %1749 = vrot.lane.b32.xlu1 %v1741_v59, %s4990_s20  ;;  %v1863_v59 = vsel %vm829_vm10, %v1861_v30, %v1862_v46  ;;  %v1927_v30 = vmul.f32 %v5756_v9, %v5301_v26 }
 0x3ab   :  { %v5699_v6 = vpop.permute.xlu0 %1494  ;;  %v1936_v20 = vrot.slane %v1924_v54, 3  ;;  %v1890_v54 = vmul.f32 %v5720_v28, %v5545_v53 }
 0x3ac   :  { %9325 = vst [vmem:[#allocation26_spill] sm:$0xff] %v5699_v6  ;;  %v5703_v12 = vpop.permute.xlu1 %1416  ;;  %v1941_v60 = vrot.slane %v1927_v30, 3  ;;  %v6130_v6 = vld [vmem:[#allocation4 + $0x38] sm:$0xff] }
 0x3ad   :  { %9326 = vst [vmem:[#allocation27_spill] sm:$0xff] %v5703_v12  ;;  %1827 = vrot.lane.b32.xlu0 %v1819_v18, %s4990_s20  ;;  %v1825_v18 = vrot.slane %v1810_v51, 2  ;;  %v1887_v51 = vmul.f32 %v5720_v28, %v5476_v62 }
 0x3ae   :  { %1753 = vrot.lane.b32.xlu1 %v1746_v34, %s4990_s20 }
 0x3af   :  { %v5715_v38 = vpop.permute.xlu0 %1574  ;;  %v1826_v39 = vsel %vm829_vm10, %v1823_v3, %v1825_v18  ;;  %v5785_v3 = vmul.f32 %v5756_v9, %v5330_v42  ;;  %v5804_v18 = vmul.f32 %v5792_v4, %v5405_v50 }
 0x3b0   :  { %9327 = vst [vmem:[#allocation28_spill] sm:$0xff] %v5715_v38  ;;  %v5722_v27 = vpop.permute.xlu1 %1496 }
 0x3b1   :  { %9328 = vst [vmem:[#allocation29_spill] sm:$0xff] %v5722_v27  ;;  %1831 = vrot.lane.b32.xlu0 %v1824_v13, %s4990_s20  ;;  %v5768_v13 = vmul.f32 %v5756_v9, %v5326_v40  ;;  %v1978_v16 = vrot.slane %v5804_v18, 4 }
 0x3b2   :  { %1788 = vrot.lane.b32.xlu1 %v1780_v7, %s4990_s20  ;;  %v1859_v7 = vrot.slane %v1846_v5, 2 }
 0x3b3   :  { %v5734_v43 = vpop.permute.xlu0 %1654  ;;  %v1937_v36 = vrot.slane %v5768_v13, 3 }
 0x3b4   :  { %9329 = vst [vmem:[#allocation30_spill] sm:$0xff] %v5734_v43  ;;  %v5739_v52 = vpop.permute.xlu1 %1576  ;;  %v1860_v8 = vsel %vm829_vm10, %v1857_v29, %v1859_v7  ;;  %v1965_v29 = vmul.f32 %v5792_v4, %v5284_v17 }
 0x3b5   :  { %9330 = vst [vmem:[#allocation31_spill] sm:$0xff] %v5739_v52  ;;  %1866 = vrot.lane.b32.xlu0 %v1858_v32, %s4990_s20  ;;  %v1904_v32 = vsel %vm894_vm11, %v1902_v10, %v1903_v31  ;;  %v1938_v35 = vsel %vm894_vm11, %v1936_v20, %v1937_v36  ;;  %v1865_v10 = vsel %vm829_vm10, %v1862_v46, %v1864_v48 }
 0x3b6   :  { %1792 = vrot.lane.b32.xlu1 %v1785_v45, %s4990_s20  ;;  %v1977_v7 = vrot.slane %v1965_v29, 4  ;;  %v5821_v46 = vmul.f32 %v5792_v4, %v5487_v56  ;;  %v1926_v20 = vmul.f32 %v5756_v9, %v5328_v41 }
 0x3b7   :  { %v5751_v0 = vpop.permute.xlu0 %1258 }
 0x3b8   :  { %9331 = vst [vmem:[#allocation32_spill] sm:$0xff] %v5751_v0  ;;  %v5758_v34 = vpop.permute.xlu1 %1656  ;;  %v1979_v48 = vsel %vm52_vm0, %v1977_v7, %v1978_v16  ;;  %v1939_v18 = vrot.slane %v1926_v20, 3 }
 0x3b9   :  { %9332 = vst [vmem:[#allocation33_spill] sm:$0xff] %v5758_v34  ;;  %1870 = vrot.lane.b32.xlu0 %v1863_v59, %s4990_s20 }
 0x3ba   :  { %1829 = vrot.lane.b32.xlu1 %v1821_v25, %s4990_s20  ;;  %v1942_v25 = vrot.slane %v5785_v3, 3 }
 0x3bb   :  { %v5770_v15 = vpop.permute.xlu0 %1338 }
 0x3bc   :  { %9333 = vst [vmem:[#allocation34_spill] sm:$0xff] %v5770_v15  ;;  %v5775_v21 = vpop.permute.xlu1 %1151  ;;  %v1943_v17 = vsel %vm894_vm11, %v1941_v60, %v1942_v25 }
 0x3bd   :  { %9334 = vst [vmem:[#allocation35_spill] sm:$0xff] %v5775_v21  ;;  %1907 = vrot.lane.b32.xlu0 %v1899_v11, %s4990_s20  ;;  %v1900_v11 = vrot.slane %v1887_v51, 3  ;;  %v1983_v51 = vrot.slane %v5821_v46, 4  ;;  %v1967_v46 = vmul.f32 %v5792_v4, %v5476_v62 }
 0x3be   :  { %1833 = vrot.lane.b32.xlu1 %v1826_v39, %s4990_s20  ;;  %v1968_v39 = vmul.f32 %v5792_v4, %v5292_v22  ;;  %v5828_v22 = vstv %s4750_s6  ;;  %s4715_s6 = sld [smem:[#allocation5 + $0x7]] }
 0x3bf   :  { %v5787_v45 = vpop.permute.xlu0 %1418  ;;  %v1901_v28 = vsel %vm894_vm11, %v1898_v61, %v1900_v11  ;;  %v2004_v61 = vmul.f32 %v5828_v22, %v5297_v24  ;;  %v5840_v60 = vmul.f32 %v5828_v22, %v5326_v40  ;;  %v2006_v2 = vmul.f32 %v5828_v22, %v5328_v41  ;;  %v5918_v41 = vld [vmem:[#allocation4 + $0x20] sm:$0xff] }
 0x3c0   :  { %9335 = vst [vmem:[#allocation36_spill] sm:$0xff] %v5787_v45  ;;  %v5794_v59 = vpop.permute.xlu1 %1260 }
 0x3c1   :  { %9336 = vst [vmem:[#allocation37_spill] sm:$0xff] %v5794_v59  ;;  %1911 = vrot.lane.b32.xlu0 %v1904_v32, %s4990_s20  ;;  %v1905_v32 = vrot.slane %v1890_v54, 3  ;;  %v2007_v54 = vmul.f32 %v5828_v22, %v5301_v26  ;;  %v2016_v40 = vrot.slane %v2004_v61, 4  ;;  %v5864_v26 = vstv %s4751_s7  ;;  %s729_s7 = sld [smem:[#allocation5]] }
 0x3c2   :  { %1868 = vrot.lane.b32.xlu1 %v1860_v8, %s4990_s20  ;;  %v1982_v8 = vrot.slane %v1968_v39, 4  ;;  %v2017_v39 = vrot.slane %v5840_v60, 4 }
 0x3c3   :  { %v5806_v5 = vpop.permute.xlu0 %1498  ;;  %v1906_v29 = vsel %vm894_vm11, %v1903_v31, %v1905_v32  ;;  %v5857_v31 = vmul.f32 %v5828_v22, %v5330_v42  ;;  %v2021_v32 = vrot.slane %v2007_v54, 4  ;;  %v5888_v54 = vld [vmem:[#allocation4 + $0x30] sm:$0xff] }
 0x3c4   :  { %9337 = vst [vmem:[#allocation38_spill] sm:$0xff] %v5806_v5  ;;  %v5811_v13 = vpop.permute.xlu1 %1340  ;;  %v1984_v24 = vsel %vm52_vm0, %v1982_v8, %v1983_v51  ;;  %v2018_v42 = vsel %vm52_vm0, %v2016_v40, %v2017_v39  ;;  %v5872_v8 = vld [vmem:[#allocation4] sm:$0xff]  ;;  %v2163_v5 = vstv %s4754_s10  ;;  %s4772_s10 = sld [smem:[#allocation5 + $0x3c]] }
 0x3c5   :  { %9338 = vst [vmem:[#allocation39_spill] sm:$0xff] %v5811_v13  ;;  %1946 = vrot.lane.b32.xlu0 %v1938_v35, %s4990_s20  ;;  %v9260_v20 = vrot.slane %v5857_v31, 4 }
 0x3c6   :  { %1872 = vrot.lane.b32.xlu1 %v1865_v10, %s4990_s20  ;;  %v1929_v10 = vmul.f32 %v5756_v9, %v5402_v47  ;;  %v1940_v9 = vsel %vm894_vm11, %v1937_v36, %v1939_v18  ;;  %v2045_v36 = vmul.f32 %v5872_v8, %v5864_v26  ;;  %v1970_v18 = vmul.f32 %v5792_v4, %v5545_v53 }
 0x3c7   :  { %v5823_v30 = vpop.permute.xlu0 %1578  ;;  %v2023_v40 = vsel %vm52_vm0, %v2021_v32, %v9260_v20  ;;  %v5899_v4 = vmul.f32 %v5864_v26, %v5487_v56  ;;  %v5914_v20 = vld [vmem:[#allocation4 + $0x18] sm:$0xff] }
 0x3c8   :  { %9339 = vst [vmem:[#allocation40_spill] sm:$0xff] %v5823_v30  ;;  %v5830_v3 = vpop.permute.xlu1 %1420  ;;  %v1944_v7 = vrot.slane %v1929_v10, 3  ;;  %v2047_v30 = vmul.f32 %v5864_v26, %v5476_v62 }
 0x3c9   :  { %9340 = vst [vmem:[#allocation41_spill] sm:$0xff] %v5830_v3  ;;  %1950 = vrot.lane.b32.xlu0 %v1943_v17, %s4990_s20 }
 0x3ca   :  { %1909 = vrot.lane.b32.xlu1 %v1901_v28, %s4990_s20  ;;  %v1945_v60 = vsel %vm894_vm11, %v1942_v25, %v1944_v7  ;;  %v2057_v25 = vrot.slane %v2045_v36, 5  ;;  %v2060_v38 = vrot.slane %v2047_v30, 5 }
 0x3cb   :  { %v5842_v35 = vpop.permute.xlu0 %1215 }
 0x3cc   :  { %9341 = vst [vmem:[#allocation42_spill] sm:$0xff] %v5842_v35  ;;  %v5847_v11 = vpop.permute.xlu1 %1500 }
 0x3cd   :  { %9342 = vst [vmem:[#allocation43_spill] sm:$0xff] %v5847_v11  ;;  %1987 = vrot.lane.b32.xlu0 %v1979_v48, %s4990_s20  ;;  %v5878_v48 = vmul.f32 %v5864_v26, %v5405_v50 }
 0x3ce   :  { %1913 = vrot.lane.b32.xlu1 %v1906_v29, %s4990_s20  ;;  %v1980_v29 = vrot.slane %v1967_v46, 4 }
 0x3cf   :  { %v5859_v17 = vpop.permute.xlu0 %1295 }
 0x3d0   :  { %9343 = vst [vmem:[#allocation44_spill] sm:$0xff] %v5859_v17  ;;  %v5866_v28 = vpop.permute.xlu1 %1580  ;;  %v1981_v46 = vsel %vm52_vm0, %v1978_v16, %v1980_v29 }
 0x3d1   :  { %9344 = vst [vmem:[#allocation45_spill] sm:$0xff] %v5866_v28  ;;  %1991 = vrot.lane.b32.xlu0 %v1984_v24, %s4990_s20  ;;  %v2048_v24 = vmul.f32 %v5888_v54, %v5864_v26 }
 0x3d2   :  { %1948 = vrot.lane.b32.xlu1 %v1940_v9, %s4990_s20  ;;  %v2058_v9 = vrot.slane %v5878_v48, 5  ;;  %v2063_v48 = vrot.slane %v5899_v4, 5 }
 0x3d3   :  { %v5880_v61 = vpop.permute.xlu0 %1375  ;;  %v2062_v32 = vrot.slane %v2048_v24, 5 }
 0x3d4   :  { %9345 = vst [vmem:[#allocation46_spill] sm:$0xff] %v5880_v61  ;;  %v5885_v10 = vpop.permute.xlu1 %1155  ;;  %v2059_v36 = vsel %vm1023_vm12, %v2057_v25, %v2058_v9  ;;  %v2009_v25 = vmul.f32 %v5828_v22, %v5402_v47  ;;  %v2061_v30 = vsel %vm1023_vm12, %v2058_v9, %v2060_v38  ;;  %v2165_v38 = vmul.f32 %v5918_v41, %v2163_v5 }
 0x3d5   :  { %9346 = vst [vmem:[#allocation47_spill] sm:$0xff] %v5885_v10  ;;  %2026 = vrot.lane.b32.xlu0 %v2018_v42, %s4990_s20  ;;  %v1985_v42 = vrot.slane %v1970_v18, 4  ;;  %v2064_v28 = vsel %vm1023_vm12, %v2062_v32, %v2063_v48 }
 0x3d6   :  { %1952 = vrot.lane.b32.xlu1 %v1945_v60, %s4990_s20  ;;  %v5906_v60 = vstv %s4752_s8  ;;  %v2024_v52 = vrot.slane %v2009_v25, 4  ;;  %v9354_v25 = vrot.slane %v5857_v31, 4  ;;  %s4714_s8 = sld [smem:[#allocation5 + $0x31]] }
 0x3d7   :  { %v5901_v7 = vpop.permute.xlu0 %1455  ;;  %v2084_v16 = vmul.f32 %v5914_v20, %v5906_v60  ;;  %v5922_v29 = vmul.f32 %v5918_v41, %v5906_v60  ;;  %v1986_v24 = vsel %vm52_vm0, %v1983_v51, %v1985_v42 }
 0x3d8   :  { %9347 = vst [vmem:[#allocation48_spill] sm:$0xff] %v5901_v7  ;;  %v5908_v37 = vpop.permute.xlu1 %1217  ;;  %v2025_v27 = vsel %vm52_vm0, %v9354_v25, %v2024_v52  ;;  %v5978_v25 = vld [vmem:[#allocation4 + $0x28] sm:$0x3f] }
 0x3d9   :  { %9348 = vst [vmem:[#allocation49_spill] sm:$0xff] %v5908_v37  ;;  %2030 = vrot.lane.b32.xlu0 %v2023_v40, %s4990_s20  ;;  %v2019_v40 = vrot.slane %v2006_v2, 4  ;;  %v2096_v43 = vrot.slane %v2084_v16, 5  ;;  %v2097_v51 = vrot.slane %v5922_v29, 5  ;;  %v5939_v2 = vld [vmem:[#allocation4 + $0x50] sm:$0xff] }
 0x3da   :  { %1989 = vrot.lane.b32.xlu1 %v1981_v46, %s4990_s20  ;;  %v5932_v46 = vld [vmem:[#allocation4 + $0x48] sm:$0xff]  ;;  %v5943_v22 = vmul.f32 %v5939_v2, %v5906_v60 }
 0x3db   :  { %v5924_v18 = vpop.permute.xlu0 %1535  ;;  %v2087_v34 = vmul.f32 %v5932_v46, %v5906_v60  ;;  %v2098_v29 = vsel %vm1023_vm12, %v2096_v43, %v2097_v51 }
 0x3dc   :  { %9349 = vst [vmem:[#allocation50_spill] sm:$0xff] %v5924_v18  ;;  %v5929_v4 = vpop.permute.xlu1 %1297  ;;  %v2102_v11 = vrot.slane %v5943_v22, 5 }
 0x3dd   :  { %9350 = vst [vmem:[#allocation51_spill] sm:$0xff] %v5929_v4  ;;  %2067 = vrot.lane.b32.xlu0 %v2059_v36, %s4990_s20  ;;  %v2020_v36 = vsel %vm52_vm0, %v2017_v39, %v2019_v40  ;;  %v2101_v16 = vrot.slane %v2087_v34, 5  ;;  %v2050_v34 = vmul.f32 %v5864_v26, %v5545_v53 }
 0x3de   :  { %1993 = vrot.lane.b32.xlu1 %v1986_v24, %s4990_s20  ;;  %v2124_v24 = vstv %s4753_s9  ;;  %s4992_s9 = smov 124  }
 0x3df   :  { %v5945_v42 = vpop.permute.xlu0 %1615  ;;  %v5958_v39 = vmul.f32 %v2124_v24, %v5405_v50  ;;  %v2128_v43 = vmul.f32 %v5888_v54, %v2124_v24  ;;  %v2103_v50 = vsel %vm1023_vm12, %v2101_v16, %v2102_v11  ;;  %v2129_v31 = vmul.f32 %v2124_v24, %v5487_v56 }
 0x3e0   :  { %9351 = vst [vmem:[#allocation52_spill] sm:$0xff] %v5945_v42  ;;  %v5950_v32 = vpop.permute.xlu1 %1377  ;;  %v2125_v42 = vmul.f32 %v5872_v8, %v2124_v24  ;;  %v2065_v26 = vrot.slane %v2050_v34, 5 }
 0x3e1   :  { %9352 = vst [vmem:[#allocation53_spill] sm:$0xff] %v5950_v32  ;;  %2071 = vrot.lane.b32.xlu0 %v2064_v28, %s4990_s20  ;;  %v2143_v16 = vrot.slane %v2129_v31, 6  ;;  %v2177_v31 = vrot.slane %v2165_v38, 6 }
 0x3e2   :  { %2028 = vrot.lane.b32.xlu1 %v2020_v36, %s4990_s20  ;;  %v2137_v22 = vrot.slane %v2125_v42, 6  ;;  %v2138_v36 = vrot.slane %v5958_v39, 6  ;;  %v2164_v39 = vmul.f32 %v5914_v20, %v2163_v5  ;;  %v2066_v34 = vsel %vm1023_vm12, %v2063_v48, %v2065_v26 }
 0x3e3   :  { %v5960_v40 = vpop.permute.xlu0 %1219 }
 0x3e4   :  { %9353 = vst [vmem:[#allocation54_spill] sm:$0xff] %v5960_v40  ;;  %v5967_v28 = vpop.permute.xlu1 %1457  ;;  %v2139_v42 = vsel %vm1088_vm13, %v2137_v22, %v2138_v36  ;;  %v2176_v22 = vrot.slane %v2164_v39, 6 }
 0x3e5   :  { %9355 = vst [vmem:[#allocation55_spill] sm:$0xff] %v5967_v28  ;;  %2106 = vrot.lane.b32.xlu0 %v2098_v29, %s4990_s20  ;;  %v2086_v29 = vmul.f32 %v5978_v25, %v5906_v60 }
 0x3e6   :  { %2032 = vrot.lane.b32.xlu1 %v2025_v27, %s4990_s20  ;;  %v2142_v27 = vrot.slane %v2128_v43, 6  ;;  %v2167_v43 = vmul.f32 %v5932_v46, %v2163_v5 }
 0x3e7   :  { %v5975_v52 = vpop.permute.xlu0 %1299  ;;  %v2099_v18 = vrot.slane %v2086_v29, 5 }
 0x3e8   :  { %9356 = vst [vmem:[#allocation56_spill] sm:$0xff] %v5975_v52  ;;  %v5982_v28 = vpop.permute.xlu1 %1537 }
 0x3e9   :  { %9357 = vst [vmem:[#allocation57_spill] sm:$0xff] %v5982_v28  ;;  %2110 = vrot.lane.b32.xlu0 %v2103_v50, %s4990_s20  ;;  %v2089_v28 = vmul.f32 %v5906_v60, %v5402_v47  ;;  %v2144_v50 = vsel %vm1088_vm13, %v2142_v27, %v2143_v16  ;;  %v2100_v26 = vsel %vm1023_vm12, %v2097_v51, %v2099_v18 }
 0x3ea   :  { %2069 = vrot.lane.b32.xlu1 %v2061_v30, %s4990_s20  ;;  %v2168_v30 = vmul.f32 %v5939_v2, %v2163_v5  ;;  %v2127_v60 = vmul.f32 %v2124_v24, %v5476_v62  ;;  %v2178_v27 = vsel %vm1088_vm13, %v2176_v22, %v2177_v31  ;;  %v2130_v18 = vmul.f32 %v2124_v24, %v5545_v53 }
 0x3eb   :  { %v5989_v9 = vpop.permute.xlu0 %1379  ;;  %v2104_v47 = vrot.slane %v2089_v28, 5  ;;  %v2204_v28 = vstv %s4755_s11  ;;  %s6492_s11 = sld [smem:[#allocation5 + $0xe]] }
 0x3ec   :  { %9358 = vst [vmem:[#allocation58_spill] sm:$0xff] %v5989_v9  ;;  %v5994_v3 = vpop.permute.xlu1 %1617  ;;  %v2182_v39 = vrot.slane %v2168_v30, 6  ;;  %v2145_v22 = vrot.slane %v2130_v18, 6  ;;  %v2205_v24 = vmul.f32 %v5872_v8, %v2204_v28 }
 0x3ed   :  { %9359 = vst [vmem:[#allocation59_spill] sm:$0xff] %v5994_v3  ;;  %2147 = vrot.lane.b32.xlu0 %v2139_v42, %s4990_s20  ;;  %v2181_v42 = vrot.slane %v2167_v43, 6  ;;  %v2140_v3 = vrot.slane %v2127_v60, 6 }
 0x3ee   :  { %2073 = vrot.lane.b32.xlu1 %v2066_v34, %s4990_s20  ;;  %v2105_v34 = vsel %vm1023_vm12, %v2102_v11, %v2104_v47  ;;  %v2166_v11 = vmul.f32 %v5978_v25, %v2163_v5  ;;  %v2146_v47 = vsel %vm1088_vm13, %v2143_v16, %v2145_v22 }
 0x3ef   :  { %v6001_v48 = vpop.permute.xlu0 %1459  ;;  %v2183_v62 = vsel %vm1088_vm13, %v2181_v42, %v2182_v39  ;;  %v2141_v43 = vsel %vm1088_vm13, %v2138_v36, %v2140_v3  ;;  %v2207_v42 = vmul.f32 %v5888_v54, %v2204_v28 }
 0x3f0   :  { %9360 = vst [vmem:[#allocation60_spill] sm:$0xff] %v6001_v48  ;;  %v6005_v29 = vpop.permute.xlu1 %1221  ;;  %v2179_v60 = vrot.slane %v2166_v11, 6 }
 0x3f1   :  { %9361 = vst [vmem:[#allocation61_spill] sm:$0xff] %v6005_v29  ;;  %2151 = vrot.lane.b32.xlu0 %v2144_v50, %s4990_s20 }
 0x3f2   :  { %2108 = vrot.lane.b32.xlu1 %v2100_v26, %s4990_s20  ;;  %v2180_v16 = vsel %vm1088_vm13, %v2177_v31, %v2179_v60 }
 0x3f3   :  { %v6010_v38 = vpop.permute.xlu0 %1539 }
 0x3f4   :  { %9362 = vst [vmem:[#allocation62_spill] sm:$0xff] %v6010_v38  ;;  %v6014_v51 = vpop.permute.xlu1 %1301 }
 0x3f5   :  { %9363 = vst [vmem:[#allocation63_spill] sm:$0xff] %v6014_v51  ;;  %2186 = vrot.lane.b32.xlu0 %v2178_v27, %s4990_s20  ;;  %v6031_v27 = vld [vmem:[#allocation4 + $0x58] sm:$0x3f] }
 0x3f6   :  { %2112 = vrot.lane.b32.xlu1 %v2105_v34, %s4990_s20  ;;  %v2169_v3 = vmul.f32 %v6031_v27, %v2163_v5  ;;  %v2229_v34 = vstv %s4756_s12  ;;  %s6496_s12 = sld [smem:[#allocation5 + $0x38]] }
 0x3f7   :  { %v6019_v50 = vpop.permute.xlu0 %1619  ;;  %v2230_v5 = vmul.f32 %v5914_v20, %v2229_v34 }
 0x3f8   :  { %9364 = vst [vmem:[#allocation64_spill] sm:$0xff] %v6019_v50  ;;  %v6023_v30 = vpop.permute.xlu1 %1381 }
 0x3f9   :  { %9365 = vst [vmem:[#allocation65_spill] sm:$0xff] %v6023_v30  ;;  %2190 = vrot.lane.b32.xlu0 %v2183_v62, %s4990_s20  ;;  %v2184_v62 = vrot.slane %v2169_v3, 6  ;;  %v2232_v3 = vmul.f32 %v5932_v46, %v2229_v34 }
 0x3fa   :  { %2149 = vrot.lane.b32.xlu1 %v2141_v43, %s4990_s20  ;;  %v2256_v43 = vstv %s4757_s13  ;;  %s6525_s13 = sld [smem:[#allocation5 + $0x3f]] }
 0x3fb   :  { %v6028_v26 = vpop.permute.xlu0 %1658  ;;  %v2257_v11 = vmul.f32 %v5872_v8, %v2256_v43  ;;  %v2185_v31 = vsel %vm1088_vm13, %v2182_v39, %v2184_v62 }
 0x3fc   :  { %9366 = vst [vmem:[#allocation66_spill] sm:$0xff] %v6028_v26  ;;  %v6034_v36 = vpop.permute.xlu1 %1461 }
 0x3fd   :  { %9367 = vst [vmem:[#allocation67_spill] sm:$0xff] %v6034_v36  ;;  %2213 = vrot.lane.b32.xlu0 %v2205_v24, %s4991_s14  ;;  %v6048_v24 = vld [vmem:[#allocation4 + $0x8] sm:$0xff]  ;;  %v2269_v26 = vrot.slane %v2257_v11, 1 }
 0x3fe   :  { %2153 = vrot.lane.b32.xlu1 %v2146_v47, %s4990_s20  ;;  %v6051_v47 = vmul.f32 %v6048_v24, %v2256_v43 }
 0x3ff   :  { %v6039_v18 = vpop.permute.xlu0 %1681 }
 0x400   :  { %9368 = vst [vmem:[#allocation68_spill] sm:$0xff] %v6039_v18  ;;  %v6042_v22 = vpop.permute.xlu1 %1541  ;;  %v2270_v50 = vrot.slane %v6051_v47, 1  ;;  %v6599_v9 = vstv %s6525_s13  ;;  %s4993_s13 = smov 123  }
 0x401   :  { %9369 = vst [vmem:[#allocation69_spill] sm:$0xff] %v6042_v22  ;;  %2217 = vrot.lane.b32.xlu0 %v2207_v42, %s4991_s14  ;;  %v2206_v42 = vmul.f32 %v6048_v24, %v2204_v28  ;;  %v6065_v22 = vmul.f32 %v2256_v43, %v5487_v56 }
 0x402   :  { %2188 = vrot.lane.b32.xlu1 %v2180_v16, %s4990_s20  ;;  %v2260_v16 = vmul.f32 %v5888_v54, %v2256_v43  ;;  %v2271_v11 = vsel %vm764_vm9, %v2269_v26, %v2270_v50 }
 0x403   :  { %v6053_v18 = vpop.permute.xlu0 %1685 }
 0x404   :  { %9370 = vst [vmem:[#allocation70_spill] sm:$0xff] %v6053_v18  ;;  %v6056_v60 = vpop.permute.xlu1 %1621  ;;  %v6067_v18 = vstv %s4758_s15  ;;  %v2274_v47 = vrot.slane %v2260_v16, 1  ;;  %v6099_v16 = vstv %s4759_s16  ;;  %s6540_s15 = sld [smem:[#allocation5 + $0x12]] }
 0x405   :  { %9371 = vst [vmem:[#allocation71_spill] sm:$0xff] %v6056_v60  ;;  %2238 = vrot.lane.b32.xlu0 %v2230_v5, %s4991_s14  ;;  %v2208_v5 = vmul.f32 %v2204_v28, %v5487_v56  ;;  %v2275_v60 = vrot.slane %v6065_v22, 1  ;;  %v6082_v38 = vmul.f32 %v5918_v41, %v6067_v18  ;;  %v2231_v56 = vmul.f32 %v5918_v41, %v2229_v34  ;;  %s6561_s16 = sld [smem:[#allocation5 + $0x46]] }
 0x406   :  { %2192 = vrot.lane.b32.xlu1 %v2185_v31, %s4990_s20  ;;  %v2296_v31 = vmul.f32 %v5914_v20, %v6067_v18  ;;  %v2299_v28 = vmul.f32 %v5932_v46, %v6067_v18  ;;  %v6094_v26 = vmul.f32 %v5939_v2, %v6067_v18  ;;  %s4765_s20 = sld [smem:[#allocation5 + $0x26]] }
 0x407   :  { %v6069_v39 = vpop.permute.xlu0 %1706  ;;  %v2276_v22 = vsel %vm764_vm9, %v2274_v47, %v2275_v60  ;;  %v2233_v47 = vmul.f32 %v5939_v2, %v2229_v34 }
 0x408   :  { %9372 = vst [vmem:[#allocation72_spill] sm:$0xff] %v6069_v39  ;;  %v6071_v62 = vpop.permute.xlu1 %1660  ;;  %v2313_v48 = vrot.slane %v2299_v28, 1  ;;  %v2262_v28 = vmul.f32 %v2256_v43, %v5545_v53  ;;  %v6136_v53 = vstv %s4760_s17  ;;  %s6594_s17 = sld [smem:[#allocation5 + $0x1c]] }
 0x409   :  { %9373 = vst [vmem:[#allocation73_spill] sm:$0xff] %v6071_v62  ;;  %2242 = vrot.lane.b32.xlu0 %v2232_v3, %s4991_s14  ;;  %v2308_v3 = vrot.slane %v2296_v31, 1  ;;  %v2337_v31 = vmul.f32 %v5872_v8, %v6099_v16 }
 0x40a   :  { %2215 = vrot.lane.b32.xlu1 %v2206_v42, %s4991_s14  ;;  %v2309_v42 = vrot.slane %v6082_v38, 1 }
 0x40b   :  { %v6084_v39 = vpop.permute.xlu0 %1710 }
 0x40c   :  { %9374 = vst [vmem:[#allocation74_spill] sm:$0xff] %v6084_v39  ;;  %v6086_v62 = vpop.permute.xlu1 %1683  ;;  %v2310_v38 = vsel %vm764_vm9, %v2308_v3, %v2309_v42  ;;  %v2340_v3 = vmul.f32 %v5888_v54, %v6099_v16 }
 0x40d   :  { %9375 = vst [vmem:[#allocation75_spill] sm:$0xff] %v6086_v62  ;;  %2279 = vrot.lane.b32.xlu0 %v2271_v11, %s4991_s14  ;;  %v6103_v62 = vld [vmem:[#allocation4 + $0x10] sm:$0x3f] }
 0x40e   :  { %2219 = vrot.lane.b32.xlu1 %v2208_v5, %s4991_s14  ;;  %v2259_v39 = vmul.f32 %v6103_v62, %v2256_v43  ;;  %v2314_v5 = vrot.slane %v6094_v26, 1 }
 0x40f   :  { %v6101_v11 = vpop.permute.xlu0 %1747 }
 0x410   :  { %9376 = vst [vmem:[#allocation76_spill] sm:$0xff] %v6101_v11  ;;  %v6106_v36 = vpop.permute.xlu1 %1687  ;;  %v6117_v11 = vmul.f32 %v6048_v24, %v6099_v16  ;;  %v2315_v26 = vsel %vm764_vm9, %v2313_v48, %v2314_v5 }
 0x411   :  { %9377 = vst [vmem:[#allocation77_spill] sm:$0xff] %v6106_v36  ;;  %2283 = vrot.lane.b32.xlu0 %v2276_v22, %s4991_s14  ;;  %v2272_v36 = vrot.slane %v2259_v39, 1  ;;  %v6134_v39 = vmul.f32 %v6130_v6, %v6099_v16 }
 0x412   :  { %2240 = vrot.lane.b32.xlu1 %v2231_v56, %s4991_s14  ;;  %v2349_v56 = vrot.slane %v2337_v31, 2  ;;  %v2350_v34 = vrot.slane %v6117_v11, 2  ;;  %v2277_v31 = vrot.slane %v2262_v28, 1 }
 0x413   :  { %v6119_v12 = vpop.permute.xlu0 %1751  ;;  %v2273_v48 = vsel %vm764_vm9, %v2270_v50, %v2272_v36  ;;  %v2354_v36 = vrot.slane %v2340_v3, 2  ;;  %v2355_v28 = vrot.slane %v6134_v39, 2  ;;  %v2379_v3 = vmul.f32 %v5932_v46, %v6136_v53 }
 0x414   :  { %9378 = vst [vmem:[#allocation78_spill] sm:$0xff] %v6119_v12  ;;  %v6122_v22 = vpop.permute.xlu1 %1708  ;;  %v2351_v50 = vsel %vm829_vm10, %v2349_v56, %v2350_v34 }
 0x415   :  { %9379 = vst [vmem:[#allocation79_spill] sm:$0xff] %v6122_v22  ;;  %2318 = vrot.lane.b32.xlu0 %v2310_v38, %s4991_s14  ;;  %v2298_v38 = vmul.f32 %v5978_v25, %v6067_v18  ;;  %v6150_v22 = vmul.f32 %v5918_v41, %v6136_v53  ;;  %v2356_v56 = vsel %vm829_vm10, %v2354_v36, %v2355_v28 }
 0x416   :  { %2244 = vrot.lane.b32.xlu1 %v2233_v47, %s4991_s14  ;;  %v2376_v47 = vmul.f32 %v5914_v20, %v6136_v53 }
 0x417   :  { %v6138_v43 = vpop.permute.xlu0 %1786  ;;  %v2311_v12 = vrot.slane %v2298_v38, 1  ;;  %v6177_v38 = vstv %s4761_s18  ;;  %s6601_s18 = sld [smem:[#allocation5 + $0x23]] }
 0x418   :  { %9380 = vst [vmem:[#allocation80_spill] sm:$0xff] %v6138_v43  ;;  %v6143_v11 = vpop.permute.xlu1 %1712  ;;  %v2388_v30 = vrot.slane %v2376_v47, 2 }
 0x419   :  { %9381 = vst [vmem:[#allocation81_spill] sm:$0xff] %v6143_v11  ;;  %2322 = vrot.lane.b32.xlu0 %v2315_v26, %s4991_s14  ;;  %v2278_v11 = vsel %vm764_vm9, %v2275_v60, %v2277_v31  ;;  %v2301_v26 = vmul.f32 %v6031_v27, %v6067_v18  ;;  %v6170_v60 = vmul.f32 %v5939_v2, %v6136_v53 }
 0x41a   :  { %2281 = vrot.lane.b32.xlu1 %v2273_v48, %s4991_s14  ;;  %v2389_v48 = vrot.slane %v6150_v22, 2  ;;  %v2312_v39 = vsel %vm764_vm9, %v2309_v42, %v2311_v12  ;;  %v2339_v22 = vmul.f32 %v6103_v62, %v6099_v16  ;;  %v2417_v12 = vmul.f32 %v5872_v8, %v6177_v38 }
 0x41b   :  { %v6155_v43 = vpop.permute.xlu0 %1790  ;;  %v2316_v31 = vrot.slane %v2301_v26, 1  ;;  %v2394_v36 = vrot.slane %v6170_v60, 2  ;;  %v6189_v42 = vmul.f32 %v6048_v24, %v6177_v38  ;;  %v2420_v60 = vmul.f32 %v5888_v54, %v6177_v38 }
 0x41c   :  { %9382 = vst [vmem:[#allocation82_spill] sm:$0xff] %v6155_v43  ;;  %v6160_v45 = vpop.permute.xlu1 %1749  ;;  %v2390_v47 = vsel %vm829_vm10, %v2388_v30, %v2389_v48 }
 0x41d   :  { %9383 = vst [vmem:[#allocation83_spill] sm:$0xff] %v6160_v45  ;;  %2359 = vrot.lane.b32.xlu0 %v2351_v50, %s4991_s14  ;;  %v2393_v50 = vrot.slane %v2379_v3, 2  ;;  %v2378_v45 = vmul.f32 %v5978_v25, %v6136_v53 }
 0x41e   :  { %2285 = vrot.lane.b32.xlu1 %v2278_v11, %s4991_s14 }
 0x41f   :  { %v6172_v18 = vpop.permute.xlu0 %1827 }
 0x420   :  { %9384 = vst [vmem:[#allocation84_spill] sm:$0xff] %v6172_v18  ;;  %v6179_v11 = vpop.permute.xlu1 %1753  ;;  %v2352_v18 = vrot.slane %v2339_v22, 2  ;;  %v2430_v22 = vrot.slane %v6189_v42, 3 }
 0x421   :  { %9385 = vst [vmem:[#allocation85_spill] sm:$0xff] %v6179_v11  ;;  %2363 = vrot.lane.b32.xlu0 %v2356_v56, %s4991_s14  ;;  %v2317_v11 = vsel %vm764_vm9, %v2314_v5, %v2316_v31  ;;  %v6194_v56 = vld [vmem:[#allocation4 + $0x40] sm:$0x3f]  ;;  %v2395_v5 = vsel %vm829_vm10, %v2393_v50, %v2394_v36  ;;  %v2429_v31 = vrot.slane %v2417_v12, 3 }
 0x422   :  { %2320 = vrot.lane.b32.xlu1 %v2312_v39, %s4991_s14  ;;  %v2342_v30 = vmul.f32 %v6194_v56, %v6099_v16  ;;  %v6205_v39 = vmul.f32 %v6130_v6, %v6177_v38 }
 0x423   :  { %v6191_v26 = vpop.permute.xlu0 %1831  ;;  %v2431_v42 = vsel %vm894_vm11, %v2429_v31, %v2430_v22 }
 0x424   :  { %9386 = vst [vmem:[#allocation86_spill] sm:$0xff] %v6191_v26  ;;  %v6198_v3 = vpop.permute.xlu1 %1788  ;;  %v6210_v26 = vstv %s4762_s0  ;;  %v2435_v50 = vrot.slane %v6205_v39, 3  ;;  %s6620_s0 = sld [smem:[#allocation5 + $0x43]] }
 0x425   :  { %9387 = vst [vmem:[#allocation87_spill] sm:$0xff] %v6198_v3  ;;  %2398 = vrot.lane.b32.xlu0 %v2390_v47, %s4991_s14  ;;  %v2353_v47 = vsel %vm829_vm10, %v2350_v34, %v2352_v18  ;;  %v2357_v3 = vrot.slane %v2342_v30, 2  ;;  %v2456_v12 = vmul.f32 %v5914_v20, %v6210_v26  ;;  %v6227_v34 = vmul.f32 %v5918_v41, %v6210_v26 }
 0x426   :  { %2324 = vrot.lane.b32.xlu1 %v2317_v11, %s4991_s14  ;;  %v2434_v11 = vrot.slane %v2420_v60, 3  ;;  %v2381_v60 = vmul.f32 %v6031_v27, %v6136_v53 }
 0x427   :  { %v6212_v16 = vpop.permute.xlu0 %1866  ;;  %v2358_v30 = vsel %vm829_vm10, %v2355_v28, %v2357_v3  ;;  %v2469_v31 = vrot.slane %v6227_v34, 3  ;;  %v6246_v28 = vstv %s4763_s1  ;;  %s6643_s1 = sld [smem:[#allocation5 + $0x4d]] }
 0x428   :  { %9388 = vst [vmem:[#allocation88_spill] sm:$0xff] %v6212_v16  ;;  %v6217_v43 = vpop.permute.xlu1 %1792  ;;  %v2497_v34 = vmul.f32 %v5872_v8, %v6246_v28 }
 0x429   :  { %9389 = vst [vmem:[#allocation89_spill] sm:$0xff] %v6217_v43  ;;  %2402 = vrot.lane.b32.xlu0 %v2395_v5, %s4991_s14  ;;  %v2391_v43 = vrot.slane %v2378_v45, 2  ;;  %v2436_v5 = vsel %vm894_vm11, %v2434_v11, %v2435_v50  ;;  %v6244_v45 = vmul.f32 %v5939_v2, %v6210_v26  ;;  %v2419_v11 = vmul.f32 %v6103_v62, %v6177_v38 }
 0x42a   :  { %2361 = vrot.lane.b32.xlu1 %v2353_v47, %s4991_s14  ;;  %v2468_v47 = vrot.slane %v2456_v12, 3  ;;  %v2509_v32 = vrot.slane %v2497_v34, 4  ;;  %v6287_v34 = vstv %s4764_s19  ;;  %s6671_s19 = sld [smem:[#allocation5 + $0x54]]  ;;  %v6715_v1 = vstv %s6620_s0 }
 0x42b   :  { %v6229_v18 = vpop.permute.xlu0 %1870  ;;  %v2392_v3 = vsel %vm829_vm10, %v2389_v48, %v2391_v43  ;;  %v2908_v0 = vmul.f32 %v6629_v63, %v6715_v1  ;;  %s7993_s0 = sld [smem:[#allocation5 + $0x52]] }
 0x42c   :  { %9390 = vst [vmem:[#allocation90_spill] sm:$0xff] %v6229_v18  ;;  %v6234_v39 = vpop.permute.xlu1 %1829  ;;  %v2459_v18 = vmul.f32 %v5932_v46, %v6210_v26  ;;  %v2470_v43 = vsel %vm894_vm11, %v2468_v47, %v2469_v31  ;;  %v2500_v47 = vmul.f32 %v5888_v54, %v6246_v28 }
 0x42d   :  { %9391 = vst [vmem:[#allocation91_spill] sm:$0xff] %v6234_v39  ;;  %2439 = vrot.lane.b32.xlu0 %v2431_v42, %s4991_s14  ;;  %v2396_v42 = vrot.slane %v2381_v60, 2  ;;  %v2474_v60 = vrot.slane %v6244_v45, 3  ;;  %v2432_v39 = vrot.slane %v2419_v11, 3  ;;  %v2458_v11 = vmul.f32 %v5978_v25, %v6210_v26 }
 0x42e   :  { %2365 = vrot.lane.b32.xlu1 %v2358_v30, %s4991_s14  ;;  %v6260_v30 = vmul.f32 %v6048_v24, %v6246_v28  ;;  %v2473_v48 = vrot.slane %v2459_v18, 3 }
 0x42f   :  { %v6248_v53 = vpop.permute.xlu0 %1907  ;;  %v2433_v45 = vsel %vm894_vm11, %v2430_v22, %v2432_v39  ;;  %v2536_v22 = vmul.f32 %v5914_v20, %v6287_v34  ;;  %v6299_v39 = vmul.f32 %v5918_v41, %v6287_v34 }
 0x430   :  { %9392 = vst [vmem:[#allocation92_spill] sm:$0xff] %v6248_v53  ;;  %v6253_v12 = vpop.permute.xlu1 %1833  ;;  %v2475_v18 = vsel %vm894_vm11, %v2473_v48, %v2474_v60  ;;  %v6765_v23 = vstv %s6671_s19  ;;  %s8099_s19 = sld [smem:[#allocation5 + $0x59]] }
 0x431   :  { %9393 = vst [vmem:[#allocation93_spill] sm:$0xff] %v6253_v12  ;;  %2443 = vrot.lane.b32.xlu0 %v2436_v5, %s4991_s14  ;;  %v2397_v12 = vsel %vm829_vm10, %v2394_v36, %v2396_v42  ;;  %v2422_v5 = vmul.f32 %v6194_v56, %v6177_v38  ;;  %v6280_v36 = vmul.f32 %v6130_v6, %v6246_v28  ;;  %9458 = vst [vmem:[#allocation150_spill] sm:$0xff] %v6765_v23 }
 0x432   :  { %2400 = vrot.lane.b32.xlu1 %v2392_v3, %s4991_s14  ;;  %v2510_v3 = vrot.slane %v6260_v30, 4 }
 0x433   :  { %v6265_v53 = vpop.permute.xlu0 %1911  ;;  %v2437_v42 = vrot.slane %v2422_v5, 3  ;;  %v2515_v48 = vrot.slane %v6280_v36, 4  ;;  %v6313_v36 = vmul.f32 %v5939_v2, %v6287_v34 }
 0x434   :  { %9394 = vst [vmem:[#allocation94_spill] sm:$0xff] %v6265_v53  ;;  %v6270_v16 = vpop.permute.xlu1 %1868  ;;  %v2511_v30 = vsel %vm52_vm0, %v2509_v32, %v2510_v3  ;;  %v2461_v32 = vmul.f32 %v6031_v27, %v6210_v26 }
 0x435   :  { %9395 = vst [vmem:[#allocation95_spill] sm:$0xff] %v6270_v16  ;;  %2478 = vrot.lane.b32.xlu0 %v2470_v43, %s4991_s14  ;;  %v2514_v43 = vrot.slane %v2500_v47, 4  ;;  %v2539_v47 = vmul.f32 %v5932_v46, %v6287_v34 }
 0x436   :  { %2404 = vrot.lane.b32.xlu1 %v2397_v12, %s4991_s14 }
 0x437   :  { %v6282_v38 = vpop.permute.xlu0 %1946 }
 0x438   :  { %9396 = vst [vmem:[#allocation96_spill] sm:$0xff] %v6282_v38  ;;  %v6289_v12 = vpop.permute.xlu1 %1872  ;;  %v2471_v38 = vrot.slane %v2458_v11, 3  ;;  %v6318_v11 = vstv %s4765_s20  ;;  %s6694_s20 = sld [smem:[#allocation5 + $0x2a]] }
 0x439   :  { %9397 = vst [vmem:[#allocation97_spill] sm:$0xff] %v6289_v12  ;;  %2482 = vrot.lane.b32.xlu0 %v2475_v18, %s4991_s14  ;;  %v2438_v12 = vsel %vm894_vm11, %v2435_v50, %v2437_v42  ;;  %v2548_v50 = vrot.slane %v2536_v22, 4  ;;  %v2549_v42 = vrot.slane %v6299_v39, 4  ;;  %v2577_v22 = vmul.f32 %v5872_v8, %v6318_v11 }
 0x43a   :  { %2441 = vrot.lane.b32.xlu1 %v2433_v45, %s4991_s14  ;;  %v2516_v45 = vsel %vm52_vm0, %v2514_v43, %v2515_v48  ;;  %v2554_v43 = vrot.slane %v6313_v36, 4 }
 0x43b   :  { %v6301_v5 = vpop.permute.xlu0 %1950  ;;  %v2550_v39 = vsel %vm52_vm0, %v2548_v50, %v2549_v42 }
 0x43c   :  { %9398 = vst [vmem:[#allocation98_spill] sm:$0xff] %v6301_v5  ;;  %v6306_v18 = vpop.permute.xlu1 %1909  ;;  %v2499_v5 = vmul.f32 %v6103_v62, %v6246_v28 }
 0x43d   :  { %9399 = vst [vmem:[#allocation99_spill] sm:$0xff] %v6306_v18  ;;  %2519 = vrot.lane.b32.xlu0 %v2511_v30, %s4991_s14  ;;  %v2472_v30 = vsel %vm894_vm11, %v2469_v31, %v2471_v38  ;;  %v2476_v18 = vrot.slane %v2461_v32, 3  ;;  %v6335_v31 = vmul.f32 %v6048_v24, %v6318_v11 }
 0x43e   :  { %2445 = vrot.lane.b32.xlu1 %v2438_v12, %s4991_s14  ;;  %v2553_v12 = vrot.slane %v2539_v47, 4  ;;  %v2502_v47 = vmul.f32 %v6194_v56, %v6246_v28 }
 0x43f   :  { %v6320_v26 = vpop.permute.xlu0 %1987  ;;  %v2477_v32 = vsel %vm894_vm11, %v2474_v60, %v2476_v18  ;;  %v2590_v50 = vrot.slane %v6335_v31, 5  ;;  %v6352_v60 = vmul.f32 %v6130_v6, %v6318_v11 }
 0x440   :  { %9400 = vst [vmem:[#allocation100_spill] sm:$0xff] %v6320_v26  ;;  %v6325_v16 = vpop.permute.xlu1 %1913 }
 0x441   :  { %9401 = vst [vmem:[#allocation101_spill] sm:$0xff] %v6325_v16  ;;  %2523 = vrot.lane.b32.xlu0 %v2516_v45, %s4991_s14  ;;  %v2512_v16 = vrot.slane %v2499_v5, 4  ;;  %v2555_v45 = vsel %vm52_vm0, %v2553_v12, %v2554_v43  ;;  %v6354_v5 = vstv %s4766_s21  ;;  %v2538_v12 = vmul.f32 %v5978_v25, %v6287_v34  ;;  %s6727_s21 = sld [smem:[#allocation5 + $0x19]] }
 0x442   :  { %2480 = vrot.lane.b32.xlu1 %v2472_v30, %s4991_s14  ;;  %v2589_v30 = vrot.slane %v2577_v22, 5  ;;  %v2616_v31 = vmul.f32 %v5914_v20, %v6354_v5 }
 0x443   :  { %v6337_v38 = vpop.permute.xlu0 %1991  ;;  %v2513_v18 = vsel %vm52_vm0, %v2510_v3, %v2512_v16 }
 0x444   :  { %9402 = vst [vmem:[#allocation102_spill] sm:$0xff] %v6337_v38  ;;  %v6342_v36 = vpop.permute.xlu1 %1948  ;;  %v2580_v38 = vmul.f32 %v5888_v54, %v6318_v11  ;;  %v2591_v16 = vsel %vm1023_vm12, %v2589_v30, %v2590_v50  ;;  %v2628_v53 = vrot.slane %v2616_v31, 5  ;;  %v2619_v30 = vmul.f32 %v5932_v46, %v6354_v5 }
 0x445   :  { %9403 = vst [vmem:[#allocation103_spill] sm:$0xff] %v6342_v36  ;;  %2558 = vrot.lane.b32.xlu0 %v2550_v39, %s4991_s14  ;;  %v2517_v39 = vrot.slane %v2502_v47, 4  ;;  %v2595_v47 = vrot.slane %v6352_v60, 5  ;;  %v2551_v36 = vrot.slane %v2538_v12, 4  ;;  %v2579_v12 = vmul.f32 %v6103_v62, %v6318_v11 }
 0x446   :  { %2484 = vrot.lane.b32.xlu1 %v2477_v32, %s4991_s14  ;;  %v6368_v32 = vmul.f32 %v5918_v41, %v6354_v5  ;;  %v2594_v3 = vrot.slane %v2580_v38, 5  ;;  %v2656_v31 = vstv %s4767_s22  ;;  %s6747_s22 = sld [smem:[#allocation5 + $0x5b]] }
 0x447   :  { %v6356_v28 = vpop.permute.xlu0 %2026 }
 0x448   :  { %9404 = vst [vmem:[#allocation104_spill] sm:$0xff] %v6356_v28  ;;  %v6361_v22 = vpop.permute.xlu1 %1952  ;;  %v2596_v38 = vsel %vm1023_vm12, %v2594_v3, %v2595_v47 }
 0x449   :  { %9405 = vst [vmem:[#allocation105_spill] sm:$0xff] %v6361_v22  ;;  %2562 = vrot.lane.b32.xlu0 %v2555_v45, %s4991_s14  ;;  %v2518_v22 = vsel %vm52_vm0, %v2515_v48, %v2517_v39  ;;  %v2541_v45 = vmul.f32 %v6031_v27, %v6287_v34  ;;  %v6388_v48 = vmul.f32 %v5939_v2, %v6354_v5 }
 0x44a   :  { %2521 = vrot.lane.b32.xlu1 %v2513_v18, %s4991_s14  ;;  %v2629_v18 = vrot.slane %v6368_v32, 5  ;;  %v2552_v34 = vsel %vm52_vm0, %v2549_v42, %v2551_v36  ;;  %v6403_v42 = vmul.f32 %v6048_v24, %v2656_v31 }
 0x44b   :  { %v6373_v28 = vpop.permute.xlu0 %2030  ;;  %v2556_v39 = vrot.slane %v2541_v45, 4  ;;  %v2634_v3 = vrot.slane %v6388_v48, 5 }
 0x44c   :  { %9406 = vst [vmem:[#allocation106_spill] sm:$0xff] %v6373_v28  ;;  %v6378_v26 = vpop.permute.xlu1 %1989  ;;  %v2630_v32 = vsel %vm1023_vm12, %v2628_v53, %v2629_v18  ;;  %v2660_v53 = vmul.f32 %v5888_v54, %v2656_v31 }
 0x44d   :  { %9407 = vst [vmem:[#allocation107_spill] sm:$0xff] %v6378_v26  ;;  %2599 = vrot.lane.b32.xlu0 %v2591_v16, %s4991_s14  ;;  %v2633_v16 = vrot.slane %v2619_v30, 5  ;;  %v2557_v45 = vsel %vm52_vm0, %v2554_v43, %v2556_v39  ;;  %v2592_v26 = vrot.slane %v2579_v12, 5  ;;  %v6415_v30 = vmul.f32 %v6130_v6, %v2656_v31 }
 0x44e   :  { %2525 = vrot.lane.b32.xlu1 %v2518_v22, %s4991_s14  ;;  %v2670_v43 = vrot.slane %v6403_v42, 6  ;;  %v2674_v28 = vrot.slane %v2660_v53, 6 }
 0x44f   :  { %v6390_v60 = vpop.permute.xlu0 %2067  ;;  %v2635_v48 = vsel %vm1023_vm12, %v2633_v16, %v2634_v3 }
 0x450   :  { %9408 = vst [vmem:[#allocation108_spill] sm:$0xff] %v6390_v60  ;;  %v6395_v22 = vpop.permute.xlu1 %1993  ;;  %v2657_v60 = vmul.f32 %v5872_v8, %v2656_v31 }
 0x451   :  { %9409 = vst [vmem:[#allocation109_spill] sm:$0xff] %v6395_v22  ;;  %2603 = vrot.lane.b32.xlu0 %v2596_v38, %s4991_s14  ;;  %v2582_v38 = vmul.f32 %v6194_v56, %v6318_v11  ;;  %v2593_v11 = vsel %vm1023_vm12, %v2590_v50, %v2592_v26 }
 0x452   :  { %2560 = vrot.lane.b32.xlu1 %v2552_v34, %s4991_s14  ;;  %v2669_v34 = vrot.slane %v2657_v60, 6 }
 0x453   :  { %v6405_v36 = vpop.permute.xlu0 %2071  ;;  %v2597_v12 = vrot.slane %v2582_v38, 5 }
 0x454   :  { %9410 = vst [vmem:[#allocation110_spill] sm:$0xff] %v6405_v36  ;;  %v6410_v22 = vpop.permute.xlu1 %2028  ;;  %v2671_v60 = vsel %vm1088_vm13, %v2669_v34, %v2670_v43 }
 0x455   :  { %9411 = vst [vmem:[#allocation111_spill] sm:$0xff] %v6410_v22  ;;  %2638 = vrot.lane.b32.xlu0 %v2630_v32, %s4991_s14  ;;  %v2618_v32 = vmul.f32 %v5978_v25, %v6354_v5  ;;  %v2695_v22 = vstv %s4768_s23  ;;  %v2598_v42 = vsel %vm1023_vm12, %v2595_v47, %v2597_v12  ;;  %s6803_s23 = sld [smem:[#allocation5 + $0x4a]] }
 0x456   :  { %2564 = vrot.lane.b32.xlu1 %v2557_v45, %s4991_s14  ;;  %v2675_v45 = vrot.slane %v6415_v30, 6  ;;  %v2696_v16 = vmul.f32 %v5914_v20, %v2695_v22  ;;  %v2697_v26 = vmul.f32 %v5918_v41, %v2695_v22 }
 0x457   :  { %v6420_v39 = vpop.permute.xlu0 %2106  ;;  %v2631_v38 = vrot.slane %v2618_v32, 5  ;;  %v2659_v32 = vmul.f32 %v6103_v62, %v2656_v31 }
 0x458   :  { %9412 = vst [vmem:[#allocation112_spill] sm:$0xff] %v6420_v39  ;;  %v6425_v36 = vpop.permute.xlu1 %2032  ;;  %v2676_v53 = vsel %vm1088_vm13, %v2674_v28, %v2675_v45  ;;  %v2708_v30 = vrot.slane %v2696_v16, 6  ;;  %v2709_v34 = vrot.slane %v2697_v26, 6 }
 0x459   :  { %9413 = vst [vmem:[#allocation113_spill] sm:$0xff] %v6425_v36  ;;  %2642 = vrot.lane.b32.xlu0 %v2635_v48, %s4991_s14  ;;  %v2621_v36 = vmul.f32 %v6031_v27, %v6354_v5  ;;  %v2632_v12 = vsel %vm1023_vm12, %v2629_v18, %v2631_v38  ;;  %v2662_v18 = vmul.f32 %v6194_v56, %v2656_v31 }
 0x45a   :  { %2601 = vrot.lane.b32.xlu1 %v2593_v11, %s4991_s14  ;;  %v2699_v11 = vmul.f32 %v5932_v46, %v2695_v22  ;;  %v2710_v28 = vsel %vm1088_vm13, %v2708_v30, %v2709_v34 }
 0x45b   :  { %v6433_v50 = vpop.permute.xlu0 %2110  ;;  %v2636_v5 = vrot.slane %v2621_v36, 5 }
 0x45c   :  { %9414 = vst [vmem:[#allocation114_spill] sm:$0xff] %v6433_v50  ;;  %v6438_v48 = vpop.permute.xlu1 %2069  ;;  %v2700_v50 = vmul.f32 %v5939_v2, %v2695_v22 }
 0x45d   :  { %9415 = vst [vmem:[#allocation115_spill] sm:$0xff] %v6438_v48  ;;  %2679 = vrot.lane.b32.xlu0 %v2671_v60, %s4991_s14  ;;  %v2713_v60 = vrot.slane %v2699_v11, 6  ;;  %v2698_v11 = vmul.f32 %v5978_v25, %v2695_v22 }
 0x45e   :  { %2605 = vrot.lane.b32.xlu1 %v2598_v42, %s4991_s14  ;;  %v2714_v16 = vrot.slane %v2700_v50, 6  ;;  %v2637_v42 = vsel %vm1023_vm12, %v2634_v3, %v2636_v5  ;;  %v2677_v3 = vrot.slane %v2662_v18, 6 }
 0x45f   :  { %v6445_v47 = vpop.permute.xlu0 %2147 }
 0x460   :  { %9416 = vst [vmem:[#allocation116_spill] sm:$0xff] %v6445_v47  ;;  %v6449_v48 = vpop.permute.xlu1 %2073  ;;  %v2672_v47 = vrot.slane %v2659_v32, 6  ;;  %v2715_v38 = vsel %vm1088_vm13, %v2713_v60, %v2714_v16  ;;  %v2678_v32 = vsel %vm1088_vm13, %v2675_v45, %v2677_v3  ;;  %v6485_v60 = vstv %s4770_s4  ;;  %s6982_s4 = sld [smem:[#allocation5 + $0x51]] }
 0x461   :  { %9417 = vst [vmem:[#allocation117_spill] sm:$0xff] %v6449_v48  ;;  %2683 = vrot.lane.b32.xlu0 %v2676_v53, %s4991_s14  ;;  %v6463_v53 = vstv %s4769_s24  ;;  %v2762_v3 = vmul.f32 %v5914_v20, %v6485_v60  ;;  %s6892_s24 = sld [smem:[#allocation5 + $0x20]] }
 0x462   :  { %2640 = vrot.lane.b32.xlu1 %v2632_v12, %s4991_s14  ;;  %v2673_v30 = vsel %vm1088_vm13, %v2670_v43, %v2672_v47  ;;  %v2737_v12 = vmul.f32 %v5872_v8, %v6463_v53  ;;  %v2701_v43 = vmul.f32 %v6031_v27, %v2695_v22  ;;  %v2739_v25 = vmul.f32 %v5888_v54, %v6463_v53 }
 0x463   :  { %v6454_v26 = vpop.permute.xlu0 %2151 }
 0x464   :  { %9418 = vst [vmem:[#allocation118_spill] sm:$0xff] %v6454_v26  ;;  %v6458_v36 = vpop.permute.xlu1 %2108  ;;  %v2716_v18 = vrot.slane %v2701_v43, 6 }
 0x465   :  { %9419 = vst [vmem:[#allocation119_spill] sm:$0xff] %v6458_v36  ;;  %2718 = vrot.lane.b32.xlu0 %v2710_v28, %s4991_s14  ;;  %v2711_v28 = vrot.slane %v2698_v11, 6  ;;  %v6559_v36 = vstv %s6496_s12  ;;  %s7545_s12 = sld [smem:[#allocation5 + $0xc]] }
 0x466   :  { %2644 = vrot.lane.b32.xlu1 %v2637_v42, %s4991_s14  ;;  %v6487_v42 = vstv %s4771_s5  ;;  %v6592_v39 = vmul.f32 %v5914_v20, %v6559_v36  ;;  %s7055_s5 = sld [smem:[#allocation5 + $0x27]] }
 0x467   :  { %v6465_v50 = vpop.permute.xlu0 %2186  ;;  %v2712_v22 = vsel %vm1088_vm13, %v2709_v34, %v2711_v28  ;;  %v2789_v11 = vmul.f32 %v5872_v8, %v6487_v42  ;;  %v6507_v34 = vmul.f32 %v6048_v24, %v6487_v42  ;;  %v6513_v28 = vstv %s729_s7  ;;  %s7245_s7 = sld [smem:[#allocation5 + $0x2e]] }
 0x468   :  { %9420 = vst [vmem:[#allocation120_spill] sm:$0xff] %v6465_v50  ;;  %v6469_v31 = vpop.permute.xlu1 %2112  ;;  %9427 = vst [vmem:[#allocation127_spill] sm:$0xff] %v6513_v28 }
 0x469   :  { %9421 = vst [vmem:[#allocation121_spill] sm:$0xff] %v6469_v31  ;;  %2722 = vrot.lane.b32.xlu0 %v2715_v38, %s4991_s14 }
 0x46a   :  { %2681 = vrot.lane.b32.xlu1 %v2673_v30, %s4991_s14  ;;  %v6498_v30 = vstv %s4715_s6  ;;  %s7143_s6 = sld [smem:[#allocation5 + $0x58]] }
 0x46b   :  { %v6475_v5 = vpop.permute.xlu0 %2190  ;;  %v752_v43 = vmul.f32 %v5872_v8, %v6498_v30 }
 0x46c   :  { %9422 = vst [vmem:[#allocation122_spill] sm:$0xff] %v6475_v5  ;;  %v6479_v47 = vpop.permute.xlu1 %2149 }
 0x46d   :  { %9423 = vst [vmem:[#allocation123_spill] sm:$0xff] %v6479_v47  ;;  %2745 = vrot.lane.b32.xlu0 %v2737_v12, %s4992_s9  ;;  %v6538_v47 = vmul.f32 %v6130_v6, %v6487_v42  ;;  %v765_v5 = vrot.slane %v752_v43, 1  ;;  %v2740_v43 = vmul.f32 %v6130_v6, %v6463_v53 }
 0x46e   :  { %2685 = vrot.lane.b32.xlu1 %v2678_v32, %s4991_s14  ;;  %v2717_v32 = vsel %vm1088_vm13, %v2714_v16, %v2716_v18  ;;  %v2764_v16 = vmul.f32 %v5932_v46, %v6485_v60  ;;  %v6546_v18 = vstv %s4772_s10  ;;  %s7479_s10 = sld [smem:[#allocation5 + $0x5]] }
 0x46f   :  { %v6489_v45 = vpop.permute.xlu0 %2213  ;;  %v6575_v48 = vmul.f32 %v5918_v41, %v6546_v18  ;;  %v9460_v21 = vrot.slane %v6538_v47, 1 }
 0x470   :  { %9424 = vst [vmem:[#allocation124_spill] sm:$0xff] %v6489_v45  ;;  %v6494_v38 = vpop.permute.xlu1 %2153  ;;  %v6523_v45 = vstv %s4714_s8  ;;  %s7337_s8 = sld [smem:[#allocation5 + $0x5f]] }
 0x471   :  { %9425 = vst [vmem:[#allocation125_spill] sm:$0xff] %v6494_v38  ;;  %2749 = vrot.lane.b32.xlu0 %v2739_v25, %s4992_s9  ;;  %v6519_v25 = vmul.f32 %v6048_v24, %v6498_v30  ;;  %9430 = vst [vmem:[#allocation130_spill] sm:$0xff] %v6523_v45 }
 0x472   :  { %2720 = vrot.lane.b32.xlu1 %v2712_v22, %s4991_s14  ;;  %v2801_v22 = vrot.slane %v2789_v11, 1 }
 0x473   :  { %v6510_v12 = vpop.permute.xlu0 %2217  ;;  %9428 = vst [vmem:[#allocation128_spill] sm:$0xff] %v6519_v25 }
 0x474   :  { %9426 = vst [vmem:[#allocation126_spill] sm:$0xff] %v6510_v12  ;;  %v6521_v38 = vpop.permute.xlu1 %2188  ;;  %v2738_v12 = vmul.f32 %v6048_v24, %v6463_v53 }
 0x475   :  { %9429 = vst [vmem:[#allocation129_spill] sm:$0xff] %v6521_v38  ;;  %2770 = vrot.lane.b32.xlu0 %v2762_v3, %s4992_s9  ;;  %v2792_v38 = vmul.f32 %v5888_v54, %v6487_v42  ;;  %v732_v3 = vmul.f32 %v5872_v8, %v6513_v28  ;;  %v6552_v54 = vstv %s6492_s11  ;;  %v9434_v8 = vrot.slane %v6507_v34, 1  ;;  %s7533_s11 = sld [smem:[#allocation5 + $0x36]] }
 0x476   :  { %2724 = vrot.lane.b32.xlu1 %v2717_v32, %s4991_s14  ;;  %v741_v32 = vmul.f32 %v5914_v20, %v6523_v45  ;;  %9432 = vst [vmem:[#allocation132_spill] sm:$0xff] %v6552_v54  ;;  %s6554_s14 = sld [smem:[#allocation5 + $0x15]]  ;;  %v6583_v53 = vmul.f32 %v6048_v24, %v6552_v54 }
 0x477   :  { %v6544_v11 = vpop.permute.xlu0 %2238  ;;  %v2806_v31 = vrot.slane %v2792_v38, 1 }
 0x478   :  { %9431 = vst [vmem:[#allocation131_spill] sm:$0xff] %v6544_v11  ;;  %v6556_v50 = vpop.permute.xlu1 %2192  ;;  %v2803_v11 = vsel %vm764_vm9, %v2801_v22, %v9434_v8  ;;  %9435 = vst [vmem:[#allocation134_spill] sm:$0xff] %v6583_v53  ;;  %v745_v38 = vadd.f32 %v741_v32, %v732_v3  ;;  %v9437_v8 = vrot.slane %v6519_v25, 1  ;;  %v2763_v3 = vmul.f32 %v5918_v41, %v6485_v60  ;;  %v6986_v25 = vld [vmem:[#allocation4 + $0x38] sm:$0xff] }
 0x479   :  { %9433 = vst [vmem:[#allocation133_spill] sm:$0xff] %v6556_v50  ;;  %2774 = vrot.lane.b32.xlu0 %v2764_v16, %s4992_s9  ;;  %v2828_v50 = vmul.f32 %v5914_v20, %v6546_v18  ;;  %v6577_v16 = vld [vmem:[#allocation4] sm:$0xff]  ;;  %v6610_v20 = vmul.f32 %v5939_v2, %v6546_v18  ;;  %v9439_v32 = vrot.slane %v6538_v47, 1  ;;  %v2791_v2 = vmul.f32 %v6103_v62, %v6487_v42 }
 0x47a   :  { %2747 = vrot.lane.b32.xlu1 %v2738_v12, %s4992_s9  ;;  %v817_v22 = vmul.f32 %v6577_v16, %v6552_v54  ;;  %v767_v26 = vsel %vm764_vm9, %v765_v5, %v9437_v8  ;;  %v2831_v5 = vmul.f32 %v5932_v46, %v6546_v18  ;;  %v6783_v47 = vstv %s6694_s20  ;;  %s8164_s20 = sld [smem:[#allocation5 + $0x2f]] }
 0x47b   :  { %v6585_v12 = vpop.permute.xlu0 %2242  ;;  %v2808_v8 = vsel %vm764_vm9, %v2806_v31, %v9439_v32  ;;  %v9451_v51 = vrot.slane %v6610_v20, 1  ;;  %9462 = vst [vmem:[#allocation153_spill] sm:$0xff] %v6783_v47 }
 0x47c   :  { %9436 = vst [vmem:[#allocation135_spill] sm:$0xff] %v6585_v12  ;;  %v6596_v7 = vpop.permute.xlu1 %2215  ;;  %v6618_v12 = vstv %s6540_s15  ;;  %v830_v41 = vrot.slane %v817_v22, 2  ;;  %v6636_v31 = vstv %s6554_s14  ;;  %v6641_v22 = vstv %s6561_s16  ;;  %s7620_s15 = sld [smem:[#allocation5 + $0x3d]] }
 0x47d   :  { %9438 = vst [vmem:[#allocation136_spill] sm:$0xff] %v6596_v7  ;;  %2811 = vrot.lane.b32.xlu0 %v2803_v11, %s4992_s9  ;;  %v2840_v7 = vrot.slane %v2828_v50, 1  ;;  %v6633_v50 = vmul.f32 %v6629_v63, %v6599_v9  ;;  %9441 = vst [vmem:[#allocation138_spill] sm:$0xff] %v6636_v31  ;;  %v2845_v46 = vrot.slane %v2831_v5, 1  ;;  %v2765_v5 = vmul.f32 %v6654_v58, %v6485_v60  ;;  %s7677_s14 = sld [smem:[#allocation5 + $0x13]] }
 0x47e   :  { %2751 = vrot.lane.b32.xlu1 %v2740_v43, %s4992_s9  ;;  %v6627_v43 = vadd.f32 %v767_v26, %v745_v38  ;;  %9443 = vst [vmem:[#allocation140_spill] sm:$0xff] %v6641_v22  ;;  %v2869_v38 = vmul.f32 %v6577_v16, %v6618_v12  ;;  %v9445_v26 = vrot.slane %v6583_v53, 2  ;;  %v2794_v60 = vmul.f32 %v6194_v56, %v6487_v42  ;;  %v6696_v42 = vld [vmem:[#allocation4 + $0x30] sm:$0xff]  ;;  %s7822_s16 = sld [smem:[#allocation5 + $0x1a]] }
 0x47f   :  { %v6623_v13 = vpop.permute.xlu0 %2279  ;;  %v6680_v15 = vmul.f32 %v6048_v24, %v6636_v31  ;;  %v2847_v61 = vsel %vm764_vm9, %v2845_v46, %v9451_v51  ;;  %v2872_v52 = vmul.f32 %v6696_v42, %v6618_v12  ;;  %v6712_v55 = vmul.f32 %v6130_v6, %v6618_v12 }
 0x480   :  { %9440 = vst [vmem:[#allocation137_spill] sm:$0xff] %v6623_v13  ;;  %v6638_v32 = vpop.permute.xlu1 %2219  ;;  %v9444_v13 = vrot.slane %v6575_v48, 1  ;;  %v6665_v11 = vsel %vm829_vm10, %v830_v41, %v9445_v26  ;;  %v6684_v41 = vmul.f32 %v6629_v63, %v6641_v22  ;;  %v6687_v26 = vstv %s6594_s17  ;;  %s7869_s17 = sld [smem:[#allocation5 + $0x4b]] }
 0x481   :  { %9442 = vst [vmem:[#allocation139_spill] sm:$0xff] %v6638_v32  ;;  %2815 = vrot.lane.b32.xlu0 %v2808_v8, %s4992_s9  ;;  %v6660_v8 = vmul.f32 %v6048_v24, %v6618_v12  ;;  %9447 = vst [vmem:[#allocation142_spill] sm:$0xff] %v6680_v15  ;;  %v2881_v59 = vrot.slane %v2869_v38, 2  ;;  %v9453_v51 = vrot.slane %v6507_v34, 1  ;;  %v2809_v38 = vrot.slane %v2794_v60, 1 }
 0x482   :  { %2772 = vrot.lane.b32.xlu1 %v2763_v3, %s4992_s9  ;;  %v2842_v32 = vsel %vm764_vm9, %v2840_v7, %v9444_v13  ;;  %v6669_v3 = vmul.f32 %v6577_v16, %v6636_v31  ;;  %v2804_v7 = vrot.slane %v2791_v2, 1  ;;  %9448 = vst [vmem:[#allocation143_spill] sm:$0xff] %v6687_v26  ;;  %v6700_v2 = vmul.f32 %v6696_v42, %v6513_v28 }
 0x483   :  { %v6673_v13 = vpop.permute.xlu0 %2283  ;;  %v947_v37 = vmul.f32 %v6577_v16, %v6687_v26  ;;  %v6741_v60 = vstv %s6643_s1  ;;  %v9457_v49 = vrot.slane %v6660_v8, 2  ;;  %v2886_v40 = vrot.slane %v2872_v52, 2  ;;  %s8042_s1 = sld [smem:[#allocation5 + $0x28]] }
 0x484   :  { %9446 = vst [vmem:[#allocation141_spill] sm:$0xff] %v6673_v13  ;;  %v6689_v4 = vpop.permute.xlu1 %2240  ;;  %v6692_v13 = vstv %s6601_s18  ;;  %v2805_v46 = vsel %vm764_vm9, %v9453_v51, %v2804_v7  ;;  %v2810_v19 = vsel %vm764_vm9, %v9460_v21, %v2809_v38  ;;  %v2920_v21 = vrot.slane %v2908_v0, 2  ;;  %v6795_v38 = vld [vmem:[#allocation4 + $0x48] sm:$0xff]  ;;  %s7927_s18 = sld [smem:[#allocation5 + $0x21]] }
 0x485   :  { %9449 = vst [vmem:[#allocation144_spill] sm:$0xff] %v6689_v4  ;;  %9450 = vst [vmem:[#allocation145_spill] sm:$0xff] %v6692_v13  ;;  %2850 = vrot.lane.b32.xlu0 %v2842_v32, %s4992_s9  ;;  %v895_v32 = vrot.slane %v6669_v3, 3  ;;  %v6734_v3 = vmul.f32 %v6048_v24, %v6687_v26  ;;  %v1011_v34 = vmul.f32 %v6577_v16, %v6692_v13  ;;  %v9466_v33 = vrot.slane %v6680_v15, 3 }
 0x486   :  { %2776 = vrot.lane.b32.xlu1 %v2765_v5, %s4992_s9  ;;  %v6723_v5 = vld [vmem:[#allocation4 + $0x28] sm:$0x3f]  ;;  %v6745_v51 = vmul.f32 %v6048_v24, %v6692_v13  ;;  %v2883_v14 = vsel %vm829_vm10, %v2881_v59, %v9457_v49  ;;  %v6777_v49 = vmul.f32 %v6629_v63, %v6741_v60  ;;  %v6911_v15 = vmul.f32 %v6130_v6, %v6552_v54 }
 0x487   :  { %v6718_v29 = vpop.permute.xlu0 %2318  ;;  %v2830_v4 = vmul.f32 %v6723_v5, %v6546_v18  ;;  %9454 = vst [vmem:[#allocation147_spill] sm:$0xff] %v6734_v3  ;;  %v1024_v59 = vrot.slane %v1011_v34, 5  ;;  %v2911_v34 = vmul.f32 %v6795_v38, %v6715_v1 }
 0x488   :  { %9452 = vst [vmem:[#allocation146_spill] sm:$0xff] %v6718_v29  ;;  %v6738_v7 = vpop.permute.xlu1 %2244  ;;  %9456 = vst [vmem:[#allocation149_spill] sm:$0xff] %v6745_v51  ;;  %v6752_v29 = vld [vmem:[#allocation4 + $0x20] sm:$0xff] }
 0x489   :  { %9455 = vst [vmem:[#allocation148_spill] sm:$0xff] %v6738_v7  ;;  %2854 = vrot.lane.b32.xlu0 %v2847_v61, %s4992_s9  ;;  %v6756_v17 = vmul.f32 %v6752_v29, %v6715_v1  ;;  %v2843_v35 = vrot.slane %v2830_v4, 1  ;;  %v2833_v7 = vmul.f32 %v6031_v27, %v6546_v18  ;;  %v9463_v27 = vrot.slane %v6712_v55, 2 }
 0x48a   :  { %2813 = vrot.lane.b32.xlu1 %v2805_v46, %s4992_s9  ;;  %v959_v46 = vrot.slane %v947_v37, 4  ;;  %v6789_v37 = vmul.f32 %v6629_v63, %v6765_v23 }
 0x48b   :  { %v6767_v10 = vpop.permute.xlu0 %2322  ;;  %v2888_v18 = vsel %vm829_vm10, %v2886_v40, %v9463_v27  ;;  %v2848_v61 = vrot.slane %v2833_v7, 1  ;;  %v2871_v40 = vmul.f32 %v6103_v62, %v6618_v12  ;;  %v6813_v27 = vstv %s6727_s21  ;;  %s8219_s21 = sld [smem:[#allocation5 + $0x60]] }
 0x48c   :  { %9459 = vst [vmem:[#allocation151_spill] sm:$0xff] %v6767_v10  ;;  %v6779_v52 = vpop.permute.xlu1 %2281  ;;  %v9468_v10 = vrot.slane %v6734_v3, 4  ;;  %v2949_v7 = vmul.f32 %v6577_v16, %v6813_v27  ;;  %v9481_v3 = vrot.slane %v6660_v8, 2 }
 0x48d   :  { %9461 = vst [vmem:[#allocation152_spill] sm:$0xff] %v6779_v52  ;;  %2891 = vrot.lane.b32.xlu0 %v2883_v14, %s4992_s9  ;;  %v6801_v14 = vmul.f32 %v6654_v58, %v6715_v1  ;;  %v6818_v52 = vsel %vm894_vm11, %v895_v32, %v9466_v33  ;;  %v6840_v32 = vstv %s6747_s22  ;;  %s8321_s22 = sld [smem:[#allocation5 + $0x6]] }
 0x48e   :  { %2817 = vrot.lane.b32.xlu1 %v2810_v19, %s4992_s9  ;;  %v9465_v19 = vrot.slane %v6575_v48, 1  ;;  %9467 = vst [vmem:[#allocation155_spill] sm:$0xff] %v6818_v52  ;;  %v6823_v57 = vsel %vm52_vm0, %v959_v46, %v9468_v10  ;;  %v1076_v48 = vmul.f32 %v6577_v16, %v6783_v47  ;;  %v9474_v10 = vrot.slane %v6756_v17, 2 }
 0x48f   :  { %v6805_v0 = vpop.permute.xlu0 %2359  ;;  %9469 = vst [vmem:[#allocation156_spill] sm:$0xff] %v6823_v57 }
 0x490   :  { %9464 = vst [vmem:[#allocation154_spill] sm:$0xff] %v6805_v0  ;;  %v2844_v4 = vsel %vm764_vm9, %v9465_v19, %v2843_v35  ;;  %v6829_v35 = vmul.f32 %v6048_v24, %v6783_v47  ;;  %v6831_v62 = vpop.permute.xlu1 %2285  ;;  %v9472_v19 = vrot.slane %v6745_v51, 5  ;;  %v2922_v46 = vsel %vm829_vm10, %v2920_v21, %v9474_v10 }
 0x491   :  { %9471 = vst [vmem:[#allocation158_spill] sm:$0xff] %v6831_v62  ;;  %2895 = vrot.lane.b32.xlu0 %v2888_v18, %s4992_s9  ;;  %v2925_v0 = vrot.slane %v2911_v34, 2  ;;  %v9476_v18 = vrot.slane %v6610_v20, 1  ;;  %v2884_v10 = vrot.slane %v2871_v40, 2  ;;  %v1089_v34 = vrot.slane %v1076_v48, 6 }
 0x492   :  { %9470 = vst [vmem:[#allocation157_spill] sm:$0xff] %v6829_v35  ;;  %v6837_v33 = vsel %vm1023_vm12, %v1024_v59, %v9472_v19  ;;  %2852 = vrot.lane.b32.xlu1 %v2844_v4, %s4992_s9  ;;  %v6852_v59 = vmul.f32 %v6048_v24, %v6813_v27  ;;  %v2874_v4 = vmul.f32 %v6194_v56, %v6618_v12  ;;  %v9479_v48 = vrot.slane %v6801_v14, 2 }
 0x493   :  { %9473 = vst [vmem:[#allocation159_spill] sm:$0xff] %v6837_v33  ;;  %v6855_v44 = vpop.permute.xlu0 %2363  ;;  %v2849_v21 = vsel %vm764_vm9, %v9476_v18, %v2848_v61  ;;  %v6865_v24 = vmul.f32 %v6629_v63, %v6840_v32  ;;  %v755_v19 = vmul.f32 %v6696_v42, %v6498_v30  ;;  %v743_v20 = vmul.f32 %v6795_v38, %v6523_v45 }
 0x494   :  { %9475 = vst [vmem:[#allocation160_spill] sm:$0xff] %v6855_v44  ;;  %v6869_v44 = vpop.permute.xlu1 %2320  ;;  %v6875_v61 = vmul.f32 %v6130_v6, %v6498_v30  ;;  %v2952_v12 = vmul.f32 %v6696_v42, %v6813_v27  ;;  %v6882_v40 = vmul.f32 %v6130_v6, %v6813_v27  ;;  %v2927_v18 = vsel %vm829_vm10, %v2925_v0, %v9479_v48 }
 0x495   :  { %9477 = vst [vmem:[#allocation161_spill] sm:$0xff] %v6869_v44  ;;  %2930 = vrot.lane.b32.xlu0 %v2922_v46, %s4992_s9  ;;  %v2961_v62 = vrot.slane %v2949_v7, 3  ;;  %v6890_v51 = vstv %s6803_s23  ;;  %v787_v46 = vmul.f32 %v6795_v38, %v6559_v36  ;;  %v2889_v57 = vrot.slane %v2874_v4, 2  ;;  %s8359_s23 = sld [smem:[#allocation5 + $0x37]] }
 0x496   :  { %9478 = vst [vmem:[#allocation162_spill] sm:$0xff] %v6875_v61  ;;  %2856 = vrot.lane.b32.xlu1 %v2849_v21, %s4992_s9  ;;  %v2885_v21 = vsel %vm829_vm10, %v9481_v3, %v2884_v10  ;;  %v2910_v0 = vmul.f32 %v6723_v5, %v6715_v1  ;;  %v770_v7 = vrot.slane %v755_v19, 1  ;;  %v6905_v48 = vmul.f32 %v6654_v58, %v6559_v36 }
 0x497   :  { %v6896_v33 = vpop.permute.xlu0 %2398  ;;  %v820_v44 = vmul.f32 %v6696_v42, %v6552_v54  ;;  %v2966_v3 = vrot.slane %v2952_v12, 3  ;;  %v2988_v10 = vmul.f32 %v6629_v63, %v6890_v51  ;;  %v9484_v4 = vrot.slane %v6829_v35, 6 }
 0x498   :  { %9480 = vst [vmem:[#allocation163_spill] sm:$0xff] %v6896_v33  ;;  %9482 = vst [vmem:[#allocation164_spill] sm:$0xff] %v6905_v48  ;;  %v6913_v33 = vpop.permute.xlu1 %2324  ;;  %v747_v6 = vadd.f32 %v743_v20, %v6700_v2  ;;  %v6932_v12 = vmul.f32 %v6752_v29, %v6890_v51  ;;  %v2923_v2 = vrot.slane %v2910_v0, 2  ;;  %v6941_v20 = vld [vmem:[#allocation4 + $0x58] sm:$0x3f]  ;;  %v7000_v0 = vld [vmem:[#allocation4 + $0x8] sm:$0xff] }
 0x499   :  { %9483 = vst [vmem:[#allocation165_spill] sm:$0xff] %v6913_v33  ;;  %2934 = vrot.lane.b32.xlu0 %v2927_v18, %s4992_s9  ;;  %v6923_v52 = vsel %vm1088_vm13, %v1089_v34, %v9484_v4  ;;  %v9486_v33 = vrot.slane %v6852_v59, 3  ;;  %v852_v18 = vmul.f32 %v6795_v38, %v6599_v9  ;;  %v9488_v34 = vrot.slane %v6712_v55, 2 }
 0x49a   :  { %9485 = vst [vmem:[#allocation166_spill] sm:$0xff] %v6923_v52  ;;  %2893 = vrot.lane.b32.xlu1 %v2885_v21, %s4992_s9  ;;  %v835_v35 = vrot.slane %v820_v44, 2  ;;  %v6948_v52 = vmul.f32 %v6654_v58, %v6599_v9  ;;  %v9491_v55 = vrot.slane %v6875_v61, 1  ;;  %v2991_v21 = vmul.f32 %v6795_v38, %v6890_v51 }
 0x49b   :  { %v2963_v8 = vsel %vm894_vm11, %v2961_v62, %v9486_v33  ;;  %v6936_v19 = vpop.permute.xlu0 %2402  ;;  %v2890_v4 = vsel %vm829_vm10, %v9488_v34, %v2889_v57  ;;  %v2913_v62 = vmul.f32 %v6941_v20, %v6715_v1  ;;  %v801_v33 = vrot.slane %v787_v46, 1 }
 0x49c   :  { %9487 = vst [vmem:[#allocation167_spill] sm:$0xff] %v6936_v19  ;;  %9489 = vst [vmem:[#allocation168_spill] sm:$0xff] %v6948_v52  ;;  %v6950_v19 = vpop.permute.xlu1 %2361  ;;  %v772_v57 = vsel %vm764_vm9, %v770_v7, %v9491_v55  ;;  %v9492_v1 = vrot.slane %v6882_v40, 3  ;;  %v3000_v34 = vrot.slane %v2988_v10, 3  ;;  %v6969_v7 = vstv %s6892_s24  ;;  %s8370_s24 = sld [smem:[#allocation5 + $0xd]] }
 0x49d   :  { %9490 = vst [vmem:[#allocation169_spill] sm:$0xff] %v6950_v19  ;;  %2971 = vrot.lane.b32.xlu0 %v2963_v8, %s4992_s9  ;;  %v6966_v19 = vmul.f32 %v6654_v58, %v6890_v51  ;;  %v885_v8 = vmul.f32 %v6696_v42, %v6636_v31  ;;  %v866_v53 = vrot.slane %v852_v18, 2  ;;  %v3029_v18 = vmul.f32 %v6577_v16, %v6969_v7 }
 0x49e   :  { %v2968_v46 = vsel %vm894_vm11, %v2966_v3, %v9492_v1  ;;  %2897 = vrot.lane.b32.xlu1 %v2890_v4, %s4992_s9  ;;  %v9494_v3 = vrot.slane %v6756_v17, 2  ;;  %v2928_v4 = vrot.slane %v2913_v62, 2  ;;  %v6978_v1 = vld [vmem:[#allocation4 + $0x10] sm:$0x3f]  ;;  %v6990_v17 = vmul.f32 %v6986_v25, %v6636_v31 }
 0x49f   :  { %v6973_v55 = vpop.permute.xlu0 %2439  ;;  %v2951_v44 = vmul.f32 %v6978_v1, %v6813_v27  ;;  %v781_v62 = vadd.f32 %v772_v57, %v747_v6  ;;  %v7004_v61 = vmul.f32 %v7000_v0, %v6969_v7  ;;  %v9498_v31 = vrot.slane %v6911_v15, 2 }
 0x4a0   :  { %9493 = vst [vmem:[#allocation170_spill] sm:$0xff] %v6973_v55  ;;  %v2924_v10 = vsel %vm829_vm10, %v9494_v3, %v2923_v2  ;;  %9495 = vst [vmem:[#allocation171_spill] sm:$0xff] %v6990_v17  ;;  %v6992_v2 = vpop.permute.xlu1 %2365  ;;  %v9497_v3 = vrot.slane %v6905_v48, 1  ;;  %v9499_v6 = vrot.slane %v6932_v12, 3  ;;  %v3005_v57 = vrot.slane %v2991_v21, 3 }
 0x4a1   :  { %9496 = vst [vmem:[#allocation172_spill] sm:$0xff] %v6992_v2  ;;  %2975 = vrot.lane.b32.xlu0 %v2968_v46, %s4992_s9  ;;  %v837_v2 = vsel %vm829_vm10, %v835_v35, %v9498_v31  ;;  %v9277_v46 = vrot.slane %v6966_v19, 3  ;;  %v9501_v54 = vrot.slane %v6801_v14, 2  ;;  %v2964_v28 = vrot.slane %v2951_v44, 3 }
 0x4a2   :  { %v803_v55 = vsel %vm764_vm9, %v801_v33, %v9497_v3  ;;  %2932 = vrot.lane.b32.xlu1 %v2924_v10, %s4992_s9  ;;  %v3002_v33 = vsel %vm894_vm11, %v3000_v34, %v9499_v6  ;;  %v900_v3 = vrot.slane %v885_v8, 3  ;;  %v2954_v31 = vmul.f32 %v6194_v56, %v6813_v27 }
 0x4a3   :  { %v7014_v48 = vpop.permute.xlu0 %2443  ;;  %v2929_v45 = vsel %vm829_vm10, %v9501_v54, %v2928_v4  ;;  %v9502_v35 = vrot.slane %v6948_v52, 2  ;;  %v9278_v21 = vrot.slane %v6990_v17, 3  ;;  %v917_v34 = vmul.f32 %v6795_v38, %v6641_v22 }
 0x4a4   :  { %9500 = vst [vmem:[#allocation173_spill] sm:$0xff] %v7014_v48  ;;  %v7031_v8 = vmul.f32 %v6654_v58, %v6641_v22  ;;  %v7033_v14 = vpop.permute.xlu1 %2400  ;;  %v812_v54 = vadd.f32 %v803_v55, %v781_v62  ;;  %v7037_v56 = vmul.f32 %v6696_v42, %v6687_v26  ;;  %v7043_v44 = vmul.f32 %v6986_v25, %v6687_v26 }
 0x4a5   :  { %v7024_v10 = vsel %vm829_vm10, %v866_v53, %v9502_v35  ;;  %9504 = vst [vmem:[#allocation175_spill] sm:$0xff] %v7033_v14  ;;  %3010 = vrot.lane.b32.xlu0 %v3002_v33, %s4992_s9  ;;  %v3041_v53 = vrot.slane %v3029_v18, 4  ;;  %v3007_v4 = vsel %vm894_vm11, %v3005_v57, %v9277_v46  ;;  %v3032_v55 = vmul.f32 %v6696_v42, %v6969_v7 }
 0x4a6   :  { %9503 = vst [vmem:[#allocation174_spill] sm:$0xff] %v7031_v8  ;;  %9505 = vst [vmem:[#allocation176_spill] sm:$0xff] %v7043_v44  ;;  %2936 = vrot.lane.b32.xlu1 %v2929_v45, %s4992_s9  ;;  %v7053_v62 = vmul.f32 %v6986_v25, %v6969_v7  ;;  %v9507_v6 = vrot.slane %v6852_v59, 3  ;;  %v2969_v45 = vrot.slane %v2954_v31, 3  ;;  %v2990_v35 = vmul.f32 %v6723_v5, %v6890_v51 }
 0x4a7   :  { %v7057_v18 = vpop.permute.xlu0 %2478  ;;  %v7065_v57 = vstv %s6982_s4  ;;  %v7070_v46 = vsel %vm894_vm11, %v900_v3, %v9278_v21  ;;  %v931_v27 = vrot.slane %v917_v34, 3  ;;  %v964_v31 = vrot.slane %v7037_v56, 4  ;;  %s4994_s4 = smov 122  }
 0x4a8   :  { %9506 = vst [vmem:[#allocation177_spill] sm:$0xff] %v7057_v18  ;;  %v2965_v33 = vsel %vm894_vm11, %v9507_v6, %v2964_v28  ;;  %v7075_v18 = vmul.f32 %v6795_v38, %v6741_v60  ;;  %v7077_v59 = vpop.permute.xlu1 %2404  ;;  %v846_v28 = vadd.f32 %v837_v2, %v812_v54  ;;  %v7082_v6 = vmul.f32 %v6654_v58, %v6741_v60 }
 0x4a9   :  { %9508 = vst [vmem:[#allocation178_spill] sm:$0xff] %v7077_v59  ;;  %3014 = vrot.lane.b32.xlu0 %v3007_v4, %s4992_s9  ;;  %v9510_v3 = vrot.slane %v7004_v61, 4  ;;  %v3046_v21 = vrot.slane %v3032_v55, 4  ;;  %v3068_v2 = vmul.f32 %v6629_v63, %v7065_v57  ;;  %v7094_v54 = vmul.f32 %v6752_v29, %v7065_v57 }
 0x4aa   :  { %9509 = vst [vmem:[#allocation179_spill] sm:$0xff] %v7082_v6  ;;  %2973 = vrot.lane.b32.xlu1 %v2965_v33, %s4992_s9  ;;  %v9512_v4 = vrot.slane %v6882_v40, 3  ;;  %v2993_v55 = vmul.f32 %v6941_v20, %v6890_v51  ;;  %v7106_v33 = vmul.f32 %v6752_v29, %v6559_v36  ;;  %v7110_v14 = vmul.f32 %v6752_v29, %v6599_v9 }
 0x4ab   :  { %v3043_v34 = vsel %vm52_vm0, %v3041_v53, %v9510_v3  ;;  %v7097_v59 = vpop.permute.xlu0 %2482  ;;  %v3003_v3 = vrot.slane %v2990_v35, 3  ;;  %v7115_v40 = vmul.f32 %v6696_v42, %v6692_v13  ;;  %v7121_v35 = vmul.f32 %v6752_v29, %v6641_v22 }
 0x4ac   :  { %9511 = vst [vmem:[#allocation180_spill] sm:$0xff] %v7097_v59  ;;  %v2970_v53 = vsel %vm894_vm11, %v9512_v4, %v2969_v45  ;;  %v7117_v45 = vpop.permute.xlu1 %2441  ;;  %v9515_v51 = vrot.slane %v7031_v8, 3  ;;  %v3071_v56 = vmul.f32 %v6795_v38, %v7065_v57  ;;  %v7133_v59 = vmul.f32 %v6654_v58, %v7065_v57 }
 0x4ad   :  { %9513 = vst [vmem:[#allocation181_spill] sm:$0xff] %v7117_v45  ;;  %9514 = vst [vmem:[#allocation182_spill] sm:$0xff] %v7121_v35  ;;  %3051 = vrot.lane.b32.xlu0 %v3043_v34, %s4992_s9  ;;  %v9516_v45 = vrot.slane %v7053_v62, 4  ;;  %v3080_v17 = vrot.slane %v3068_v2, 4  ;;  %v9518_v26 = vrot.slane %v6932_v12, 3  ;;  %v3031_v22 = vmul.f32 %v6978_v1, %v6969_v7 }
 0x4ae   :  { %v7126_v4 = vsel %vm894_vm11, %v931_v27, %v9515_v51  ;;  %2977 = vrot.lane.b32.xlu1 %v2970_v53, %s4992_s9  ;;  %v7141_v27 = vstv %s7055_s5  ;;  %v3008_v53 = vrot.slane %v2993_v55, 3  ;;  %v7161_v34 = vmul.f32 %v6986_v25, %v6692_v13  ;;  %v7193_v13 = vld [vmem:[#allocation4 + $0x40] sm:$0x3f]  ;;  %s8419_s5 = sld [smem:[#allocation5 + $0x3e]] }
 0x4af   :  { %v3048_v48 = vsel %vm52_vm0, %v3046_v21, %v9516_v45  ;;  %v7146_v51 = vpop.permute.xlu0 %2519  ;;  %v3004_v52 = vsel %vm894_vm11, %v9518_v26, %v3003_v3  ;;  %v7157_v45 = vmul.f32 %v6752_v29, %v6741_v60  ;;  %v3085_v12 = vrot.slane %v3071_v56, 4 }
 0x4b0   :  { %9517 = vst [vmem:[#allocation183_spill] sm:$0xff] %v7146_v51  ;;  %9520 = vst [vmem:[#allocation185_spill] sm:$0xff] %v7161_v34  ;;  %v7163_v8 = vpop.permute.xlu1 %2445  ;;  %v3109_v55 = vmul.f32 %v6577_v16, %v7141_v27  ;;  %v877_v2 = vadd.f32 %v7024_v10, %v846_v28  ;;  %v7173_v21 = vmul.f32 %v6795_v38, %v6765_v23  ;;  %v9523_v56 = vrot.slane %v7043_v44, 4 }
 0x4b1   :  { %9519 = vst [vmem:[#allocation184_spill] sm:$0xff] %v7157_v45  ;;  %9521 = vst [vmem:[#allocation186_spill] sm:$0xff] %v7163_v8  ;;  %3055 = vrot.lane.b32.xlu0 %v3048_v48, %s4992_s9  ;;  %v9522_v8 = vrot.slane %v7094_v54, 4  ;;  %v7181_v48 = vmul.f32 %v7000_v0, %v7141_v27  ;;  %v9525_v28 = vrot.slane %v6966_v19, 3  ;;  %v9527_v44 = vrot.slane %v6592_v39, 1 }
 0x4b2   :  { %3012 = vrot.lane.b32.xlu1 %v3004_v52, %s4992_s9  ;;  %v7186_v3 = vsel %vm52_vm0, %v964_v31, %v9523_v56  ;;  %v3044_v52 = vrot.slane %v3031_v22, 4  ;;  %v7206_v19 = vmul.f32 %v6654_v58, %v6765_v23  ;;  %v9532_v39 = vrot.slane %v7121_v35, 3 }
 0x4b3   :  { %v3082_v26 = vsel %vm52_vm0, %v3080_v17, %v9522_v8  ;;  %v7188_v10 = vpop.permute.xlu0 %2523  ;;  %v3009_v51 = vsel %vm894_vm11, %v9525_v28, %v3008_v53  ;;  %v3034_v17 = vmul.f32 %v7193_v13, %v6969_v7  ;;  %v9526_v8 = vrot.slane %v7106_v33, 1 }
 0x4b4   :  { %9524 = vst [vmem:[#allocation187_spill] sm:$0xff] %v7188_v10  ;;  %v1029_v10 = vrot.slane %v7115_v40, 5  ;;  %9528 = vst [vmem:[#allocation188_spill] sm:$0xff] %v7206_v19  ;;  %v7208_v22 = vpop.permute.xlu1 %2480  ;;  %v9530_v53 = vrot.slane %v7110_v14, 2  ;;  %v9531_v7 = vrot.slane %v6633_v50, 2  ;;  %v9534_v40 = vrot.slane %v7133_v59, 4 }
 0x4b5   :  { %v798_v31 = vsel %vm764_vm9, %v9527_v44, %v9526_v8  ;;  %9529 = vst [vmem:[#allocation189_spill] sm:$0xff] %v7208_v22  ;;  %v9533_v44 = vrot.slane %v6684_v41, 3  ;;  %3090 = vrot.lane.b32.xlu0 %v3082_v26, %s4992_s9  ;;  %v3121_v22 = vrot.slane %v3109_v55, 5  ;;  %v7232_v41 = vmul.f32 %v6986_v25, %v7141_v27 }
 0x4b6   :  { %v863_v28 = vsel %vm829_vm10, %v9531_v7, %v9530_v53  ;;  %v3087_v56 = vsel %vm52_vm0, %v3085_v12, %v9534_v40  ;;  %3016 = vrot.lane.b32.xlu1 %v3009_v51, %s4992_s9  ;;  %v3112_v53 = vmul.f32 %v6696_v42, %v7141_v27  ;;  %v7235_v7 = vstv %s7143_s6  ;;  %s8478_s6 = sld [smem:[#allocation5 + $0x14]] }
 0x4b7   :  { %v7220_v8 = vsel %vm894_vm11, %v9533_v44, %v9532_v39  ;;  %v810_v26 = vadd.f32 %v798_v31, %v6627_v43  ;;  %v7238_v39 = vpop.permute.xlu0 %2558  ;;  %v9536_v12 = vrot.slane %v7004_v61, 4  ;;  %v3049_v51 = vrot.slane %v3034_v17, 4 }
 0x4b8   :  { %9535 = vst [vmem:[#allocation190_spill] sm:$0xff] %v7238_v39  ;;  %v3070_v44 = vmul.f32 %v6723_v5, %v7065_v57  ;;  %v9537_v40 = vrot.slane %v7157_v45, 4  ;;  %v9538_v50 = vrot.slane %v6777_v49, 4  ;;  %v7256_v43 = vmul.f32 %v6752_v29, %v6765_v23  ;;  %v7263_v17 = vpop.permute.xlu1 %2484 }
 0x4b9   :  { %v3045_v55 = vsel %vm52_vm0, %v9536_v12, %v3044_v52  ;;  %v7260_v61 = vmul.f32 %v6752_v29, %v6840_v32  ;;  %v911_v52 = vadd.f32 %v7070_v46, %v877_v2  ;;  %9541 = vst [vmem:[#allocation193_spill] sm:$0xff] %v7263_v17  ;;  %v9542_v31 = vrot.slane %v7082_v6, 4  ;;  %3094 = vrot.lane.b32.xlu0 %v3087_v56, %s4992_s9 }
 0x4ba   :  { %v7252_v35 = vsel %vm52_vm0, %v9538_v50, %v9537_v40  ;;  %9539 = vst [vmem:[#allocation191_spill] sm:$0xff] %v7256_v43  ;;  %v9543_v12 = vrot.slane %v7075_v18, 4  ;;  %v3148_v40 = vmul.f32 %v6629_v63, %v7235_v7  ;;  %v7278_v39 = vmul.f32 %v6752_v29, %v7235_v7  ;;  %3053 = vrot.lane.b32.xlu1 %v3045_v55, %s4992_s9 }
 0x4bb   :  { %9540 = vst [vmem:[#allocation192_spill] sm:$0xff] %v7260_v61  ;;  %v1060_v46 = vrot.slane %v7173_v21, 5  ;;  %v9544_v18 = vrot.slane %v7181_v48, 5  ;;  %v844_v56 = vadd.f32 %v6665_v11, %v810_v26  ;;  %v7287_v50 = vpop.permute.xlu0 %2562  ;;  %v9546_v17 = vrot.slane %v7053_v62, 4 }
 0x4bc   :  { %v7270_v49 = vsel %vm52_vm0, %v9543_v12, %v9542_v31  ;;  %v3126_v31 = vrot.slane %v3112_v53, 5  ;;  %v9294_v12 = vrot.slane %v7232_v41, 5  ;;  %9545 = vst [vmem:[#allocation194_spill] sm:$0xff] %v7287_v50  ;;  %v3083_v45 = vrot.slane %v3070_v44, 4  ;;  %v7300_v11 = vpop.permute.xlu1 %2521 }
 0x4bd   :  { %v3123_v2 = vsel %vm1023_vm12, %v3121_v22, %v9544_v18  ;;  %v3050_v6 = vsel %vm52_vm0, %v9546_v17, %v3049_v51  ;;  %v3073_v21 = vmul.f32 %v6941_v20, %v7065_v57  ;;  %v9295_v55 = vrot.slane %v7256_v43, 5  ;;  %9547 = vst [vmem:[#allocation195_spill] sm:$0xff] %v7300_v11 }
 0x4be   :  { %v9296_v23 = vrot.slane %v7260_v61, 6  ;;  %v7297_v22 = vadd.f32 %v7126_v4, %v911_v52  ;;  %v9548_v62 = vrot.slane %v7161_v34, 5  ;;  %v7309_v57 = vmul.f32 %v6696_v42, %v6783_v47  ;;  %3131 = vrot.lane.b32.xlu0 %v3123_v2, %s4992_s9  ;;  %3057 = vrot.lane.b32.xlu1 %v3050_v6, %s4992_s9 }
 0x4bf   :  { %v3160_v51 = vrot.slane %v3148_v40, 5  ;;  %v7315_v44 = vmul.f32 %v6986_v25, %v6783_v47  ;;  %v3151_v52 = vmul.f32 %v6795_v38, %v7235_v7  ;;  %v7325_v17 = vmul.f32 %v6654_v58, %v7235_v7  ;;  %v7327_v40 = vpop.permute.xlu0 %2599 }
 0x4c0   :  { %v7305_v26 = vsel %vm1023_vm12, %v1029_v10, %v9548_v62  ;;  %v3128_v10 = vsel %vm1023_vm12, %v3126_v31, %v9294_v12  ;;  %9549 = vst [vmem:[#allocation196_spill] sm:$0xff] %v7327_v40  ;;  %v9550_v18 = vrot.slane %v7094_v54, 4  ;;  %v3088_v62 = vrot.slane %v3073_v21, 4 }
 0x4c1   :  { %v3111_v6 = vmul.f32 %v6978_v1, %v7141_v27  ;;  %v7335_v4 = vstv %s7245_s7  ;;  %v7339_v31 = vadd.f32 %v863_v28, %v844_v56  ;;  %v9551_v12 = vrot.slane %v6789_v37, 5  ;;  %v9558_v37 = vld [vmem:[#allocation127_spill] sm:$0xff]  ;;  %s8524_s7 = sld [smem:[#allocation5 + $0x45]] }
 0x4c2   :  { %v3084_v2 = vsel %vm52_vm0, %v9550_v18, %v3083_v45  ;;  %v9553_v54 = vrot.slane %v6865_v24, 6  ;;  %v754_v21 = vmul.f32 %v6978_v1, %v6498_v30  ;;  %v7357_v18 = vpop.permute.xlu1 %2525  ;;  %v9556_v28 = vrot.slane %v7206_v19, 5  ;;  %3135 = vrot.lane.b32.xlu0 %v3128_v10, %s4992_s9 }
 0x4c3   :  { %v7346_v53 = vsel %vm1023_vm12, %v9551_v12, %v9295_v55  ;;  %9555 = vst [vmem:[#allocation199_spill] sm:$0xff] %v7357_v18  ;;  %v733_v12 = vmul.f32 %v7000_v0, %v9558_v37  ;;  %v757_v55 = vmul.f32 %v7193_v13, %v6498_v30  ;;  %v9559_v24 = vrot.slane %v7278_v39, 5  ;;  %3092 = vrot.lane.b32.xlu1 %v3084_v2, %s4992_s9  ;;  %v7382_v10 = vpop.permute.xlu0 %2603  ;;  %v9562_v18 = vld [vmem:[#allocation130_spill] sm:$0xff] }
 0x4c4   :  { %9552 = vst [vmem:[#allocation197_spill] sm:$0xff] %v7346_v53  ;;  %v7353_v45 = vsel %vm1088_vm13, %v9553_v54, %v9296_v23  ;;  %v7362_v56 = vsel %vm1023_vm12, %v1060_v46, %v9556_v28  ;;  %v3165_v23 = vrot.slane %v3151_v52, 5  ;;  %v3189_v46 = vmul.f32 %v6577_v16, %v7335_v4  ;;  %9560 = vst [vmem:[#allocation127_spill] sm:$0xff] %v7382_v10 }
 0x4c5   :  { %9554 = vst [vmem:[#allocation198_spill] sm:$0xff] %v7353_v45  ;;  %9557 = vst [vmem:[#allocation200_spill] sm:$0xff] %v7362_v56  ;;  %v3162_v54 = vsel %vm1023_vm12, %v3160_v51, %v9559_v24  ;;  %v7378_v28 = vmul.f32 %v7000_v0, %v7335_v4  ;;  %v786_v30 = vmul.f32 %v6723_v5, %v6559_v36  ;;  %v9561_v40 = vrot.slane %v7133_v59, 4  ;;  %v9564_v59 = vld [vmem:[#allocation132_spill] sm:$0xff] }
 0x4c6   :  { %v3124_v2 = vrot.slane %v3111_v6, 5  ;;  %v3114_v52 = vmul.f32 %v7193_v13, %v7141_v27  ;;  %v768_v24 = vrot.slane %v754_v21, 1  ;;  %v742_v11 = vmul.f32 %v6752_v29, %v9562_v18  ;;  %v7395_v10 = vpop.permute.xlu1 %2560  ;;  %3170 = vrot.lane.b32.xlu0 %v3162_v54, %s4992_s9 }
 0x4c7   :  { %v3089_v51 = vsel %vm52_vm0, %v9561_v40, %v3088_v62  ;;  %v735_v50 = vmul.f32 %v6986_v25, %v9558_v37  ;;  %v744_v61 = vmul.f32 %v6654_v58, %v9562_v18  ;;  %9563 = vst [vmem:[#allocation130_spill] sm:$0xff] %v7395_v10  ;;  %v7399_v40 = vmul.f32 %v6978_v1, %v9564_v59 }
 0x4c8   :  { %v789_v27 = vmul.f32 %v6941_v20, %v6559_v36  ;;  %v3192_v62 = vmul.f32 %v6696_v42, %v7335_v4  ;;  %v7408_v6 = vmul.f32 %v6986_v25, %v7335_v4  ;;  %v773_v21 = vrot.slane %v757_v55, 1  ;;  %3096 = vrot.lane.b32.xlu1 %v3089_v51, %s4992_s9  ;;  %v7415_v36 = vpop.permute.xlu0 %2638  ;;  %v9568_v51 = vld [vmem:[#allocation128_spill] sm:$0xff] }
 0x4c9   :  { %v9565_v18 = vrot.slane %v7325_v17, 5  ;;  %v3201_v10 = vrot.slane %v3189_v46, 6  ;;  %9566 = vst [vmem:[#allocation132_spill] sm:$0xff] %v7415_v36  ;;  %v9567_v54 = vrot.slane %v7181_v48, 5  ;;  %v3129_v43 = vrot.slane %v3114_v52, 5 }
 0x4ca   :  { %v3150_v56 = vmul.f32 %v6723_v5, %v7235_v7  ;;  %v7423_v55 = vstv %s7337_s8  ;;  %v9569_v34 = vrot.slane %v9568_v51, 1  ;;  %v746_v46 = vadd.f32 %v742_v11, %v733_v12  ;;  %v7428_v45 = vpop.permute.xlu1 %2564  ;;  %s8584_s8 = sld [smem:[#allocation5 + $0x1b]] }
 0x4cb   :  { %v3167_v37 = vsel %vm1023_vm12, %v3165_v23, %v9565_v18  ;;  %v3125_v19 = vsel %vm1023_vm12, %v9567_v54, %v3124_v2  ;;  %v799_v23 = vrot.slane %v786_v30, 1  ;;  %v748_v18 = vadd.f32 %v744_v61, %v735_v50  ;;  %v9570_v54 = vld [vmem:[#allocation162_spill] sm:$0xff] }
 0x4cc   :  { %v769_v47 = vsel %vm764_vm9, %v9569_v34, %v768_v24  ;;  %v804_v36 = vrot.slane %v789_v27, 1  ;;  %v822_v48 = vmul.f32 %v7193_v13, %v9564_v59  ;;  %3174 = vrot.lane.b32.xlu0 %v3167_v37, %s4992_s9  ;;  %v3206_v2 = vrot.slane %v3192_v62, 6  ;;  %3133 = vrot.lane.b32.xlu1 %v3125_v19, %s4992_s9  ;;  %v7449_v30 = vpop.permute.xlu0 %2642 }
 0x4cd   :  { %v9571_v53 = vrot.slane %v9570_v54, 1  ;;  %v9572_v34 = vrot.slane %v7378_v28, 6  ;;  %v3228_v50 = vmul.f32 %v6629_v63, %v7423_v55  ;;  %v7445_v11 = vmul.f32 %v6752_v29, %v7423_v55 }
 0x4ce   :  { %v851_v12 = vmul.f32 %v6723_v5, %v6599_v9  ;;  %v3163_v24 = vrot.slane %v3150_v56, 5  ;;  %v833_v59 = vrot.slane %v7399_v40, 2  ;;  %v780_v27 = vadd.f32 %v769_v47, %v746_v46  ;;  %v7462_v54 = vpop.permute.xlu1 %2601 }
 0x4cf   :  { %v774_v51 = vsel %vm764_vm9, %v9571_v53, %v773_v21  ;;  %v3203_v61 = vsel %vm1088_vm13, %v3201_v10, %v9572_v34  ;;  %v9573_v53 = vrot.slane %v7232_v41, 5  ;;  %v3153_v10 = vmul.f32 %v6941_v20, %v7235_v7  ;;  %v9575_v41 = vld [vmem:[#allocation164_spill] sm:$0xff] }
 0x4d0   :  { %v9574_v62 = vrot.slane %v7106_v33, 1  ;;  %v854_v37 = vmul.f32 %v6941_v20, %v6599_v9  ;;  %v782_v34 = vadd.f32 %v774_v51, %v748_v18  ;;  %v9576_v52 = vrot.slane %v9575_v41, 1  ;;  %3211 = vrot.lane.b32.xlu0 %v3203_v61, %s4992_s9  ;;  %v7483_v46 = vpop.permute.xlu0 %2679 }
 0x4d1   :  { %v3130_v19 = vsel %vm1023_vm12, %v9573_v53, %v3129_v43  ;;  %v838_v56 = vrot.slane %v822_v48, 2  ;;  %v9577_v7 = vrot.slane %v7408_v6, 6  ;;  %v3240_v33 = vrot.slane %v3228_v50, 6  ;;  %v9579_v50 = vld [vmem:[#allocation138_spill] sm:$0xff] }
 0x4d2   :  { %v800_v21 = vsel %vm764_vm9, %v9574_v62, %v799_v23  ;;  %v805_v43 = vsel %vm764_vm9, %v9576_v52, %v804_v36  ;;  %3137 = vrot.lane.b32.xlu1 %v3130_v19, %s4992_s9  ;;  %v3241_v40 = vrot.slane %v7445_v11, 6  ;;  %v3231_v9 = vmul.f32 %v6795_v38, %v7423_v55  ;;  %v7493_v62 = vpop.permute.xlu1 %2605 }
 0x4d3   :  { %v3208_v47 = vsel %vm1088_vm13, %v3206_v2, %v9577_v7  ;;  %v7477_v23 = vmul.f32 %v6654_v58, %v7423_v55  ;;  %v975_v36 = vadd.f32 %v7186_v3, %v7297_v22  ;;  %v9578_v18 = vrot.slane %v7278_v39, 5  ;;  %v9580_v3 = vld [vmem:[#allocation134_spill] sm:$0xff] }
 0x4d4   :  { %v3168_v2 = vrot.slane %v3153_v10, 5  ;;  %v3191_v52 = vmul.f32 %v6978_v1, %v7335_v4  ;;  %v1094_v51 = vrot.slane %v7309_v57, 6  ;;  %v864_v61 = vrot.slane %v851_v12, 2  ;;  %3215 = vrot.lane.b32.xlu0 %v3208_v47, %s4992_s9 }
 0x4d5   :  { %v3164_v48 = vsel %vm1023_vm12, %v9578_v18, %v3163_v24  ;;  %v884_v53 = vmul.f32 %v6978_v1, %v9579_v50  ;;  %v811_v19 = vadd.f32 %v800_v21, %v780_v27  ;;  %v9581_v22 = vrot.slane %v9580_v3, 2  ;;  %v9583_v21 = vld [vmem:[#allocation155_spill] sm:$0xff] }
 0x4d6   :  { %v813_v39 = vadd.f32 %v805_v43, %v782_v34  ;;  %v869_v7 = vrot.slane %v854_v37, 2  ;;  %v887_v24 = vmul.f32 %v7193_v13, %v9579_v50  ;;  %v9582_v57 = vrot.slane %v6911_v15, 2  ;;  %3172 = vrot.lane.b32.xlu1 %v3164_v48, %s4992_s9  ;;  %v7511_v34 = vpop.permute.xlu0 %2683  ;;  %v7525_v50 = vpop.permute.xlu1 %2640 }
 0x4d7   :  { %v834_v41 = vsel %vm829_vm10, %v9581_v22, %v833_v59  ;;  %v3242_v10 = vsel %vm1088_vm13, %v3240_v33, %v3241_v40  ;;  %v3245_v27 = vrot.slane %v3231_v9, 6  ;;  %v3246_v59 = vrot.slane %v7477_v23, 6  ;;  %v9585_v9 = vld [vmem:[#allocation140_spill] sm:$0xff] }
 0x4d8   :  { %v839_v12 = vsel %vm829_vm10, %v9582_v57, %v838_v56  ;;  %v909_v37 = vadd.f32 %v9583_v21, %v7339_v31  ;;  %v9584_v43 = vrot.slane %v7325_v17, 5  ;;  %v3204_v47 = vrot.slane %v3191_v52, 6  ;;  %3250 = vrot.lane.b32.xlu0 %v3242_v10, %s4992_s9  ;;  %v9587_v22 = vld [vmem:[#allocation168_spill] sm:$0xff] }
 0x4d9   :  { %v3194_v56 = vmul.f32 %v7193_v13, %v7335_v4  ;;  %v9303_v18 = vrot.slane %v7315_v44, 6  ;;  %v7521_v33 = vmul.f32 %v6795_v38, %v6840_v32  ;;  %v916_v31 = vmul.f32 %v6723_v5, %v9585_v9 }
 0x4da   :  { %v3169_v15 = vsel %vm1023_vm12, %v9584_v43, %v3168_v2  ;;  %v845_v48 = vadd.f32 %v834_v41, %v811_v19  ;;  %v898_v17 = vrot.slane %v884_v53, 3  ;;  %v9586_v2 = vrot.slane %v7110_v14, 2  ;;  %v7548_v41 = vpop.permute.xlu0 %2718  ;;  %v9590_v43 = vld [vmem:[#allocation143_spill] sm:$0xff] }
 0x4db   :  { %v847_v3 = vadd.f32 %v839_v12, %v813_v39  ;;  %v919_v4 = vmul.f32 %v6941_v20, %v9585_v9  ;;  %v9588_v57 = vrot.slane %v9587_v22, 2  ;;  %v903_v19 = vrot.slane %v887_v24, 3  ;;  %3176 = vrot.lane.b32.xlu1 %v3169_v15, %s4992_s9  ;;  %v9591_v9 = vld [vmem:[#allocation142_spill] sm:$0xff] }
 0x4dc   :  { %v865_v52 = vsel %vm829_vm10, %v9586_v2, %v864_v61  ;;  %v3247_v14 = vsel %vm1088_vm13, %v3245_v27, %v3246_v59  ;;  %v7543_v61 = vstv %s7479_s10  ;;  %v940_v53 = vadd.f32 %v7220_v8, %v909_v37  ;;  %v7562_v37 = vpop.permute.xlu1 %2644  ;;  %s8657_s10 = sld [smem:[#allocation5 + $0x4c]] }
 0x4dd   :  { %v870_v21 = vsel %vm829_vm10, %v9588_v57, %v869_v7  ;;  %v9589_v39 = vrot.slane %v7378_v28, 6  ;;  %v3209_v7 = vrot.slane %v3194_v56, 6  ;;  %v3230_v24 = vmul.f32 %v6723_v5, %v7423_v55  ;;  %3254 = vrot.lane.b32.xlu0 %v3247_v14, %s4992_s9 }
 0x4de   :  { %v1006_v10 = vadd.f32 %v7270_v49, %v975_v36  ;;  %v7558_v27 = vmul.f32 %v6654_v58, %v6840_v32  ;;  %v949_v15 = vmul.f32 %v6978_v1, %v9590_v43  ;;  %v876_v8 = vadd.f32 %v865_v52, %v845_v48  ;;  %v9593_v36 = vld [vmem:[#allocation171_spill] sm:$0xff]  ;;  %v7582_v57 = vpop.permute.xlu0 %2722 }
 0x4df   :  { %v3205_v12 = vsel %vm1088_vm13, %v9589_v39, %v3204_v47  ;;  %v9592_v28 = vrot.slane %v9591_v9, 3  ;;  %v929_v56 = vrot.slane %v916_v31, 3  ;;  %v878_v2 = vadd.f32 %v870_v21, %v847_v3  ;;  %v9595_v31 = vld [vmem:[#allocation156_spill] sm:$0xff] }
 0x4e0   :  { %v3269_v49 = vmul.f32 %v6577_v16, %v7543_v61  ;;  %v7573_v58 = vsel %vm1088_vm13, %v1094_v51, %v9303_v18  ;;  %v9594_v48 = vrot.slane %v9593_v36, 3  ;;  %v934_v22 = vrot.slane %v919_v4, 3  ;;  %3213 = vrot.lane.b32.xlu1 %v3205_v12, %s4992_s9 }
 0x4e1   :  { %v899_v47 = vsel %vm894_vm11, %v9592_v28, %v898_v17  ;;  %v952_v17 = vmul.f32 %v7193_v13, %v9590_v43  ;;  %v973_v3 = vadd.f32 %v9595_v31, %v940_v53  ;;  %v9596_v16 = vrot.slane %v7408_v6, 6  ;;  %v7592_v53 = vpop.permute.xlu1 %2681  ;;  %v9597_v43 = vld [vmem:[#allocation182_spill] sm:$0xff] }
 0x4e2   :  { %v904_v52 = vsel %vm894_vm11, %v9594_v48, %v903_v19  ;;  %v3243_v51 = vrot.slane %v3230_v24, 6  ;;  %v3233_v14 = vmul.f32 %v6941_v20, %v7423_v55  ;;  %v962_v19 = vrot.slane %v949_v15, 4  ;;  %3277 = vrot.lane.b32.xlu0 %v3269_v49, %s4993_s13  ;;  %v9599_v15 = vld [vmem:[#allocation174_spill] sm:$0xff]  ;;  %v7615_v49 = vpop.permute.xlu0 %2745 }
 0x4e3   :  { %v3210_v21 = vsel %vm1088_vm13, %v9596_v16, %v3209_v7  ;;  %v980_v39 = vmul.f32 %v6723_v5, %v6741_v60  ;;  %v910_v12 = vadd.f32 %v899_v47, %v876_v8  ;;  %v9598_v9 = vrot.slane %v9597_v43, 3 }
 0x4e4   :  { %v912_v7 = vadd.f32 %v904_v52, %v878_v2  ;;  %v983_v24 = vmul.f32 %v6941_v20, %v6741_v60  ;;  %v3271_v55 = vmul.f32 %v6696_v42, %v7543_v61  ;;  %v9600_v28 = vrot.slane %v9599_v15, 3  ;;  %3217 = vrot.lane.b32.xlu1 %v3210_v21, %s4992_s9  ;;  %v9601_v60 = vld [vmem:[#allocation145_spill] sm:$0xff] }
 0x4e5   :  { %v930_v6 = vsel %vm894_vm11, %v9598_v9, %v929_v56  ;;  %v967_v47 = vrot.slane %v952_v17, 4  ;;  %v7607_v36 = vstv %s7533_s11  ;;  %v7610_v56 = vstv %s7545_s12  ;;  %s8707_s11 = sld [smem:[#allocation5 + $0x22]] }
 0x4e6   :  { %v935_v8 = vsel %vm894_vm11, %v9600_v28, %v934_v22  ;;  %v1004_v2 = vadd.f32 %v7252_v35, %v973_v3  ;;  %v1013_v48 = vmul.f32 %v6978_v1, %v9601_v60  ;;  %v3244_v52 = vsel %vm1088_vm13, %v3241_v40, %v3243_v51  ;;  %v9602_v22 = vld [vmem:[#allocation147_spill] sm:$0xff]  ;;  %v7627_v3 = vpop.permute.xlu1 %2685  ;;  %3281 = vrot.lane.b32.xlu0 %v3271_v55, %s4993_s13  ;;  %s8770_s12 = sld [smem:[#allocation5 + $0x53]] }
 0x4e7   :  { %v3248_v31 = vrot.slane %v3233_v14, 6  ;;  %v9603_v17 = vrot.slane %v9602_v22, 4  ;;  %v993_v21 = vrot.slane %v980_v39, 4  ;;  %v941_v43 = vadd.f32 %v930_v6, %v910_v12  ;;  %v7632_v40 = vld [vmem:[#allocation4] sm:$0xff]  ;;  %v7649_v22 = vpop.permute.xlu0 %2749 }
 0x4e8   :  { %v1016_v35 = vmul.f32 %v7193_v13, %v9601_v60  ;;  %v943_v9 = vadd.f32 %v935_v8, %v912_v7  ;;  %v3294_v11 = vmul.f32 %v6629_v63, %v7607_v36  ;;  %v3321_v51 = vmul.f32 %v7632_v40, %v7610_v56  ;;  %v9604_v12 = vld [vmem:[#allocation176_spill] sm:$0xff]  ;;  %3252 = vrot.lane.b32.xlu1 %v3244_v52, %s4992_s9  ;;  %v9606_v63 = vld [vmem:[#allocation159_spill] sm:$0xff]  ;;  %v9607_v8 = vld [vmem:[#allocation150_spill] sm:$0xff] }
 0x4e9   :  { %v963_v16 = vsel %vm52_vm0, %v9603_v17, %v962_v19  ;;  %v7638_v14 = vmul.f32 %v7000_v0, %v7610_v56  ;;  %v1040_v19 = vadd.f32 %v7305_v26, %v1006_v10  ;;  %v9605_v6 = vrot.slane %v9604_v12, 4  ;;  %v9608_v17 = vld [vmem:[#allocation184_spill] sm:$0xff] }
 0x4ea   :  { %v998_v55 = vrot.slane %v983_v24, 4  ;;  %v1038_v15 = vadd.f32 %v9606_v63, %v1004_v2  ;;  %v1027_v28 = vrot.slane %v1013_v48, 5  ;;  %v1045_v60 = vmul.f32 %v6723_v5, %v9607_v8  ;;  %v7659_v2 = vpop.permute.xlu1 %2720  ;;  %3302 = vrot.lane.b32.xlu0 %v3294_v11, %s4993_s13  ;;  %v9612_v11 = vld [vmem:[#allocation197_spill] sm:$0xff] }
 0x4eb   :  { %v968_v7 = vsel %vm52_vm0, %v9605_v6, %v967_v47  ;;  %v3249_v26 = vsel %vm1088_vm13, %v3246_v59, %v3248_v31  ;;  %v974_v10 = vadd.f32 %v963_v16, %v941_v43  ;;  %v9609_v12 = vrot.slane %v9608_v17, 4  ;;  %v9610_v31 = vld [vmem:[#allocation179_spill] sm:$0xff]  ;;  %v7682_v63 = vpop.permute.xlu0 %2770 }
 0x4ec   :  { %v1032_v24 = vrot.slane %v1016_v35, 5  ;;  %v1048_v52 = vmul.f32 %v6941_v20, %v9607_v8  ;;  %v976_v48 = vadd.f32 %v968_v7, %v943_v9  ;;  %v3296_v5 = vmul.f32 %v6795_v38, %v7607_v36  ;;  %3256 = vrot.lane.b32.xlu1 %v3249_v26, %s4992_s9  ;;  %v9613_v7 = vld [vmem:[#allocation153_spill] sm:$0xff]  ;;  %9614 = vst [vmem:[#allocation128_spill] sm:$0xff] %v7682_v63  ;;  %s7748_s9 = sld [smem:[#allocation5 + $0x44]] }
 0x4ed   :  { %v994_v47 = vsel %vm52_vm0, %v9609_v12, %v993_v21  ;;  %v3333_v23 = vrot.slane %v3321_v51, 1  ;;  %v9304_v59 = vrot.slane %v7638_v14, 1  ;;  %v9611_v16 = vrot.slane %v9610_v31, 4  ;;  %v9615_v26 = vld [vmem:[#allocation149_spill] sm:$0xff] }
 0x4ee   :  { %v3270_v43 = vmul.f32 %v7000_v0, %v7543_v61  ;;  %v3324_v35 = vmul.f32 %v6696_v42, %v7610_v56  ;;  %v7675_v9 = vmul.f32 %v6986_v25, %v7610_v56  ;;  %v1069_v51 = vadd.f32 %v9612_v11, %v1038_v15  ;;  %v7692_v18 = vpop.permute.xlu1 %2724  ;;  %3306 = vrot.lane.b32.xlu0 %v3296_v5, %s4993_s13  ;;  %v9620_v5 = vld [vmem:[#allocation166_spill] sm:$0xff] }
 0x4ef   :  { %v999_v21 = vsel %vm52_vm0, %v9611_v16, %v998_v55  ;;  %v1058_v6 = vrot.slane %v1045_v60, 5  ;;  %v1078_v55 = vmul.f32 %v6978_v1, %v9613_v7  ;;  %v7685_v8 = vstv %s7620_s15  ;;  %9617 = vst [vmem:[#allocation162_spill] sm:$0xff] %v7692_v18  ;;  %v9618_v60 = vld [vmem:[#allocation185_spill] sm:$0xff]  ;;  %s8888_s15 = sld [smem:[#allocation5 + $0x5a]] }
 0x4f0   :  { %v9616_v17 = vrot.slane %v9615_v26, 5  ;;  %v1005_v12 = vadd.f32 %v994_v47, %v974_v10  ;;  %v1063_v31 = vrot.slane %v1048_v52, 5  ;;  %v1081_v16 = vmul.f32 %v7193_v13, %v9613_v7  ;;  %3279 = vrot.lane.b32.xlu1 %v3270_v43, %s4993_s13  ;;  %v7705_v52 = vld [vmem:[#allocation4 + $0x18] sm:$0xff]  ;;  %v9624_v47 = vld [vmem:[#allocation188_spill] sm:$0xff] }
 0x4f1   :  { %v1007_v15 = vadd.f32 %v999_v21, %v976_v48  ;;  %v9619_v11 = vrot.slane %v9618_v60, 5  ;;  %v3335_v26 = vsel %vm764_vm9, %v3333_v23, %v9304_v59  ;;  %v3338_v10 = vrot.slane %v3324_v35, 1  ;;  %v9621_v23 = vld [vmem:[#allocation200_spill] sm:$0xff]  ;;  %v7719_v35 = vpop.permute.xlu0 %2774 }
 0x4f2   :  { %v1028_v42 = vsel %vm1023_vm12, %v9616_v17, %v1027_v28  ;;  %v3272_v28 = vmul.f32 %v6986_v25, %v7543_v61  ;;  %v3360_v48 = vmul.f32 %v7705_v52, %v7685_v8  ;;  %v1103_v21 = vadd.f32 %v9620_v5, %v1069_v51  ;;  %v7715_v61 = vld [vmem:[#allocation4 + $0x28] sm:$0x3f]  ;;  %3343 = vrot.lane.b32.xlu0 %v3335_v26, %s4993_s13 }
 0x4f3   :  { %v1033_v4 = vsel %vm1023_vm12, %v9619_v11, %v1032_v24  ;;  %v7711_v24 = vmul.f32 %v6752_v29, %v7685_v8  ;;  %v1071_v7 = vadd.f32 %v9621_v23, %v1040_v19  ;;  %v1092_v17 = vrot.slane %v1078_v55, 6  ;;  %v9622_v11 = vld [vmem:[#allocation191_spill] sm:$0xff]  ;;  %v7727_v19 = vpop.permute.xlu1 %2747 }
 0x4f4   :  { %v1110_v43 = vmul.f32 %v7715_v61, %v6840_v32  ;;  %v1039_v60 = vadd.f32 %v1028_v42, %v1005_v12  ;;  %v9623_v59 = vrot.slane %v9622_v11, 5  ;;  %v9625_v18 = vrot.slane %v9624_v47, 5  ;;  %9626 = vst [vmem:[#allocation164_spill] sm:$0xff] %v7727_v19  ;;  %v7734_v12 = vld [vmem:[#allocation4 + $0x50] sm:$0xff]  ;;  %3283 = vrot.lane.b32.xlu1 %v3272_v28, %s4993_s13 }
 0x4f5   :  { %v1097_v5 = vrot.slane %v1081_v16, 6  ;;  %v1041_v55 = vadd.f32 %v1033_v4, %v1007_v15  ;;  %v3295_v23 = vmul.f32 %v6752_v29, %v7607_v36  ;;  %v3363_v42 = vmul.f32 %v6795_v38, %v7685_v8  ;;  %v7758_v47 = vpop.permute.xlu0 %2811 }
 0x4f6   :  { %v1059_v39 = vsel %vm1023_vm12, %v9623_v59, %v1058_v6  ;;  %v1064_v51 = vsel %vm1023_vm12, %v9625_v18, %v1063_v31  ;;  %v7738_v59 = vmul.f32 %v7734_v12, %v7685_v8  ;;  %v9627_v18 = vrot.slane %v7675_v9, 1  ;;  %9630 = vst [vmem:[#allocation138_spill] sm:$0xff] %v7758_v47 }
 0x4f7   :  { %v3372_v6 = vrot.slane %v3360_v48, 1  ;;  %v7746_v16 = vstv %s7677_s14  ;;  %v1105_v29 = vadd.f32 %v7573_v58, %v1071_v7  ;;  %v9628_v38 = vrot.slane %v7558_v27, 6  ;;  %v9631_v48 = vld [vmem:[#allocation198_spill] sm:$0xff]  ;;  %v7766_v63 = vpop.permute.xlu1 %2751  ;;  %s8961_s14 = sld [smem:[#allocation5 + $0x30]] }
 0x4f8   :  { %v3340_v4 = vsel %vm764_vm9, %v3338_v10, %v9627_v18  ;;  %v9629_v15 = vrot.slane %v7521_v33, 6  ;;  %v1113_v28 = vmul.f32 %v6941_v20, %v6840_v32  ;;  %v3323_v10 = vmul.f32 %v6978_v1, %v7610_v56  ;;  %v9632_v18 = vld [vmem:[#allocation157_spill] sm:$0xff]  ;;  %3304 = vrot.lane.b32.xlu1 %v3295_v23, %s4993_s13 }
 0x4f9   :  { %v1134_v11 = vadd.f32 %v9631_v48, %v1103_v21  ;;  %v9633_v31 = vrot.slane %v9632_v18, 6  ;;  %v1123_v7 = vrot.slane %v1110_v43, 6  ;;  %v1070_v19 = vadd.f32 %v1059_v39, %v1039_v60  ;;  %3347 = vrot.lane.b32.xlu0 %v3340_v4, %s4993_s13 }
 0x4fa   :  { %v1127_v26 = vsel %vm1088_vm13, %v9629_v15, %v9628_v38  ;;  %v1072_v33 = vadd.f32 %v1064_v51, %v1041_v55  ;;  %v3377_v38 = vrot.slane %v3363_v42, 1  ;;  %v9305_v32 = vrot.slane %v7738_v59, 1  ;;  %v7785_v55 = vpop.permute.xlu0 %2815 }
 0x4fb   :  { %v1093_v58 = vsel %vm1088_vm13, %v9633_v31, %v1092_v17  ;;  %v3401_v15 = vmul.f32 %v7632_v40, %v7746_v16  ;;  %v9634_v47 = vrot.slane %v7315_v44, 6  ;;  %v9635_v17 = vrot.slane %v7711_v24, 1  ;;  %v9637_v31 = vld [vmem:[#allocation192_spill] sm:$0xff] }
 0x4fc   :  { %v3297_v43 = vmul.f32 %v7734_v12, %v7607_v36  ;;  %v7783_v60 = vmul.f32 %v7000_v0, %v7746_v16  ;;  %v1128_v51 = vrot.slane %v1113_v28, 6  ;;  %v3336_v42 = vrot.slane %v3323_v10, 1  ;;  %v7793_v36 = vpop.permute.xlu1 %2772 }
 0x4fd   :  { %v1098_v21 = vsel %vm1088_vm13, %v9634_v47, %v1097_v5  ;;  %v3374_v39 = vsel %vm764_vm9, %v3372_v6, %v9635_v17  ;;  %v3326_v44 = vmul.f32 %v7193_v13, %v7610_v56  ;;  %v9636_v5 = vld [vmem:[#allocation15_spill] sm:$0xff]  ;;  %v1136_v4 = vadd.f32 %v1127_v26, %v1105_v29  ;;  %9639 = vst [vmem:[#allocation134_spill] sm:$0xff] %v7793_v36  ;;  %v7801_v29 = vld [vmem:[#allocation4 + $0x30] sm:$0xff] }
 0x4fe   :  { %v1161_v23 = vadd.f32 %v9636_v5, %v1134_v11  ;;  %v9638_v6 = vrot.slane %v9637_v31, 6  ;;  %v1104_v48 = vadd.f32 %v1093_v58, %v1070_v19  ;;  %v1106_v18 = vadd.f32 %v1098_v21, %v1072_v33  ;;  %3382 = vrot.lane.b32.xlu0 %v3374_v39, %s4993_s13  ;;  %3308 = vrot.lane.b32.xlu1 %v3297_v43, %s4993_s13  ;;  %v7815_v33 = vpop.permute.xlu0 %2850  ;;  %v9643_v39 = vld [vmem:[#allocation16_spill] sm:$0xff]  ;;  %v9645_v31 = vld [vmem:[#allocation17_spill] sm:$0xff] }
 0x4ff   :  { %v3379_v28 = vsel %vm764_vm9, %v3377_v38, %v9305_v32  ;;  %v3413_v10 = vrot.slane %v3401_v15, 2  ;;  %v9306_v56 = vrot.slane %v7783_v60, 2  ;;  %v3404_v26 = vmul.f32 %v7801_v29, %v7746_v16  ;;  %9641 = vst [vmem:[#allocation155_spill] sm:$0xff] %v7815_v33  ;;  %v9782_v33 = vld [vmem:[#allocation89_spill] sm:$0xff] }
 0x500   :  { %v1124_v47 = vsel %vm1088_vm13, %v9638_v6, %v1123_v7  ;;  %v7807_v19 = vmul.f32 %v6986_v25, %v7746_v16  ;;  %v7810_v11 = vstv %s7748_s9  ;;  %v9640_v58 = vrot.slane %v7558_v27, 6  ;;  %v7825_v5 = vpop.permute.xlu1 %2776  ;;  %s9026_s9 = sld [smem:[#allocation5 + $0x61]] }
 0x501   :  { %v9642_v38 = vrot.slane %v7638_v14, 1  ;;  %v3341_v21 = vrot.slane %v3326_v44, 1  ;;  %v3362_v17 = vmul.f32 %v7715_v61, %v7685_v8  ;;  %v1163_v43 = vadd.f32 %v9643_v39, %v1136_v4  ;;  %9644 = vst [vmem:[#allocation140_spill] sm:$0xff] %v7825_v5 }
 0x502   :  { %v1129_v7 = vsel %vm1088_vm13, %v9640_v58, %v1128_v51  ;;  %v1186_v27 = vadd.f32 %v9645_v31, %v1161_v23  ;;  %v1135_v6 = vadd.f32 %v1124_v47, %v1104_v48  ;;  %3386 = vrot.lane.b32.xlu0 %v3379_v28, %s4993_s13  ;;  %v3440_v14 = vmul.f32 %v7705_v52, %v7810_v11  ;;  %v7831_v51 = vld [vmem:[#allocation4 + $0x20] sm:$0xff]  ;;  %v7842_v48 = vpop.permute.xlu0 %2854  ;;  %v9649_v31 = vld [vmem:[#allocation18_spill] sm:$0xff] }
 0x503   :  { %v3337_v15 = vsel %vm764_vm9, %v9642_v38, %v3336_v42  ;;  %v7835_v42 = vmul.f32 %v7831_v51, %v7810_v11  ;;  %v1137_v44 = vadd.f32 %v1129_v7, %v1106_v18  ;;  %v3415_v4 = vsel %vm829_vm10, %v3413_v10, %v9306_v56  ;;  %v9647_v18 = vld [vmem:[#allocation42_spill] sm:$0xff]  ;;  %v9650_v10 = vld [vmem:[#allocation35_spill] sm:$0xff] }
 0x504   :  { %3345 = vrot.lane.b32.xlu1 %v3337_v15, %s4993_s13  ;;  %v3418_v23 = vrot.slane %v3404_v26, 2  ;;  %v9646_v28 = vrot.slane %v7675_v9, 1  ;;  %v3375_v38 = vrot.slane %v3362_v17, 1  ;;  %v3365_v39 = vmul.f32 %v6941_v20, %v7685_v8  ;;  %v7850_v15 = vpop.permute.xlu1 %2813  ;;  %v9651_v47 = vld [vmem:[#allocation47_spill] sm:$0xff]  ;;  %v7861_v17 = vld [vmem:[#allocation4 + $0x48] sm:$0xff] }
 0x505   :  { %v1227_v7 = vadd.f32 %v9647_v18, %v1186_v27  ;;  %9648 = vst [vmem:[#allocation168_spill] sm:$0xff] %v7850_v15  ;;  %v1188_v32 = vadd.f32 %v9649_v31, %v1163_v43  ;;  %v1162_v26 = vadd.f32 %v9650_v10, %v1135_v6  ;;  %v3452_v56 = vrot.slane %v3440_v14, 2  ;;  %v9656_v18 = vld [vmem:[#allocation54_spill] sm:$0xff] }
 0x506   :  { %v3342_v58 = vsel %vm764_vm9, %v9646_v28, %v3341_v21  ;;  %3423 = vrot.lane.b32.xlu0 %v3415_v4, %s4993_s13  ;;  %v1164_v21 = vadd.f32 %v9651_v47, %v1137_v44  ;;  %v9652_v20 = vrot.slane %v7807_v19, 2  ;;  %v3443_v43 = vmul.f32 %v7861_v17, %v7810_v11  ;;  %v7871_v6 = vpop.permute.xlu0 %2891  ;;  %v9655_v28 = vld [vmem:[#allocation20_spill] sm:$0xff] }
 0x507   :  { %v7867_v27 = vmul.f32 %v7734_v12, %v7810_v11  ;;  %9653 = vst [vmem:[#allocation143_spill] sm:$0xff] %v7871_v6  ;;  %v9654_v14 = vrot.slane %v7711_v24, 1  ;;  %v3380_v4 = vrot.slane %v3365_v39, 1  ;;  %v7879_v47 = vstv %s7822_s16 }
 0x508   :  { %3349 = vrot.lane.b32.xlu1 %v3342_v58, %s4993_s13  ;;  %v3420_v8 = vsel %vm829_vm10, %v3418_v23, %v9652_v20  ;;  %v3403_v23 = vmul.f32 %v6978_v1, %v7746_v16  ;;  %v1266_v58 = vadd.f32 %v9655_v28, %v1227_v7  ;;  %v1229_v31 = vadd.f32 %v9656_v18, %v1188_v32  ;;  %v7883_v10 = vpop.permute.xlu1 %2817  ;;  %v9658_v20 = vld [vmem:[#allocation19_spill] sm:$0xff]  ;;  %v9663_v18 = vld [vmem:[#allocation44_spill] sm:$0xff] }
 0x509   :  { %v3376_v44 = vsel %vm764_vm9, %v9654_v14, %v3375_v38  ;;  %9657 = vst [vmem:[#allocation142_spill] sm:$0xff] %v7883_v10  ;;  %v1187_v9 = vadd.f32 %v9658_v20, %v1162_v26  ;;  %v9659_v24 = vrot.slane %v7835_v42, 2  ;;  %v3457_v39 = vrot.slane %v3443_v43, 2  ;;  %v9660_v14 = vld [vmem:[#allocation21_spill] sm:$0xff]  ;;  %v9665_v10 = vld [vmem:[#allocation32_spill] sm:$0xff] }
 0x50a   :  { %3427 = vrot.lane.b32.xlu0 %v3420_v8, %s4993_s13  ;;  %v3481_v7 = vmul.f32 %v7632_v40, %v7879_v47  ;;  %v7896_v32 = vmul.f32 %v7000_v0, %v7879_v47  ;;  %v1189_v26 = vadd.f32 %v9660_v14, %v1164_v21  ;;  %v7899_v28 = vpop.permute.xlu0 %2895  ;;  %v9662_v8 = vrot.slane %v7738_v59, 1  ;;  %v9667_v21 = vld [vmem:[#allocation61_spill] sm:$0xff] }
 0x50b   :  { %v3454_v38 = vsel %vm829_vm10, %v3452_v56, %v9659_v24  ;;  %9661 = vst [vmem:[#allocation171_spill] sm:$0xff] %v7899_v28  ;;  %v3406_v43 = vmul.f32 %v7193_v13, %v7746_v16  ;;  %v1307_v20 = vadd.f32 %v9663_v18, %v1266_v58  ;;  %v9664_v24 = vld [vmem:[#allocation49_spill] sm:$0xff]  ;;  %v1268_v0 = vadd.f32 %v9665_v10, %v1229_v31 }
 0x50c   :  { %3384 = vrot.lane.b32.xlu1 %v3376_v44, %s4993_s13  ;;  %v3381_v56 = vsel %vm764_vm9, %v9662_v8, %v3380_v4  ;;  %v3416_v44 = vrot.slane %v3403_v23, 2  ;;  %v1228_v1 = vadd.f32 %v9664_v24, %v1187_v9  ;;  %v7909_v15 = vpop.permute.xlu1 %2852  ;;  %v1230_v14 = vadd.f32 %v9667_v21, %v1189_v26  ;;  %v9673_v24 = vld [vmem:[#allocation56_spill] sm:$0xff]  ;;  %v9675_v58 = vld [vmem:[#allocation37_spill] sm:$0xff] }
 0x50d   :  { %9666 = vst [vmem:[#allocation156_spill] sm:$0xff] %v7909_v15  ;;  %v3484_v59 = vmul.f32 %v7801_v29, %v7879_v47  ;;  %v7917_v4 = vmul.f32 %v6986_v25, %v7879_v47  ;;  %v9668_v16 = vrot.slane %v7867_v27, 2  ;;  %v3493_v23 = vrot.slane %v3481_v7, 3 }
 0x50e   :  { %3462 = vrot.lane.b32.xlu0 %v3454_v38, %s4993_s13  ;;  %v7925_v31 = vstv %s7869_s17  ;;  %v7929_v10 = vpop.permute.xlu0 %2930  ;;  %v9670_v38 = vrot.slane %v7783_v60, 2  ;;  %v3421_v26 = vrot.slane %v3406_v43, 2  ;;  %v3442_v8 = vmul.f32 %v7715_v61, %v7810_v11 }
 0x50f   :  { %v3459_v9 = vsel %vm829_vm10, %v3457_v39, %v9668_v16  ;;  %9669 = vst [vmem:[#allocation182_spill] sm:$0xff] %v7929_v10  ;;  %v9672_v39 = vld [vmem:[#allocation23_spill] sm:$0xff]  ;;  %v1309_v21 = vadd.f32 %v9673_v24, %v1268_v0  ;;  %v1269_v15 = vadd.f32 %v9675_v58, %v1230_v14  ;;  %v3498_v10 = vrot.slane %v3484_v59, 3 }
 0x510   :  { %3388 = vrot.lane.b32.xlu1 %v3381_v56, %s4993_s13  ;;  %v3417_v25 = vsel %vm829_vm10, %v9670_v38, %v3416_v44  ;;  %v9671_v56 = vld [vmem:[#allocation22_spill] sm:$0xff]  ;;  %v1267_v7 = vadd.f32 %v9672_v39, %v1228_v1  ;;  %v7939_v16 = vpop.permute.xlu1 %2856  ;;  %v3520_v44 = vmul.f32 %v7705_v52, %v7925_v31  ;;  %v9676_v43 = vrot.slane %v7896_v32, 3 }
 0x511   :  { %v1346_v18 = vadd.f32 %v9671_v56, %v1307_v20  ;;  %9674 = vst [vmem:[#allocation174_spill] sm:$0xff] %v7939_v16  ;;  %v7952_v20 = vmul.f32 %v7831_v51, %v7925_v31  ;;  %v9678_v14 = vrot.slane %v7807_v19, 2  ;;  %v7959_v58 = vld [vmem:[#allocation4 + $0x58] sm:$0x3f]  ;;  %v9684_v19 = vrot.slane %v7917_v4, 3 }
 0x512   :  { %3466 = vrot.lane.b32.xlu0 %v3459_v9, %s4993_s13  ;;  %v3495_v1 = vsel %vm894_vm11, %v3493_v23, %v9676_v43  ;;  %v7954_v0 = vpop.permute.xlu0 %2934  ;;  %v3455_v9 = vrot.slane %v3442_v8, 2  ;;  %v3445_v38 = vmul.f32 %v7959_v58, %v7810_v11  ;;  %v9680_v23 = vld [vmem:[#allocation51_spill] sm:$0xff]  ;;  %v9682_v43 = vld [vmem:[#allocation34_spill] sm:$0xff]  ;;  %v3532_v8 = vrot.slane %v3520_v44, 3 }
 0x513   :  { %9677 = vst [vmem:[#allocation145_spill] sm:$0xff] %v7954_v0  ;;  %v3422_v59 = vsel %vm829_vm10, %v9678_v14, %v3421_v26  ;;  %v1308_v39 = vadd.f32 %v9680_v23, %v1267_v7  ;;  %v1348_v60 = vadd.f32 %v9682_v43, %v1309_v21  ;;  %v9683_v16 = vld [vmem:[#allocation63_spill] sm:$0xff]  ;;  %v3500_v26 = vsel %vm894_vm11, %v3498_v10, %v9684_v19  ;;  %v9688_v23 = vld [vmem:[#allocation25_spill] sm:$0xff] }
 0x514   :  { %3425 = vrot.lane.b32.xlu1 %v3417_v25, %s4993_s13  ;;  %v9679_v25 = vld [vmem:[#allocation46_spill] sm:$0xff]  ;;  %v7965_v24 = vpop.permute.xlu1 %2893  ;;  %v1310_v0 = vadd.f32 %v9683_v16, %v1269_v15  ;;  %v7979_v7 = vmul.f32 %v7734_v12, %v7925_v31  ;;  %v7982_v21 = vstv %s7927_s18  ;;  %v9686_v16 = vrot.slane %v7835_v42, 2  ;;  %v9690_v11 = vld [vmem:[#allocation39_spill] sm:$0xff] }
 0x515   :  { %v1387_v56 = vadd.f32 %v9679_v25, %v1346_v18  ;;  %9681 = vst [vmem:[#allocation147_spill] sm:$0xff] %v7965_v24  ;;  %v3523_v18 = vmul.f32 %v7861_v17, %v7925_v31  ;;  %v3460_v44 = vrot.slane %v3445_v38, 2  ;;  %v1347_v43 = vadd.f32 %v9688_v23, %v1308_v39 }
 0x516   :  { %3503 = vrot.lane.b32.xlu0 %v3495_v1, %s4993_s13  ;;  %v7984_v15 = vpop.permute.xlu0 %2971  ;;  %v3456_v10 = vsel %vm829_vm10, %v9686_v16, %v3455_v9  ;;  %v7989_v1 = vld [vmem:[#allocation4 + $0x10] sm:$0x3f]  ;;  %v1349_v24 = vadd.f32 %v9690_v11, %v1310_v0  ;;  %v3561_v42 = vmul.f32 %v7632_v40, %v7982_v21  ;;  %v8003_v9 = vld [vmem:[#allocation4 + $0x8] sm:$0xff]  ;;  %v3486_v5 = vmul.f32 %v7193_v13, %v7879_v47 }
 0x517   :  { %9685 = vst [vmem:[#allocation176_spill] sm:$0xff] %v7984_v15  ;;  %v3483_v14 = vmul.f32 %v7989_v1, %v7879_v47  ;;  %v8007_v38 = vmul.f32 %v8003_v9, %v7982_v21  ;;  %v9691_v16 = vld [vmem:[#allocation58_spill] sm:$0xff]  ;;  %v3537_v0 = vrot.slane %v3523_v18, 3  ;;  %v9700_v13 = vrot.slane %v7979_v7, 3 }
 0x518   :  { %3429 = vrot.lane.b32.xlu1 %v3422_v59, %s4993_s13  ;;  %v9687_v59 = vld [vmem:[#allocation24_spill] sm:$0xff]  ;;  %v7997_v19 = vpop.permute.xlu1 %2897  ;;  %v1389_v15 = vadd.f32 %v9691_v16, %v1348_v60 }
 0x519   :  { %v1426_v25 = vadd.f32 %v9687_v59, %v1387_v56  ;;  %9689 = vst [vmem:[#allocation159_spill] sm:$0xff] %v7997_v19  ;;  %v9692_v56 = vrot.slane %v7952_v20, 3  ;;  %v9694_v59 = vrot.slane %v7867_v27, 2  ;;  %v3496_v19 = vrot.slane %v3483_v14, 3  ;;  %v9695_v60 = vld [vmem:[#allocation48_spill] sm:$0xff] }
 0x51a   :  { %3507 = vrot.lane.b32.xlu0 %v3500_v26, %s4993_s13  ;;  %v8015_v11 = vpop.permute.xlu0 %2975  ;;  %v9699_v26 = vld [vmem:[#allocation36_spill] sm:$0xff]  ;;  %v3539_v47 = vsel %vm894_vm11, %v3537_v0, %v9700_v13  ;;  %v3564_v14 = vmul.f32 %v7801_v29, %v7982_v21  ;;  %v3522_v0 = vmul.f32 %v7715_v61, %v7925_v31  ;;  %v9706_v13 = vld [vmem:[#allocation41_spill] sm:$0xff] }
 0x51b   :  { %v3534_v39 = vsel %vm894_vm11, %v3532_v8, %v9692_v56  ;;  %9693 = vst [vmem:[#allocation150_spill] sm:$0xff] %v8015_v11  ;;  %v3461_v23 = vsel %vm829_vm10, %v9694_v59, %v3460_v44  ;;  %v1467_v16 = vadd.f32 %v9695_v60, %v1426_v25  ;;  %v9698_v8 = vld [vmem:[#allocation65_spill] sm:$0xff]  ;;  %v3573_v56 = vrot.slane %v3561_v42, 4  ;;  %v8036_v25 = vld [vmem:[#allocation4 + $0x38] sm:$0xff] }
 0x51c   :  { %3464 = vrot.lane.b32.xlu1 %v3456_v10, %s4993_s13  ;;  %v9696_v10 = vld [vmem:[#allocation53_spill] sm:$0xff]  ;;  %v8024_v28 = vpop.permute.xlu1 %2932  ;;  %v1390_v18 = vadd.f32 %v9698_v8, %v1349_v24  ;;  %v1428_v44 = vadd.f32 %v9699_v26, %v1389_v15  ;;  %v8040_v24 = vmul.f32 %v8036_v25, %v7982_v21  ;;  %v9702_v15 = vrot.slane %v7896_v32, 3  ;;  %v9703_v59 = vld [vmem:[#allocation26_spill] sm:$0xff]  ;;  %v9704_v60 = vld [vmem:[#allocation27_spill] sm:$0xff] }
 0x51d   :  { %v1388_v6 = vadd.f32 %v9696_v10, %v1347_v43  ;;  %9697 = vst [vmem:[#allocation184_spill] sm:$0xff] %v8024_v28  ;;  %v8052_v26 = vstv %s7993_s0  ;;  %v9707_v32 = vrot.slane %v8007_v38, 4 }
 0x51e   :  { %3542 = vrot.lane.b32.xlu0 %v3534_v39, %s4993_s13  ;;  %v8044_v43 = vpop.permute.xlu0 %3010  ;;  %v3497_v42 = vsel %vm894_vm11, %v9702_v15, %v3496_v19  ;;  %v3501_v39 = vrot.slane %v3486_v5, 3  ;;  %v1429_v27 = vadd.f32 %v9706_v13, %v1390_v18  ;;  %v3578_v5 = vrot.slane %v3564_v14, 4  ;;  %v9711_v13 = vld [vmem:[#allocation50_spill] sm:$0xff]  ;;  %v9712_v15 = vld [vmem:[#allocation55_spill] sm:$0xff] }
 0x51f   :  { %9701 = vst [vmem:[#allocation179_spill] sm:$0xff] %v8044_v43  ;;  %v1427_v10 = vadd.f32 %v9704_v60, %v1388_v6  ;;  %v3575_v19 = vsel %vm52_vm0, %v3573_v56, %v9707_v32  ;;  %v8069_v6 = vmul.f32 %v7831_v51, %v8052_v26  ;;  %v9710_v60 = vrot.slane %v7917_v4, 3  ;;  %v9714_v43 = vld [vmem:[#allocation67_spill] sm:$0xff] }
 0x520   :  { %3468 = vrot.lane.b32.xlu1 %v3461_v23, %s4993_s13  ;;  %v1506_v23 = vadd.f32 %v9703_v59, %v1467_v16  ;;  %v8056_v8 = vpop.permute.xlu1 %2936  ;;  %v3600_v16 = vmul.f32 %v7705_v52, %v8052_v26  ;;  %v9708_v59 = vld [vmem:[#allocation60_spill] sm:$0xff]  ;;  %v3525_v14 = vmul.f32 %v7959_v58, %v7925_v31  ;;  %v1470_v11 = vadd.f32 %v9714_v43, %v1429_v27  ;;  %v9716_v27 = vld [vmem:[#allocation38_spill] sm:$0xff] }
 0x521   :  { %9705 = vst [vmem:[#allocation197_spill] sm:$0xff] %v8056_v8  ;;  %v1469_v18 = vadd.f32 %v9708_v59, %v1428_v44  ;;  %v3502_v56 = vsel %vm894_vm11, %v9710_v60, %v3501_v39  ;;  %v1468_v8 = vadd.f32 %v9712_v15, %v1427_v10  ;;  %v3603_v44 = vmul.f32 %v7861_v17, %v8052_v26 }
 0x522   :  { %3546 = vrot.lane.b32.xlu0 %v3539_v47, %s4993_s13  ;;  %v8072_v47 = vpop.permute.xlu0 %3014  ;;  %v1547_v32 = vadd.f32 %v9711_v13, %v1506_v23  ;;  %v8089_v4 = vmul.f32 %v7734_v12, %v8052_v26  ;;  %v9715_v31 = vrot.slane %v8040_v24, 4  ;;  %v8097_v10 = vstv %s8042_s1  ;;  %v9720_v13 = vld [vmem:[#allocation29_spill] sm:$0xff] }
 0x523   :  { %9709 = vst [vmem:[#allocation153_spill] sm:$0xff] %v8072_v47  ;;  %v1508_v43 = vadd.f32 %v9716_v27, %v1469_v18  ;;  %v9718_v15 = vrot.slane %v7952_v20, 3  ;;  %v3540_v60 = vrot.slane %v3525_v14, 3  ;;  %v3617_v18 = vrot.slane %v3603_v44, 4  ;;  %v9729_v27 = vld [vmem:[#allocation52_spill] sm:$0xff] }
 0x524   :  { %3505 = vrot.lane.b32.xlu1 %v3497_v42, %s4993_s13  ;;  %v3535_v42 = vrot.slane %v3522_v0, 3  ;;  %v8081_v28 = vpop.permute.xlu1 %2973  ;;  %v3580_v39 = vsel %vm52_vm0, %v3578_v5, %v9715_v31  ;;  %v3612_v0 = vrot.slane %v3600_v16, 4  ;;  %v9719_v5 = vld [vmem:[#allocation28_spill] sm:$0xff]  ;;  %v1507_v31 = vadd.f32 %v9720_v13, %v1468_v8 }
 0x525   :  { %9713 = vst [vmem:[#allocation149_spill] sm:$0xff] %v8081_v28  ;;  %v1586_v16 = vadd.f32 %v9719_v5, %v1547_v32  ;;  %v9722_v28 = vld [vmem:[#allocation43_spill] sm:$0xff]  ;;  %v3641_v20 = vmul.f32 %v7632_v40, %v8097_v10  ;;  %v8124_v8 = vmul.f32 %v8003_v9, %v8097_v10  ;;  %v9724_v32 = vld [vmem:[#allocation62_spill] sm:$0xff]  ;;  %v9726_v44 = vrot.slane %v7979_v7, 3 }
 0x526   :  { %3583 = vrot.lane.b32.xlu0 %v3575_v19, %s4993_s13  ;;  %v8102_v19 = vpop.permute.xlu0 %3051  ;;  %v3536_v59 = vsel %vm894_vm11, %v9718_v15, %v3535_v42  ;;  %v1509_v47 = vadd.f32 %v9722_v28, %v1470_v11  ;;  %v9723_v42 = vrot.slane %v8069_v6, 4  ;;  %v1549_v28 = vadd.f32 %v9724_v32, %v1508_v43  ;;  %v8132_v5 = vld [vmem:[#allocation4 + $0x40] sm:$0x3f]  ;;  %v9730_v43 = vld [vmem:[#allocation69_spill] sm:$0xff] }
 0x527   :  { %9717 = vst [vmem:[#allocation185_spill] sm:$0xff] %v8102_v19  ;;  %v9731_v7 = vrot.slane %v8089_v4, 4 }
 0x528   :  { %3509 = vrot.lane.b32.xlu1 %v3502_v56, %s4993_s13  ;;  %v3563_v56 = vmul.f32 %v7989_v1, %v7982_v21  ;;  %v8111_v23 = vpop.permute.xlu1 %2977  ;;  %v3614_v14 = vsel %vm52_vm0, %v3612_v0, %v9723_v42  ;;  %v9727_v0 = vld [vmem:[#allocation57_spill] sm:$0xff]  ;;  %v1550_v32 = vadd.f32 %v9730_v43, %v1509_v47  ;;  %v9732_v47 = vld [vmem:[#allocation40_spill] sm:$0xff]  ;;  %v9735_v43 = vld [vmem:[#allocation31_spill] sm:$0xff] }
 0x529   :  { %9721 = vst [vmem:[#allocation166_spill] sm:$0xff] %v8111_v23  ;;  %v1548_v13 = vadd.f32 %v9727_v0, %v1507_v31  ;;  %v1627_v23 = vadd.f32 %v9729_v27, %v1586_v16  ;;  %v8151_v31 = vmul.f32 %v8036_v25, %v8097_v10  ;;  %v8154_v16 = vstv %s8099_s19 }
 0x52a   :  { %3587 = vrot.lane.b32.xlu0 %v3580_v39, %s4993_s13  ;;  %v8127_v11 = vpop.permute.xlu0 %3055  ;;  %v3541_v39 = vsel %vm894_vm11, %v9726_v44, %v3540_v60  ;;  %v3576_v15 = vrot.slane %v3563_v56, 4  ;;  %v3619_v60 = vsel %vm52_vm0, %v3617_v18, %v9731_v7  ;;  %v3653_v56 = vrot.slane %v3641_v20, 5 }
 0x52b   :  { %9725 = vst [vmem:[#allocation200_spill] sm:$0xff] %v8127_v11  ;;  %v1588_v27 = vadd.f32 %v9732_v47, %v1549_v28  ;;  %v9734_v18 = vrot.slane %v8007_v38, 4  ;;  %v3602_v0 = vmul.f32 %v7715_v61, %v8052_v26  ;;  %v1587_v7 = vadd.f32 %v9735_v43, %v1548_v13 }
 0x52c   :  { %3544 = vrot.lane.b32.xlu1 %v3536_v59, %s4993_s13  ;;  %v3566_v59 = vmul.f32 %v8132_v5, %v7982_v21  ;;  %v8137_v42 = vpop.permute.xlu1 %3012  ;;  %v3644_v21 = vmul.f32 %v7801_v29, %v8097_v10  ;;  %v3680_v28 = vmul.f32 %v7705_v52, %v8154_v16  ;;  %v8175_v38 = vmul.f32 %v7831_v51, %v8154_v16 }
 0x52d   :  { %9728 = vst [vmem:[#allocation191_spill] sm:$0xff] %v8137_v42  ;;  %v3577_v20 = vsel %vm52_vm0, %v9734_v18, %v3576_v15  ;;  %v9737_v42 = vld [vmem:[#allocation30_spill] sm:$0xff]  ;;  %v9738_v15 = vld [vmem:[#allocation45_spill] sm:$0xff]  ;;  %v9739_v47 = vrot.slane %v8124_v8, 5  ;;  %v3615_v11 = vrot.slane %v3602_v0, 4  ;;  %v3683_v0 = vmul.f32 %v7861_v17, %v8154_v16 }
 0x52e   :  { %3622 = vrot.lane.b32.xlu0 %v3614_v14, %s4993_s13  ;;  %v8157_v14 = vpop.permute.xlu0 %3090  ;;  %v1666_v19 = vadd.f32 %v9737_v42, %v1627_v23  ;;  %v3658_v18 = vrot.slane %v3644_v21, 5  ;;  %v9740_v42 = vld [vmem:[#allocation64_spill] sm:$0xff] }
 0x52f   :  { %9733 = vst [vmem:[#allocation188_spill] sm:$0xff] %v8157_v14  ;;  %v3655_v13 = vsel %vm1023_vm12, %v3653_v56, %v9739_v47  ;;  %v9745_v56 = vld [vmem:[#allocation66_spill] sm:$0xff]  ;;  %v9746_v47 = vld [vmem:[#allocation68_spill] sm:$0xff] }
 0x530   :  { %3548 = vrot.lane.b32.xlu1 %v3541_v39, %s4993_s13  ;;  %v3581_v39 = vrot.slane %v3566_v59, 4  ;;  %v8167_v44 = vpop.permute.xlu1 %3016  ;;  %v1589_v59 = vadd.f32 %v9738_v15, %v1550_v32  ;;  %v3605_v32 = vmul.f32 %v7959_v58, %v8052_v26  ;;  %v1693_v23 = vadd.f32 %v9746_v47, %v1666_v19  ;;  %v9753_v47 = vld [vmem:[#allocation70_spill] sm:$0xff] }
 0x531   :  { %9736 = vst [vmem:[#allocation198_spill] sm:$0xff] %v8167_v44  ;;  %v9742_v44 = vrot.slane %v8040_v24, 4  ;;  %v9748_v26 = vrot.slane %v8151_v31, 5 }
 0x532   :  { %3626 = vrot.lane.b32.xlu0 %v3619_v60, %s4993_s13  ;;  %v1629_v60 = vadd.f32 %v9740_v42, %v1588_v27  ;;  %v8184_v43 = vpop.permute.xlu0 %3094  ;;  %v3692_v27 = vrot.slane %v3680_v28, 5  ;;  %v9747_v42 = vld [vmem:[#allocation71_spill] sm:$0xff]  ;;  %v9750_v28 = vrot.slane %v8069_v6, 4 }
 0x533   :  { %9741 = vst [vmem:[#allocation157_spill] sm:$0xff] %v8184_v43  ;;  %v3582_v14 = vsel %vm52_vm0, %v9742_v44, %v3581_v39  ;;  %v1630_v44 = vadd.f32 %v9747_v42, %v1589_v59  ;;  %v3660_v39 = vsel %vm1023_vm12, %v3658_v18, %v9748_v26  ;;  %v3620_v59 = vrot.slane %v3605_v32, 4  ;;  %v9751_v18 = vld [vmem:[#allocation33_spill] sm:$0xff]  ;;  %v9754_v26 = vld [vmem:[#allocation72_spill] sm:$0xff] }
 0x534   :  { %3585 = vrot.lane.b32.xlu1 %v3577_v20, %s4993_s13  ;;  %v9743_v20 = vld [vmem:[#allocation59_spill] sm:$0xff]  ;;  %v8192_v36 = vpop.permute.xlu1 %3053  ;;  %v1668_v21 = vadd.f32 %v9745_v56, %v1629_v60  ;;  %v8217_v60 = vstv %s8164_s20  ;;  %v1718_v24 = vadd.f32 %v9754_v26, %v1693_v23  ;;  %v9757_v23 = vld [vmem:[#allocation74_spill] sm:$0xff]  ;;  %v9761_v26 = vld [vmem:[#allocation76_spill] sm:$0xff] }
 0x535   :  { %v1628_v15 = vadd.f32 %v9743_v20, %v1587_v7  ;;  %9744 = vst [vmem:[#allocation15_spill] sm:$0xff] %v8192_v36  ;;  %v8207_v7 = vmul.f32 %v7734_v12, %v8154_v16  ;;  %v9755_v36 = vld [vmem:[#allocation73_spill] sm:$0xff] }
 0x536   :  { %3663 = vrot.lane.b32.xlu0 %v3655_v13, %s4993_s13  ;;  %v8209_v19 = vpop.permute.xlu0 %3131  ;;  %v3616_v13 = vsel %vm52_vm0, %v9750_v28, %v3615_v11  ;;  %v1695_v42 = vadd.f32 %v9753_v47, %v1668_v21  ;;  %v1669_v6 = vadd.f32 %v9755_v36, %v1630_v44  ;;  %v9756_v11 = vrot.slane %v8175_v38, 5 }
 0x537   :  { %9749 = vst [vmem:[#allocation192_spill] sm:$0xff] %v8209_v19  ;;  %v1667_v20 = vadd.f32 %v9751_v18, %v1628_v15  ;;  %v3697_v28 = vrot.slane %v3683_v0, 5  ;;  %v3721_v15 = vmul.f32 %v7632_v40, %v8217_v60  ;;  %v8237_v21 = vmul.f32 %v8003_v9, %v8217_v60 }
 0x538   :  { %3589 = vrot.lane.b32.xlu1 %v3582_v14, %s4993_s13  ;;  %v3643_v14 = vmul.f32 %v7989_v1, %v8097_v10  ;;  %v8222_v56 = vpop.permute.xlu1 %3057  ;;  %v3694_v32 = vsel %vm1023_vm12, %v3692_v27, %v9756_v11  ;;  %v1720_v36 = vadd.f32 %v9757_v23, %v1695_v42  ;;  %v3646_v0 = vmul.f32 %v8132_v5, %v8097_v10  ;;  %v9764_v42 = vld [vmem:[#allocation78_spill] sm:$0xff]  ;;  %v9765_v10 = vld [vmem:[#allocation79_spill] sm:$0xff] }
 0x539   :  { %9752 = vst [vmem:[#allocation16_spill] sm:$0xff] %v8222_v56  ;;  %v1759_v11 = vadd.f32 %v9761_v26, %v1718_v24  ;;  %v9763_v56 = vld [vmem:[#allocation77_spill] sm:$0xff]  ;;  %v9766_v24 = vrot.slane %v8207_v7, 5  ;;  %v3682_v26 = vmul.f32 %v7715_v61, %v8154_v16 }
 0x53a   :  { %3667 = vrot.lane.b32.xlu0 %v3660_v39, %s4993_s13  ;;  %v8240_v44 = vpop.permute.xlu0 %3135  ;;  %v9759_v39 = vrot.slane %v8089_v4, 4  ;;  %v3656_v18 = vrot.slane %v3643_v14, 5  ;;  %v1696_v43 = vadd.f32 %v9763_v56, %v1669_v6  ;;  %v1761_v23 = vadd.f32 %v9764_v42, %v1720_v36  ;;  %v9773_v6 = vld [vmem:[#allocation83_spill] sm:$0xff] }
 0x53b   :  { %9758 = vst [vmem:[#allocation17_spill] sm:$0xff] %v8240_v44  ;;  %v3724_v4 = vmul.f32 %v7801_v29, %v8217_v60  ;;  %v3733_v56 = vrot.slane %v3721_v15, 6  ;;  %v9772_v15 = vld [vmem:[#allocation82_spill] sm:$0xff]  ;;  %v9775_v44 = vrot.slane %v8237_v21, 6 }
 0x53c   :  { %3624 = vrot.lane.b32.xlu1 %v3616_v13, %s4993_s13  ;;  %v3621_v27 = vsel %vm52_vm0, %v9759_v39, %v3620_v59  ;;  %v9760_v13 = vld [vmem:[#allocation75_spill] sm:$0xff]  ;;  %v8249_v19 = vpop.permute.xlu1 %3092  ;;  %v8258_v59 = vmul.f32 %v8036_v25, %v8217_v60 }
 0x53d   :  { %v1694_v47 = vadd.f32 %v9760_v13, %v1667_v20  ;;  %9762 = vst [vmem:[#allocation42_spill] sm:$0xff] %v8249_v19  ;;  %v3699_v20 = vsel %vm1023_vm12, %v3697_v28, %v9766_v24  ;;  %v3661_v13 = vrot.slane %v3646_v0, 5  ;;  %v1800_v24 = vadd.f32 %v9772_v15, %v1761_v23  ;;  %v9774_v0 = vld [vmem:[#allocation84_spill] sm:$0xff]  ;;  %v9780_v15 = vld [vmem:[#allocation87_spill] sm:$0xff] }
 0x53e   :  { %3702 = vrot.lane.b32.xlu0 %v3694_v32, %s4993_s13  ;;  %v8266_v36 = vpop.permute.xlu0 %3170  ;;  %v9768_v32 = vrot.slane %v8124_v8, 5  ;;  %v3738_v8 = vrot.slane %v3724_v4, 6 }
 0x53f   :  { %v1719_v14 = vadd.f32 %v9765_v10, %v1694_v47  ;;  %9767 = vst [vmem:[#allocation18_spill] sm:$0xff] %v8266_v36  ;;  %v8274_v47 = vstv %s8219_s21  ;;  %v9770_v10 = vld [vmem:[#allocation81_spill] sm:$0xff] }
 0x540   :  { %3628 = vrot.lane.b32.xlu1 %v3621_v27, %s4993_s13  ;;  %v3657_v39 = vsel %vm1023_vm12, %v9768_v32, %v3656_v18  ;;  %v9769_v27 = vld [vmem:[#allocation80_spill] sm:$0xff]  ;;  %v1721_v19 = vadd.f32 %v9770_v10, %v1696_v43  ;;  %v8278_v28 = vpop.permute.xlu1 %3096  ;;  %v3760_v43 = vmul.f32 %v7705_v52, %v8274_v47  ;;  %v8293_v23 = vmul.f32 %v7831_v51, %v8274_v47 }
 0x541   :  { %v1798_v42 = vadd.f32 %v9769_v27, %v1759_v11  ;;  %9771 = vst [vmem:[#allocation35_spill] sm:$0xff] %v8278_v28  ;;  %v1760_v36 = vadd.f32 %v9773_v6, %v1719_v14  ;;  %v3735_v11 = vsel %vm1088_vm13, %v3733_v56, %v9775_v44  ;;  %v9776_v14 = vld [vmem:[#allocation85_spill] sm:$0xff]  ;;  %v9777_v6 = vrot.slane %v8151_v31, 5  ;;  %v9778_v44 = vld [vmem:[#allocation86_spill] sm:$0xff]  ;;  %v9781_v18 = vld [vmem:[#allocation88_spill] sm:$0xff] }
 0x542   :  { %3706 = vrot.lane.b32.xlu0 %v3699_v20, %s4993_s13  ;;  %v1762_v20 = vadd.f32 %v9776_v14, %v1721_v19  ;;  %v8296_v4 = vpop.permute.xlu0 %3174  ;;  %v1841_v56 = vadd.f32 %v9778_v44, %v1800_v24  ;;  %v9783_v31 = vrot.slane %v8258_v59, 6  ;;  %v3763_v24 = vmul.f32 %v7861_v17, %v8274_v47  ;;  %v9788_v44 = vld [vmem:[#allocation92_spill] sm:$0xff] }
 0x543   :  { %v1839_v32 = vadd.f32 %v9774_v0, %v1798_v42  ;;  %v3662_v27 = vsel %vm1023_vm12, %v9777_v6, %v3661_v13  ;;  %v3685_v42 = vmul.f32 %v7959_v58, %v8154_v16  ;;  %v1799_v0 = vadd.f32 %v9780_v15, %v1760_v36 }
 0x544   :  { %3665 = vrot.lane.b32.xlu1 %v3657_v39, %s4993_s13  ;;  %v3695_v39 = vrot.slane %v3682_v26, 5  ;;  %v8304_v10 = vpop.permute.xlu1 %3133  ;;  %v1801_v19 = vadd.f32 %v9782_v33, %v1762_v20  ;;  %v3740_v13 = vsel %vm1088_vm13, %v3738_v8, %v9783_v31  ;;  %v3772_v26 = vrot.slane %v3760_v43, 6  ;;  %v9784_v33 = vld [vmem:[#allocation90_spill] sm:$0xff]  ;;  %v9786_v20 = vld [vmem:[#allocation91_spill] sm:$0xff]  ;;  %v9789_v31 = vld [vmem:[#allocation93_spill] sm:$0xff] }
 0x545   :  { %9779 = vst [vmem:[#allocation47_spill] sm:$0xff] %v8304_v10  ;;  %v1878_v28 = vadd.f32 %v9781_v18, %v1839_v32  ;;  %v8319_v36 = vmul.f32 %v7734_v12, %v8274_v47  ;;  %v1880_v18 = vadd.f32 %v9784_v33, %v1841_v56  ;;  %v9785_v8 = vrot.slane %v8175_v38, 5  ;;  %v9790_v10 = vld [vmem:[#allocation94_spill] sm:$0xff]  ;;  %v9791_v33 = vld [vmem:[#allocation95_spill] sm:$0xff] }
 0x546   :  { %3743 = vrot.lane.b32.xlu0 %v3735_v11, %s4993_s13  ;;  %v8324_v32 = vpop.permute.xlu0 %3211  ;;  %v3700_v43 = vrot.slane %v3685_v42, 5  ;;  %v3723_v14 = vmul.f32 %v7989_v1, %v8217_v60  ;;  %v1840_v6 = vadd.f32 %v9786_v20, %v1799_v0  ;;  %v1842_v16 = vadd.f32 %v9789_v31, %v1801_v19  ;;  %v9793_v20 = vld [vmem:[#allocation96_spill] sm:$0xff]  ;;  %v9798_v31 = vld [vmem:[#allocation99_spill] sm:$0xff] }
 0x547   :  { %v3696_v11 = vsel %vm1023_vm12, %v9785_v8, %v3695_v39  ;;  %v1919_v15 = vadd.f32 %v9788_v44, %v1878_v28  ;;  %v1921_v56 = vadd.f32 %v9790_v10, %v1880_v18  ;;  %v9792_v39 = vrot.slane %v8293_v23, 6  ;;  %v9796_v44 = vld [vmem:[#allocation98_spill] sm:$0xff] }
 0x548   :  { %3669 = vrot.lane.b32.xlu1 %v3662_v27, %s4993_s13  ;;  %v8332_v27 = vpop.permute.xlu1 %3137  ;;  %v1879_v38 = vadd.f32 %v9791_v33, %v1840_v6  ;;  %v3777_v8 = vrot.slane %v3763_v24, 6  ;;  %v9307_v0 = vrot.slane %v8319_v36, 6  ;;  %v9794_v10 = vrot.slane %v8207_v7, 5  ;;  %v9800_v7 = vld [vmem:[#allocation101_spill] sm:$0xff] }
 0x549   :  { %9787 = vst [vmem:[#allocation20_spill] sm:$0xff] %v8332_v27  ;;  %v3774_v42 = vsel %vm1088_vm13, %v3772_v26, %v9792_v39  ;;  %v1958_v27 = vadd.f32 %v9793_v20, %v1919_v15  ;;  %v3726_v18 = vmul.f32 %v8132_v5, %v8217_v60  ;;  %v1960_v26 = vadd.f32 %v9796_v44, %v1921_v56  ;;  %v9799_v15 = vld [vmem:[#allocation100_spill] sm:$0xff]  ;;  %v9802_v56 = vld [vmem:[#allocation103_spill] sm:$0xff] }
 0x54a   :  { %3747 = vrot.lane.b32.xlu0 %v3740_v13, %s4993_s13  ;;  %v8345_v28 = vpop.permute.xlu0 %3215  ;;  %v3701_v19 = vsel %vm1023_vm12, %v9794_v10, %v3700_v43  ;;  %v3736_v13 = vrot.slane %v3723_v14, 6  ;;  %v1920_v33 = vadd.f32 %v9798_v31, %v1879_v38  ;;  %v9801_v14 = vld [vmem:[#allocation102_spill] sm:$0xff]  ;;  %v3779_v60 = vsel %vm1088_vm13, %v3777_v8, %v9307_v0 }
 0x54b   :  { %v1999_v39 = vadd.f32 %v9799_v15, %v1958_v27  ;;  %v2001_v20 = vadd.f32 %v9801_v14, %v1960_v26  ;;  %v9806_v26 = vld [vmem:[#allocation105_spill] sm:$0xff]  ;;  %v9807_v31 = vld [vmem:[#allocation106_spill] sm:$0xff]  ;;  %v9809_v14 = vld [vmem:[#allocation107_spill] sm:$0xff] }
 0x54c   :  { %3704 = vrot.lane.b32.xlu1 %v3696_v11, %s4993_s13  ;;  %v9795_v11 = vld [vmem:[#allocation97_spill] sm:$0xff]  ;;  %v8354_v24 = vpop.permute.xlu1 %3172  ;;  %v1959_v27 = vadd.f32 %v9802_v56, %v1920_v33 }
 0x54d   :  { %v1881_v6 = vadd.f32 %v9795_v11, %v1842_v16  ;;  %9797 = vst [vmem:[#allocation54_spill] sm:$0xff] %v8354_v24  ;;  %v8368_v16 = vstv %s8321_s22  ;;  %v3741_v11 = vrot.slane %v3726_v18, 6  ;;  %v2040_v15 = vadd.f32 %v9807_v31, %v2001_v20  ;;  %v9811_v56 = vld [vmem:[#allocation109_spill] sm:$0xff]  ;;  %v9849_v24 = vld [vmem:[#allocation146_spill] sm:$0xff] }
 0x54e   :  { %3782 = vrot.lane.b32.xlu0 %v3774_v42, %s4993_s13  ;;  %v8373_v38 = vpop.permute.xlu0 %3250  ;;  %v9804_v42 = vrot.slane %v8237_v21, 6  ;;  %v2000_v33 = vadd.f32 %v9809_v14, %v1959_v27  ;;  %v3801_v21 = vmul.f32 %v7632_v40, %v8368_v16  ;;  %v9815_v27 = vrot.slane %v8258_v59, 6  ;;  %v9817_v31 = vld [vmem:[#allocation113_spill] sm:$0xff] }
 0x54f   :  { %v1922_v43 = vadd.f32 %v9800_v7, %v1881_v6  ;;  %9803 = vst [vmem:[#allocation19_spill] sm:$0xff] %v8373_v38  ;;  %v9805_v6 = vld [vmem:[#allocation104_spill] sm:$0xff]  ;;  %v3803_v59 = vmul.f32 %v7801_v29, %v8368_v16 }
 0x550   :  { %3708 = vrot.lane.b32.xlu1 %v3701_v19, %s4993_s13  ;;  %v3737_v10 = vsel %vm1088_vm13, %v9804_v42, %v3736_v13  ;;  %v3762_v19 = vmul.f32 %v7715_v61, %v8274_v47  ;;  %v2038_v44 = vadd.f32 %v9805_v6, %v1999_v39  ;;  %v8383_v7 = vpop.permute.xlu1 %3176  ;;  %v9810_v13 = vld [vmem:[#allocation108_spill] sm:$0xff]  ;;  %v9812_v61 = vld [vmem:[#allocation110_spill] sm:$0xff]  ;;  %v9813_v39 = vld [vmem:[#allocation111_spill] sm:$0xff] }
 0x551   :  { %v1961_v8 = vadd.f32 %v9806_v26, %v1922_v43  ;;  %9808 = vst [vmem:[#allocation21_spill] sm:$0xff] %v8383_v7  ;;  %v2081_v0 = vadd.f32 %v9812_v61, %v2040_v15  ;;  %v2039_v43 = vadd.f32 %v9813_v39, %v2000_v33  ;;  %v9816_v26 = vld [vmem:[#allocation112_spill] sm:$0xff]  ;;  %v9822_v61 = vld [vmem:[#allocation117_spill] sm:$0xff] }
 0x552   :  { %3786 = vrot.lane.b32.xlu0 %v3779_v60, %s4993_s13  ;;  %v2079_v18 = vadd.f32 %v9810_v13, %v2038_v44  ;;  %v8394_v20 = vpop.permute.xlu0 %3254  ;;  %v3742_v60 = vsel %vm1088_vm13, %v9815_v27, %v3741_v11  ;;  %v3775_v6 = vrot.slane %v3762_v19, 6  ;;  %v3765_v44 = vmul.f32 %v7959_v58, %v8274_v47  ;;  %v9820_v13 = vld [vmem:[#allocation115_spill] sm:$0xff]  ;;  %v9821_v11 = vld [vmem:[#allocation116_spill] sm:$0xff] }
 0x553   :  { %v2002_v42 = vadd.f32 %v9811_v56, %v1961_v8  ;;  %9814 = vst [vmem:[#allocation44_spill] sm:$0xff] %v8394_v20  ;;  %v2080_v56 = vadd.f32 %v9820_v13, %v2039_v43  ;;  %v9874_v38 = vld [vmem:[#allocation180_spill] sm:$0xff] }
 0x554   :  { %3745 = vrot.lane.b32.xlu1 %v3737_v10, %s4993_s13  ;;  %v2118_v8 = vadd.f32 %v9816_v26, %v2079_v18  ;;  %v8403_v14 = vpop.permute.xlu1 %3213  ;;  %v9819_v10 = vld [vmem:[#allocation114_spill] sm:$0xff]  ;;  %v8414_v18 = vstv %s8359_s23  ;;  %v3780_v26 = vrot.slane %v3765_v44, 6 }
 0x555   :  { %v2041_v15 = vadd.f32 %v9817_v31, %v2002_v42  ;;  %9818 = vst [vmem:[#allocation49_spill] sm:$0xff] %v8403_v14  ;;  %v2120_v33 = vadd.f32 %v9819_v10, %v2081_v0  ;;  %v8417_v42 = vstv %s8370_s24  ;;  %v9823_v0 = vld [vmem:[#allocation118_spill] sm:$0xff] }
 0x556   :  { %3809 = vrot.lane.b32.xlu0 %v3801_v21, %s4994_s4  ;;  %v2159_v19 = vadd.f32 %v9821_v11, %v2118_v8  ;;  %v8422_v43 = vpop.permute.xlu0 %3277  ;;  %v9825_v21 = vrot.slane %v8293_v23, 6  ;;  %v9826_v8 = vld [vmem:[#allocation119_spill] sm:$0xff]  ;;  %v3853_v23 = vmul.f32 %v7632_v40, %v8417_v42 }
 0x557   :  { %v2082_v47 = vadd.f32 %v9822_v61, %v2041_v15  ;;  %v2161_v39 = vadd.f32 %v9823_v0, %v2120_v33  ;;  %9824 = vst [vmem:[#allocation32_spill] sm:$0xff] %v8422_v43  ;;  %v2119_v31 = vadd.f32 %v9826_v8, %v2080_v56  ;;  %v9827_v15 = vld [vmem:[#allocation120_spill] sm:$0xff]  ;;  %v9830_v61 = vld [vmem:[#allocation122_spill] sm:$0xff]  ;;  %v3826_v33 = vmul.f32 %v7705_v52, %v8414_v18 }
 0x558   :  { %3749 = vrot.lane.b32.xlu1 %v3742_v60, %s4993_s13  ;;  %v3776_v27 = vsel %vm1088_vm13, %v9825_v21, %v3775_v6  ;;  %v2198_v10 = vadd.f32 %v9827_v15, %v2159_v19  ;;  %v9828_v60 = vld [vmem:[#allocation121_spill] sm:$0xff]  ;;  %v8430_v11 = vpop.permute.xlu1 %3217  ;;  %v9831_v6 = vld [vmem:[#allocation123_spill] sm:$0xff]  ;;  %v9832_v0 = vld [vmem:[#allocation124_spill] sm:$0xff]  ;;  %v9836_v15 = vrot.slane %v8319_v36, 6  ;;  %v3802_v36 = vmul.f32 %v8003_v9, %v8368_v16 }
 0x559   :  { %v2121_v13 = vadd.f32 %v9828_v60, %v2082_v47  ;;  %9829 = vst [vmem:[#allocation61_spill] sm:$0xff] %v8430_v11  ;;  %v2200_v14 = vadd.f32 %v9830_v61, %v2161_v39  ;;  %v2160_v44 = vadd.f32 %v9831_v6, %v2119_v31  ;;  %v9833_v21 = vld [vmem:[#allocation125_spill] sm:$0xff]  ;;  %v8444_v47 = vmul.f32 %v8003_v9, %v8417_v42  ;;  %v9834_v39 = vld [vmem:[#allocation126_spill] sm:$0xff] }
 0x55a   :  { %3813 = vrot.lane.b32.xlu0 %v3803_v59, %s4994_s4  ;;  %v2225_v56 = vadd.f32 %v9832_v0, %v2198_v10  ;;  %v8447_v8 = vpop.permute.xlu0 %3281  ;;  %v3781_v40 = vsel %vm1088_vm13, %v9836_v15, %v3780_v26  ;;  %v9837_v31 = vld [vmem:[#allocation129_spill] sm:$0xff]  ;;  %v9838_v10 = vld [vmem:[#allocation131_spill] sm:$0xff]  ;;  %v9857_v43 = vld [vmem:[#allocation158_spill] sm:$0xff] }
 0x55b   :  { %v2162_v19 = vadd.f32 %v9833_v21, %v2121_v13  ;;  %v2227_v59 = vadd.f32 %v9834_v39, %v2200_v14  ;;  %9835 = vst [vmem:[#allocation22_spill] sm:$0xff] %v8447_v8  ;;  %v2199_v60 = vadd.f32 %v9837_v31, %v2160_v44  ;;  %v9839_v13 = vld [vmem:[#allocation133_spill] sm:$0xff]  ;;  %v9841_v0 = vld [vmem:[#allocation135_spill] sm:$0xff]  ;;  %v3828_v14 = vmul.f32 %v7861_v17, %v8414_v18 }
 0x55c   :  { %3784 = vrot.lane.b32.xlu1 %v3776_v27, %s4993_s13  ;;  %v2250_v61 = vadd.f32 %v9838_v10, %v2225_v56  ;;  %v8455_v27 = vpop.permute.xlu1 %3252  ;;  %v3865_v39 = vrot.slane %v3853_v23, 1  ;;  %v3856_v44 = vmul.f32 %v7801_v29, %v8417_v42  ;;  %v8469_v56 = vmul.f32 %v8036_v25, %v8417_v42  ;;  %v9843_v15 = vld [vmem:[#allocation137_spill] sm:$0xff]  ;;  %v9845_v23 = vld [vmem:[#allocation139_spill] sm:$0xff] }
 0x55d   :  { %v2201_v6 = vadd.f32 %v9839_v13, %v2162_v19  ;;  %9840 = vst [vmem:[#allocation23_spill] sm:$0xff] %v8455_v27  ;;  %v2252_v21 = vadd.f32 %v9841_v0, %v2227_v59  ;;  %v8472_v19 = vstv %s8419_s5  ;;  %v9846_v13 = vld [vmem:[#allocation141_spill] sm:$0xff]  ;;  %v9848_v27 = vld [vmem:[#allocation144_spill] sm:$0xff] }
 0x55e   :  { %3834 = vrot.lane.b32.xlu0 %v3826_v33, %s4994_s4  ;;  %v9842_v33 = vld [vmem:[#allocation136_spill] sm:$0xff]  ;;  %v2291_v31 = vadd.f32 %v9843_v15, %v2250_v61  ;;  %v8476_v10 = vpop.permute.xlu0 %3302  ;;  %v8491_v61 = vmul.f32 %v7831_v51, %v8472_v19  ;;  %v9852_v15 = vld [vmem:[#allocation151_spill] sm:$0xff] }
 0x55f   :  { %v2226_v59 = vadd.f32 %v9842_v33, %v2199_v60  ;;  %9844 = vst [vmem:[#allocation56_spill] sm:$0xff] %v8476_v10  ;;  %v2293_v0 = vadd.f32 %v9846_v13, %v2252_v21  ;;  %v3892_v60 = vmul.f32 %v7705_v52, %v8472_v19  ;;  %v3870_v33 = vrot.slane %v3856_v44, 1 }
 0x560   :  { %3788 = vrot.lane.b32.xlu1 %v3781_v40, %s4993_s13  ;;  %v2228_v40 = vadd.f32 %v9845_v23, %v2201_v6  ;;  %v8482_v26 = vpop.permute.xlu1 %3256  ;;  %v2330_v7 = vadd.f32 %v9849_v24, %v2291_v31  ;;  %v9850_v6 = vrot.slane %v8444_v47, 1  ;;  %v9308_v24 = vrot.slane %v8469_v56, 1  ;;  %v9854_v23 = vld [vmem:[#allocation152_spill] sm:$0xff]  ;;  %s8815_s13 = sld [smem:[#allocation5 + $0x29]] }
 0x561   :  { %9847 = vst [vmem:[#allocation37_spill] sm:$0xff] %v8482_v26  ;;  %v2251_v11 = vadd.f32 %v9848_v27, %v2226_v59  ;;  %v3804_v27 = vmul.f32 %v8036_v25, %v8368_v16  ;;  %v2332_v52 = vadd.f32 %v9852_v15, %v2293_v0  ;;  %v9855_v26 = vld [vmem:[#allocation154_spill] sm:$0xff]  ;;  %v3904_v44 = vrot.slane %v3892_v60, 1  ;;  %v9859_v0 = vld [vmem:[#allocation161_spill] sm:$0xff] }
 0x562   :  { %3838 = vrot.lane.b32.xlu0 %v3828_v14, %s4994_s4  ;;  %v3867_v21 = vsel %vm764_vm9, %v3865_v39, %v9850_v6  ;;  %v9851_v14 = vld [vmem:[#allocation148_spill] sm:$0xff]  ;;  %v8502_v31 = vpop.permute.xlu0 %3306  ;;  %v9862_v15 = vld [vmem:[#allocation165_spill] sm:$0xff] }
 0x563   :  { %v2253_v59 = vadd.f32 %v9851_v14, %v2228_v40  ;;  %9853 = vst [vmem:[#allocation46_spill] sm:$0xff] %v8502_v31  ;;  %v2292_v13 = vadd.f32 %v9854_v23, %v2251_v11  ;;  %v9858_v6 = vld [vmem:[#allocation160_spill] sm:$0xff]  ;;  %v3872_v11 = vsel %vm764_vm9, %v3870_v33, %v9308_v24  ;;  %v3855_v33 = vmul.f32 %v7989_v1, %v8417_v42  ;;  %v9863_v23 = vld [vmem:[#allocation167_spill] sm:$0xff]  ;;  %v9865_v40 = vld [vmem:[#allocation169_spill] sm:$0xff] }
 0x564   :  { %3811 = vrot.lane.b32.xlu1 %v3802_v36, %s4994_s4  ;;  %v2371_v36 = vadd.f32 %v9855_v26, %v2330_v7  ;;  %v8506_v10 = vpop.permute.xlu1 %3279  ;;  %v2373_v16 = vadd.f32 %v9858_v6, %v2332_v52  ;;  %v3827_v7 = vmul.f32 %v7831_v51, %v8414_v18  ;;  %v3895_v26 = vmul.f32 %v7861_v17, %v8472_v19  ;;  %v9866_v31 = vld [vmem:[#allocation170_spill] sm:$0xff] }
 0x565   :  { %9856 = vst [vmem:[#allocation51_spill] sm:$0xff] %v8506_v10  ;;  %v2294_v39 = vadd.f32 %v9857_v43, %v2253_v59  ;;  %v8522_v43 = vmul.f32 %v7734_v12, %v8472_v19  ;;  %v2331_v60 = vadd.f32 %v9859_v0, %v2292_v13  ;;  %v8533_v59 = vstv %s8478_s6 }
 0x566   :  { %3875 = vrot.lane.b32.xlu0 %v3867_v21, %s4994_s4  ;;  %v9860_v21 = vld [vmem:[#allocation163_spill] sm:$0xff]  ;;  %v8528_v14 = vpop.permute.xlu0 %3343  ;;  %v2412_v6 = vadd.f32 %v9863_v23, %v2373_v16  ;;  %v9867_v13 = vrot.slane %v8491_v61, 1  ;;  %v3829_v0 = vmul.f32 %v7734_v12, %v8414_v18  ;;  %v3868_v18 = vrot.slane %v3855_v33, 1  ;;  %v9871_v23 = vld [vmem:[#allocation177_spill] sm:$0xff] }
 0x567   :  { %9861 = vst [vmem:[#allocation34_spill] sm:$0xff] %v8528_v14  ;;  %v2333_v52 = vadd.f32 %v9862_v15, %v2294_v39  ;;  %v2372_v10 = vadd.f32 %v9865_v40, %v2331_v60  ;;  %v3909_v39 = vrot.slane %v3895_v26, 1  ;;  %v9870_v26 = vld [vmem:[#allocation175_spill] sm:$0xff]  ;;  %v8574_v33 = vmul.f32 %v8036_v25, %v8533_v59 }
 0x568   :  { %3815 = vrot.lane.b32.xlu1 %v3804_v27, %s4994_s4  ;;  %v2410_v27 = vadd.f32 %v9860_v21, %v2371_v36  ;;  %v8537_v24 = vpop.permute.xlu1 %3283  ;;  %v3906_v36 = vsel %vm764_vm9, %v3904_v44, %v9867_v13  ;;  %v8549_v21 = vld [vmem:[#allocation4] sm:$0xff]  ;;  %v9869_v44 = vld [vmem:[#allocation173_spill] sm:$0xff] }
 0x569   :  { %9864 = vst [vmem:[#allocation63_spill] sm:$0xff] %v8537_v24  ;;  %v3933_v40 = vmul.f32 %v8549_v21, %v8533_v59  ;;  %v2411_v15 = vadd.f32 %v9870_v26, %v2372_v10  ;;  %v9873_v24 = vld [vmem:[#allocation178_spill] sm:$0xff] }
 0x56a   :  { %v2451_v8 = vadd.f32 %v9866_v31, %v2410_v27  ;;  %3879 = vrot.lane.b32.xlu0 %v3872_v11, %s4994_s4  ;;  %v8555_v31 = vmul.f32 %v8003_v9, %v8533_v59  ;;  %v9868_v11 = vld [vmem:[#allocation172_spill] sm:$0xff]  ;;  %v2453_v27 = vadd.f32 %v9869_v44, %v2412_v6  ;;  %v8582_v6 = vstv %s8524_s7  ;;  %v9880_v26 = vld [vmem:[#allocation186_spill] sm:$0xff] }
 0x56b   :  { %v2374_v60 = vadd.f32 %v9868_v11, %v2333_v52  ;;  %v8559_v12 = vpop.permute.xlu0 %3347  ;;  %v3936_v52 = vmul.f32 %v7801_v29, %v8533_v59  ;;  %v3945_v10 = vrot.slane %v3933_v40, 2  ;;  %v9878_v11 = vrot.slane %v8444_v47, 1  ;;  %v8592_v44 = vld [vmem:[#allocation4 + $0x28] sm:$0x3f]  ;;  %v9879_v40 = vld [vmem:[#allocation183_spill] sm:$0xff] }
 0x56c   :  { %3836 = vrot.lane.b32.xlu1 %v3827_v7, %s4994_s4  ;;  %v3858_v7 = vmul.f32 %v8132_v5, %v8417_v42  ;;  %v2490_v13 = vadd.f32 %v9871_v23, %v2451_v8  ;;  %v8565_v16 = vpop.permute.xlu1 %3304  ;;  %v2492_v20 = vadd.f32 %v9874_v38, %v2453_v27  ;;  %v9875_v42 = vrot.slane %v8522_v43, 1  ;;  %v9876_v38 = vld [vmem:[#allocation181_spill] sm:$0xff] }
 0x56d   :  { %9872 = vst [vmem:[#allocation24_spill] sm:$0xff] %v8565_v16  ;;  %v2413_v14 = vadd.f32 %v9873_v24, %v2374_v60  ;;  %v3869_v60 = vsel %vm764_vm9, %v9878_v11, %v3868_v18  ;;  %v3950_v47 = vrot.slane %v3936_v52, 2  ;;  %v8616_v52 = vmul.f32 %v7831_v51, %v8582_v6  ;;  %v9891_v51 = vld [vmem:[#allocation199_spill] sm:$0xff] }
 0x56e   :  { %3914 = vrot.lane.b32.xlu0 %v3906_v36, %s4994_s4  ;;  %v3911_v8 = vsel %vm764_vm9, %v3909_v39, %v9875_v42  ;;  %v2452_v36 = vadd.f32 %v9876_v38, %v2411_v15  ;;  %v3894_v39 = vmul.f32 %v8592_v44, %v8472_v19  ;;  %v2531_v27 = vadd.f32 %v9879_v40, %v2490_v13  ;;  %v9881_v42 = vld [vmem:[#allocation187_spill] sm:$0xff]  ;;  %v9883_v15 = vld [vmem:[#allocation189_spill] sm:$0xff] }
 0x56f   :  { %v2454_v23 = vadd.f32 %v9880_v26, %v2413_v14  ;;  %v2533_v24 = vadd.f32 %v9881_v42, %v2492_v20  ;;  %v9885_v40 = vld [vmem:[#allocation193_spill] sm:$0xff]  ;;  %v9886_v20 = vrot.slane %v8555_v31, 2 }
 0x570   :  { %3840 = vrot.lane.b32.xlu1 %v3829_v0, %s4994_s4  ;;  %v8587_v29 = vpop.permute.xlu0 %3382  ;;  %v3873_v0 = vrot.slane %v3858_v7, 1  ;;  %v8599_v16 = vpop.permute.xlu1 %3308  ;;  %v2491_v38 = vadd.f32 %v9883_v15, %v2452_v36  ;;  %v8604_v7 = vld [vmem:[#allocation4 + $0x18] sm:$0xff]  ;;  %v9888_v15 = vrot.slane %v8469_v56, 1  ;;  %v9893_v56 = vrot.slane %v8574_v33, 2 }
 0x571   :  { %9877 = vst [vmem:[#allocation25_spill] sm:$0xff] %v8587_v29  ;;  %9882 = vst [vmem:[#allocation39_spill] sm:$0xff] %v8599_v16  ;;  %v3972_v11 = vmul.f32 %v8604_v7, %v8582_v6  ;;  %v9884_v29 = vld [vmem:[#allocation190_spill] sm:$0xff]  ;;  %v2493_v14 = vadd.f32 %v9885_v40, %v2454_v23  ;;  %v3947_v36 = vsel %vm829_vm10, %v3945_v10, %v9886_v20  ;;  %v9889_v23 = vld [vmem:[#allocation195_spill] sm:$0xff] }
 0x572   :  { %3918 = vrot.lane.b32.xlu0 %v3911_v8, %s4994_s4  ;;  %v2570_v13 = vadd.f32 %v9884_v29, %v2531_v27  ;;  %v9887_v8 = vld [vmem:[#allocation194_spill] sm:$0xff]  ;;  %v3874_v29 = vsel %vm764_vm9, %v9888_v15, %v3873_v0  ;;  %v3907_v27 = vrot.slane %v3894_v39, 1  ;;  %v2532_v40 = vadd.f32 %v9889_v23, %v2491_v38  ;;  %v9890_v10 = vld [vmem:[#allocation196_spill] sm:$0xff] }
 0x573   :  { %v2572_v26 = vadd.f32 %v9887_v8, %v2533_v24  ;;  %v2534_v16 = vadd.f32 %v9891_v51, %v2493_v14  ;;  %v9892_v24 = vld [vmem:[#allocation127_spill] sm:$0xff]  ;;  %v3952_v0 = vsel %vm829_vm10, %v3950_v47, %v9893_v56  ;;  %v3984_v39 = vrot.slane %v3972_v11, 2 }
 0x574   :  { %3877 = vrot.lane.b32.xlu1 %v3869_v60, %s4994_s4  ;;  %v8619_v42 = vpop.permute.xlu0 %3386  ;;  %v3897_v60 = vmul.f32 %v7959_v58, %v8472_v19  ;;  %v2611_v20 = vadd.f32 %v9890_v10, %v2570_v13  ;;  %v3985_v19 = vrot.slane %v8616_v52, 2  ;;  %v3975_v38 = vmul.f32 %v7861_v17, %v8582_v6  ;;  %v8640_v13 = vld [vmem:[#allocation4 + $0x50] sm:$0xff]  ;;  %v9896_v10 = vld [vmem:[#allocation132_spill] sm:$0xff] }
 0x575   :  { %v2613_v8 = vadd.f32 %v9892_v24, %v2572_v26  ;;  %v8644_v14 = vmul.f32 %v8640_v13, %v8582_v6  ;;  %v8647_v26 = vstv %s8584_s8  ;;  %v9895_v47 = vrot.slane %v8491_v61, 1 }
 0x576   :  { %v8628_v18 = vpop.permute.xlu1 %3345  ;;  %3955 = vrot.lane.b32.xlu0 %v3947_v36, %s4994_s4  ;;  %v9894_v36 = vld [vmem:[#allocation130_spill] sm:$0xff]  ;;  %v3935_v17 = vmul.f32 %v7989_v1, %v8533_v59  ;;  %v2650_v51 = vadd.f32 %v9896_v10, %v2611_v20  ;;  %v2573_v24 = vadd.f32 %v7428_v45, %v2534_v16  ;;  %v4013_v61 = vmul.f32 %v8549_v21, %v8647_v26 }
 0x577   :  { %v2571_v15 = vadd.f32 %v9894_v36, %v2532_v40  ;;  %v3908_v11 = vsel %vm764_vm9, %v9895_v47, %v3907_v27  ;;  %v2652_v40 = vadd.f32 %v7449_v30, %v2613_v8  ;;  %v8670_v27 = vmul.f32 %v8003_v9, %v8647_v26 }
 0x578   :  { %3881 = vrot.lane.b32.xlu1 %v3874_v29, %s4994_s4  ;;  %v8650_v23 = vpop.permute.xlu0 %3423  ;;  %v3912_v29 = vrot.slane %v3897_v60, 1  ;;  %v2691_v60 = vadd.f32 %v7483_v46, %v2650_v51  ;;  %v3986_v45 = vsel %vm829_vm10, %v3984_v39, %v3985_v19  ;;  %v3989_v30 = vrot.slane %v3975_v38, 2 }
 0x579   :  { %v2612_v36 = vadd.f32 %v7462_v54, %v2571_v15  ;;  %v3990_v54 = vrot.slane %v8644_v14, 2  ;;  %v2614_v16 = vadd.f32 %v7493_v62, %v2573_v24  ;;  %v9897_v8 = vrot.slane %v8522_v43, 1  ;;  %v9912_v14 = vld [vmem:[#allocation182_spill] sm:$0xff] }
 0x57a   :  { %v8661_v56 = vpop.permute.xlu1 %3349  ;;  %3959 = vrot.lane.b32.xlu0 %v3952_v0, %s4994_s4  ;;  %v3948_v15 = vrot.slane %v3935_v17, 2  ;;  %v3938_v46 = vmul.f32 %v8132_v5, %v8533_v59  ;;  %v2693_v47 = vadd.f32 %v7511_v34, %v2652_v40  ;;  %v2730_v38 = vadd.f32 %v7548_v41, %v2691_v60 }
 0x57b   :  { %v3913_v0 = vsel %vm764_vm9, %v9897_v8, %v3912_v29  ;;  %v2653_v62 = vadd.f32 %v7562_v37, %v2614_v16  ;;  %v4025_v43 = vrot.slane %v4013_v61, 3  ;;  %v4026_v29 = vrot.slane %v8670_v27, 3 }
 0x57c   :  { %3916 = vrot.lane.b32.xlu1 %v3908_v11, %s4994_s4  ;;  %v8679_v20 = vpop.permute.xlu0 %3427  ;;  %v2651_v11 = vadd.f32 %v7525_v50, %v2612_v36  ;;  %v2732_v17 = vadd.f32 %v7582_v57, %v2693_v47  ;;  %v3991_v34 = vsel %vm829_vm10, %v3989_v30, %v3990_v54  ;;  %v8699_v50 = vld [vmem:[#allocation4 + $0x30] sm:$0xff]  ;;  %v8705_v37 = vmul.f32 %v8036_v25, %v8647_v26 }
 0x57d   :  { %v4016_v41 = vmul.f32 %v8699_v50, %v8647_v26  ;;  %v9898_v57 = vrot.slane %v8555_v31, 2  ;;  %v3953_v51 = vrot.slane %v3938_v46, 2  ;;  %v3974_v24 = vmul.f32 %v8592_v44, %v8582_v6 }
 0x57e   :  { %v8688_v39 = vpop.permute.xlu1 %3384  ;;  %3994 = vrot.lane.b32.xlu0 %v3986_v45, %s4994_s4  ;;  %v8717_v40 = vstv %s8657_s10  ;;  %v2692_v36 = vadd.f32 %v7592_v53, %v2651_v11  ;;  %v2757_v60 = vadd.f32 %v7615_v49, %v2730_v38  ;;  %v2694_v45 = vadd.f32 %v7627_v3, %v2653_v62  ;;  %v9900_v62 = vld [vmem:[#allocation128_spill] sm:$0xff] }
 0x57f   :  { %v3949_v10 = vsel %vm829_vm10, %v9898_v57, %v3948_v15  ;;  %v2759_v30 = vadd.f32 %v7649_v22, %v2732_v17  ;;  %v4027_v31 = vsel %vm894_vm11, %v4025_v43, %v4026_v29  ;;  %v4030_v16 = vrot.slane %v4016_v41, 3 }
 0x580   :  { %3920 = vrot.lane.b32.xlu1 %v3913_v0, %s4994_s4  ;;  %v8709_v59 = vpop.permute.xlu0 %3462  ;;  %v4031_v8 = vrot.slane %v8705_v37, 3  ;;  %v4052_v53 = vmul.f32 %v8604_v7, %v8717_v40  ;;  %v8733_v0 = vld [vmem:[#allocation4 + $0x20] sm:$0xff]  ;;  %v9899_v15 = vrot.slane %v8574_v33, 2  ;;  %v3987_v47 = vrot.slane %v3974_v24, 2  ;;  %v8754_v33 = vld [vmem:[#allocation4 + $0x48] sm:$0xff] }
 0x581   :  { %v8737_v49 = vmul.f32 %v8733_v0, %v8717_v40  ;;  %v2784_v3 = vadd.f32 %v7719_v35, %v2759_v30  ;;  %v3977_v11 = vmul.f32 %v7959_v58, %v8582_v6  ;;  %v2731_v38 = vadd.f32 %v7659_v2, %v2692_v36 }
 0x582   :  { %v8720_v61 = vpop.permute.xlu1 %3388  ;;  %3998 = vrot.lane.b32.xlu0 %v3991_v34, %s4994_s4  ;;  %v3954_v46 = vsel %vm829_vm10, %v9899_v15, %v3953_v51  ;;  %v2782_v43 = vadd.f32 %v9900_v62, %v2757_v60  ;;  %v9901_v34 = vld [vmem:[#allocation162_spill] sm:$0xff]  ;;  %v4055_v57 = vmul.f32 %v8754_v33, %v8717_v40  ;;  %v8760_v58 = vmul.f32 %v8640_v13, %v8717_v40 }
 0x583   :  { %v2733_v41 = vadd.f32 %v9901_v34, %v2694_v45  ;;  %v2825_v35 = vadd.f32 %v7785_v55, %v2784_v3  ;;  %v4032_v2 = vsel %vm894_vm11, %v4030_v16, %v4031_v8  ;;  %v4064_v6 = vrot.slane %v4052_v53, 3  ;;  %v9902_v51 = vld [vmem:[#allocation138_spill] sm:$0xff]  ;;  %v9907_v34 = vld [vmem:[#allocation143_spill] sm:$0xff] }
 0x584   :  { %3957 = vrot.lane.b32.xlu1 %v3949_v10, %s4994_s4  ;;  %v8740_v22 = vpop.permute.xlu0 %3466  ;;  %v9310_v55 = vrot.slane %v8737_v49, 3  ;;  %v8768_v10 = vstv %s8707_s11  ;;  %v2823_v24 = vadd.f32 %v9902_v51, %v2782_v43  ;;  %v3988_v60 = vsel %vm829_vm10, %v3985_v19, %v3987_v47  ;;  %v9905_v47 = vld [vmem:[#allocation134_spill] sm:$0xff] }
 0x585   :  { %v3992_v45 = vrot.slane %v3977_v11, 2  ;;  %v4015_v30 = vmul.f32 %v7989_v1, %v8647_v26  ;;  %v2760_v53 = vadd.f32 %v7766_v63, %v2733_v41  ;;  %v2864_v3 = vadd.f32 %v7842_v48, %v2825_v35  ;;  %v9906_v11 = vld [vmem:[#allocation171_spill] sm:$0xff] }
 0x586   :  { %v8749_v17 = vpop.permute.xlu1 %3425  ;;  %4035 = vrot.lane.b32.xlu0 %v4027_v31, %s4994_s4  ;;  %v9903_v31 = vld [vmem:[#allocation164_spill] sm:$0xff]  ;;  %v4069_v43 = vrot.slane %v4055_v57, 3  ;;  %v9309_v52 = vrot.slane %v8760_v58, 3  ;;  %v4093_v19 = vmul.f32 %v8549_v21, %v8768_v10  ;;  %v4066_v63 = vsel %vm894_vm11, %v4064_v6, %v9310_v55 }
 0x587   :  { %v2758_v16 = vadd.f32 %v9903_v31, %v2731_v38  ;;  %v2905_v38 = vadd.f32 %v9906_v11, %v2864_v3  ;;  %v8798_v48 = vmul.f32 %v8003_v9, %v8768_v10  ;;  %v3993_v57 = vsel %vm829_vm10, %v3990_v54, %v3992_v45  ;;  %v9909_v6 = vld [vmem:[#allocation168_spill] sm:$0xff] }
 0x588   :  { %3961 = vrot.lane.b32.xlu1 %v3954_v46, %s4994_s4  ;;  %v8773_v36 = vpop.permute.xlu0 %3503  ;;  %v9904_v46 = vld [vmem:[#allocation155_spill] sm:$0xff]  ;;  %v4018_v51 = vmul.f32 %v8132_v5, %v8647_v26  ;;  %v4071_v26 = vsel %vm894_vm11, %v4069_v43, %v9309_v52  ;;  %v4105_v45 = vrot.slane %v4093_v19, 4  ;;  %v8832_v11 = vstv %s8770_s12  ;;  %v9915_v19 = vld [vmem:[#allocation156_spill] sm:$0xff] }
 0x589   :  { %v2862_v62 = vadd.f32 %v9904_v46, %v2823_v24  ;;  %v2783_v1 = vadd.f32 %v9905_v47, %v2758_v16  ;;  %v9908_v24 = vld [vmem:[#allocation140_spill] sm:$0xff]  ;;  %v9910_v16 = vld [vmem:[#allocation145_spill] sm:$0xff]  ;;  %v4096_v46 = vmul.f32 %v8699_v50, %v8768_v10  ;;  %v9311_v47 = vrot.slane %v8798_v48, 4 }
 0x58a   :  { %v8783_v15 = vpop.permute.xlu1 %3429  ;;  %4039 = vrot.lane.b32.xlu0 %v4032_v2, %s4994_s4  ;;  %v4028_v2 = vrot.slane %v4015_v30, 3  ;;  %v2944_v9 = vadd.f32 %v9910_v16, %v2905_v38  ;;  %v8824_v30 = vmul.f32 %v8036_v25, %v8768_v10  ;;  %v9914_v38 = vld [vmem:[#allocation142_spill] sm:$0xff]  ;;  %v4033_v43 = vrot.slane %v4018_v51, 3  ;;  %v9918_v51 = vld [vmem:[#allocation179_spill] sm:$0xff] }
 0x58b   :  { %v2903_v41 = vadd.f32 %v9907_v34, %v2862_v62  ;;  %v2824_v31 = vadd.f32 %v9909_v6, %v2783_v1  ;;  %v4054_v1 = vmul.f32 %v8592_v44, %v8717_v40  ;;  %v9917_v6 = vld [vmem:[#allocation153_spill] sm:$0xff]  ;;  %v8851_v27 = vmul.f32 %v8733_v0, %v8832_v11 }
 0x58c   :  { %3996 = vrot.lane.b32.xlu1 %v3988_v60, %s4994_s4  ;;  %v8801_v35 = vpop.permute.xlu0 %3507  ;;  %v2785_v60 = vadd.f32 %v9908_v24, %v2760_v53  ;;  %v9913_v53 = vld [vmem:[#allocation150_spill] sm:$0xff]  ;;  %v4029_v25 = vsel %vm894_vm11, %v4026_v29, %v4028_v2  ;;  %v9916_v24 = vld [vmem:[#allocation176_spill] sm:$0xff] }
 0x58d   :  { %v2942_v54 = vadd.f32 %v9912_v14, %v2903_v41  ;;  %v2985_v62 = vadd.f32 %v9913_v53, %v2944_v9  ;;  %v2863_v41 = vadd.f32 %v9915_v19, %v2824_v31  ;;  %v4110_v14 = vrot.slane %v4096_v46, 4  ;;  %v8853_v29 = vld [vmem:[#allocation4 + $0x58] sm:$0x3f]  ;;  %v9919_v46 = vld [vmem:[#allocation200_spill] sm:$0xff] }
 0x58e   :  { %v8811_v3 = vpop.permute.xlu1 %3464  ;;  %4074 = vrot.lane.b32.xlu0 %v4066_v63, %s4994_s4  ;;  %v2826_v63 = vadd.f32 %v9914_v38, %v2785_v60  ;;  %v9312_v60 = vrot.slane %v8824_v30, 4  ;;  %v4132_v53 = vmul.f32 %v8604_v7, %v8832_v11  ;;  %v4057_v2 = vmul.f32 %v8853_v29, %v8717_v40  ;;  %v9920_v38 = vld [vmem:[#allocation174_spill] sm:$0xff] }
 0x58f   :  { %9911 = vst [vmem:[#allocation58_spill] sm:$0xff] %v8811_v3  ;;  %v3024_v16 = vadd.f32 %v9917_v6, %v2985_v62  ;;  %v4067_v62 = vrot.slane %v4054_v1, 3  ;;  %v4034_v40 = vsel %vm894_vm11, %v4031_v8, %v4033_v43  ;;  %v8881_v1 = vstv %s8815_s13 }
 0x590   :  { %4000 = vrot.lane.b32.xlu1 %v3993_v57, %s4994_s4  ;;  %v8835_v34 = vpop.permute.xlu0 %3542  ;;  %v2983_v57 = vadd.f32 %v9916_v24, %v2942_v54  ;;  %v2865_v19 = vadd.f32 %v9920_v38, %v2826_v63  ;;  %v9921_v24 = vld [vmem:[#allocation147_spill] sm:$0xff]  ;;  %v4112_v37 = vsel %vm52_vm0, %v4110_v14, %v9312_v60  ;;  %v4144_v8 = vrot.slane %v4132_v53, 4  ;;  %v8899_v53 = vld [vmem:[#allocation4 + $0x10] sm:$0x3f] }
 0x591   :  { %v3065_v54 = vadd.f32 %v9919_v46, %v3024_v16  ;;  %v2904_v6 = vadd.f32 %v9921_v24, %v2863_v41  ;;  %v9922_v16 = vld [vmem:[#allocation185_spill] sm:$0xff]  ;;  %v4072_v43 = vrot.slane %v4057_v2, 3  ;;  %v9925_v41 = vld [vmem:[#allocation159_spill] sm:$0xff]  ;;  %v4095_v2 = vmul.f32 %v8899_v53, %v8768_v10 }
 0x592   :  { %v8843_v9 = vpop.permute.xlu1 %3468  ;;  %4078 = vrot.lane.b32.xlu0 %v4071_v26, %s4994_s4  ;;  %v3022_v31 = vadd.f32 %v9918_v51, %v2983_v57  ;;  %v4107_v26 = vsel %vm52_vm0, %v4105_v45, %v9311_v47  ;;  %v4135_v57 = vmul.f32 %v8754_v33, %v8832_v11  ;;  %v9923_v51 = vld [vmem:[#allocation157_spill] sm:$0xff]  ;;  %v8878_v45 = vmul.f32 %v8640_v13, %v8832_v11 }
 0x593   :  { %v3104_v46 = vadd.f32 %v9923_v51, %v3065_v54  ;;  %v9926_v54 = vld [vmem:[#allocation188_spill] sm:$0xff]  ;;  %v9927_v24 = vld [vmem:[#allocation17_spill] sm:$0xff] }
 0x594   :  { %4037 = vrot.lane.b32.xlu1 %v4029_v25, %s4994_s4  ;;  %v8865_v52 = vpop.permute.xlu0 %3546  ;;  %v3063_v25 = vadd.f32 %v9922_v16, %v3022_v31  ;;  %v2906_v31 = vadd.f32 %v9925_v41, %v2865_v19  ;;  %v4149_v14 = vrot.slane %v4135_v57, 4  ;;  %v4173_v19 = vmul.f32 %v8549_v21, %v8881_v1  ;;  %v9932_v60 = vld [vmem:[#allocation197_spill] sm:$0xff] }
 0x595   :  { %v3145_v16 = vadd.f32 %v9927_v24, %v3104_v46  ;;  %v9931_v24 = vld [vmem:[#allocation184_spill] sm:$0xff] }
 0x596   :  { %v8874_v55 = vpop.permute.xlu1 %3505  ;;  %4115 = vrot.lane.b32.xlu0 %v4107_v26, %s4994_s4  ;;  %v3102_v38 = vadd.f32 %v9926_v54, %v3063_v25  ;;  %v9928_v26 = vrot.slane %v8737_v49, 3  ;;  %v8905_v25 = vld [vmem:[#allocation4 + $0x8] sm:$0xff]  ;;  %v4098_v54 = vmul.f32 %v8132_v5, %v8768_v10  ;;  %v2945_v63 = vadd.f32 %v9932_v60, %v2906_v31  ;;  %v8932_v10 = vld [vmem:[#allocation4 + $0x38] sm:$0xff] }
 0x597   :  { %9924 = vst [vmem:[#allocation48_spill] sm:$0xff] %v8874_v55  ;;  %v9929_v49 = vld [vmem:[#allocation192_spill] sm:$0xff]  ;;  %v9933_v55 = vrot.slane %v8851_v27, 4  ;;  %v4176_v5 = vmul.f32 %v8699_v50, %v8881_v1  ;;  %v8936_v60 = vmul.f32 %v8932_v10, %v8881_v1 }
 0x598   :  { %4041 = vrot.lane.b32.xlu1 %v4034_v40, %s4994_s4  ;;  %v4068_v51 = vsel %vm894_vm11, %v9928_v26, %v4067_v62  ;;  %v8897_v47 = vpop.permute.xlu0 %3583  ;;  %v8909_v40 = vmul.f32 %v8905_v25, %v8881_v1  ;;  %v3143_v46 = vadd.f32 %v9929_v49, %v3102_v38  ;;  %v3184_v62 = vadd.f32 %v8296_v4, %v3145_v16  ;;  %v9935_v16 = vld [vmem:[#allocation18_spill] sm:$0xff]  ;;  %v9937_v31 = vld [vmem:[#allocation44_spill] sm:$0xff] }
 0x599   :  { %v2943_v26 = vadd.f32 %v9931_v24, %v2904_v6  ;;  %v4146_v3 = vsel %vm52_vm0, %v4144_v8, %v9933_v55  ;;  %v9934_v38 = vrot.slane %v8760_v58, 3  ;;  %v9936_v55 = vld [vmem:[#allocation166_spill] sm:$0xff]  ;;  %v4185_v8 = vrot.slane %v4173_v19, 5 }
 0x59a   :  { %v8913_v41 = vpop.permute.xlu1 %3509  ;;  %4119 = vrot.lane.b32.xlu0 %v4112_v37, %s4994_s4  ;;  %v3182_v49 = vadd.f32 %v9935_v16, %v3143_v46  ;;  %v3225_v57 = vadd.f32 %v8345_v28, %v3184_v62  ;;  %v2986_v58 = vadd.f32 %v9936_v55, %v2945_v63  ;;  %v4108_v37 = vrot.slane %v4095_v2, 4  ;;  %v9940_v16 = vld [vmem:[#allocation149_spill] sm:$0xff]  ;;  %v9941_v63 = vld [vmem:[#allocation198_spill] sm:$0xff] }
 0x59b   :  { %9930 = vst [vmem:[#allocation53_spill] sm:$0xff] %v8913_v41  ;;  %v4073_v4 = vsel %vm894_vm11, %v9934_v38, %v4072_v43  ;;  %v9939_v62 = vrot.slane %v8878_v45, 4  ;;  %v4113_v38 = vrot.slane %v4098_v54, 4  ;;  %v2984_v41 = vadd.f32 %v9940_v16, %v2943_v26  ;;  %v9944_v54 = vld [vmem:[#allocation191_spill] sm:$0xff] }
 0x59c   :  { %4076 = vrot.lane.b32.xlu1 %v4068_v51, %s4994_s4  ;;  %v8939_v6 = vpop.permute.xlu0 %3587  ;;  %v3223_v43 = vadd.f32 %v8324_v32, %v3182_v49  ;;  %v3264_v51 = vadd.f32 %v9937_v31, %v3225_v57  ;;  %v3025_v55 = vadd.f32 %v9941_v63, %v2986_v58  ;;  %v4134_v2 = vmul.f32 %v8592_v44, %v8832_v11  ;;  %v9942_v32 = vld [vmem:[#allocation19_spill] sm:$0xff]  ;;  %v9943_v49 = vld [vmem:[#allocation22_spill] sm:$0xff]  ;;  %v9945_v58 = vld [vmem:[#allocation16_spill] sm:$0xff] }
 0x59d   :  { %v4151_v24 = vsel %vm52_vm0, %v4149_v14, %v9939_v62  ;;  %v8955_v19 = vstv %s8888_s15  ;;  %v4190_v28 = vrot.slane %v4176_v5, 5  ;;  %v3023_v26 = vadd.f32 %v9944_v54, %v2984_v41 }
 0x59e   :  { %v8944_v46 = vpop.permute.xlu1 %3544  ;;  %4154 = vrot.lane.b32.xlu0 %v4146_v3, %s4994_s4  ;;  %v3262_v57 = vadd.f32 %v9942_v32, %v3223_v43  ;;  %v3291_v31 = vadd.f32 %v9943_v49, %v3264_v51  ;;  %v3066_v3 = vadd.f32 %v9945_v58, %v3025_v55  ;;  %v9946_v16 = vrot.slane %v8798_v48, 4  ;;  %v9949_v32 = vld [vmem:[#allocation46_spill] sm:$0xff]  ;;  %v9951_v48 = vld [vmem:[#allocation15_spill] sm:$0xff] }
 0x59f   :  { %9938 = vst [vmem:[#allocation65_spill] sm:$0xff] %v8944_v46  ;;  %v9947_v43 = vrot.slane %v8909_v40, 5  ;;  %v4212_v41 = vmul.f32 %v8604_v7, %v8955_v19  ;;  %v8981_v55 = vmul.f32 %v8733_v0, %v8955_v19  ;;  %v3064_v54 = vadd.f32 %v9951_v48, %v3023_v26  ;;  %v9956_v48 = vld [vmem:[#allocation42_spill] sm:$0xff] }
 0x5a0   :  { %4080 = vrot.lane.b32.xlu1 %v4073_v4, %s4994_s4  ;;  %v8965_v62 = vpop.permute.xlu0 %3622  ;;  %v4109_v63 = vsel %vm52_vm0, %v9946_v16, %v4108_v37  ;;  %v9948_v4 = vld [vmem:[#allocation32_spill] sm:$0xff]  ;;  %v3316_v49 = vadd.f32 %v9949_v32, %v3291_v31  ;;  %v9952_v37 = vld [vmem:[#allocation35_spill] sm:$0xff]  ;;  %v9955_v26 = vrot.slane %v8936_v60, 5 }
 0x5a1   :  { %v4187_v51 = vsel %vm1023_vm12, %v4185_v8, %v9947_v43  ;;  %v3289_v5 = vadd.f32 %v9948_v4, %v3262_v57  ;;  %v3105_v58 = vadd.f32 %v9952_v37, %v3066_v3  ;;  %v4147_v8 = vrot.slane %v4134_v2, 4  ;;  %v9953_v31 = vld [vmem:[#allocation56_spill] sm:$0xff] }
 0x5a2   :  { %v8975_v14 = vpop.permute.xlu1 %3548  ;;  %4158 = vrot.lane.b32.xlu0 %v4151_v24, %s4994_s4  ;;  %v4137_v57 = vmul.f32 %v8853_v29, %v8832_v11  ;;  %v3357_v43 = vadd.f32 %v8559_v12, %v3316_v49  ;;  %v9954_v4 = vrot.slane %v8824_v30, 4  ;;  %v4192_v3 = vsel %vm1023_vm12, %v4190_v28, %v9955_v26  ;;  %v9957_v2 = vld [vmem:[#allocation20_spill] sm:$0xff]  ;;  %v9958_v30 = vld [vmem:[#allocation34_spill] sm:$0xff] }
 0x5a3   :  { %9950 = vst [vmem:[#allocation36_spill] sm:$0xff] %v8975_v14  ;;  %v3314_v16 = vadd.f32 %v9953_v31, %v3289_v5  ;;  %v3103_v24 = vadd.f32 %v9956_v48, %v3064_v54  ;;  %v3146_v37 = vadd.f32 %v9957_v2, %v3105_v58  ;;  %v4215_v11 = vmul.f32 %v8754_v33, %v8955_v19  ;;  %v9959_v54 = vld [vmem:[#allocation47_spill] sm:$0xff]  ;;  %v9960_v31 = vld [vmem:[#allocation21_spill] sm:$0xff] }
 0x5a4   :  { %4117 = vrot.lane.b32.xlu1 %v4109_v63, %s4994_s4  ;;  %v4114_v32 = vsel %vm52_vm0, %v9954_v4, %v4113_v38  ;;  %v8999_v46 = vpop.permute.xlu0 %3626  ;;  %v9005_v12 = vmul.f32 %v8640_v13, %v8955_v19  ;;  %v3396_v63 = vadd.f32 %v8619_v42, %v3357_v43  ;;  %v4224_v28 = vrot.slane %v4212_v41, 5  ;;  %v9962_v14 = vld [vmem:[#allocation25_spill] sm:$0xff] }
 0x5a5   :  { %v3355_v38 = vadd.f32 %v9958_v30, %v3314_v16  ;;  %v4225_v49 = vrot.slane %v8981_v55, 5  ;;  %v3144_v58 = vadd.f32 %v9959_v54, %v3103_v24  ;;  %v3185_v4 = vadd.f32 %v9960_v31, %v3146_v37  ;;  %v9963_v24 = vld [vmem:[#allocation54_spill] sm:$0xff]  ;;  %v9964_v37 = vld [vmem:[#allocation61_spill] sm:$0xff] }
 0x5a6   :  { %v9009_v5 = vpop.permute.xlu1 %3585  ;;  %4195 = vrot.lane.b32.xlu0 %v4187_v51, %s4994_s4  ;;  %v9961_v26 = vrot.slane %v8851_v27, 4  ;;  %v4152_v2 = vrot.slane %v4137_v57, 4  ;;  %v3437_v42 = vadd.f32 %v8679_v20, %v3396_v63  ;;  %v4175_v41 = vmul.f32 %v8899_v53, %v8881_v1  ;;  %v9965_v63 = vld [vmem:[#allocation49_spill] sm:$0xff] }
 0x5a7   :  { %v3394_v16 = vadd.f32 %v9962_v14, %v3355_v38  ;;  %v9024_v43 = vstv %s8961_s14  ;;  %v3183_v51 = vadd.f32 %v9963_v24, %v3144_v58  ;;  %v3226_v27 = vadd.f32 %v9964_v37, %v3185_v4  ;;  %v9966_v58 = vld [vmem:[#allocation37_spill] sm:$0xff]  ;;  %v9969_v24 = vld [vmem:[#allocation63_spill] sm:$0xff] }
 0x5a8   :  { %v4148_v48 = vsel %vm52_vm0, %v9961_v26, %v4147_v8  ;;  %4121 = vrot.lane.b32.xlu1 %v4114_v32, %s4994_s4  ;;  %v9030_v30 = vpop.permute.xlu0 %3663  ;;  %v4229_v8 = vrot.slane %v4215_v11, 5  ;;  %v4230_v14 = vrot.slane %v9005_v12, 5  ;;  %v3476_v57 = vadd.f32 %v8740_v22, %v3437_v42 }
 0x5a9   :  { %v3435_v20 = vadd.f32 %v8650_v23, %v3394_v16  ;;  %v4226_v38 = vsel %vm1023_vm12, %v4224_v28, %v4225_v49  ;;  %v3224_v54 = vadd.f32 %v9965_v63, %v3183_v51  ;;  %v3265_v31 = vadd.f32 %v9966_v58, %v3226_v27  ;;  %v9055_v16 = vld [vmem:[#allocation4 + $0x40] sm:$0x3f] }
 0x5aa   :  { %v9035_v32 = vpop.permute.xlu1 %3589  ;;  %4199 = vrot.lane.b32.xlu0 %v4192_v3, %s4994_s4  ;;  %v4253_v11 = vmul.f32 %v8549_v21, %v9024_v43  ;;  %v9047_v23 = vmul.f32 %v8905_v25, %v9024_v43  ;;  %v3517_v4 = vadd.f32 %v8801_v35, %v3476_v57  ;;  %v9967_v28 = vrot.slane %v8878_v45, 4  ;;  %v9968_v21 = vld [vmem:[#allocation23_spill] sm:$0xff] }
 0x5ab   :  { %v3474_v22 = vadd.f32 %v8709_v59, %v3435_v20  ;;  %v4178_v3 = vmul.f32 %v9055_v16, %v8881_v1  ;;  %v3263_v42 = vadd.f32 %v9968_v21, %v3224_v54  ;;  %v3292_v25 = vadd.f32 %v9969_v24, %v3265_v31  ;;  %v9970_v27 = vld [vmem:[#allocation51_spill] sm:$0xff] }
 0x5ac   :  { %4156 = vrot.lane.b32.xlu1 %v4148_v48, %s4994_s4  ;;  %v4153_v26 = vsel %vm52_vm0, %v9967_v28, %v4152_v2  ;;  %v3668_v51 = vpop.permute.xlu0 %3667  ;;  %v4231_v59 = vsel %vm1023_vm12, %v4229_v8, %v4230_v14  ;;  %v4188_v35 = vrot.slane %v4175_v41, 5  ;;  %v3556_v48 = vadd.f32 %v8865_v52, %v3517_v4  ;;  %v9971_v57 = vld [vmem:[#allocation39_spill] sm:$0xff] }
 0x5ad   :  { %v3515_v45 = vadd.f32 %v8773_v36, %v3474_v22  ;;  %v4256_v1 = vmul.f32 %v8699_v50, %v9024_v43  ;;  %v9072_v37 = vmul.f32 %v8932_v10, %v9024_v43  ;;  %v3290_v20 = vadd.f32 %v9970_v27, %v3263_v42  ;;  %v9972_v10 = vld [vmem:[#allocation24_spill] sm:$0xff] }
 0x5ae   :  { %v9066_v2 = vpop.permute.xlu1 %3624  ;;  %v3317_v63 = vadd.f32 %v9971_v57, %v3292_v25  ;;  %4234 = vrot.lane.b32.xlu0 %v4226_v38, %s4994_s4  ;;  %v4265_v41 = vrot.slane %v4253_v11, 6  ;;  %v4266_v36 = vrot.slane %v9047_v23, 6  ;;  %v3597_v8 = vadd.f32 %v8939_v6, %v3556_v48 }
 0x5af   :  { %v3554_v52 = vadd.f32 %v8835_v34, %v3515_v45  ;;  %v4193_v50 = vrot.slane %v4178_v3, 5  ;;  %v9082_v54 = vstv %s9026_s9  ;;  %v3315_v58 = vadd.f32 %v9972_v10, %v3290_v20 }
 0x5b0   :  { %4160 = vrot.lane.b32.xlu1 %v4153_v26, %s4994_s4  ;;  %v3358_v31 = vadd.f32 %v8661_v56, %v3317_v63  ;;  %v3703_v22 = vpop.permute.xlu0 %3702  ;;  %v9973_v4 = vrot.slane %v8909_v40, 5  ;;  %v4214_v11 = vmul.f32 %v8592_v44, %v8955_v19  ;;  %v3636_v6 = vadd.f32 %v8999_v46, %v3597_v8 }
 0x5b1   :  { %v3595_v34 = vadd.f32 %v8897_v47, %v3554_v52  ;;  %v4270_v26 = vrot.slane %v4256_v1, 6  ;;  %v4271_v3 = vrot.slane %v9072_v37, 6  ;;  %v3356_v21 = vadd.f32 %v8628_v18, %v3315_v58  ;;  %v9977_v58 = vld [vmem:[#allocation48_spill] sm:$0xff] }
 0x5b2   :  { %v4189_v38 = vsel %vm1023_vm12, %v9973_v4, %v4188_v35  ;;  %v3629_v28 = vpop.permute.xlu1 %3628  ;;  %v3397_v56 = vadd.f32 %v8720_v61, %v3358_v31  ;;  %4238 = vrot.lane.b32.xlu0 %v4231_v59, %s4994_s4  ;;  %v4292_v40 = vmul.f32 %v8604_v7, %v9082_v54  ;;  %v9101_v42 = vmul.f32 %v8733_v0, %v9082_v54  ;;  %v9978_v31 = vld [vmem:[#allocation36_spill] sm:$0xff] }
 0x5b3   :  { %v3634_v47 = vadd.f32 %v8965_v62, %v3595_v34  ;;  %v3677_v46 = vadd.f32 %v3668_v51, %v3636_v6  ;;  %v4267_v18 = vsel %vm1088_vm13, %v4265_v41, %v4266_v36  ;;  %v9974_v61 = vrot.slane %v8936_v60, 5 }
 0x5b4   :  { %4197 = vrot.lane.b32.xlu1 %v4189_v38, %s4994_s4  ;;  %v3395_v25 = vadd.f32 %v8688_v39, %v3356_v21  ;;  %v3438_v7 = vadd.f32 %v8783_v15, %v3397_v56  ;;  %v3707_v59 = vpop.permute.xlu0 %3706  ;;  %v4227_v0 = vrot.slane %v4214_v11, 5  ;;  %v4217_v62 = vmul.f32 %v8853_v29, %v8955_v19  ;;  %v9979_v11 = vld [vmem:[#allocation65_spill] sm:$0xff] }
 0x5b5   :  { %v4194_v24 = vsel %vm1023_vm12, %v9974_v61, %v4193_v50  ;;  %v3675_v51 = vadd.f32 %v9030_v30, %v3634_v47  ;;  %v3716_v35 = vadd.f32 %v3707_v59, %v3677_v46  ;;  %v4272_v48 = vsel %vm1088_vm13, %v4270_v26, %v4271_v3 }
 0x5b6   :  { %v3666_v45 = vpop.permute.xlu1 %3665  ;;  %v3436_v60 = vadd.f32 %v8749_v17, %v3395_v25  ;;  %v3477_v1 = vadd.f32 %v8843_v9, %v3438_v7  ;;  %4275 = vrot.lane.b32.xlu0 %v4267_v18, %s4994_s4  ;;  %v4304_v39 = vrot.slane %v4292_v40, 6  ;;  %v4305_v15 = vrot.slane %v9101_v42, 6  ;;  %v9975_v17 = vld [vmem:[#allocation58_spill] sm:$0xff]  ;;  %v9976_v9 = vld [vmem:[#allocation53_spill] sm:$0xff] }
 0x5b7   :  { %v3714_v27 = vadd.f32 %v3703_v22, %v3675_v51  ;;  %v4295_v19 = vmul.f32 %v8754_v33, %v9082_v54  ;;  %v4296_v30 = vmul.f32 %v8640_v13, %v9082_v54  ;;  %v4255_v20 = vmul.f32 %v8899_v53, %v9024_v43 }
 0x5b8   :  { %4201 = vrot.lane.b32.xlu1 %v4194_v24, %s4994_s4  ;;  %v3475_v57 = vadd.f32 %v9975_v17, %v3436_v60  ;;  %v3518_v63 = vadd.f32 %v9976_v9, %v3477_v1  ;;  %v3744_v41 = vpop.permute.xlu0 %3743  ;;  %v4228_v52 = vsel %vm1023_vm12, %v4225_v49, %v4227_v0  ;;  %v4232_v8 = vrot.slane %v4217_v62, 5 }
 0x5b9   :  { %v3755_v50 = vadd.f32 %v3744_v41, %v3714_v27  ;;  %v4306_v13 = vsel %vm1088_vm13, %v4304_v39, %v4305_v15  ;;  %v4309_v53 = vrot.slane %v4295_v19, 6  ;;  %v4310_v4 = vrot.slane %v4296_v30, 6 }
 0x5ba   :  { %v3670_v10 = vpop.permute.xlu1 %3669  ;;  %v3516_v33 = vadd.f32 %v9977_v58, %v3475_v57  ;;  %v3557_v22 = vadd.f32 %v9978_v31, %v3518_v63  ;;  %4279 = vrot.lane.b32.xlu0 %v4272_v48, %s4994_s4  ;;  %v4268_v38 = vrot.slane %v4255_v20, 6  ;;  %v4233_v6 = vsel %vm1023_vm12, %v4230_v14, %v4232_v8 }
 0x5bb   :  { %v4258_v26 = vmul.f32 %v9055_v16, %v9024_v43  ;;  %v4311_v47 = vsel %vm1088_vm13, %v4309_v53, %v4310_v4  ;;  %v4294_v16 = vmul.f32 %v8592_v44, %v9082_v54  ;;  %v4297_v25 = vmul.f32 %v8853_v29, %v9082_v54 }
 0x5bc   :  { %4236 = vrot.lane.b32.xlu1 %v4228_v52, %s4994_s4  ;;  %v3555_v55 = vadd.f32 %v9979_v11, %v3516_v33  ;;  %v3598_v49 = vadd.f32 %v9035_v32, %v3557_v22  ;;  %v3748_v34 = vpop.permute.xlu0 %3747  ;;  %v4269_v12 = vsel %vm1088_vm13, %v4266_v36, %v4268_v38 }
 0x5bd   :  { %v3757_v21 = vadd.f32 %v3748_v34, %v3716_v35  ;;  %v4273_v43 = vrot.slane %v4258_v26, 6  ;;  %v4307_v36 = vrot.slane %v4294_v16, 6  ;;  %v4312_v51 = vrot.slane %v4297_v25, 6 }
 0x5be   :  { %v3705_v56 = vpop.permute.xlu1 %3704  ;;  %v3596_v40 = vadd.f32 %v9009_v5, %v3555_v55  ;;  %v3637_v42 = vadd.f32 %v3629_v28, %v3598_v49  ;;  %4314 = vrot.lane.b32.xlu0 %v4306_v13, %s4994_s4 }
 0x5bf   :  { %v4308_v62 = vsel %vm1088_vm13, %v4305_v15, %v4307_v36 }
 0x5c0   :  { %4240 = vrot.lane.b32.xlu1 %v4233_v6, %s4994_s4  ;;  %v3635_v14 = vadd.f32 %v9066_v2, %v3596_v40  ;;  %v3678_v32 = vadd.f32 %v3670_v10, %v3637_v42  ;;  %v3783_v46 = vpop.permute.xlu0 %3782  ;;  %v4274_v2 = vsel %vm1088_vm13, %v4271_v3, %v4273_v43  ;;  %v4313_v3 = vsel %vm1088_vm13, %v4310_v4, %v4312_v51 }
 0x5c1   :  { %v3794_v5 = vadd.f32 %v3783_v46, %v3755_v50 }
 0x5c2   :  { %v3709_v28 = vpop.permute.xlu1 %3708  ;;  %v3676_v18 = vadd.f32 %v3666_v45, %v3635_v14  ;;  %4318 = vrot.lane.b32.xlu0 %v4311_v47, %s4994_s4 }
 0x5c3   :  { %v3717_v61 = vadd.f32 %v3709_v28, %v3678_v32 }
 0x5c4   :  { %4277 = vrot.lane.b32.xlu1 %v4269_v12, %s4994_s4  ;;  %v3715_v24 = vadd.f32 %v3705_v56, %v3676_v18  ;;  %v3787_v23 = vpop.permute.xlu0 %3786 }
 0x5c5   :  { %v3796_v7 = vadd.f32 %v3787_v23, %v3757_v21 }
 0x5c6   :  { %v3746_v44 = vpop.permute.xlu1 %3745 }
 0x5c7   :  { %v3756_v59 = vadd.f32 %v3746_v44, %v3715_v24 }
 0x5c8   :  { %4281 = vrot.lane.b32.xlu1 %v4274_v2, %s4994_s4  ;;  %v3810_v0 = vpop.permute.xlu0 %3809 }
 0x5c9   :  { %v3821_v35 = vadd.f32 %v3810_v0, %v3794_v5 }
 0x5ca   :  { %v3750_v45 = vpop.permute.xlu1 %3749 }
 0x5cb   :  { %v3758_v48 = vadd.f32 %v3750_v45, %v3717_v61 }
 0x5cc   :  { %4316 = vrot.lane.b32.xlu1 %v4308_v62, %s4994_s4  ;;  %v3814_v37 = vpop.permute.xlu0 %3813 }
 0x5cd   :  { %v3823_v60 = vadd.f32 %v3814_v37, %v3796_v7 }
 0x5ce   :  { %v3785_v1 = vpop.permute.xlu1 %3784 }
 0x5cf   :  { %v3795_v29 = vadd.f32 %v3785_v1, %v3756_v59 }
 0x5d0   :  { %4320 = vrot.lane.b32.xlu1 %v4313_v3, %s4994_s4  ;;  %v3835_v54 = vpop.permute.xlu0 %3834 }
 0x5d1   :  { %v3846_v39 = vadd.f32 %v3835_v54, %v3821_v35 }
 0x5d2   :  { %v3789_v27 = vpop.permute.xlu1 %3788 }
 0x5d3   :  { %v3797_v19 = vadd.f32 %v3789_v27, %v3758_v48 }
 0x5d4   :  { %v3839_v30 = vpop.permute.xlu0 %3838 }
 0x5d5   :  { %v3848_v15 = vadd.f32 %v3839_v30, %v3823_v60 }
 0x5d6   :  { %v3812_v20 = vpop.permute.xlu1 %3811 }
 0x5d7   :  { %v3822_v17 = vadd.f32 %v3812_v20, %v3795_v29 }
 0x5d8   :  { %v3876_v57 = vpop.permute.xlu0 %3875 }
 0x5d9   :  { %v3887_v9 = vadd.f32 %v3876_v57, %v3846_v39 }
 0x5da   :  { %v3816_v63 = vpop.permute.xlu1 %3815 }
 0x5db   :  { %v3824_v41 = vadd.f32 %v3816_v63, %v3797_v19 }
 0x5dc   :  { %v3880_v52 = vpop.permute.xlu0 %3879 }
 0x5dd   :  { %v3889_v8 = vadd.f32 %v3880_v52, %v3848_v15 }
 0x5de   :  { %v3837_v50 = vpop.permute.xlu1 %3836 }
 0x5df   :  { %v3847_v10 = vadd.f32 %v3837_v50, %v3822_v17 }
 0x5e0   :  { %v3915_v58 = vpop.permute.xlu0 %3914 }
 0x5e1   :  { %v3926_v7 = vadd.f32 %v3915_v58, %v3887_v9 }
 0x5e2   :  { %v3841_v33 = vpop.permute.xlu1 %3840 }
 0x5e3   :  { %v3849_v31 = vadd.f32 %v3841_v33, %v3824_v41 }
 0x5e4   :  { %v3919_v22 = vpop.permute.xlu0 %3918 }
 0x5e5   :  { %v3928_v62 = vadd.f32 %v3919_v22, %v3889_v8 }
 0x5e6   :  { %v3878_v13 = vpop.permute.xlu1 %3877 }
 0x5e7   :  { %v3888_v53 = vadd.f32 %v3878_v13, %v3847_v10 }
 0x5e8   :  { %v3956_v4 = vpop.permute.xlu0 %3955 }
 0x5e9   :  { %v3967_v59 = vadd.f32 %v3956_v4, %v3926_v7 }
 0x5ea   :  { %v3882_v38 = vpop.permute.xlu1 %3881 }
 0x5eb   :  { %v3890_v11 = vadd.f32 %v3882_v38, %v3849_v31 }
 0x5ec   :  { %v3960_v55 = vpop.permute.xlu0 %3959 }
 0x5ed   :  { %v3969_v45 = vadd.f32 %v3960_v55, %v3928_v62 }
 0x5ee   :  { %v3917_v49 = vpop.permute.xlu1 %3916 }
 0x5ef   :  { %v3927_v15 = vadd.f32 %v3917_v49, %v3888_v53 }
 0x5f0   :  { %v3995_v34 = vpop.permute.xlu0 %3994 }
 0x5f1   :  { %v4006_v51 = vadd.f32 %v3995_v34, %v3967_v59 }
 0x5f2   :  { %v3921_v6 = vpop.permute.xlu1 %3920 }
 0x5f3   :  { %v3929_v8 = vadd.f32 %v3921_v6, %v3890_v11 }
 0x5f4   :  { %v3999_v26 = vpop.permute.xlu0 %3998 }
 0x5f5   :  { %v4008_v3 = vadd.f32 %v3999_v26, %v3969_v45 }
 0x5f6   :  { %v3958_v21 = vpop.permute.xlu1 %3957 }
 0x5f7   :  { %v3968_v57 = vadd.f32 %v3958_v21, %v3927_v15 }
 0x5f8   :  { %v4036_v56 = vpop.permute.xlu0 %4035 }
 0x5f9   :  { %v4047_v48 = vadd.f32 %v4036_v56, %v4006_v51 }
 0x5fa   :  { %v3962_v40 = vpop.permute.xlu1 %3961 }
 0x5fb   :  { %v3970_v33 = vadd.f32 %v3962_v40, %v3929_v8 }
 0x5fc   :  { %v4040_v42 = vpop.permute.xlu0 %4039 }
 0x5fd   :  { %v4049_v29 = vadd.f32 %v4040_v42, %v4008_v3  ;;  %v9983_v3 = vld [vmem:[#allocation14_spill] sm:$0xff] }
 0x5fe   :  { %v3997_v47 = vpop.permute.xlu1 %3996 }
 0x5ff   :  { %v4007_v50 = vadd.f32 %v3997_v47, %v3968_v57 }
 0x600   :  { %v4075_v12 = vpop.permute.xlu0 %4074 }
 0x601   :  { %v4086_v60 = vadd.f32 %v4075_v12, %v4047_v48 }
 0x602   :  { %v4001_v14 = vpop.permute.xlu1 %4000 }
 0x603   :  { %v4009_v55 = vadd.f32 %v4001_v14, %v3970_v33 }
 0x604   :  { %v4079_v32 = vpop.permute.xlu0 %4078 }
 0x605   :  { %v4088_v27 = vadd.f32 %v4079_v32, %v4049_v29 }
 0x606   :  { %v4038_v46 = vpop.permute.xlu1 %4037 }
 0x607   :  { %v4048_v31 = vadd.f32 %v4038_v46, %v4007_v50 }
 0x608   :  { %v4116_v43 = vpop.permute.xlu0 %4115 }
 0x609   :  { %v4127_v54 = vadd.f32 %v4116_v43, %v4086_v60 }
 0x60a   :  { %v4042_v16 = vpop.permute.xlu1 %4041 }
 0x60b   :  { %v4050_v26 = vadd.f32 %v4042_v16, %v4009_v55 }
 0x60c   :  { %v4120_v5 = vpop.permute.xlu0 %4119 }
 0x60d   :  { %v4129_v20 = vadd.f32 %v4120_v5, %v4088_v27 }
 0x60e   :  { %v4077_v28 = vpop.permute.xlu1 %4076 }
 0x60f   :  { %v4087_v34 = vadd.f32 %v4077_v28, %v4048_v31 }
 0x610   :  { %v4155_v18 = vpop.permute.xlu0 %4154 }
 0x611   :  { %v4166_v19 = vadd.f32 %v4155_v18, %v4127_v54 }
 0x612   :  { %v4081_v61 = vpop.permute.xlu1 %4080 }
 0x613   :  { %v4089_v11 = vadd.f32 %v4081_v61, %v4050_v26 }
 0x614   :  { %v4159_v24 = vpop.permute.xlu0 %4158 }
 0x615   :  { %v4168_v63 = vadd.f32 %v4159_v24, %v4129_v20 }
 0x616   :  { %v4118_v23 = vpop.permute.xlu1 %4117 }
 0x617   :  { %v4128_v21 = vadd.f32 %v4118_v23, %v4087_v34 }
 0x618   :  { %v4196_v2 = vpop.permute.xlu0 %4195 }
 0x619   :  { %v4207_v17 = vadd.f32 %v4196_v2, %v4166_v19 }
 0x61a   :  { %v4122_v36 = vpop.permute.xlu1 %4121 }
 0x61b   :  { %v4130_v32 = vadd.f32 %v4122_v36, %v4089_v11 }
 0x61c   :  { %v4200_v25 = vpop.permute.xlu0 %4199 }
 0x61d   :  { %v4209_v10 = vadd.f32 %v4200_v25, %v4168_v63 }
 0x61e   :  { %v4157_v44 = vpop.permute.xlu1 %4156 }
 0x61f   :  { %v4167_v6 = vadd.f32 %v4157_v44, %v4128_v21 }
 0x620   :  { %v4235_v0 = vpop.permute.xlu0 %4234 }
 0x621   :  { %v4246_v41 = vadd.f32 %v4235_v0, %v4207_v17 }
 0x622   :  { %v4161_v35 = vpop.permute.xlu1 %4160 }
 0x623   :  { %v4169_v43 = vadd.f32 %v4161_v35, %v4130_v32  ;;  %v9980_v35 = vlaneseq }
 0x624   :  { %v4239_v37 = vpop.permute.xlu0 %4238 }
 0x625   :  { %v4248_v13 = vadd.f32 %v4239_v37, %v4209_v10  ;;  %vm9170_vm14 = vcmp.lt.s32.totalorder %v9980_v35, 16  ;;  %vm4412_vm15 = vcmp.ge.s32.totalorder %v9980_v35, 16  ;;  %vm4413_vm0 = vcmp.lt.s32.totalorder %v9980_v35, 32 }
 0x626   :  { %v4198_v1 = vpop.permute.xlu1 %4197  ;;  %vm4414_vm1 = vmand %vm4412_vm15, %vm4413_vm0  ;;  %vm4425_vm2 = vcmp.ge.s32.totalorder %v9980_v35, 32  ;;  %vm4426_vm3 = vcmp.lt.s32.totalorder %v9980_v35, 48  ;;  %vm4438_vm5 = vcmp.ge.s32.totalorder %v9980_v35, 48  ;;  %vm4439_vm6 = vcmp.lt.s32.totalorder %v9980_v35, 64 }
 0x627   :  { %v4208_v40 = vadd.f32 %v4198_v1, %v4167_v6  ;;  %vm4427_vm4 = vmand %vm4425_vm2, %vm4426_vm3  ;;  %vm4479_vm8 = vcmp.ge.s32.totalorder %v9980_v35, 64  ;;  %vm4480_vm9 = vcmp.lt.s32.totalorder %v9980_v35, 80  ;;  %vm4506_vm11 = vcmp.ge.s32.totalorder %v9980_v35, 80 }
 0x628   :  { %v4276_v39 = vpop.permute.xlu0 %4275  ;;  %vm4440_vm7 = vmand %vm4438_vm5, %vm4439_vm6  ;;  %vm4507_vm12 = vcmp.lt.s32.totalorder %v9980_v35, 96  ;;  %vm4520_vm15 = vcmp.lt.s32.totalorder %v9980_v35, 112  ;;  %vm4533_vm2 = vcmp.lt.s32.totalorder %v9980_v35, 128 }
 0x629   :  { %v4287_v58 = vadd.f32 %v4276_v39, %v4246_v41  ;;  %vm4481_vm10 = vmand %vm4479_vm8, %vm4480_vm9 }
 0x62a   :  { %v4202_v30 = vpop.permute.xlu1 %4201  ;;  %vm4508_vm13 = vmand %vm4506_vm11, %vm4507_vm12 }
 0x62b   :  { %v4210_v18 = vadd.f32 %v4202_v30, %v4169_v43 }
 0x62c   :  { %v4280_v9 = vpop.permute.xlu0 %4279 }
 0x62d   :  { %v4289_v53 = vadd.f32 %v4280_v9, %v4248_v13 }
 0x62e   :  { %v4237_v52 = vpop.permute.xlu1 %4236 }
 0x62f   :  { %v4247_v5 = vadd.f32 %v4237_v52, %v4208_v40 }
 0x630   :  { %v4315_v22 = vpop.permute.xlu0 %4314 }
 0x631   :  { %v4326_v4 = vadd.f32 %v4315_v22, %v4287_v58 }
 0x632   :  { %v4241_v38 = vpop.permute.xlu1 %4240 }
 0x633   :  { %v4811_v49 = vmul.f32 -1.442695, %v4326_v4  ;;  %v4249_v24 = vadd.f32 %v4241_v38, %v4210_v18 }
 0x634   :  { %v4319_v56 = vpop.permute.xlu0 %4318 }
 0x635   :  { %4848 = vpow2.f32 %v4811_v49  ;;  %v4328_v42 = vadd.f32 %v4319_v56, %v4289_v53 }
 0x636   :  { %v4278_v12 = vpop.permute.xlu1 %4277 }
 0x637   :  { %v4813_v47 = vmul.f32 -1.442695, %v4328_v42  ;;  %v4288_v14 = vadd.f32 %v4278_v12, %v4247_v5 }
 0x639   :  { %4850 = vpow2.f32 %v4813_v47 }
 0x63a   :  { %v4282_v46 = vpop.permute.xlu1 %4281 }
 0x63b   :  { %v4290_v16 = vadd.f32 %v4282_v46, %v4249_v24 }
 0x63e   :  { %v4317_v28 = vpop.permute.xlu1 %4316 }
 0x63f   :  { %v4327_v2 = vadd.f32 %v4317_v28, %v4288_v14 }
 0x641   :  { %v4812_v23 = vmul.f32 -1.442695, %v4327_v2 }
 0x642   :  { %v4321_v25 = vpop.permute.xlu1 %4320  ;;  %v4849_v7 = vpop.eup %4848 }
 0x643   :  { %4852 = vpow2.f32 %v4812_v23  ;;  %v4329_v59 = vadd.f32 %v4321_v25, %v4290_v16  ;;  %v4342_v61 = vadd.f32 1.0, %v4849_v7 }
 0x645   :  { %v4814_v44 = vmul.f32 -1.442695, %v4329_v59  ;;  %4854 = vrcp.f32 %v4342_v61 }
 0x646   :  { %v4851_v36 = vpop.eup %4850 }
 0x647   :  { %4856 = vpow2.f32 %v4814_v44  ;;  %v4344_v0 = vadd.f32 1.0, %v4851_v36 }
 0x649   :  { %4858 = vrcp.f32 %v4344_v0 }
 0x650   :  { %v4853_v62 = vpop.eup %4852 }
 0x651   :  { %v4343_v51 = vadd.f32 1.0, %v4853_v62 }
 0x652   :  { %v4855_v48 = vpop.eup %4854 }
 0x653   :  { %4860 = vrcp.f32 %v4343_v51  ;;  %v4368_v60 = vrot.slane %v4855_v48, %v9983_v3  ;;  %4358 = vst.msk [vmem:[#allocation10] sm:$0x1] %vm9170_vm14, %v4855_v48  ;;  %v4443_v13 = vcombine.high %v4855_v48, %v4855_v48 }
 0x654   :  { %v4857_v37 = vpop.eup %4856 }
 0x655   :  { %v4345_v1 = vadd.f32 1.0, %v4857_v37  ;;  %v4369_v29 = vcombine.high %v4368_v60, %v4368_v60  ;;  %v4376_v63 = vrot.slane %v4368_v60, %v9983_v3  ;;  %v4450_v55 = vrot.slane %v4443_v13, %v9983_v3 }
 0x656   :  { %v4859_v54 = vpop.eup %4858 }
 0x657   :  { %4862 = vrcp.f32 %v4345_v1  ;;  %v4383_v39 = vrot.slane %v4369_v29, %v9983_v3  ;;  %v4390_v27 = vrot.slane %v4859_v54, %v9983_v3  ;;  %4359 = vst.msk [vmem:[#allocation10 + $0x2] sm:$0x1] %vm9170_vm14, %v4859_v54  ;;  %v4417_v8 = vcombine.high %v4376_v63, %v4376_v63 }
 0x658   :  { %v4458_v26 = vcombine.high %v4859_v54, %v4859_v54  ;;  %v4457_v21 = vrot.slane %v4450_v55, %v9983_v3  ;;  %v4484_v32 = vcombine.high %v4450_v55, %v4450_v55 }
 0x659   :  { %4406 = vrot.lane.b32.xlu0 %v4383_v39, %s4988_s3  ;;  %v4391_v19 = vcombine.high %v4390_v27, %v4390_v27  ;;  %v4398_v58 = vrot.slane %v4390_v27, %v9983_v3  ;;  %v4430_v4 = vcombine.high %v4383_v39, %v4383_v39 }
 0x65a   :  { %v4465_v12 = vrot.slane %v4458_v26, %v9983_v3  ;;  %v4491_v46 = vrot.slane %v4484_v32, %v9983_v3  ;;  %v4511_v2 = vcombine.high %v4457_v21, %v4457_v21 }
 0x65b   :  { %v4405_v30 = vrot.slane %v4391_v19, %v9983_v3  ;;  %v4418_v31 = vcombine.high %v4398_v58, %v4398_v58 }
 0x65c   :  { %v4472_v47 = vrot.slane %v4465_v12, %v9983_v3  ;;  %v4492_v18 = vcombine.high %v4465_v12, %v4465_v12  ;;  %v4524_v7 = vcombine.high %v4491_v46, %v4491_v46 }
 0x65d   :  { %4408 = vrot.lane.b32.xlu1 %v4405_v30, %s4988_s3  ;;  %v4431_v53 = vcombine.high %v4405_v30, %v4405_v30 }
 0x65e   :  { %v4499_v28 = vrot.slane %v4492_v18, %v9983_v3  ;;  %v4512_v25 = vcombine.high %v4472_v47, %v4472_v47 }
 0x660   :  { %v4861_v15 = vpop.eup %4860  ;;  %v4525_v44 = vcombine.high %v4499_v28, %v4499_v28 }
 0x661   :  { %v4547_v20 = vrot.slane %v4861_v15, %v9983_v3  ;;  %4537 = vst.msk [vmem:[#allocation10 + $0x1] sm:$0x1] %vm9170_vm14, %v4861_v15  ;;  %v4613_v49 = vcombine.high %v4861_v15, %v4861_v15 }
 0x663   :  { %v4548_v17 = vcombine.high %v4547_v20, %v4547_v20  ;;  %v4555_v10 = vrot.slane %v4547_v20, %v9983_v3  ;;  %v4620_v42 = vrot.slane %v4613_v49, %v9983_v3 }
 0x664   :  { %v4863_v57 = vpop.eup %4862 }
 0x665   :  { %v4562_v9 = vrot.slane %v4548_v17, %v9983_v3  ;;  %v4569_v41 = vrot.slane %v4863_v57, %v9983_v3  ;;  %4538 = vst.msk [vmem:[#allocation10 + $0x3] sm:$0x1] %vm9170_vm14, %v4863_v57  ;;  %v4593_v33 = vcombine.high %v4555_v10, %v4555_v10  ;;  %v4628_v11 = vcombine.high %v4863_v57, %v4863_v57 }
 0x666   :  { %v4627_v6 = vrot.slane %v4620_v42, %v9983_v3  ;;  %v4651_v5 = vcombine.high %v4620_v42, %v4620_v42  ;;  %vm4519_vm14 = vcmp.ge.s32.totalorder %v9980_v35, 96 }
 0x667   :  { %4585 = vrot.lane.b32.xlu0 %v4562_v9, %s4988_s3  ;;  %v4570_v52 = vcombine.high %v4569_v41, %v4569_v41  ;;  %v4577_v22 = vrot.slane %v4569_v41, %v9983_v3  ;;  %v4603_v34 = vcombine.high %v4562_v9, %v4562_v9  ;;  %v4635_v40 = vrot.slane %v4628_v11, %v9983_v3  ;;  %vm4521_vm0 = vmand %vm4519_vm14, %vm4520_vm15 }
 0x668   :  { %v4658_v14 = vrot.slane %v4651_v5, %v9983_v3  ;;  %v4675_v23 = vcombine.high %v4627_v6, %v4627_v6 }
 0x669   :  { %v4584_v50 = vrot.slane %v4570_v52, %v9983_v3  ;;  %v4594_v38 = vcombine.high %v4577_v22, %v4577_v22  ;;  %v4642_v43 = vrot.slane %v4635_v40, %v9983_v3  ;;  %v4659_v24 = vcombine.high %v4635_v40, %v4635_v40 }
 0x66a   :  { %v4685_v61 = vcombine.high %v4658_v14, %v4658_v14 }
 0x66b   :  { %4419 = vrot.lane.b32.xlu0 %v4417_v8, %s4987_s30  ;;  %4587 = vrot.lane.b32.xlu1 %v4584_v50, %s4988_s3  ;;  %v4604_v56 = vcombine.high %v4584_v50, %v4584_v50  ;;  %v4666_v16 = vrot.slane %v4659_v24, %v9983_v3  ;;  %v4676_v59 = vcombine.high %v4642_v43, %v4642_v43 }
 0x66d   :  { %v4686_v36 = vcombine.high %v4666_v16, %v4666_v16 }
 0x66f   :  { %4595 = vrot.lane.b32.xlu0 %v4593_v33, %s4987_s30  ;;  %4421 = vrot.lane.b32.xlu1 %v4418_v31, %s4987_s30 }
 0x673   :  { %4432 = vrot.lane.b32.xlu0 %v4430_v4, %s4986_s29  ;;  %4597 = vrot.lane.b32.xlu1 %v4594_v38, %s4987_s30 }
 0x677   :  { %4605 = vrot.lane.b32.xlu0 %v4603_v34, %s4986_s29  ;;  %4434 = vrot.lane.b32.xlu1 %v4431_v53, %s4986_s29 }
 0x67b   :  { %4473 = vrot.lane.b32.xlu0 %v4457_v21, %s4985_s28  ;;  %4607 = vrot.lane.b32.xlu1 %v4604_v56, %s4986_s29 }
 0x67f   :  { %4643 = vrot.lane.b32.xlu0 %v4627_v6, %s4985_s28  ;;  %4475 = vrot.lane.b32.xlu1 %v4472_v47, %s4985_s28 }
 0x683   :  { %4500 = vrot.lane.b32.xlu0 %v4491_v46, %s4984_s27  ;;  %4645 = vrot.lane.b32.xlu1 %v4642_v43, %s4985_s28 }
 0x687   :  { %4667 = vrot.lane.b32.xlu0 %v4658_v14, %s4984_s27  ;;  %4502 = vrot.lane.b32.xlu1 %v4499_v28, %s4984_s27 }
 0x68b   :  { %4513 = vrot.lane.b32.xlu0 %v4511_v2, %s4983_s26  ;;  %4669 = vrot.lane.b32.xlu1 %v4666_v16, %s4984_s27 }
 0x68f   :  { %4677 = vrot.lane.b32.xlu0 %v4675_v23, %s4983_s26  ;;  %4515 = vrot.lane.b32.xlu1 %v4512_v25, %s4983_s26 }
 0x693   :  { %4526 = vrot.lane.b32.xlu0 %v4524_v7, %s4982_s25  ;;  %4679 = vrot.lane.b32.xlu1 %v4676_v59, %s4983_s26 }
 0x697   :  { %4687 = vrot.lane.b32.xlu0 %v4685_v61, %s4982_s25  ;;  %4528 = vrot.lane.b32.xlu1 %v4525_v44, %s4982_s25 }
 0x69b   :  { %4689 = vrot.lane.b32.xlu1 %v4686_v36, %s4982_s25  ;;  %s4995_s25 = smov [#allocation10]  }
 0x69c   :  { %s4700_s26 = sshll.u32 %s4995_s25, 4  ;;  %s4701_s26 = int_to_ptr.vmem [resolvable:$true] %s4700_s26 }
 0x69d   :  { %s4940_s27 = scalar_lea.vmem %s4701_s26, 64  ;;  %p4945_p6 = scmp.lt.s32.totalorder %s4701_s26, %s4701_s26 }
 0x69e   :  { %p4941_p5 = scmp.ne.s32.totalorder %s4701_s26, %s4940_s27  ;;  %p4946_p7 = scmp.lt.s32.totalorder %s4940_s27, %s4940_s27 }
 0x6a0   :  { %p4947_p8 = por %p4946_p7, %p4945_p6 }
 0x6a2   :  { %p4948_p9 = pnand %p4947_p8, %p4941_p5 }
 0x6cb   :  { %v4407_v0 = vpop.permute.xlu0 %4406 }
 0x6cc   :  { %4415 = vst.msk [vmem:[#allocation10] sm:$0x1] %vm4414_vm1, %v4407_v0 }
 0x6cf   :  { %v4409_v62 = vpop.permute.xlu1 %4408 }
 0x6d0   :  { %4416 = vst.msk [vmem:[#allocation10 + $0x2] sm:$0x1] %vm4414_vm1, %v4409_v62 }
 0x6d9   :  { %v4586_v51 = vpop.permute.xlu0 %4585 }
 0x6da   :  { %4591 = vst.msk [vmem:[#allocation10 + $0x1] sm:$0x1] %vm4414_vm1, %v4586_v51 }
 0x6dd   :  { %v4588_v45 = vpop.permute.xlu1 %4587  ;;  %v4420_v48 = vpop.permute.xlu0 %4419 }
 0x6de   :  { %4592 = vst.msk [vmem:[#allocation10 + $0x3] sm:$0x1] %vm4414_vm1, %v4588_v45  ;;  %vm4532_vm1 = vcmp.ge.s32.totalorder %v9980_v35, 112 }
 0x6df   :  { %4428 = vst.msk [vmem:[#allocation10] sm:$0x1] %vm4427_vm4, %v4420_v48  ;;  %vm4534_vm3 = vmand %vm4532_vm1, %vm4533_vm2 }
 0x6e1   :  { %v4422_v37 = vpop.permute.xlu1 %4421  ;;  %v4596_v3 = vpop.permute.xlu0 %4595 }
 0x6e2   :  { %4429 = vst.msk [vmem:[#allocation10 + $0x2] sm:$0x1] %vm4427_vm4, %v4422_v37  ;;  %4601 = vst.msk [vmem:[#allocation10 + $0x1] sm:$0x1] %vm4427_vm4, %v4596_v3 }
 0x6e5   :  { %v4598_v60 = vpop.permute.xlu1 %4597  ;;  %v4433_v1 = vpop.permute.xlu0 %4432 }
 0x6e6   :  { %4602 = vst.msk [vmem:[#allocation10 + $0x3] sm:$0x1] %vm4427_vm4, %v4598_v60 }
 0x6e7   :  { %4441 = vst.msk [vmem:[#allocation10] sm:$0x1] %vm4440_vm7, %v4433_v1 }
 0x6e9   :  { %v4435_v29 = vpop.permute.xlu1 %4434  ;;  %v4606_v54 = vpop.permute.xlu0 %4605 }
 0x6ea   :  { %4442 = vst.msk [vmem:[#allocation10 + $0x2] sm:$0x1] %vm4440_vm7, %v4435_v29  ;;  %4611 = vst.msk [vmem:[#allocation10 + $0x1] sm:$0x1] %vm4440_vm7, %v4606_v54 }
 0x6ed   :  { %v4608_v39 = vpop.permute.xlu1 %4607  ;;  %v4474_v27 = vpop.permute.xlu0 %4473 }
 0x6ee   :  { %4612 = vst.msk [vmem:[#allocation10 + $0x3] sm:$0x1] %vm4440_vm7, %v4608_v39 }
 0x6ef   :  { %4482 = vst.msk [vmem:[#allocation10] sm:$0x1] %vm4481_vm10, %v4474_v27 }
 0x6f1   :  { %v4476_v19 = vpop.permute.xlu1 %4475  ;;  %v4644_v30 = vpop.permute.xlu0 %4643 }
 0x6f2   :  { %4483 = vst.msk [vmem:[#allocation10 + $0x2] sm:$0x1] %vm4481_vm10, %v4476_v19  ;;  %4649 = vst.msk [vmem:[#allocation10 + $0x1] sm:$0x1] %vm4481_vm10, %v4644_v30 }
 0x6f5   :  { %v4646_v15 = vpop.permute.xlu1 %4645  ;;  %v4501_v20 = vpop.permute.xlu0 %4500 }
 0x6f6   :  { %4650 = vst.msk [vmem:[#allocation10 + $0x3] sm:$0x1] %vm4481_vm10, %v4646_v15 }
 0x6f7   :  { %4509 = vst.msk [vmem:[#allocation10] sm:$0x1] %vm4508_vm13, %v4501_v20 }
 0x6f9   :  { %v4503_v17 = vpop.permute.xlu1 %4502  ;;  %v4668_v57 = vpop.permute.xlu0 %4667 }
 0x6fa   :  { %4510 = vst.msk [vmem:[#allocation10 + $0x2] sm:$0x1] %vm4508_vm13, %v4503_v17  ;;  %4673 = vst.msk [vmem:[#allocation10 + $0x1] sm:$0x1] %vm4508_vm13, %v4668_v57 }
 0x6fd   :  { %v4670_v9 = vpop.permute.xlu1 %4669  ;;  %v4514_v63 = vpop.permute.xlu0 %4513 }
 0x6fe   :  { %4674 = vst.msk [vmem:[#allocation10 + $0x3] sm:$0x1] %vm4508_vm13, %v4670_v9 }
 0x6ff   :  { %4522 = vst.msk [vmem:[#allocation10] sm:$0x1] %vm4521_vm0, %v4514_v63 }
 0x701   :  { %v4516_v41 = vpop.permute.xlu1 %4515  ;;  %v4678_v52 = vpop.permute.xlu0 %4677 }
 0x702   :  { %4523 = vst.msk [vmem:[#allocation10 + $0x2] sm:$0x1] %vm4521_vm0, %v4516_v41  ;;  %4683 = vst.msk [vmem:[#allocation10 + $0x1] sm:$0x1] %vm4521_vm0, %v4678_v52 }
 0x705   :  { %v4680_v8 = vpop.permute.xlu1 %4679  ;;  %v4527_v50 = vpop.permute.xlu0 %4526 }
 0x706   :  { %4684 = vst.msk [vmem:[#allocation10 + $0x3] sm:$0x1] %vm4521_vm0, %v4680_v8 }
 0x707   :  { %4535 = vst.msk [vmem:[#allocation10] sm:$0x1] %vm4534_vm3, %v4527_v50 }
 0x709   :  { %v4529_v10 = vpop.permute.xlu1 %4528  ;;  %v4688_v58 = vpop.permute.xlu0 %4687 }
 0x70a   :  { %4536 = vst.msk [vmem:[#allocation10 + $0x2] sm:$0x1] %vm4534_vm3, %v4529_v10  ;;  %4693 = vst.msk [vmem:[#allocation10 + $0x1] sm:$0x1] %vm4534_vm3, %v4688_v58 }
 0x70d   :  { %v4690_v33 = vpop.permute.xlu1 %4689 }
 0x70e   :  { %4694 = vst.msk [vmem:[#allocation10 + $0x3] sm:$0x1] %vm4534_vm3, %v4690_v33 }
 0x70f   :  { %4951 = shalt.err (!%p4948_p9)
}
 0x710   :  { %s4996_s28 = smov 2  }
 0x711   :  { %4706 = dma.vmem_to_hbm [thread:$0]  %s4701_s26, 64, %s9255_s2, [#allocation7], %s4987_s30, %s4987_s30, %s4996_s28  }
 0x712   :  { %4964 = dma.done.wait [#allocation7], 64  }
 0x713   :  { %4965 = vsyncadd [#allocation7], 4294967232 }
 0x714   :  { %4710 = vsyncpa [#allocation6], 1 }
 0x715   :  { %4711 = vsyncpa [#allocation7], 1 }
 0x716   :  { %4712 = vsyncpa [#allocation8], 1 }

</bundles_post_ra>
